<compile_context>
chip_gen: v5e
topology: v5e:2x2
jax: 0.10.0
libtpu: 0.0.40
codegen_flags: <defaults>
</compile_context>

<pallas_src>
import math
from fractions import Fraction

import numpy as np
import jax
import jax.numpy as jnp
from jax.experimental import pallas as pl
from jax.experimental.pallas import tpu as pltpu


# ----------------------------------------------------------------------------
# e3nn-compatible real Wigner 3j symbols (Frobenius norm 1), plain NumPy.
# ----------------------------------------------------------------------------
def _su2_cg(j1, m1, j2, m2, j3, m3):
    if m3 != m1 + m2:
        return 0.0
    vmin = int(max(-j1 + j2 + m3, -j1 + m1, 0))
    vmax = int(min(j2 + j3 + m1, j3 - j1 + j2, j3 + m3))

    def f(n):
        assert n == round(n)
        return math.factorial(round(n))

    C = ((2.0 * j3 + 1.0) * Fraction(
        f(j3 + j1 - j2) * f(j3 - j1 + j2) * f(j1 + j2 - j3) * f(j3 + m3) * f(j3 - m3),
        f(j1 + j2 + j3 + 1) * f(j1 - m1) * f(j1 + m1) * f(j2 - m2) * f(j2 + m2),
    )) ** 0.5
    S = 0
    for v in range(vmin, vmax + 1):
        S += (-1) ** int(v + j2 + m2) * Fraction(
            f(j2 + j3 + m1 - v) * f(j1 - m1 + v),
            f(v) * f(j3 - j1 + j2 - v) * f(j3 + m3 - v) * f(v + j1 - j2 - m3),
        )
    return float(C * S)


def _su2_clebsch_gordan(j1, j2, j3):
    mat = np.zeros((2 * j1 + 1, 2 * j2 + 1, 2 * j3 + 1), dtype=np.float64)
    for m1 in range(-j1, j1 + 1):
        for m2 in range(-j2, j2 + 1):
            m3 = m1 + m2
            if abs(m3) <= j3:
                mat[j1 + m1, j2 + m2, j3 + m3] = _su2_cg(j1, m1, j2, m2, j3, m3)
    return mat


def _change_basis_real_to_complex(l):
    q = np.zeros((2 * l + 1, 2 * l + 1), dtype=np.complex128)
    for m in range(-l, 0):
        q[l + m, l + abs(m)] = 1 / 2 ** 0.5
        q[l + m, l - abs(m)] = -1j / 2 ** 0.5
    q[l, l] = 1
    for m in range(1, l + 1):
        q[l + m, l + abs(m)] = (-1) ** m / 2 ** 0.5
        q[l + m, l - abs(m)] = 1j * (-1) ** m / 2 ** 0.5
    return (-1j) ** l * q


def wigner_3j(l1, l2, l3):
    Q1 = _change_basis_real_to_complex(l1)
    Q2 = _change_basis_real_to_complex(l2)
    Q3 = _change_basis_real_to_complex(l3)
    C = _su2_clebsch_gordan(l1, l2, l3).astype(np.complex128)
    C = np.einsum("ij,kl,mn,ikn->jlm", Q1, Q2, np.conj(Q3.T), C)
    assert np.max(np.abs(C.imag)) < 1e-8
    C = C.real
    return C / np.linalg.norm(C)


# ----------------------------------------------------------------------------
# Irreps configuration and FullyConnectedTensorProduct "plan" (built once).
# ----------------------------------------------------------------------------
IN1_IRREPS = [(4, 0, 1), (4, 1, -1)]              # 4x0e + 4x1o
IN2_IRREPS = [(1, 0, 1), (1, 1, -1), (1, 2, 1)]   # 1x0e + 1x1o + 1x2e
OUT_IRREPS = [(4, 0, 1), (4, 1, -1)]              # 4x0e + 4x1o


def _offsets_and_dim(irreps):
    offs, d = [], 0
    for mul, l, _ in irreps:
        offs.append(d)
        d += mul * (2 * l + 1)
    return offs, d


def build_tp_plan():
    off1, dim1 = _offsets_and_dim(IN1_IRREPS)
    off2, dim2 = _offsets_and_dim(IN2_IRREPS)
    offo, dimo = _offsets_and_dim(OUT_IRREPS)

    # e3nn FullyConnectedTensorProduct instruction enumeration order ('uvw' paths).
    instructions = []
    for i1, (m1, l1, p1) in enumerate(IN1_IRREPS):
        for i2, (m2, l2, p2) in enumerate(IN2_IRREPS):
            for io, (mo, lo, po) in enumerate(OUT_IRREPS):
                if p1 * p2 == po and abs(l1 - l2) <= lo <= l1 + l2:
                    instructions.append((i1, i2, io))

    woffs, wnum = [], 0
    for (i1, i2, io) in instructions:
        woffs.append(wnum)
        wnum += IN1_IRREPS[i1][0] * IN2_IRREPS[i2][0] * OUT_IRREPS[io][0]

    # path normalization: irrep_normalization='component', path_normalization='element'
    fan_in = {}
    for (i1, i2, io) in instructions:
        fan_in[io] = fan_in.get(io, 0) + IN1_IRREPS[i1][0] * IN2_IRREPS[i2][0]

    terms = []      # flat sparse plan: (c_out_col, pq_weight_col, a_in1_col, b_in2_col, coeff)
    ins_meta = []   # per-instruction metadata for the plain-JAX reference
    for n, (i1, i2, io) in enumerate(instructions):
        mul1, l1, _ = IN1_IRREPS[i1]
        mul2, l2, _ = IN2_IRREPS[i2]
        mulo, lo, _ = OUT_IRREPS[io]
        d1, d2, do = 2 * l1 + 1, 2 * l2 + 1, 2 * lo + 1
        C = wigner_3j(l1, l2, lo)
        pw = math.sqrt((2 * lo + 1) / fan_in[io])
        woff = woffs[n]
        ins_meta.append(dict(off1=off1[i1], off2=off2[i2], offo=offo[io], woff=woff,
                             mul1=mul1, mul2=mul2, mulo=mulo, d1=d1, d2=d2, do=do,
                             C=C, pw=pw))
        nz = np.argwhere(np.abs(C) > 1e-12)
        for u in range(mul1):
            for v in range(mul2):
                for w in range(mulo):
                    pq = woff + (u * mul2 + v) * mulo + w
                    for (i, j, k) in nz:
                        a = off1[i1] + u * d1 + int(i)
                        b = off2[i2] + v * d2 + int(j)
                        c = offo[io] + w * do + int(k)
                        terms.append((c, pq, a, b, float(pw * C[i, j, k])))

    # ---- Kernel-layout static matrices (review: single MXU coefficient reduction) ----
    # Each unique (pq, a, b) triple becomes one column j of the weighted-pair slab
    #   Z[e, j] = wt[e, pq_j] * x1[e, a_j] * sh[e, b_j]
    # and the static CG coefficients (incl. path weights) live in CoeffT[j, c].
    tri_index, pq_idx, a_idx, b_idx = {}, [], [], []
    for (c, pq, a, b, coeff) in terms:
        key = (pq, a, b)
        if key not in tri_index:
            tri_index[key] = len(pq_idx)
            pq_idx.append(pq); a_idx.append(a); b_idx.append(b)
    K = len(pq_idx)
    Kpad = -(-K // 128) * 128                      # lane-dense / MXU-friendly K

    coeff_t = np.zeros((Kpad, dimo), dtype=np.float32)
    for (c, pq, a, b, coeff) in terms:
        coeff_t[tri_index[(pq, a, b)], c] += coeff

    xsel_t = np.zeros((dim1, Kpad), dtype=np.float32)   # x1 (E,16) @ xsel_t -> (E,Kpad)
    ssel_t = np.zeros((dim2, Kpad), dtype=np.float32)   # sh (E, 9) @ ssel_t -> (E,Kpad)
    for j in range(K):
        xsel_t[a_idx[j], j] = 1.0
        ssel_t[b_idx[j], j] = 1.0

    return dict(terms=terms, instructions=ins_meta,
                dim1=dim1, dim2=dim2, dimo=dimo, weight_numel=wnum,
                K=K, Kpad=Kpad, pq_idx=np.asarray(pq_idx, np.int64),
                xsel_t=xsel_t, ssel_t=ssel_t, coeff_t=coeff_t)


def prepare_tp_params(plan, params):
    """One-time repack of fc params into the kernel layout (done OUTSIDE the forward).

    Folds fc layer 2 together with the (pq -> Z column) selection so the (80, E) `wt`
    intermediate never materializes in the kernel.
    """
    W1, b1, W2, b2 = (np.asarray(p, np.float32) for p in params)
    K, Kpad, pq = plan['K'], plan['Kpad'], plan['pq_idx']
    nf = W2.shape[1]
    w2e_t = np.zeros((nf, Kpad), np.float32)
    b2e = np.zeros((1, Kpad), np.float32)
    w2e_t[:, :K] = W2[pq].T
    b2e[0, :K] = b2[pq]
    return dict(
        w1_t=jnp.asarray(W1.T),                               # (8, 8)
        b1=jnp.asarray(b1.reshape(1, -1)),                    # (1, 8)
        w2e_t=jnp.asarray(w2e_t),                             # (8, Kpad)
        b2e=jnp.asarray(b2e),                                 # (1, Kpad)
        xsel_t=jnp.asarray(plan['xsel_t']),                   # (16, Kpad)
        ssel_t=jnp.asarray(plan['ssel_t']),                   # (9, Kpad)
        coeff_t=jnp.asarray(plan['coeff_t']),                 # (Kpad, 16)
    )


# ----------------------------------------------------------------------------
# Pallas kernel: fused per-edge weight MLP + weighted tensor product (messages).
# Natural edge-major layout: blocks are (EDGE_TILE, features).
# ----------------------------------------------------------------------------
def tp_message_kernel(x1_ref, sh_ref, ea_ref, w1t_ref, b1_ref, w2e_ref, b2e_ref,
                      xsel_ref, ssel_ref, coefft_ref, out_ref):
    f32 = jnp.float32

    # fc layer 1 + Softplus (numerically stable, matches torch.nn.Softplus).
    h = jnp.dot(ea_ref[...], w1t_ref[...], preferred_element_type=f32) + b1_ref[...]
    h = jnp.maximum(h, 0.0) + jnp.log(1.0 + jnp.exp(-jnp.abs(h)))                 # (TE, 8)

    # Expanded per-edge weights for every Z column: fc layer 2 fused with the weight
    # selection, so no (80, TE) wt round-trip (MXU matmul, K = 8).
    wte = jnp.dot(h, w2e_ref[...], preferred_element_type=f32) + b2e_ref[...]     # (TE, Kpad)
    # Expanded in1 / sh operands for every Z column (0/1 selection matmuls on the MXU).
    x1e = jnp.dot(x1_ref[...], xsel_ref[...], preferred_element_type=f32)         # (TE, Kpad)
    she = jnp.dot(sh_ref[...], ssel_ref[...], preferred_element_type=f32)         # (TE, Kpad)

    # Weighted pair products: two dense, lane-dense elementwise multiplies on the VPU.
    z = wte * x1e * she                                                           # (TE, Kpad)

    # Static Clebsch-Gordan reduction as ONE MXU matmul, then one dense (TE, 16) store.
    out_ref[...] = jnp.dot(z, coefft_ref[...],
                           preferred_element_type=f32).astype(out_ref.dtype)


# ----------------------------------------------------------------------------
# Forward wrapper: gather -> Pallas messages -> scatter-mean -> residual.
# ----------------------------------------------------------------------------
def tp_conv_forward(kparams, plan, node_attr, edge_index, edge_attr, edge_sh,
                    out_nodes=None, reduce='mean', residual=True, edge_tile=1024):
    edge_src, edge_dst = edge_index[0], edge_index[1]
    E = int(edge_src.shape[0])
    n_nodes = node_attr.shape[0] if out_nodes is None else out_nodes
    in_dim, sh_dim, out_dim = plan['dim1'], plan['dim2'], plan['dimo']

    # Natural (edge-major) layout: no wrapper-side transposes.  The gather below is the only
    # edge-sized materialization outside the kernel.
    x1 = jnp.take(node_attr.astype(jnp.float32), edge_dst, axis=0)     # (E, in_dim)
    sh = edge_sh.astype(jnp.float32)                                   # (E, sh_dim)
    ea = edge_attr.astype(jnp.float32)                                 # (E, n_edge)
    n_fe = ea.shape[1]

    # Edge tile: large default (sweep 1024-2048), multiple of 128, clamped so the "parallel"
    # grid has >= 2 steps whenever possible (both v7x TensorCores get work).
    te = edge_tile
    if E <= 2 * edge_tile:
        te = max(128, ((E + 2 * 128 - 1) // (2 * 128)) * 128)
    te = min(te, edge_tile)
    e_pad = ((E + te - 1) // te) * te
    if e_pad != E:
        pad = e_pad - E
        x1 = jnp.pad(x1, ((0, pad), (0, 0)))     # zero rows -> exactly-zero messages
        sh = jnp.pad(sh, ((0, pad), (0, 0)))
        ea = jnp.pad(ea, ((0, pad), (0, 0)))

    def resident(arr):        # small params: same block every grid step
        return pl.BlockSpec(arr.shape, lambda i: (0, 0))

    msgs = pl.pallas_call(
        tp_message_kernel,
        out_shape=jax.ShapeDtypeStruct((e_pad, out_dim), jnp.float32),
        grid_spec=pltpu.PrefetchScalarGridSpec(
            num_scalar_prefetch=0,
            grid=(e_pad // te,),
            in_specs=[
                pl.BlockSpec((te, in_dim), lambda i: (i, 0)),   # gathered node features
                pl.BlockSpec((te, sh_dim), lambda i: (i, 0)),   # edge spherical harmonics
                pl.BlockSpec((te, n_fe), lambda i: (i, 0)),     # edge scalar features
                resident(kparams['w1_t']),
                resident(kparams['b1']),
                resident(kparams['w2e_t']),
                resident(kparams['b2e']),
                resident(kparams['xsel_t']),
                resident(kparams['ssel_t']),
                resident(kparams['coeff_t']),
            ],
            out_specs=pl.BlockSpec((te, out_dim), lambda i: (i, 0)),
        ),
        compiler_params=pltpu.CompilerParams(dimension_semantics=("parallel",)),
    )(x1, sh, ea, kparams['w1_t'], kparams['b1'], kparams['w2e_t'], kparams['b2e'],
      kparams['xsel_t'], kparams['ssel_t'], kparams['coeff_t'])

    msgs = msgs[:E]                                                     # (E, out_dim)

    # scatter(reduce='mean') over edge_src (data-dependent -> XLA glue).
    seg = jax.ops.segment_sum(msgs, edge_src, num_segments=n_nodes)
    if reduce == 'mean':
        cnt = jax.ops.segment_sum(jnp.ones((E,), jnp.float32), edge_src, num_segments=n_nodes)
        seg = seg / jnp.maximum(cnt, 1.0)[:, None]

    if residual:
        pad_w = out_dim - node_attr.shape[1]
        seg = seg + jnp.pad(node_attr.astype(jnp.float32), ((0, 0), (0, pad_w)))
    return seg


# ----------------------------------------------------------------------------
# Pure-JAX reference (einsum over the CG tensors) for validation.
# ----------------------------------------------------------------------------
def reference_forward(params, plan, node_attr, edge_index, edge_attr, edge_sh,
                      out_nodes=None, reduce='mean', residual=True):
    hi = jax.lax.Precision.HIGHEST
    W1, b1, W2, b2 = params
    edge_src, edge_dst = edge_index[0], edge_index[1]
    E = edge_src.shape[0]
    n_nodes = node_attr.shape[0] if out_nodes is None else out_nodes

    x1 = node_attr[edge_dst].astype(jnp.float32)
    h = jax.nn.softplus(jnp.dot(edge_attr, W1.T, precision=hi) + b1)
    wt = jnp.dot(h, W2.T, precision=hi) + b2

    msgs = jnp.zeros((E, plan['dimo']), jnp.float32)
    for m in plan['instructions']:
        x1b = x1[:, m['off1']:m['off1'] + m['mul1'] * m['d1']].reshape(E, m['mul1'], m['d1'])
        x2b = edge_sh[:, m['off2']:m['off2'] + m['mul2'] * m['d2']].reshape(E, m['mul2'], m['d2'])
        wb = wt[:, m['woff']:m['woff'] + m['mul1'] * m['mul2'] * m['mulo']]
        wb = wb.reshape(E, m['mul1'], m['mul2'], m['mulo'])
        C = jnp.asarray(m['C'], jnp.float32)
        tmp = jnp.einsum('eui,evj,ijk,euvw->ewk', x1b, x2b, C, wb, precision=hi)
        msgs = msgs.at[:, m['offo']:m['offo'] + m['mulo'] * m['do']].add(
            m['pw'] * tmp.reshape(E, m['mulo'] * m['do']))

    seg = jax.ops.segment_sum(msgs, edge_src, num_segments=n_nodes)
    if reduce == 'mean':
        cnt = jax.ops.segment_sum(jnp.ones((E,), jnp.float32), edge_src, num_segments=n_nodes)
        seg = seg / jnp.maximum(cnt, 1.0)[:, None]
    if residual:
        seg = seg + jnp.pad(node_attr.astype(jnp.float32),
                            ((0, 0), (0, plan['dimo'] - node_attr.shape[1])))
    return seg


if __name__ == "__main__":
    key = jax.random.PRNGKey(0)
    k1, k2, k3, k4, k5, k6, k7, k8 = jax.random.split(key, 8)

    plan = build_tp_plan()
    in_dim, sh_dim, out_dim, wnum = plan['dim1'], plan['dim2'], plan['dimo'], plan['weight_numel']
    n_edge_features = 8
    num_nodes, num_edges = 16, 1024    # tile clamps to 512 -> 2 "parallel" grid steps (v7x 2 TCs)

    node_attr = jax.random.normal(k1, (num_nodes, in_dim), dtype=jnp.float32)
    edge_index = jax.random.randint(k2, (2, num_edges), 0, num_nodes)
    edge_attr = jax.random.normal(k3, (num_edges, n_edge_features), dtype=jnp.float32)
    edge_sh = jax.random.normal(k4, (num_edges, sh_dim), dtype=jnp.float32)

    # fc parameters (natural PyTorch layout), repacked once into the kernel layout below.
    s1 = 1.0 / math.sqrt(n_edge_features)
    W1 = jax.random.uniform(k5, (n_edge_features, n_edge_features), jnp.float32, -s1, s1)
    b1 = jax.random.uniform(k6, (n_edge_features,), jnp.float32, -s1, s1)
    W2 = jax.random.uniform(k7, (wnum, n_edge_features), jnp.float32, -s1, s1)
    b2 = jax.random.uniform(k8, (wnum,), jnp.float32, -s1, s1)
    params = (W1, b1, W2, b2)

    kparams = prepare_tp_params(plan, params)      # one-time repack, outside the forward

    out = tp_conv_forward(kparams, plan, node_attr, edge_index, edge_attr, edge_sh)
    jax.block_until_ready(out)

    ref = reference_forward(params, plan, node_attr, edge_index, edge_attr, edge_sh)
    assert out.shape == (num_nodes, out_dim)
    np.testing.assert_allclose(np.asarray(out), np.asarray(ref), rtol=5e-4, atol=5e-4)

    print("KERNEL_OK")
</pallas_src>

<mosaic_0001>
module attributes {stable_mosaic.version = 11 : i64} {
  func.func @tp_message_kernel(%arg0: i32, %arg1: memref<512x16xf32, #tpu.memory_space<vmem>>, %arg2: memref<512x9xf32, #tpu.memory_space<vmem>>, %arg3: memref<512x8xf32, #tpu.memory_space<vmem>>, %arg4: memref<8x8xf32, #tpu.memory_space<vmem>>, %arg5: memref<1x8xf32, #tpu.memory_space<vmem>>, %arg6: memref<8x384xf32, #tpu.memory_space<vmem>>, %arg7: memref<1x384xf32, #tpu.memory_space<vmem>>, %arg8: memref<16x384xf32, #tpu.memory_space<vmem>>, %arg9: memref<9x384xf32, #tpu.memory_space<vmem>>, %arg10: memref<384x16xf32, #tpu.memory_space<vmem>>, %arg11: memref<512x16xf32, #tpu.memory_space<vmem>>) attributes {dimension_semantics = [#tpu.dimension_semantics<parallel>], iteration_bounds = array<i64: 2>, scalar_prefetch = 0 : i64, scratch_operands = 0 : i64, tpu.core_type = #tpu.core_type<tc>, window_params = [{transform_indices = @transform_0, window_bounds = array<i64: 512, 16>}, {transform_indices = @transform_1, window_bounds = array<i64: 512, 9>}, {transform_indices = @transform_2, window_bounds = array<i64: 512, 8>}, {pipeline_mode = #tpu.pipeline_mode<synchronous>, transform_indices = @transform_3, window_bounds = array<i64: 8, 8>}, {pipeline_mode = #tpu.pipeline_mode<synchronous>, transform_indices = @transform_4, window_bounds = array<i64: 1, 8>}, {pipeline_mode = #tpu.pipeline_mode<synchronous>, transform_indices = @transform_5, window_bounds = array<i64: 8, 384>}, {pipeline_mode = #tpu.pipeline_mode<synchronous>, transform_indices = @transform_6, window_bounds = array<i64: 1, 384>}, {pipeline_mode = #tpu.pipeline_mode<synchronous>, transform_indices = @transform_7, window_bounds = array<i64: 16, 384>}, {pipeline_mode = #tpu.pipeline_mode<synchronous>, transform_indices = @transform_8, window_bounds = array<i64: 9, 384>}, {pipeline_mode = #tpu.pipeline_mode<synchronous>, transform_indices = @transform_9, window_bounds = array<i64: 384, 16>}, {transform_indices = @transform_10, window_bounds = array<i64: 512, 16>}]} {
    %c0 = arith.constant 0 : index
    %c0_0 = arith.constant 0 : index
    %0 = vector.load %arg3[%c0, %c0_0] : memref<512x8xf32, #tpu.memory_space<vmem>>, vector<512x8xf32>
    %c0_1 = arith.constant 0 : index
    %c0_2 = arith.constant 0 : index
    %1 = vector.load %arg4[%c0_1, %c0_2] : memref<8x8xf32, #tpu.memory_space<vmem>>, vector<8x8xf32>
    %cst = arith.constant dense<0.000000e+00> : vector<512x8xf32>
    %2 = tpu.matmul %0, %1, %cst {dimension_numbers = #tpu.dot_dimension_numbers<[1], [0], [0], [1], [0, 0, 1, 1], [], []>} : vector<512x8xf32>, vector<8x8xf32>, vector<512x8xf32> -> vector<512x8xf32>
    %c0_3 = arith.constant 0 : index
    %c0_4 = arith.constant 0 : index
    %3 = vector.load %arg5[%c0_3, %c0_4] : memref<1x8xf32, #tpu.memory_space<vmem>>, vector<1x8xf32>
    %4 = vector.broadcast %3 : vector<1x8xf32> to vector<512x8xf32>
    %5 = arith.addf %2, %4 : vector<512x8xf32>
    %cst_5 = arith.constant 0.000000e+00 : f32
    %6 = vector.broadcast %cst_5 : f32 to vector<512x8xf32>
    %7 = arith.maximumf %5, %6 : vector<512x8xf32>
    %8 = math.absf %5 : vector<512x8xf32>
    %cst_6 = arith.constant 0.000000e+00 : f32
    %9 = vector.broadcast %cst_6 : f32 to vector<512x8xf32>
    %10 = arith.subf %9, %8 : vector<512x8xf32>
    %11 = math.exp %10 : vector<512x8xf32>
    %cst_7 = arith.constant 1.000000e+00 : f32
    %12 = vector.broadcast %cst_7 : f32 to vector<512x8xf32>
    %13 = arith.addf %12, %11 : vector<512x8xf32>
    %14 = math.log %13 : vector<512x8xf32>
    %15 = arith.addf %7, %14 : vector<512x8xf32>
    %c0_8 = arith.constant 0 : index
    %c0_9 = arith.constant 0 : index
    %16 = vector.load %arg6[%c0_8, %c0_9] : memref<8x384xf32, #tpu.memory_space<vmem>>, vector<8x384xf32>
    %cst_10 = arith.constant dense<0.000000e+00> : vector<512x384xf32>
    %17 = tpu.matmul %15, %16, %cst_10 {dimension_numbers = #tpu.dot_dimension_numbers<[1], [0], [0], [1], [0, 0, 1, 1], [], []>} : vector<512x8xf32>, vector<8x384xf32>, vector<512x384xf32> -> vector<512x384xf32>
    %c0_11 = arith.constant 0 : index
    %c0_12 = arith.constant 0 : index
    %18 = vector.load %arg7[%c0_11, %c0_12] : memref<1x384xf32, #tpu.memory_space<vmem>>, vector<1x384xf32>
    %19 = vector.broadcast %18 : vector<1x384xf32> to vector<512x384xf32>
    %20 = arith.addf %17, %19 : vector<512x384xf32>
    %c0_13 = arith.constant 0 : index
    %c0_14 = arith.constant 0 : index
    %21 = vector.load %arg1[%c0_13, %c0_14] : memref<512x16xf32, #tpu.memory_space<vmem>>, vector<512x16xf32>
    %c0_15 = arith.constant 0 : index
    %c0_16 = arith.constant 0 : index
    %22 = vector.load %arg8[%c0_15, %c0_16] : memref<16x384xf32, #tpu.memory_space<vmem>>, vector<16x384xf32>
    %cst_17 = arith.constant dense<0.000000e+00> : vector<512x384xf32>
    %23 = tpu.matmul %21, %22, %cst_17 {dimension_numbers = #tpu.dot_dimension_numbers<[1], [0], [0], [1], [0, 0, 1, 1], [], []>} : vector<512x16xf32>, vector<16x384xf32>, vector<512x384xf32> -> vector<512x384xf32>
    %c0_18 = arith.constant 0 : index
    %c0_19 = arith.constant 0 : index
    %24 = vector.load %arg2[%c0_18, %c0_19] : memref<512x9xf32, #tpu.memory_space<vmem>>, vector<512x9xf32>
    %c0_20 = arith.constant 0 : index
    %c0_21 = arith.constant 0 : index
    %25 = vector.load %arg9[%c0_20, %c0_21] : memref<9x384xf32, #tpu.memory_space<vmem>>, vector<9x384xf32>
    %cst_22 = arith.constant dense<0.000000e+00> : vector<512x384xf32>
    %26 = tpu.matmul %24, %25, %cst_22 {dimension_numbers = #tpu.dot_dimension_numbers<[1], [0], [0], [1], [0, 0, 1, 1], [], []>} : vector<512x9xf32>, vector<9x384xf32>, vector<512x384xf32> -> vector<512x384xf32>
    %27 = arith.mulf %20, %23 : vector<512x384xf32>
    %28 = arith.mulf %27, %26 : vector<512x384xf32>
    %c0_23 = arith.constant 0 : index
    %c0_24 = arith.constant 0 : index
    %29 = vector.load %arg10[%c0_23, %c0_24] : memref<384x16xf32, #tpu.memory_space<vmem>>, vector<384x16xf32>
    %cst_25 = arith.constant dense<0.000000e+00> : vector<512x16xf32>
    %30 = tpu.matmul %28, %29, %cst_25 {dimension_numbers = #tpu.dot_dimension_numbers<[1], [0], [0], [1], [0, 0, 1, 1], [], []>} : vector<512x384xf32>, vector<384x16xf32>, vector<512x16xf32> -> vector<512x16xf32>
    %c0_26 = arith.constant 0 : index
    %c0_27 = arith.constant 0 : index
    %31 = vector.load %arg11[%c0_26, %c0_27] : memref<512x16xf32, #tpu.memory_space<vmem>>, vector<512x16xf32>
    tpu.vector_store %arg11[%c0_26, %c0_27], %30 {strides = array<i32>} : memref<512x16xf32, #tpu.memory_space<vmem>>, vector<512x16xf32>,
    return
  }
  func.func @transform_0(%arg0: i32) -> (i32, i32) {
    %c0_i32 = arith.constant 0 : i32
    %c0_i32_0 = arith.constant 0 : i32
    return %arg0, %c0_i32 : i32, i32
  }
  func.func @transform_1(%arg0: i32) -> (i32, i32) {
    %c0_i32 = arith.constant 0 : i32
    %c0_i32_0 = arith.constant 0 : i32
    return %arg0, %c0_i32 : i32, i32
  }
  func.func @transform_2(%arg0: i32) -> (i32, i32) {
    %c0_i32 = arith.constant 0 : i32
    %c0_i32_0 = arith.constant 0 : i32
    return %arg0, %c0_i32 : i32, i32
  }
  func.func @transform_3(%arg0: i32) -> (i32, i32) {
    %c0_i32 = arith.constant 0 : i32
    %c0_i32_0 = arith.constant 0 : i32
    %c0_i32_1 = arith.constant 0 : i32
    return %c0_i32, %c0_i32_0 : i32, i32
  }
  func.func @transform_4(%arg0: i32) -> (i32, i32) {
    %c0_i32 = arith.constant 0 : i32
    %c0_i32_0 = arith.constant 0 : i32
    %c0_i32_1 = arith.constant 0 : i32
    return %c0_i32, %c0_i32_0 : i32, i32
  }
  func.func @transform_5(%arg0: i32) -> (i32, i32) {
    %c0_i32 = arith.constant 0 : i32
    %c0_i32_0 = arith.constant 0 : i32
    %c0_i32_1 = arith.constant 0 : i32
    return %c0_i32, %c0_i32_0 : i32, i32
  }
  func.func @transform_6(%arg0: i32) -> (i32, i32) {
    %c0_i32 = arith.constant 0 : i32
    %c0_i32_0 = arith.constant 0 : i32
    %c0_i32_1 = arith.constant 0 : i32
    return %c0_i32, %c0_i32_0 : i32, i32
  }
  func.func @transform_7(%arg0: i32) -> (i32, i32) {
    %c0_i32 = arith.constant 0 : i32
    %c0_i32_0 = arith.constant 0 : i32
    %c0_i32_1 = arith.constant 0 : i32
    return %c0_i32, %c0_i32_0 : i32, i32
  }
  func.func @transform_8(%arg0: i32) -> (i32, i32) {
    %c0_i32 = arith.constant 0 : i32
    %c0_i32_0 = arith.constant 0 : i32
    %c0_i32_1 = arith.constant 0 : i32
    return %c0_i32, %c0_i32_0 : i32, i32
  }
  func.func @transform_9(%arg0: i32) -> (i32, i32) {
    %c0_i32 = arith.constant 0 : i32
    %c0_i32_0 = arith.constant 0 : i32
    %c0_i32_1 = arith.constant 0 : i32
    return %c0_i32, %c0_i32_0 : i32, i32
  }
  func.func @transform_10(%arg0: i32) -> (i32, i32) {
    %c0_i32 = arith.constant 0 : i32
    %c0_i32_0 = arith.constant 0 : i32
    return %arg0, %c0_i32 : i32, i32
  }
}

</mosaic_0001>

<bundles_post_ra>
// kernel: tpu_custom_call.1
= control target key start
LH: loop header
LB: loop body
LE: loop exit
PB: predicated region body
PF: predicated region fallthrough
CT: control target
= control target key end

     0   :  { %s6396_s13 = smov 0   ;;  %s10084_s0 = inlined_call_operand.vmem [shape: f32[1024,16], index: 0, kind: input, shape index: {}]   ;;  %s10085_s1 = inlined_call_operand.vmem [shape: f32[1024,9], index: 1, kind: input, shape index: {}]   ;;  %s10086_s2 = inlined_call_operand.vmem [shape: f32[1024,8], index: 2, kind: input, shape index: {}]   ;;  %s10087_s3 = inlined_call_operand.vmem [shape: f32[8,8], index: 3, kind: input, shape index: {}]   ;;  %s10088_s4 = inlined_call_operand.vmem [shape: f32[1,8], index: 4, kind: input, shape index: {}]   ;;  %s10089_s5 = inlined_call_operand.vmem [shape: f32[8,384], index: 5, kind: input, shape index: {}]   ;;  %s10090_s6 = inlined_call_operand.vmem [shape: f32[1,384], index: 6, kind: input, shape index: {}]   ;;  %s10091_s7 = inlined_call_operand.vmem [shape: f32[16,384], index: 7, kind: input, shape index: {}]   ;;  %s10092_s8 = inlined_call_operand.vmem [shape: f32[9,384], index: 8, kind: input, shape index: {}]   ;;  %s10093_s9 = inlined_call_operand.vmem [shape: f32[384,16], index: 9, kind: input, shape index: {}]   ;;  %s10094_s10 = inlined_call_operand.vmem [shape: f32[1024,16], index: 10, kind: output, shape index: {}]  }
   0x1 LB: > { %s5277_s14 = sadd.s32 4294967295, %s6339_s13   ;;  %p5281_p0 = scmp.ge.s32.totalorder %s6339_s13, 1  ;;  %s6339_s13 = sphi %s6396_s13, %s20_s13  }
   0x2   : > { %p335_p1 = scmp.lt.s32.totalorder %s6339_s13, 3 }
   0x4   : > { %p336_p2 = pnand %p5281_p0, %p335_p1 }
   0x6   : > { %339 = sbr.rel (%p336_p2) target bundleno = 1962 (0x7aa), region = 60 }
   0xb   : > { %v471_v0 = vld [vmem:[%s10087_s3] sm:$0xff]  ;;  %s5282_s17 = sshll.u32 %s5277_s14, 6  ;;  %vm476_vm0 = vcmask 64512   ;;  %vm2354_vm1 = vcmask 130048   ;;  %vm3437_vm2 = vcmask 1040384   ;;  %vm3244_vm3 = vcmask 72704  }
   0xc   : > { %v1454_v1 = vld [vmem:[%s10089_s5] sm:$0xff]  ;;  %684 = vmatpush.msra.mxu0 %v471_v0  ;;  %p384_p3 = scmp.lt.s32.totalorder %s5282_s17, 127  ;;  %5935 = vmatpush.msra.mxu1 %v471_v0 }
   0xd   : > { %5936 = vmatpush.msra.mxu2 %v471_v0  ;;  %5937 = vmatpush.msra.mxu3 %v471_v0 }
   0xe   : > { %s10858_s17 = smov (!%p384_p3, %s5282_s17), 127  ;;  %1672 = vmatpush.msrb.mxu1 %v1454_v1 }
   0xf   : > { %s6410_s20 = sshll.u32 %s10858_s17, 3 }
  0x10   : > { %s6416_s23 = scalar_lea.vmem %s10086_s2, %s6410_s20  ;;  %s6564_s15 = scalar_lea.vmem %s10084_s0, %s6410_s20 }
  0x11   : > { %v407_v2 = vld [vmem:[%s6416_s23] sm:$0xff]  ;;  %v408_v6 = vld [vmem:[%s6416_s23 + $0x8] sm:$0xff]  ;;  %v409_v10 = vld [vmem:[%s6416_s23 + $0x10] sm:$0xff]  ;;  %s7746_s26 = scalar_lea.vmem %s10085_s1, %s6410_s20  ;;  %s9524_s12 = scalar_lea.vmem %s10094_s10, %s6410_s20 }
  0x12   : > { %v423_v3 = vld [vmem:[%s6416_s23 + $0x80] sm:$0xff]  ;;  %5290 = vmatmul.msk.f32.vlgmr.msra.gmra.mxu0 %vm476_vm0, %v407_v2  ;;  %v424_v7 = vld [vmem:[%s6416_s23 + $0x88] sm:$0xff]  ;;  %v425_v11 = vld [vmem:[%s6416_s23 + $0x90] sm:$0xff] }
  0x13   : > { %5306 = vmatmul.msk.f32.vlgmr.msra.gmra.mxu1 %vm476_vm0, %v423_v3  ;;  %v439_v4 = vld [vmem:[%s6416_s23 + $0x100] sm:$0xff]  ;;  %v440_v8 = vld [vmem:[%s6416_s23 + $0x108] sm:$0xff]  ;;  %v441_v12 = vld [vmem:[%s6416_s23 + $0x110] sm:$0xff] }
  0x14   : > { %v455_v5 = vld [vmem:[%s6416_s23 + $0x180] sm:$0xff]  ;;  %5322 = vmatmul.msk.f32.vlgmr.msra.gmra.mxu2 %vm476_vm0, %v439_v4  ;;  %v456_v9 = vld [vmem:[%s6416_s23 + $0x188] sm:$0xff]  ;;  %v457_v13 = vld [vmem:[%s6416_s23 + $0x190] sm:$0xff] }
  0x15   : > { %5338 = vmatmul.msk.f32.vlgmr.msra.gmra.mxu3 %vm476_vm0, %v455_v5  ;;  %v410_v14 = vld [vmem:[%s6416_s23 + $0x18] sm:$0xff]  ;;  %v411_v18 = vld [vmem:[%s6416_s23 + $0x20] sm:$0xff]  ;;  %v412_v22 = vld [vmem:[%s6416_s23 + $0x28] sm:$0xff] }
  0x16   : > { %v426_v15 = vld [vmem:[%s6416_s23 + $0x98] sm:$0xff]  ;;  %v427_v19 = vld [vmem:[%s6416_s23 + $0xa0] sm:$0xff]  ;;  %v428_v23 = vld [vmem:[%s6416_s23 + $0xa8] sm:$0xff] }
  0x17   : > { %v442_v16 = vld [vmem:[%s6416_s23 + $0x118] sm:$0xff]  ;;  %v443_v20 = vld [vmem:[%s6416_s23 + $0x120] sm:$0xff]  ;;  %v444_v24 = vld [vmem:[%s6416_s23 + $0x128] sm:$0xff] }
  0x18   : > { %v458_v17 = vld [vmem:[%s6416_s23 + $0x198] sm:$0xff]  ;;  %v459_v21 = vld [vmem:[%s6416_s23 + $0x1a0] sm:$0xff]  ;;  %v460_v25 = vld [vmem:[%s6416_s23 + $0x1a8] sm:$0xff] }
  0x19   : > { %v413_v26 = vld [vmem:[%s6416_s23 + $0x30] sm:$0xff]  ;;  %v414_v30 = vld [vmem:[%s6416_s23 + $0x38] sm:$0xff]  ;;  %v415_v34 = vld [vmem:[%s6416_s23 + $0x40] sm:$0xff] }
  0x1a   : > { %5291 = vmatmul.msk.f32.gmra.mxu0 %vm476_vm0, %v408_v6  ;;  %v429_v27 = vld [vmem:[%s6416_s23 + $0xb0] sm:$0xff]  ;;  %v430_v31 = vld [vmem:[%s6416_s23 + $0xb8] sm:$0xff]  ;;  %v431_v35 = vld [vmem:[%s6416_s23 + $0xc0] sm:$0xff] }
  0x1b   : > { %5307 = vmatmul.msk.f32.gmra.mxu1 %vm476_vm0, %v424_v7  ;;  %v445_v28 = vld [vmem:[%s6416_s23 + $0x130] sm:$0xff]  ;;  %v446_v32 = vld [vmem:[%s6416_s23 + $0x138] sm:$0xff]  ;;  %v447_v36 = vld [vmem:[%s6416_s23 + $0x140] sm:$0xff] }
  0x1c   : > { %5323 = vmatmul.msk.f32.gmra.mxu2 %vm476_vm0, %v440_v8  ;;  %v461_v29 = vld [vmem:[%s6416_s23 + $0x1b0] sm:$0xff]  ;;  %v462_v33 = vld [vmem:[%s6416_s23 + $0x1b8] sm:$0xff]  ;;  %v463_v37 = vld [vmem:[%s6416_s23 + $0x1c0] sm:$0xff] }
  0x1d   : > { %5339 = vmatmul.msk.f32.gmra.mxu3 %vm476_vm0, %v456_v9  ;;  %v416_v38 = vld [vmem:[%s6416_s23 + $0x48] sm:$0xff]  ;;  %v417_v42 = vld [vmem:[%s6416_s23 + $0x50] sm:$0xff]  ;;  %v418_v46 = vld [vmem:[%s6416_s23 + $0x58] sm:$0xff] }
  0x1e   : > { %v432_v39 = vld [vmem:[%s6416_s23 + $0xc8] sm:$0xff]  ;;  %v433_v43 = vld [vmem:[%s6416_s23 + $0xd0] sm:$0xff]  ;;  %v434_v47 = vld [vmem:[%s6416_s23 + $0xd8] sm:$0xff] }
  0x1f   : > { %v448_v40 = vld [vmem:[%s6416_s23 + $0x148] sm:$0xff]  ;;  %v449_v44 = vld [vmem:[%s6416_s23 + $0x150] sm:$0xff]  ;;  %v450_v48 = vld [vmem:[%s6416_s23 + $0x158] sm:$0xff] }
  0x20   : > { %v464_v41 = vld [vmem:[%s6416_s23 + $0x1c8] sm:$0xff]  ;;  %v465_v45 = vld [vmem:[%s6416_s23 + $0x1d0] sm:$0xff]  ;;  %v466_v49 = vld [vmem:[%s6416_s23 + $0x1d8] sm:$0xff] }
  0x21   : > { %v419_v50 = vld [vmem:[%s6416_s23 + $0x60] sm:$0xff]  ;;  %v420_v54 = vld [vmem:[%s6416_s23 + $0x68] sm:$0xff]  ;;  %v421_v58 = vld [vmem:[%s6416_s23 + $0x70] sm:$0xff] }
  0x22   : > { %5292 = vmatmul.msk.f32.gmra.mxu0 %vm476_vm0, %v409_v10  ;;  %v435_v51 = vld [vmem:[%s6416_s23 + $0xe0] sm:$0xff]  ;;  %v436_v55 = vld [vmem:[%s6416_s23 + $0xe8] sm:$0xff]  ;;  %v437_v59 = vld [vmem:[%s6416_s23 + $0xf0] sm:$0xff] }
  0x23   : > { %5308 = vmatmul.msk.f32.gmra.mxu1 %vm476_vm0, %v425_v11  ;;  %v451_v52 = vld [vmem:[%s6416_s23 + $0x160] sm:$0xff]  ;;  %v452_v56 = vld [vmem:[%s6416_s23 + $0x168] sm:$0xff]  ;;  %v453_v60 = vld [vmem:[%s6416_s23 + $0x170] sm:$0xff] }
  0x24   : > { %5324 = vmatmul.msk.f32.gmra.mxu2 %vm476_vm0, %v441_v12  ;;  %v467_v53 = vld [vmem:[%s6416_s23 + $0x1e0] sm:$0xff]  ;;  %v468_v57 = vld [vmem:[%s6416_s23 + $0x1e8] sm:$0xff]  ;;  %v469_v61 = vld [vmem:[%s6416_s23 + $0x1f0] sm:$0xff] }
  0x25   : > { %5340 = vmatmul.msk.f32.gmra.mxu3 %vm476_vm0, %v457_v13  ;;  %v422_v62 = vld [vmem:[%s6416_s23 + $0x78] sm:$0xff]  ;;  %v1455_v2 = vld [vmem:[%s10089_s5 + $0x8] sm:$0xff]  ;;  %v1456_v3 = vld [vmem:[%s10089_s5 + $0x10] sm:$0xff] }
  0x26   : > { %v438_v63 = vld [vmem:[%s6416_s23 + $0xf8] sm:$0xff]  ;;  %1881 = vmatpush.msrb.mxu2 %v1455_v2  ;;  %2090 = vmatpush.msrb.mxu3 %v1456_v3  ;;  %v6553_v4 = vld [vmem:[%s10088_s4] ss:$0 sm:$0xff] }
  0x27   : > { %v454_v0 = vld [vmem:[%s6416_s23 + $0x178] sm:$0xff]  ;;  %v2348_v6 = vld [vmem:[%s10091_s7] sm:$0xff] }
  0x28   : > { %v470_v1 = vld [vmem:[%s6416_s23 + $0x1f8] sm:$0xff]  ;;  %v2284_v9 = vld [vmem:[%s6564_s15] sm:$0xff] }
  0x29   : > { %v2351_v5 = vld [vmem:[%s10091_s7 + $0x18] sm:$0xff] }
  0x2a   : > { %5293 = vmatmul.msk.f32.gmra.mxu0 %vm476_vm0, %v410_v14 }
  0x2b   : > { %5309 = vmatmul.msk.f32.gmra.mxu1 %vm476_vm0, %v426_v15  ;;  %2561 = vmatpush.msrb.mxu0 %v2351_v5 }
  0x2c   : > { %5325 = vmatmul.msk.f32.gmra.mxu2 %vm476_vm0, %v442_v16  ;;  %v2285_v16 = vld [vmem:[%s6564_s15 + $0x8] sm:$0xff] }
  0x2d   : > { %5341 = vmatmul.msk.f32.gmra.mxu3 %vm476_vm0, %v458_v17  ;;  %2562 = vmatpush.msrb.mxu0 %v2348_v6 }
  0x32   : > { %5294 = vmatmul.msk.f32.gmra.mxu0 %vm476_vm0, %v411_v18 }
  0x33   : > { %5310 = vmatmul.msk.f32.gmra.mxu1 %vm476_vm0, %v427_v19 }
  0x34   : > { %5326 = vmatmul.msk.f32.gmra.mxu2 %vm476_vm0, %v443_v20 }
  0x35   : > { %5342 = vmatmul.msk.f32.gmra.mxu3 %vm476_vm0, %v459_v21 }
  0x3a   : > { %5295 = vmatmul.msk.f32.gmra.mxu0 %vm476_vm0, %v412_v22 }
  0x3b   : > { %5311 = vmatmul.msk.f32.gmra.mxu1 %vm476_vm0, %v428_v23 }
  0x3c   : > { %5327 = vmatmul.msk.f32.gmra.mxu2 %vm476_vm0, %v444_v24 }
  0x3d   : > { %5343 = vmatmul.msk.f32.gmra.mxu3 %vm476_vm0, %v460_v25 }
  0x42   : > { %5296 = vmatmul.msk.f32.gmra.mxu0 %vm476_vm0, %v413_v26 }
  0x43   : > { %5312 = vmatmul.msk.f32.gmra.mxu1 %vm476_vm0, %v429_v27 }
  0x44   : > { %5328 = vmatmul.msk.f32.gmra.mxu2 %vm476_vm0, %v445_v28 }
  0x45   : > { %5344 = vmatmul.msk.f32.gmra.mxu3 %vm476_vm0, %v461_v29 }
  0x4a   : > { %5297 = vmatmul.msk.f32.gmra.mxu0 %vm476_vm0, %v414_v30  ;;  %v2286_v30 = vld [vmem:[%s6564_s15 + $0x10] sm:$0xff] }
  0x4b   : > { %5313 = vmatmul.msk.f32.gmra.mxu1 %vm476_vm0, %v430_v31 }
  0x4c   : > { %5329 = vmatmul.msk.f32.gmra.mxu2 %vm476_vm0, %v446_v32 }
  0x4d   : > { %5345 = vmatmul.msk.f32.gmra.mxu3 %vm476_vm0, %v462_v33 }
  0x52   : > { %5298 = vmatmul.msk.f32.gmra.mxu0 %vm476_vm0, %v415_v34 }
  0x53   : > { %5314 = vmatmul.msk.f32.gmra.mxu1 %vm476_vm0, %v431_v35  ;;  %v2352_v35 = vld [vmem:[%s10091_s7 + $0x20] sm:$0xff] }
  0x54   : > { %5330 = vmatmul.msk.f32.gmra.mxu2 %vm476_vm0, %v447_v36  ;;  %2770 = vmatpush.msra.mxu1 %v2352_v35 }
  0x55   : > { %5346 = vmatmul.msk.f32.gmra.mxu3 %vm476_vm0, %v463_v37 }
  0x5a   : > { %5299 = vmatmul.msk.f32.gmra.mxu0 %vm476_vm0, %v416_v38 }
  0x5b   : > { %5315 = vmatmul.msk.f32.gmra.mxu1 %vm476_vm0, %v432_v39 }
  0x5c   : > { %5331 = vmatmul.msk.f32.gmra.mxu2 %vm476_vm0, %v448_v40 }
  0x5d   : > { %5347 = vmatmul.msk.f32.gmra.mxu3 %vm476_vm0, %v464_v41 }
  0x62   : > { %5300 = vmatmul.msk.f32.gmra.mxu0 %vm476_vm0, %v417_v42 }
  0x63   : > { %5316 = vmatmul.msk.f32.gmra.mxu1 %vm476_vm0, %v433_v43 }
  0x64   : > { %5332 = vmatmul.msk.f32.gmra.mxu2 %vm476_vm0, %v449_v44 }
  0x65   : > { %5348 = vmatmul.msk.f32.gmra.mxu3 %vm476_vm0, %v465_v45 }
  0x6a   : > { %5301 = vmatmul.msk.f32.gmra.mxu0 %vm476_vm0, %v418_v46 }
  0x6b   : > { %5317 = vmatmul.msk.f32.gmra.mxu1 %vm476_vm0, %v434_v47  ;;  %v2287_v47 = vld [vmem:[%s6564_s15 + $0x18] sm:$0xff] }
  0x6c   : > { %5333 = vmatmul.msk.f32.gmra.mxu2 %vm476_vm0, %v450_v48 }
  0x6d   : > { %5349 = vmatmul.msk.f32.gmra.mxu3 %vm476_vm0, %v466_v49 }
  0x72   : > { %5302 = vmatmul.msk.f32.gmra.mxu0 %vm476_vm0, %v419_v50 }
  0x73   : > { %5318 = vmatmul.msk.f32.gmra.mxu1 %vm476_vm0, %v435_v51 }
  0x74   : > { %5334 = vmatmul.msk.f32.gmra.mxu2 %vm476_vm0, %v451_v52 }
  0x75   : > { %5350 = vmatmul.msk.f32.gmra.mxu3 %vm476_vm0, %v467_v53 }
  0x7a   : > { %5303 = vmatmul.msk.f32.gmra.mxu0 %vm476_vm0, %v420_v54 }
  0x7b   : > { %5319 = vmatmul.msk.f32.gmra.mxu1 %vm476_vm0, %v436_v55 }
  0x7c   : > { %5335 = vmatmul.msk.f32.gmra.mxu2 %vm476_vm0, %v452_v56 }
  0x7d   : > { %5351 = vmatmul.msk.f32.gmra.mxu3 %vm476_vm0, %v468_v57 }
  0x82   : > { %5304 = vmatmul.msk.f32.gmra.mxu0 %vm476_vm0, %v421_v58 }
  0x83   : > { %5320 = vmatmul.msk.f32.gmra.mxu1 %vm476_vm0, %v437_v59 }
  0x84   : > { %5336 = vmatmul.msk.f32.gmra.mxu2 %vm476_vm0, %v453_v60 }
  0x85   : > { %5352 = vmatmul.msk.f32.gmra.mxu3 %vm476_vm0, %v469_v61 }
  0x8a   : > { %5305 = vmatmul.msk.f32.gmra.mxu0 %vm476_vm0, %v422_v62 }
  0x8b   : > { %5321 = vmatmul.msk.f32.gmra.mxu1 %vm476_vm0, %v438_v63  ;;  %v2288_v63 = vld [vmem:[%s6564_s15 + $0x20] sm:$0xff] }
  0x8c   : > { %5337 = vmatmul.msk.f32.gmra.mxu2 %vm476_vm0, %v454_v0 }
  0x8d   : > { %5353 = vmatmul.msk.f32.gmra.mxu3 %vm476_vm0, %v470_v1 }
  0x8f   : > { %v686_v7 = vpop.f32.mrf.mxu0 }
  0x90   : > { %v6569_v8 = vpop.f32.mrf.mxu1  ;;  %v687_v10 = vadd.f32 %v6553_v4, %v686_v7 }
  0x92   : > { %v942_v11 = vand.u32 2147483647, %v687_v10  ;;  %5546 = vmatmul.msk.f32.vlgmr.msrb.gmra.mxu0 %vm2354_vm1, %v2284_v9  ;;  %v878_v39 = vmax.f32 %v687_v10, 0.0 }
  0x94   : > { %v1006_v12 = vsub.f32 0.0, %v942_v11 }
  0x96   : > { %v1070_v13 = vmul.f32 1.442695, %v1006_v12 }
  0x97   : > { %v689_v14 = vpop.f32.mrf.mxu0  ;;  %v6578_v18 = vpop.f32.mrf.mxu2 }
  0x98   : > { %v6574_v15 = vpop.f32.mrf.mxu1  ;;  %5947 = vpow2.f32 %v1070_v13  ;;  %v690_v17 = vadd.f32 %v6553_v4, %v689_v14  ;;  %v6580_v19 = vpop.f32.mrf.mxu3 }
  0x9a   : > { %v943_v20 = vand.u32 2147483647, %v690_v17  ;;  %5547 = vmatmul.msk.f32.gmra.mxu0 %vm2354_vm1, %v2285_v16  ;;  %v879_v57 = vmax.f32 %v690_v17, 0.0 }
  0x9c   : > { %v1007_v21 = vsub.f32 0.0, %v943_v20 }
  0x9e   : > { %v5948_v22 = vpop.eup %5947  ;;  %v1072_v23 = vmul.f32 1.442695, %v1007_v21  ;;  %v2289_v21 = vld [vmem:[%s6564_s15 + $0x28] sm:$0xff] }
  0x9f   : > { %v1198_v24 = vadd.f32 1.0, %v5948_v22  ;;  %v692_v25 = vpop.f32.mrf.mxu0  ;;  %v6588_v28 = vpop.f32.mrf.mxu2 }
  0xa0   : > { %v6583_v26 = vpop.f32.mrf.mxu1  ;;  %5949 = vpow2.f32 %v1072_v23  ;;  %v6586_v27 = vadd.f32 %v6553_v4, %v692_v25  ;;  %v6590_v29 = vpop.f32.mrf.mxu3 }
  0xa1   : > { %5951 = vlog2.f32 %v1198_v24 }
  0xa2   : > { %v944_v31 = vand.u32 2147483647, %v6586_v27  ;;  %5548 = vmatmul.msk.f32.gmra.mxu0 %vm2354_vm1, %v2286_v30  ;;  %v880_v12 = vmax.f32 %v6586_v27, 0.0 }
  0xa4   : > { %v1008_v32 = vsub.f32 0.0, %v944_v31 }
  0xa6   : > { %v5950_v33 = vpop.eup %5949  ;;  %v1074_v34 = vmul.f32 1.442695, %v1008_v32 }
  0xa7   : > { %v5952_v36 = vpop.eup %5951  ;;  %v1199_v37 = vadd.f32 1.0, %v5950_v33  ;;  %v695_v38 = vpop.f32.mrf.mxu0 }
  0xa8   : > { %v1263_v40 = vmul.f32 0.6931472, %v5952_v36  ;;  %5953 = vpow2.f32 %v1074_v34  ;;  %v6599_v41 = vadd.f32 %v6553_v4, %v695_v38  ;;  %v6601_v42 = vpop.f32.mrf.mxu2  ;;  %v6603_v43 = vpop.f32.mrf.mxu3 }
  0xa9   : > { %5955 = vlog2.f32 %v1199_v37  ;;  %v6605_v44 = vpop.f32.mrf.mxu1 }
  0xaa   : > { %v1390_v45 = vadd.f32 %v1263_v40, %v878_v39  ;;  %v945_v46 = vand.u32 2147483647, %v6599_v41  ;;  %5549 = vmatmul.msk.f32.gmra.mxu0 %vm2354_vm1, %v2287_v47  ;;  %v881_v33 = vmax.f32 %v6599_v41, 0.0 }
  0xac   : > { %5354 = vmatmul.msk.f32.vlgmr.msrb.gmra.mxu1 %vm476_vm0, %v1390_v45  ;;  %5418 = vmatmul.msk.f32.vlgmr.msrb.gmra.mxu2 %vm476_vm0, %v1390_v45  ;;  %v1009_v48 = vsub.f32 0.0, %v945_v46 }
  0xad   : > { %5482 = vmatmul.msk.f32.vlgmr.msrb.gmra.mxu3 %vm476_vm0, %v1390_v45  ;;  %v2290_v45 = vld [vmem:[%s6564_s15 + $0x30] sm:$0xff] }
  0xae   : > { %v5954_v49 = vpop.eup %5953  ;;  %v1076_v52 = vmul.f32 1.442695, %v1009_v48 }
  0xaf   : > { %v5956_v50 = vpop.eup %5955  ;;  %v1200_v51 = vadd.f32 1.0, %v5954_v49  ;;  %v698_v53 = vpop.f32.mrf.mxu0 }
  0xb0   : > { %v6614_v54 = vadd.f32 %v6553_v4, %v698_v53  ;;  %v6616_v55 = vpop.f32.mrf.mxu2  ;;  %v6618_v56 = vpop.f32.mrf.mxu3  ;;  %v1265_v58 = vmul.f32 0.6931472, %v5956_v50 }
  0xb1   : > { %5957 = vlog2.f32 %v1200_v51  ;;  %v6621_v60 = vpop.f32.mrf.mxu1 }
  0xb2   : > { %5959 = vpow2.f32 %v1076_v52  ;;  %v946_v59 = vand.u32 2147483647, %v6614_v54  ;;  %v1391_v61 = vadd.f32 %v1265_v58, %v879_v57  ;;  %5550 = vmatmul.msk.f32.gmra.mxu0 %vm2354_vm1, %v2288_v63  ;;  %v882_v51 = vmax.f32 %v6614_v54, 0.0  ;;  %v2291_v63 = vld [vmem:[%s6564_s15 + $0x38] sm:$0xff] }
  0xb4   : > { %v1010_v62 = vsub.f32 0.0, %v946_v59  ;;  %5355 = vmatmul.msk.f32.gmra.mxu1 %vm476_vm0, %v1391_v61  ;;  %5419 = vmatmul.msk.f32.gmra.mxu2 %vm476_vm0, %v1391_v61 }
  0xb5   : > { %5483 = vmatmul.msk.f32.gmra.mxu3 %vm476_vm0, %v1391_v61 }
  0xb6   : > { %v1078_v0 = vmul.f32 1.442695, %v1010_v62 }
  0xb7   : > { %v5958_v1 = vpop.eup %5957  ;;  %v701_v2 = vpop.f32.mrf.mxu0 }
  0xb8   : > { %v5960_v3 = vpop.eup %5959  ;;  %5961 = vpow2.f32 %v1078_v0  ;;  %v6629_v5 = vadd.f32 %v6553_v4, %v701_v2  ;;  %v6631_v6 = vpop.f32.mrf.mxu2  ;;  %v1267_v10 = vmul.f32 0.6931472, %v5958_v1 }
  0xb9   : > { %v6633_v7 = vpop.f32.mrf.mxu3  ;;  %v1201_v9 = vadd.f32 1.0, %v5960_v3  ;;  %v6637_v14 = vpop.f32.mrf.mxu1 }
  0xba   : > { %v947_v11 = vand.u32 2147483647, %v6629_v5  ;;  %v1392_v16 = vadd.f32 %v1267_v10, %v880_v12  ;;  %5551 = vmatmul.msk.f32.gmra.mxu0 %vm2354_vm1, %v2289_v21 }
  0xbb   : > { %5963 = vlog2.f32 %v1201_v9 }
  0xbc   : > { %v1011_v13 = vsub.f32 0.0, %v947_v11  ;;  %5356 = vmatmul.msk.f32.gmra.mxu1 %vm476_vm0, %v1392_v16  ;;  %5420 = vmatmul.msk.f32.gmra.mxu2 %vm476_vm0, %v1392_v16  ;;  %v883_v11 = vmax.f32 %v6629_v5, 0.0 }
  0xbd   : > { %5484 = vmatmul.msk.f32.gmra.mxu3 %vm476_vm0, %v1392_v16 }
  0xbe   : > { %v5962_v17 = vpop.eup %5961  ;;  %v1080_v20 = vmul.f32 1.442695, %v1011_v13 }
  0xbf   : > { %v704_v22 = vpop.f32.mrf.mxu0  ;;  %v1202_v24 = vadd.f32 1.0, %v5962_v17 }
  0xc0   : > { %v6644_v23 = vadd.f32 %v6553_v4, %v704_v22  ;;  %v6647_v25 = vpop.f32.mrf.mxu2  ;;  %5965 = vpow2.f32 %v1080_v20  ;;  %v2292_v22 = vld [vmem:[%s6564_s15 + $0x40] sm:$0xff] }
  0xc1   : > { %v5964_v27 = vpop.eup %5963  ;;  %v6650_v31 = vpop.f32.mrf.mxu3  ;;  %5967 = vlog2.f32 %v1202_v24 }
  0xc2   : > { %v948_v30 = vand.u32 2147483647, %v6644_v23  ;;  %v1269_v34 = vmul.f32 0.6931472, %v5964_v27  ;;  %v6653_v36 = vpop.f32.mrf.mxu1  ;;  %5552 = vmatmul.msk.f32.gmra.mxu0 %vm2354_vm1, %v2290_v45 }
  0xc4   : > { %v1012_v32 = vsub.f32 0.0, %v948_v30  ;;  %v1393_v37 = vadd.f32 %v1269_v34, %v881_v33 }
  0xc6   : > { %v1082_v35 = vmul.f32 1.442695, %v1012_v32  ;;  %v5966_v39 = vpop.eup %5965  ;;  %5357 = vmatmul.msk.f32.gmra.mxu1 %vm476_vm0, %v1393_v37  ;;  %5421 = vmatmul.msk.f32.gmra.mxu2 %vm476_vm0, %v1393_v37 }
  0xc7   : > { %v707_v38 = vpop.f32.mrf.mxu0  ;;  %5485 = vmatmul.msk.f32.gmra.mxu3 %vm476_vm0, %v1393_v37  ;;  %v5968_v46 = vpop.eup %5967  ;;  %v1203_v47 = vadd.f32 1.0, %v5966_v39  ;;  %v884_v39 = vmax.f32 %v6644_v23, 0.0 }
  0xc8   : > { %v6656_v40 = vadd.f32 %v6553_v4, %v707_v38  ;;  %5969 = vpow2.f32 %v1082_v35  ;;  %v6664_v48 = vpop.f32.mrf.mxu2  ;;  %v1271_v52 = vmul.f32 0.6931472, %v5968_v46 }
  0xc9   : > { %v6666_v49 = vpop.f32.mrf.mxu3  ;;  %5971 = vlog2.f32 %v1203_v47  ;;  %v2293_v47 = vld [vmem:[%s6564_s15 + $0x48] sm:$0xff] }
  0xca   : > { %v949_v41 = vand.u32 2147483647, %v6656_v40  ;;  %v1394_v57 = vadd.f32 %v1271_v52, %v882_v51  ;;  %v6669_v61 = vpop.f32.mrf.mxu1  ;;  %5553 = vmatmul.msk.f32.gmra.mxu0 %vm2354_vm1, %v2291_v63 }
  0xcc   : > { %v1013_v50 = vsub.f32 0.0, %v949_v41 }
  0xce   : > { %v5970_v58 = vpop.eup %5969  ;;  %v1084_v59 = vmul.f32 1.442695, %v1013_v50  ;;  %5358 = vmatmul.msk.f32.gmra.mxu1 %vm476_vm0, %v1394_v57  ;;  %5422 = vmatmul.msk.f32.gmra.mxu2 %vm476_vm0, %v1394_v57 }
  0xcf   : > { %v710_v53 = vpop.f32.mrf.mxu0  ;;  %5486 = vmatmul.msk.f32.gmra.mxu3 %vm476_vm0, %v1394_v57  ;;  %v1204_v0 = vadd.f32 1.0, %v5970_v58  ;;  %v5972_v54 = vpop.eup %5971 }
  0xd0   : > { %v6674_v62 = vadd.f32 %v6553_v4, %v710_v53  ;;  %5973 = vpow2.f32 %v1084_v59  ;;  %v6680_v2 = vpop.f32.mrf.mxu2  ;;  %v1273_v12 = vmul.f32 0.6931472, %v5972_v54 }
  0xd1   : > { %v6682_v3 = vpop.f32.mrf.mxu3  ;;  %5975 = vlog2.f32 %v1204_v0 }
  0xd2   : > { %v950_v1 = vand.u32 2147483647, %v6674_v62  ;;  %v1395_v17 = vadd.f32 %v1273_v12, %v883_v11  ;;  %v6688_v21 = vpop.f32.mrf.mxu1  ;;  %5554 = vmatmul.msk.f32.gmra.mxu0 %vm2354_vm1, %v2292_v22 }
  0xd4   : > { %v1014_v9 = vsub.f32 0.0, %v950_v1  ;;  %v2294_v1 = vld [vmem:[%s6564_s15 + $0x50] sm:$0xff] }
  0xd6   : > { %v1086_v13 = vmul.f32 1.442695, %v1014_v9  ;;  %v5974_v20 = vpop.eup %5973  ;;  %5359 = vmatmul.msk.f32.gmra.mxu1 %vm476_vm0, %v1395_v17  ;;  %5423 = vmatmul.msk.f32.gmra.mxu2 %vm476_vm0, %v1395_v17  ;;  %v885_v9 = vmax.f32 %v6656_v40, 0.0  ;;  %v886_v40 = vmax.f32 %v6674_v62, 0.0 }
  0xd7   : > { %v713_v10 = vpop.f32.mrf.mxu0  ;;  %5487 = vmatmul.msk.f32.gmra.mxu3 %vm476_vm0, %v1395_v17  ;;  %v5976_v5 = vpop.eup %5975  ;;  %v1205_v27 = vadd.f32 1.0, %v5974_v20 }
  0xd8   : > { %v6686_v16 = vadd.f32 %v6553_v4, %v713_v10  ;;  %5977 = vpow2.f32 %v1086_v13  ;;  %v6696_v33 = vpop.f32.mrf.mxu2  ;;  %v1275_v38 = vmul.f32 0.6931472, %v5976_v5 }
  0xd9   : > { %v6698_v35 = vpop.f32.mrf.mxu3  ;;  %5979 = vlog2.f32 %v1205_v27 }
  0xda   : > { %v951_v24 = vand.u32 2147483647, %v6686_v16  ;;  %v1396_v46 = vadd.f32 %v1275_v38, %v884_v39  ;;  %v6705_v50 = vpop.f32.mrf.mxu1  ;;  %5555 = vmatmul.msk.f32.gmra.mxu0 %vm2354_vm1, %v2293_v47  ;;  %v2295_v39 = vld [vmem:[%s6564_s15 + $0x58] sm:$0xff]  ;;  %v887_v47 = vmax.f32 %v6686_v16, 0.0 }
  0xdc   : > { %v1015_v30 = vsub.f32 0.0, %v951_v24 }
  0xde   : > { %v1088_v34 = vmul.f32 1.442695, %v1015_v30  ;;  %v5978_v37 = vpop.eup %5977  ;;  %5360 = vmatmul.msk.f32.gmra.mxu1 %vm476_vm0, %v1396_v46  ;;  %5424 = vmatmul.msk.f32.gmra.mxu2 %vm476_vm0, %v1396_v46 }
  0xdf   : > { %v716_v32 = vpop.f32.mrf.mxu0  ;;  %v1206_v41 = vadd.f32 1.0, %v5978_v37  ;;  %5488 = vmatmul.msk.f32.gmra.mxu3 %vm476_vm0, %v1396_v46  ;;  %v5980_v23 = vpop.eup %5979 }
  0xe0   : > { %v6702_v45 = vadd.f32 %v6553_v4, %v716_v32  ;;  %5981 = vpow2.f32 %v1088_v34  ;;  %v6712_v57 = vpop.f32.mrf.mxu2  ;;  %v1277_v54 = vmul.f32 0.6931472, %v5980_v23 }
  0xe1   : > { %5983 = vlog2.f32 %v1206_v41  ;;  %v6714_v63 = vpop.f32.mrf.mxu3 }
  0xe2   : > { %v952_v51 = vand.u32 2147483647, %v6702_v45  ;;  %5556 = vmatmul.msk.f32.gmra.mxu0 %vm2354_vm1, %v2294_v1  ;;  %v6719_v11 = vpop.f32.mrf.mxu1  ;;  %v1397_v12 = vadd.f32 %v1277_v54, %v885_v9 }
  0xe4   : > { %v1016_v52 = vsub.f32 0.0, %v952_v51 }
  0xe6   : > { %v5982_v53 = vpop.eup %5981  ;;  %v1090_v58 = vmul.f32 1.442695, %v1016_v52  ;;  %5361 = vmatmul.msk.f32.gmra.mxu1 %vm476_vm0, %v1397_v12  ;;  %5425 = vmatmul.msk.f32.gmra.mxu2 %vm476_vm0, %v1397_v12 }
  0xe7   : > { %v719_v59 = vpop.f32.mrf.mxu0  ;;  %v1207_v0 = vadd.f32 1.0, %v5982_v53  ;;  %v5984_v10 = vpop.eup %5983  ;;  %5489 = vmatmul.msk.f32.gmra.mxu3 %vm476_vm0, %v1397_v12  ;;  %v2296_v12 = vld [vmem:[%s6564_s15 + $0x60] sm:$0xff] }
  0xe8   : > { %5985 = vpow2.f32 %v1090_v58  ;;  %v6722_v13 = vadd.f32 %v6553_v4, %v719_v59  ;;  %v1279_v17 = vmul.f32 0.6931472, %v5984_v10  ;;  %v6729_v5 = vpop.f32.mrf.mxu2 }
  0xe9   : > { %5987 = vlog2.f32 %v1207_v0  ;;  %v6731_v32 = vpop.f32.mrf.mxu3 }
  0xea   : > { %v953_v20 = vand.u32 2147483647, %v6722_v13  ;;  %v1398_v34 = vadd.f32 %v1279_v17, %v886_v40  ;;  %5557 = vmatmul.msk.f32.gmra.mxu0 %vm2354_vm1, %v2295_v39  ;;  %v6738_v62 = vpop.f32.mrf.mxu1  ;;  %v888_v17 = vmax.f32 %v6702_v45, 0.0  ;;  %v2297_v45 = vld [vmem:[%s6564_s15 + $0x68] sm:$0xff] }
  0xec   : > { %v1017_v24 = vsub.f32 0.0, %v953_v20 }
  0xee   : > { %v5986_v22 = vpop.eup %5985  ;;  %v1092_v37 = vmul.f32 1.442695, %v1017_v24  ;;  %5362 = vmatmul.msk.f32.gmra.mxu1 %vm476_vm0, %v1398_v34  ;;  %5426 = vmatmul.msk.f32.gmra.mxu2 %vm476_vm0, %v1398_v34 }
  0xef   : > { %v1208_v27 = vadd.f32 1.0, %v5986_v22  ;;  %v722_v30 = vpop.f32.mrf.mxu0  ;;  %v5988_v38 = vpop.eup %5987  ;;  %5490 = vmatmul.msk.f32.gmra.mxu3 %vm476_vm0, %v1398_v34 }
  0xf0   : > { %5989 = vpow2.f32 %v1092_v37  ;;  %v6735_v41 = vadd.f32 %v6553_v4, %v722_v30  ;;  %v1281_v46 = vmul.f32 0.6931472, %v5988_v38  ;;  %v6745_v58 = vpop.f32.mrf.mxu2 }
  0xf1   : > { %5991 = vlog2.f32 %v1208_v27  ;;  %v6747_v1 = vpop.f32.mrf.mxu3 }
  0xf2   : > { %v954_v51 = vand.u32 2147483647, %v6735_v41  ;;  %v1399_v52 = vadd.f32 %v1281_v46, %v887_v47  ;;  %5558 = vmatmul.msk.f32.gmra.mxu0 %vm2354_vm1, %v2296_v12  ;;  %v6758_v20 = vpop.f32.mrf.mxu1 }
  0xf4   : > { %v1018_v53 = vsub.f32 0.0, %v954_v51  ;;  %v889_v51 = vmax.f32 %v6722_v13, 0.0 }
  0xf6   : > { %v5990_v23 = vpop.eup %5989  ;;  %v1094_v9 = vmul.f32 1.442695, %v1018_v53  ;;  %5363 = vmatmul.msk.f32.gmra.mxu1 %vm476_vm0, %v1399_v52  ;;  %5427 = vmatmul.msk.f32.gmra.mxu2 %vm476_vm0, %v1399_v52 }
  0xf7   : > { %v5992_v59 = vpop.eup %5991  ;;  %v1209_v0 = vadd.f32 1.0, %v5990_v23  ;;  %v725_v54 = vpop.f32.mrf.mxu0  ;;  %5491 = vmatmul.msk.f32.gmra.mxu3 %vm476_vm0, %v1399_v52  ;;  %v6776_v52 = vadd.f32 %v6553_v4, %v6569_v8  ;;  %v2298_v8 = vld [vmem:[%s6564_s15 + $0x70] sm:$0xff] }
  0xf8   : > { %v1283_v10 = vmul.f32 0.6931472, %v5992_v59  ;;  %v6752_v16 = vadd.f32 %v6553_v4, %v725_v54  ;;  %v6761_v34 = vpop.f32.mrf.mxu2 }
  0xf9   : > { %5993 = vlog2.f32 %v1209_v0  ;;  %v6763_v46 = vpop.f32.mrf.mxu3 }
  0xfa   : > { %5995 = vpow2.f32 %v1094_v9  ;;  %v955_v22 = vand.u32 2147483647, %v6752_v16  ;;  %v1400_v40 = vadd.f32 %v1283_v10, %v888_v17  ;;  %5559 = vmatmul.msk.f32.gmra.mxu0 %vm2354_vm1, %v2297_v45  ;;  %v6778_v59 = vpop.f32.mrf.mxu1  ;;  %v958_v10 = vand.u32 2147483647, %v6776_v52 }
  0xfc   : > { %v1019_v27 = vsub.f32 0.0, %v955_v22 }
  0xfe   : > { %v1096_v38 = vmul.f32 1.442695, %v1019_v27  ;;  %5364 = vmatmul.msk.f32.gmra.mxu1 %vm476_vm0, %v1400_v40  ;;  %5428 = vmatmul.msk.f32.gmra.mxu2 %vm476_vm0, %v1400_v40 }
  0xff   : > { %v5994_v24 = vpop.eup %5993  ;;  %v728_v39 = vpop.f32.mrf.mxu0  ;;  %5492 = vmatmul.msk.f32.gmra.mxu3 %vm476_vm0, %v1400_v40 }
 0x100   : > { %v5996_v30 = vpop.eup %5995  ;;  %v1285_v47 = vmul.f32 0.6931472, %v5994_v24  ;;  %v6772_v23 = vadd.f32 %v6553_v4, %v728_v39  ;;  %v6784_v13 = vpop.f32.mrf.mxu2  ;;  %v890_v24 = vmax.f32 %v6735_v41, 0.0  ;;  %v6794_v39 = vadd.f32 %v6553_v4, %v6574_v15  ;;  %v2299_v15 = vld [vmem:[%s6564_s15 + $0x78] sm:$0xff] }
 0x101   : > { %v1210_v37 = vadd.f32 1.0, %v5996_v30  ;;  %v6788_v40 = vpop.f32.mrf.mxu3 }
 0x102   : > { %v1401_v53 = vadd.f32 %v1285_v47, %v889_v51  ;;  %v956_v0 = vand.u32 2147483647, %v6772_v23  ;;  %5560 = vmatmul.msk.f32.gmra.mxu0 %vm2354_vm1, %v2298_v8  ;;  %v6799_v45 = vpop.f32.mrf.mxu1 }
 0x103   : > { %5997 = vlog2.f32 %v1210_v37  ;;  %v1022_v37 = vsub.f32 0.0, %v958_v10 }
 0x104   : > { %5999 = vpow2.f32 %v1096_v38  ;;  %v1020_v54 = vsub.f32 0.0, %v956_v0  ;;  %v959_v0 = vand.u32 2147483647, %v6794_v39 }
 0x105   : > { %v1102_v41 = vmul.f32 1.442695, %v1022_v37 }
 0x106   : > { %v1098_v17 = vmul.f32 1.442695, %v1020_v54  ;;  %5365 = vmatmul.msk.f32.gmra.mxu1 %vm476_vm0, %v1401_v53  ;;  %5429 = vmatmul.msk.f32.gmra.mxu2 %vm476_vm0, %v1401_v53 }
 0x107   : > { %5493 = vmatmul.msk.f32.gmra.mxu3 %vm476_vm0, %v1401_v53  ;;  %v731_v30 = vpop.f32.mrf.mxu0 }
 0x108   : > { %6001 = vpow2.f32 %v1098_v17  ;;  %v6797_v47 = vadd.f32 %v6553_v4, %v731_v30  ;;  %v891_v17 = vmax.f32 %v6752_v16, 0.0  ;;  %v1023_v30 = vsub.f32 0.0, %v959_v0  ;;  %v2300_v16 = vld [vmem:[%s6564_s15 + $0x80] sm:$0xff] }
 0x109   : > { %v5998_v9 = vpop.eup %5997  ;;  %v892_v0 = vmax.f32 %v6772_v23, 0.0 }
 0x10a   : > { %v1287_v12 = vmul.f32 0.6931472, %v5998_v9  ;;  %v6000_v22 = vpop.eup %5999  ;;  %v957_v51 = vand.u32 2147483647, %v6797_v47  ;;  %5561 = vmatmul.msk.f32.gmra.mxu0 %vm2354_vm1, %v2299_v15 }
 0x10b   : > { %v1211_v27 = vadd.f32 1.0, %v6000_v22 }
 0x10c   : > { %v1402_v38 = vadd.f32 %v1287_v12, %v890_v24  ;;  %v1021_v9 = vsub.f32 0.0, %v957_v51  ;;  %v6807_v12 = vpop.f32.mrf.mxu2  ;;  %v6811_v24 = vpop.f32.mrf.mxu3 }
 0x10d   : > { %6003 = vlog2.f32 %v1211_v27  ;;  %v6815_v27 = vadd.f32 %v6553_v4, %v6583_v26 }
 0x10e   : > { %v6002_v53 = vpop.eup %6001  ;;  %5366 = vmatmul.msk.f32.gmra.mxu1 %vm476_vm0, %v1402_v38  ;;  %5430 = vmatmul.msk.f32.gmra.mxu2 %vm476_vm0, %v1402_v38  ;;  %v1100_v22 = vmul.f32 1.442695, %v1021_v9 }
 0x10f   : > { %v1212_v54 = vadd.f32 1.0, %v6002_v53  ;;  %5494 = vmatmul.msk.f32.gmra.mxu3 %vm476_vm0, %v1402_v38  ;;  %v6817_v38 = vpop.f32.mrf.mxu0  ;;  %v960_v51 = vand.u32 2147483647, %v6815_v27  ;;  %v6820_v53 = vpop.f32.mrf.mxu1 }
 0x110   : > { %10095 = vst [vmem:[#allocation2_spill] sm:$0xff] %v6817_v38  ;;  %v6832_v38 = vadd.f32 %v6553_v4, %v6605_v44  ;;  %v3241_v44 = vld [vmem:[%s10092_s8 + $0x18] sm:$0x1] }
 0x111   : > { %6005 = vlog2.f32 %v1212_v54  ;;  %5738 = vmatpush.msk.msra.mxu3 %vm3437_vm2, %v3241_v44 }
 0x112   : > { %6007 = vpow2.f32 %v1102_v41  ;;  %v1104_v41 = vmul.f32 1.442695, %v1023_v30  ;;  %5562 = vmatmul.msk.f32.gmra.mxu0 %vm2354_vm1, %v2300_v16 }
 0x113   : > { %v6004_v10 = vpop.eup %6003  ;;  %6009 = vpow2.f32 %v1100_v22 }
 0x114   : > { %v1289_v8 = vmul.f32 0.6931472, %v6004_v10  ;;  %v1024_v10 = vsub.f32 0.0, %v960_v51  ;;  %v6828_v22 = vpop.f32.mrf.mxu2  ;;  %6011 = vpow2.f32 %v1104_v41  ;;  %v6834_v30 = vpop.f32.mrf.mxu3  ;;  %v2353_v51 = vld [vmem:[%s10091_s7 + $0x28] sm:$0xff] }
 0x115   : > { %10096 = vst [vmem:[#allocation3_spill] sm:$0xff] %v6834_v30  ;;  %v2301_v41 = vld [vmem:[%s6564_s15 + $0x88] sm:$0xff]  ;;  %2979 = vmatpush.msra.mxu2 %v2353_v51 }
 0x116   : > { %v1403_v37 = vadd.f32 %v1289_v8, %v891_v17  ;;  %v1106_v16 = vmul.f32 1.442695, %v1024_v10  ;;  %v6855_v10 = vadd.f32 %v6553_v4, %v6621_v60 }
 0x117   : > { %v6006_v54 = vpop.eup %6005  ;;  %v6836_v23 = vpop.f32.mrf.mxu0 }
 0x118   : > { %5367 = vmatmul.msk.f32.gmra.mxu1 %vm476_vm0, %v1403_v37  ;;  %5431 = vmatmul.msk.f32.gmra.mxu2 %vm476_vm0, %v1403_v37  ;;  %v6008_v26 = vpop.eup %6007  ;;  %v1291_v9 = vmul.f32 0.6931472, %v6006_v54  ;;  %10097 = vst [vmem:[#allocation4_spill] sm:$0xff] %v6836_v23 }
 0x119   : > { %5495 = vmatmul.msk.f32.gmra.mxu3 %vm476_vm0, %v1403_v37  ;;  %v6010_v15 = vpop.eup %6009  ;;  %v1214_v37 = vadd.f32 1.0, %v6008_v26  ;;  %v961_v26 = vand.u32 2147483647, %v6832_v38 }
 0x11a   : > { %v1404_v17 = vadd.f32 %v1291_v9, %v892_v0  ;;  %v1213_v8 = vadd.f32 1.0, %v6010_v15  ;;  %5563 = vmatmul.msk.f32.gmra.mxu0 %vm2354_vm1, %v2301_v41  ;;  %v6012_v0 = vpop.eup %6011 }
 0x11b   : > { %v1025_v15 = vsub.f32 0.0, %v961_v26  ;;  %v2302_v26 = vld [vmem:[%s6564_s15 + $0x90] sm:$0xff] }
 0x11c   : > { %6013 = vlog2.f32 %v1213_v8  ;;  %v893_v8 = vmax.f32 %v6797_v47, 0.0  ;;  %v962_v47 = vand.u32 2147483647, %v6855_v10 }
 0x11d   : > { %6015 = vlog2.f32 %v1214_v37  ;;  %v3242_v37 = vld [vmem:[%s10092_s8 + $0x20] sm:$0x1] }
 0x11e   : > { %6017 = vpow2.f32 %v1106_v16  ;;  %5803 = vmatpush.msk.msra.mxu0 %vm3437_vm2, %v3242_v37  ;;  %v6879_v37 = vadd.f32 %v6553_v4, %v6637_v14 }
 0x11f   : > { %v6863_v41 = vpop.f32.mrf.mxu0 }
 0x120   : > { %5368 = vmatmul.msk.f32.gmra.mxu1 %vm476_vm0, %v1404_v17  ;;  %5432 = vmatmul.msk.f32.gmra.mxu2 %vm476_vm0, %v1404_v17  ;;  %10100 = vst [vmem:[#allocation7_spill] sm:$0xff] %v6863_v41 }
 0x121   : > { %5496 = vmatmul.msk.f32.gmra.mxu3 %vm476_vm0, %v1404_v17  ;;  %v1215_v17 = vadd.f32 1.0, %v6012_v0 }
 0x122   : > { %v6014_v9 = vpop.eup %6013  ;;  %5564 = vmatmul.msk.f32.gmra.mxu0 %vm2354_vm1, %v2302_v26 }
 0x123   : > { %v1293_v23 = vmul.f32 0.6931472, %v6014_v9  ;;  %v6016_v60 = vpop.eup %6015  ;;  %6019 = vlog2.f32 %v1215_v17  ;;  %v2303_v17 = vld [vmem:[%s6564_s15 + $0x98] sm:$0xff] }
 0x124   : > { %v6018_v9 = vpop.eup %6017 }
 0x125   : > { %v1405_v44 = vadd.f32 %v1293_v23, %v893_v8  ;;  %v894_v23 = vmax.f32 %v6776_v52, 0.0  ;;  %v1295_v8 = vmul.f32 0.6931472, %v6016_v60  ;;  %v963_v52 = vand.u32 2147483647, %v6879_v37 }
 0x127   : > { %v1406_v41 = vadd.f32 %v1295_v8, %v894_v23  ;;  %v6898_v23 = vadd.f32 %v6553_v4, %v6653_v36 }
 0x128   : > { %5369 = vmatmul.msk.f32.gmra.mxu1 %vm476_vm0, %v1405_v44  ;;  %5433 = vmatmul.msk.f32.gmra.mxu2 %vm476_vm0, %v1405_v44 }
 0x129   : > { %v6846_v54 = vpop.f32.mrf.mxu1  ;;  %5497 = vmatmul.msk.f32.gmra.mxu3 %vm476_vm0, %v1405_v44  ;;  %v6020_v30 = vpop.eup %6019 }
 0x12a   : > { %10098 = vst [vmem:[#allocation5_spill] sm:$0xff] %v6846_v54  ;;  %v1108_v54 = vmul.f32 1.442695, %v1025_v15  ;;  %v1026_v15 = vsub.f32 0.0, %v962_v47  ;;  %5565 = vmatmul.msk.f32.gmra.mxu0 %vm2354_vm1, %v2303_v17  ;;  %v1297_v60 = vmul.f32 0.6931472, %v6020_v30 }
 0x12b   : > { %v964_v17 = vand.u32 2147483647, %v6898_v23 }
 0x12c   : > { %6021 = vpow2.f32 %v1108_v54  ;;  %v1110_v26 = vmul.f32 1.442695, %v1026_v15  ;;  %v895_v54 = vmax.f32 %v6794_v39, 0.0 }
 0x12f   : > { %v6861_v51 = vpop.f32.mrf.mxu2 }
 0x130   : > { %10099 = vst [vmem:[#allocation6_spill] sm:$0xff] %v6861_v51  ;;  %v6866_v16 = vpop.f32.mrf.mxu3  ;;  %v6881_v51 = vpop.f32.mrf.mxu0  ;;  %5370 = vmatmul.msk.f32.gmra.mxu1 %vm476_vm0, %v1406_v41  ;;  %5434 = vmatmul.msk.f32.gmra.mxu2 %vm476_vm0, %v1406_v41 }
 0x131   : > { %10101 = vst [vmem:[#allocation8_spill] sm:$0xff] %v6866_v16  ;;  %v6872_v0 = vpop.f32.mrf.mxu1  ;;  %v1216_v16 = vadd.f32 1.0, %v6018_v9  ;;  %5498 = vmatmul.msk.f32.gmra.mxu3 %vm476_vm0, %v1406_v41  ;;  %v1027_v9 = vsub.f32 0.0, %v963_v52 }
 0x132   : > { %10102 = vst [vmem:[#allocation9_spill] sm:$0xff] %v6872_v0  ;;  %v6022_v14 = vpop.eup %6021 }
 0x133   : > { %6023 = vlog2.f32 %v1216_v16  ;;  %v1217_v8 = vadd.f32 1.0, %v6022_v14  ;;  %v1407_v16 = vadd.f32 %v1297_v60, %v895_v54  ;;  %v1028_v14 = vsub.f32 0.0, %v964_v17 }
 0x134   : > { %6025 = vpow2.f32 %v1110_v26  ;;  %v896_v26 = vmax.f32 %v6815_v27, 0.0  ;;  %v6915_v54 = vadd.f32 %v6553_v4, %v6669_v61  ;;  %v897_v27 = vmax.f32 %v6832_v38, 0.0 }
 0x135   : > { %6027 = vlog2.f32 %v1217_v8 }
 0x137   : > { %v6883_v0 = vpop.f32.mrf.mxu2 }
 0x138   : > { %10103 = vst [vmem:[#allocation10_spill] sm:$0xff] %v6883_v0  ;;  %v6886_v44 = vpop.f32.mrf.mxu3  ;;  %v6900_v15 = vpop.f32.mrf.mxu0  ;;  %v1112_v0 = vmul.f32 1.442695, %v1027_v9  ;;  %5371 = vmatmul.msk.f32.gmra.mxu1 %vm476_vm0, %v1407_v16  ;;  %5435 = vmatmul.msk.f32.gmra.mxu2 %vm476_vm0, %v1407_v16 }
 0x139   : > { %10104 = vst [vmem:[#allocation11_spill] sm:$0xff] %v6886_v44  ;;  %v6894_v47 = vpop.f32.mrf.mxu1  ;;  %v2304_v44 = vld [vmem:[%s6564_s15 + $0xa0] sm:$0xff]  ;;  %v6024_v41 = vpop.eup %6023  ;;  %5499 = vmatmul.msk.f32.gmra.mxu3 %vm476_vm0, %v1407_v16 }
 0x13a   : > { %10105 = vst [vmem:[#allocation12_spill] sm:$0xff] %v6900_v15  ;;  %5566 = vmatmul.msk.f32.gmra.mxu0 %vm2354_vm1, %v2304_v44  ;;  %v6026_v30 = vpop.eup %6025  ;;  %v1299_v52 = vmul.f32 0.6931472, %v6024_v41  ;;  %6029 = vpow2.f32 %v1112_v0  ;;  %v1114_v15 = vmul.f32 1.442695, %v1028_v14 }
 0x13b   : > { %v1218_v9 = vadd.f32 1.0, %v6026_v30  ;;  %v965_v44 = vand.u32 2147483647, %v6915_v54 }
 0x13c   : > { %v1408_v16 = vadd.f32 %v1299_v52, %v896_v26  ;;  %v6934_v26 = vadd.f32 %v6553_v4, %v6688_v21 }
 0x13d   : > { %6031 = vlog2.f32 %v1218_v9  ;;  %v1029_v30 = vsub.f32 0.0, %v965_v44 }
 0x13e   : > { %6033 = vpow2.f32 %v1114_v15  ;;  %v898_v15 = vmax.f32 %v6855_v10, 0.0 }
 0x13f   : > { %v6906_v39 = vpop.f32.mrf.mxu2  ;;  %v1116_v38 = vmul.f32 1.442695, %v1029_v30 }
 0x140   : > { %10106 = vst [vmem:[#allocation13_spill] sm:$0xff] %v6906_v39  ;;  %v6909_v36 = vpop.f32.mrf.mxu3  ;;  %v6919_v8 = vpop.f32.mrf.mxu0  ;;  %v2305_v39 = vld [vmem:[%s6564_s15 + $0xa8] sm:$0xff]  ;;  %5372 = vmatmul.msk.f32.gmra.mxu1 %vm476_vm0, %v1408_v16  ;;  %5436 = vmatmul.msk.f32.gmra.mxu2 %vm476_vm0, %v1408_v16 }
 0x141   : > { %10107 = vst [vmem:[#allocation14_spill] sm:$0xff] %v6909_v36  ;;  %v6028_v36 = vpop.eup %6027  ;;  %5500 = vmatmul.msk.f32.gmra.mxu3 %vm476_vm0, %v1408_v16 }
 0x142   : > { %10108 = vst [vmem:[#allocation15_spill] sm:$0xff] %v6919_v8  ;;  %5567 = vmatmul.msk.f32.gmra.mxu0 %vm2354_vm1, %v2305_v39  ;;  %v6030_v61 = vpop.eup %6029  ;;  %v1301_v0 = vmul.f32 0.6931472, %v6028_v36  ;;  %v2306_v39 = vld [vmem:[%s6564_s15 + $0xb0] sm:$0xff]  ;;  %v966_v36 = vand.u32 2147483647, %v6934_v26 }
 0x143   : > { %v6917_v60 = vpop.f32.mrf.mxu1  ;;  %v1219_v52 = vadd.f32 1.0, %v6030_v61  ;;  %v6032_v8 = vpop.eup %6031 }
 0x144   : > { %v1409_v9 = vadd.f32 %v1301_v0, %v897_v27  ;;  %v6034_v21 = vpop.eup %6033  ;;  %v1303_v44 = vmul.f32 0.6931472, %v6032_v8  ;;  %v1030_v61 = vsub.f32 0.0, %v966_v36  ;;  %v6949_v27 = vadd.f32 %v6553_v4, %v6705_v50 }
 0x145   : > { %6035 = vlog2.f32 %v1219_v52  ;;  %v1220_v30 = vadd.f32 1.0, %v6034_v21 }
 0x146   : > { %6037 = vpow2.f32 %v1116_v38  ;;  %v967_v10 = vand.u32 2147483647, %v6949_v27  ;;  %v899_v38 = vmax.f32 %v6879_v37, 0.0 }
 0x147   : > { %6039 = vlog2.f32 %v1220_v30  ;;  %v2308_v30 = vld [vmem:[%s6564_s15 + $0xc0] sm:$0xff] }
 0x148   : > { %v6936_v14 = vpop.f32.mrf.mxu0  ;;  %5373 = vmatmul.msk.f32.gmra.mxu1 %vm476_vm0, %v1409_v9  ;;  %5437 = vmatmul.msk.f32.gmra.mxu2 %vm476_vm0, %v1409_v9  ;;  %v1031_v21 = vsub.f32 0.0, %v967_v10 }
 0x149   : > { %v6928_v41 = vpop.f32.mrf.mxu2  ;;  %10111 = vst [vmem:[#allocation18_spill] sm:$0xff] %v6936_v14  ;;  %5501 = vmatmul.msk.f32.gmra.mxu3 %vm476_vm0, %v1409_v9  ;;  %v1410_v9 = vadd.f32 %v1303_v44, %v898_v15  ;;  %v1118_v14 = vmul.f32 1.442695, %v1030_v61  ;;  %v6968_v15 = vadd.f32 %v6553_v4, %v6719_v11  ;;  %v900_v11 = vmax.f32 %v6898_v23, 0.0 }
 0x14a   : > { %10109 = vst [vmem:[#allocation16_spill] sm:$0xff] %v6928_v41  ;;  %v6930_v17 = vpop.f32.mrf.mxu3  ;;  %5568 = vmatmul.msk.f32.gmra.mxu0 %vm2354_vm1, %v2306_v39  ;;  %v2307_v41 = vld [vmem:[%s6564_s15 + $0xb8] sm:$0xff] }
 0x14b   : > { %10110 = vst [vmem:[#allocation17_spill] sm:$0xff] %v6930_v17  ;;  %v6938_v16 = vpop.f32.mrf.mxu1  ;;  %v6036_v39 = vpop.eup %6035  ;;  %6041 = vpow2.f32 %v1118_v14  ;;  %v968_v37 = vand.u32 2147483647, %v6968_v15 }
 0x14c   : > { %v6038_v8 = vpop.eup %6037  ;;  %v1305_v36 = vmul.f32 0.6931472, %v6036_v39 }
 0x14d   : > { %v1221_v44 = vadd.f32 1.0, %v6038_v8  ;;  %v1032_v10 = vsub.f32 0.0, %v968_v37  ;;  %v6988_v8 = vld [vmem:[%s10088_s4] ss:$0 sm:$0xff] }
 0x14f   : > { %6043 = vlog2.f32 %v1221_v44  ;;  %v2309_v44 = vld [vmem:[%s6564_s15 + $0xc8] sm:$0xff] }
 0x150   : > { %v6955_v52 = vpop.f32.mrf.mxu0  ;;  %5374 = vmatmul.msk.f32.gmra.mxu1 %vm476_vm0, %v1410_v9  ;;  %5438 = vmatmul.msk.f32.gmra.mxu2 %vm476_vm0, %v1410_v9 }
 0x151   : > { %v6951_v0 = vpop.f32.mrf.mxu2  ;;  %10114 = vst [vmem:[#allocation21_spill] sm:$0xff] %v6955_v52  ;;  %5502 = vmatmul.msk.f32.gmra.mxu3 %vm476_vm0, %v1410_v9  ;;  %v6040_v9 = vpop.eup %6039 }
 0x152   : > { %10112 = vst [vmem:[#allocation19_spill] sm:$0xff] %v6951_v0  ;;  %v6953_v17 = vpop.f32.mrf.mxu3  ;;  %5569 = vmatmul.msk.f32.gmra.mxu0 %vm2354_vm1, %v2307_v41  ;;  %v1120_v41 = vmul.f32 1.442695, %v1031_v21  ;;  %v6042_v4 = vpop.eup %6041  ;;  %v1307_v14 = vmul.f32 0.6931472, %v6040_v9 }
 0x153   : > { %10113 = vst [vmem:[#allocation20_spill] sm:$0xff] %v6953_v17  ;;  %v6961_v50 = vpop.f32.mrf.mxu1  ;;  %v1411_v17 = vadd.f32 %v1305_v36, %v899_v38  ;;  %v6992_v38 = vadd.f32 %v6988_v8, %v6738_v62 }
 0x154   : > { %6045 = vpow2.f32 %v1120_v41  ;;  %v1412_v21 = vadd.f32 %v1307_v14, %v900_v11 }
 0x155   : > { %v6044_v23 = vpop.eup %6043  ;;  %v969_v9 = vand.u32 2147483647, %v6992_v38 }
 0x156   : > { %v1309_v11 = vmul.f32 0.6931472, %v6044_v23 }
 0x157   : > { %v1033_v14 = vsub.f32 0.0, %v969_v9 }
 0x158   : > { %v6970_v61 = vpop.f32.mrf.mxu0  ;;  %5375 = vmatmul.msk.f32.gmra.mxu1 %vm476_vm0, %v1411_v17  ;;  %5439 = vmatmul.msk.f32.gmra.mxu2 %vm476_vm0, %v1411_v17 }
 0x159   : > { %10115 = vst [vmem:[#allocation22_spill] sm:$0xff] %v6970_v61  ;;  %v6972_v0 = vpop.f32.mrf.mxu2  ;;  %5503 = vmatmul.msk.f32.gmra.mxu3 %vm476_vm0, %v1411_v17  ;;  %v1222_v17 = vadd.f32 1.0, %v6042_v4  ;;  %v901_v4 = vmax.f32 %v6915_v54, 0.0  ;;  %v902_v54 = vmax.f32 %v6934_v26, 0.0 }
 0x15a   : > { %10116 = vst [vmem:[#allocation23_spill] sm:$0xff] %v6972_v0  ;;  %v6975_v52 = vpop.f32.mrf.mxu3  ;;  %5570 = vmatmul.msk.f32.gmra.mxu0 %vm2354_vm1, %v2308_v30  ;;  %v1122_v30 = vmul.f32 1.442695, %v1032_v10  ;;  %v6046_v37 = vpop.eup %6045  ;;  %v7009_v10 = vadd.f32 %v6988_v8, %v6758_v20 }
 0x15b   : > { %10117 = vst [vmem:[#allocation24_spill] sm:$0xff] %v6975_v52  ;;  %v6983_v39 = vpop.f32.mrf.mxu1  ;;  %6047 = vlog2.f32 %v1222_v17  ;;  %v1223_v0 = vadd.f32 1.0, %v6046_v37 }
 0x15c   : > { %6049 = vpow2.f32 %v1122_v30 }
 0x15d   : > { %6051 = vlog2.f32 %v1223_v0 }
 0x160   : > { %v6994_v36 = vpop.f32.mrf.mxu0  ;;  %5376 = vmatmul.msk.f32.gmra.mxu1 %vm476_vm0, %v1412_v21  ;;  %5440 = vmatmul.msk.f32.gmra.mxu2 %vm476_vm0, %v1412_v21 }
 0x161   : > { %10118 = vst [vmem:[#allocation25_spill] sm:$0xff] %v6994_v36  ;;  %v7000_v41 = vpop.f32.mrf.mxu2  ;;  %5504 = vmatmul.msk.f32.gmra.mxu3 %vm476_vm0, %v1412_v21  ;;  %v1413_v21 = vadd.f32 %v1309_v11, %v901_v4  ;;  %v2310_v36 = vld [vmem:[%s6564_s15 + $0xd0] sm:$0xff]  ;;  %v6048_v61 = vpop.eup %6047  ;;  %v7028_v4 = vadd.f32 %v6988_v8, %v6778_v59 }
 0x162   : > { %v7003_v62 = vpop.f32.mrf.mxu3  ;;  %5571 = vmatmul.msk.f32.gmra.mxu0 %vm2354_vm1, %v2309_v44  ;;  %v970_v44 = vand.u32 2147483647, %v7009_v10  ;;  %v6050_v20 = vpop.eup %6049  ;;  %v1311_v23 = vmul.f32 0.6931472, %v6048_v61 }
 0x163   : > { %10119 = vst [vmem:[#allocation26_spill] sm:$0xff] %v7003_v62  ;;  %v7011_v52 = vpop.f32.mrf.mxu1  ;;  %v1124_v62 = vmul.f32 1.442695, %v1033_v14  ;;  %v1224_v0 = vadd.f32 1.0, %v6050_v20  ;;  %v971_v61 = vand.u32 2147483647, %v7028_v4 }
 0x164   : > { %v1034_v37 = vsub.f32 0.0, %v970_v44 }
 0x165   : > { %6053 = vpow2.f32 %v1124_v62  ;;  %v903_v62 = vmax.f32 %v6949_v27, 0.0 }
 0x166   : > { %v1126_v26 = vmul.f32 1.442695, %v1034_v37  ;;  %6055 = vlog2.f32 %v1224_v0  ;;  %v7047_v37 = vadd.f32 %v6988_v8, %v6799_v45 }
 0x168   : > { %v7013_v17 = vpop.f32.mrf.mxu0  ;;  %5377 = vmatmul.msk.f32.gmra.mxu1 %vm476_vm0, %v1413_v21  ;;  %5441 = vmatmul.msk.f32.gmra.mxu2 %vm476_vm0, %v1413_v21  ;;  %6057 = vpow2.f32 %v1126_v26  ;;  %v904_v26 = vmax.f32 %v6968_v15, 0.0 }
 0x169   : > { %10120 = vst [vmem:[#allocation27_spill] sm:$0xff] %v7013_v17  ;;  %5505 = vmatmul.msk.f32.gmra.mxu3 %vm476_vm0, %v1413_v21  ;;  %v7022_v30 = vpop.f32.mrf.mxu2  ;;  %v2311_v21 = vld [vmem:[%s6564_s15 + $0xd8] sm:$0xff]  ;;  %v6052_v17 = vpop.eup %6051 }
 0x16a   : > { %5572 = vmatmul.msk.f32.gmra.mxu0 %vm2354_vm1, %v2310_v36  ;;  %v7024_v9 = vpop.f32.mrf.mxu3  ;;  %v1414_v36 = vadd.f32 %v1311_v23, %v902_v54  ;;  %v1313_v44 = vmul.f32 0.6931472, %v6052_v17  ;;  %v1035_v23 = vsub.f32 0.0, %v971_v61  ;;  %v972_v17 = vand.u32 2147483647, %v7047_v37 }
 0x16b   : > { %10121 = vst [vmem:[#allocation28_spill] sm:$0xff] %v7024_v9  ;;  %v7030_v11 = vpop.f32.mrf.mxu1  ;;  %v6054_v59 = vpop.eup %6053 }
 0x16c   : > { %10122 = vst [vmem:[#allocation29_spill] sm:$0xff] %v7030_v11  ;;  %v1225_v0 = vadd.f32 1.0, %v6054_v59  ;;  %v2312_v11 = vld [vmem:[%s6564_s15 + $0xe0] sm:$0xff]  ;;  %v6056_v9 = vpop.eup %6055  ;;  %v1128_v27 = vmul.f32 1.442695, %v1035_v23  ;;  %v7066_v23 = vadd.f32 %v6988_v8, %v6820_v53 }
 0x16d   : > { %v1315_v61 = vmul.f32 0.6931472, %v6056_v9 }
 0x16e   : > { %6059 = vlog2.f32 %v1225_v0  ;;  %v6058_v45 = vpop.eup %6057  ;;  %v973_v9 = vand.u32 2147483647, %v7066_v23 }
 0x16f   : > { %6061 = vpow2.f32 %v1128_v27  ;;  %v1226_v0 = vadd.f32 1.0, %v6058_v45  ;;  %v905_v27 = vmax.f32 %v6992_v38, 0.0 }
 0x170   : > { %v7032_v14 = vpop.f32.mrf.mxu0  ;;  %5378 = vmatmul.msk.f32.gmra.mxu1 %vm476_vm0, %v1414_v36  ;;  %5442 = vmatmul.msk.f32.gmra.mxu2 %vm476_vm0, %v1414_v36 }
 0x171   : > { %10123 = vst [vmem:[#allocation30_spill] sm:$0xff] %v7032_v14  ;;  %5506 = vmatmul.msk.f32.gmra.mxu3 %vm476_vm0, %v1414_v36  ;;  %v7041_v20 = vpop.f32.mrf.mxu2  ;;  %6063 = vlog2.f32 %v1226_v0 }
 0x172   : > { %5573 = vmatmul.msk.f32.gmra.mxu0 %vm2354_vm1, %v2311_v21  ;;  %v7043_v54 = vpop.f32.mrf.mxu3  ;;  %v1415_v21 = vadd.f32 %v1313_v44, %v903_v62  ;;  %v1036_v44 = vsub.f32 0.0, %v972_v17 }
 0x173   : > { %10124 = vst [vmem:[#allocation31_spill] sm:$0xff] %v7043_v54  ;;  %v7049_v14 = vpop.f32.mrf.mxu1 }
 0x174   : > { %10125 = vst [vmem:[#allocation32_spill] sm:$0xff] %v7049_v14  ;;  %v2313_v14 = vld [vmem:[%s6564_s15 + $0xe8] sm:$0xff]  ;;  %v6060_v54 = vpop.eup %6059  ;;  %v1130_v15 = vmul.f32 1.442695, %v1036_v44  ;;  %v1037_v44 = vsub.f32 0.0, %v973_v9 }
 0x175   : > { %v6062_v53 = vpop.eup %6061  ;;  %v1317_v17 = vmul.f32 0.6931472, %v6060_v54 }
 0x176   : > { %6065 = vpow2.f32 %v1130_v15  ;;  %v1227_v0 = vadd.f32 1.0, %v6062_v53  ;;  %v1132_v54 = vmul.f32 1.442695, %v1037_v44  ;;  %v906_v15 = vmax.f32 %v7009_v10, 0.0 }
 0x177   : > { %v7104_v44 = vadd.f32 %v6988_v8, %v6588_v28  ;;  %v2349_v28 = vld [vmem:[%s10091_s7 + $0x8] sm:$0xff] }
 0x178   : > { %v7051_v36 = vpop.f32.mrf.mxu0  ;;  %5379 = vmatmul.msk.f32.gmra.mxu1 %vm476_vm0, %v1415_v21  ;;  %5443 = vmatmul.msk.f32.gmra.mxu2 %vm476_vm0, %v1415_v21  ;;  %6067 = vlog2.f32 %v1227_v0 }
 0x179   : > { %10126 = vst [vmem:[#allocation33_spill] sm:$0xff] %v7051_v36  ;;  %5507 = vmatmul.msk.f32.gmra.mxu3 %vm476_vm0, %v1415_v21  ;;  %v7060_v59 = vpop.f32.mrf.mxu2  ;;  %6069 = vpow2.f32 %v1132_v54  ;;  %v907_v54 = vmax.f32 %v7028_v4, 0.0  ;;  %2771 = vmatpush.msra.mxu1 %v2349_v28 }
 0x17a   : > { %5574 = vmatmul.msk.f32.gmra.mxu0 %vm2354_vm1, %v2312_v11  ;;  %v7062_v62 = vpop.f32.mrf.mxu3  ;;  %v1416_v11 = vadd.f32 %v1315_v61, %v904_v26  ;;  %v7085_v61 = vadd.f32 %v6988_v8, %v6578_v18 }
 0x17b   : > { %10127 = vst [vmem:[#allocation34_spill] sm:$0xff] %v7062_v62  ;;  %v7068_v36 = vpop.f32.mrf.mxu1  ;;  %v6064_v62 = vpop.eup %6063 }
 0x17c   : > { %10128 = vst [vmem:[#allocation35_spill] sm:$0xff] %v7068_v36  ;;  %v2314_v36 = vld [vmem:[%s6564_s15 + $0xf0] sm:$0xff]  ;;  %v974_v38 = vand.u32 2147483647, %v7085_v61  ;;  %v6066_v18 = vpop.eup %6065  ;;  %v1319_v9 = vmul.f32 0.6931472, %v6064_v62 }
 0x17d   : > { %v1228_v0 = vadd.f32 1.0, %v6066_v18  ;;  %v975_v62 = vand.u32 2147483647, %v7104_v44 }
 0x17f   : > { %6071 = vlog2.f32 %v1228_v0  ;;  %v7126_v0 = vadd.f32 %v6988_v8, %v6601_v42 }
 0x180   : > { %v7070_v21 = vpop.f32.mrf.mxu0  ;;  %5380 = vmatmul.msk.f32.gmra.mxu1 %vm476_vm0, %v1416_v11  ;;  %5444 = vmatmul.msk.f32.gmra.mxu2 %vm476_vm0, %v1416_v11 }
 0x181   : > { %10129 = vst [vmem:[#allocation36_spill] sm:$0xff] %v7070_v21  ;;  %5508 = vmatmul.msk.f32.gmra.mxu3 %vm476_vm0, %v1416_v11  ;;  %v7079_v45 = vpop.f32.mrf.mxu2 }
 0x182   : > { %5575 = vmatmul.msk.f32.gmra.mxu0 %vm2354_vm1, %v2313_v14  ;;  %v7081_v26 = vpop.f32.mrf.mxu3  ;;  %v1417_v14 = vadd.f32 %v1317_v17, %v905_v27  ;;  %v1038_v17 = vsub.f32 0.0, %v974_v38 }
 0x183   : > { %10130 = vst [vmem:[#allocation37_spill] sm:$0xff] %v7081_v26  ;;  %v7087_v21 = vpop.f32.mrf.mxu1  ;;  %v6068_v26 = vpop.eup %6067 }
 0x184   : > { %10131 = vst [vmem:[#allocation38_spill] sm:$0xff] %v7087_v21  ;;  %v1134_v10 = vmul.f32 1.442695, %v1038_v17  ;;  %v6070_v38 = vpop.eup %6069  ;;  %v1321_v18 = vmul.f32 0.6931472, %v6068_v26  ;;  %v1039_v17 = vsub.f32 0.0, %v975_v62 }
 0x185   : > { %v6072_v4 = vpop.eup %6071 }
 0x186   : > { %6073 = vpow2.f32 %v1134_v10  ;;  %v1136_v26 = vmul.f32 1.442695, %v1039_v17  ;;  %v908_v10 = vmax.f32 %v7047_v37, 0.0  ;;  %v1323_v62 = vmul.f32 0.6931472, %v6072_v4 }
 0x188   : > { %v7089_v11 = vpop.f32.mrf.mxu0  ;;  %5381 = vmatmul.msk.f32.gmra.mxu1 %vm476_vm0, %v1417_v14  ;;  %5445 = vmatmul.msk.f32.gmra.mxu2 %vm476_vm0, %v1417_v14 }
 0x189   : > { %10132 = vst [vmem:[#allocation39_spill] sm:$0xff] %v7089_v11  ;;  %5509 = vmatmul.msk.f32.gmra.mxu3 %vm476_vm0, %v1417_v14  ;;  %v7098_v53 = vpop.f32.mrf.mxu2  ;;  %v1418_v14 = vadd.f32 %v1319_v9, %v906_v15 }
 0x18a   : > { %5576 = vmatmul.msk.f32.gmra.mxu0 %vm2354_vm1, %v2314_v36  ;;  %v7100_v27 = vpop.f32.mrf.mxu3  ;;  %v2315_v36 = vld [vmem:[%s6564_s15 + $0xf8] sm:$0xff] }
 0x18b   : > { %10133 = vst [vmem:[#allocation40_spill] sm:$0xff] %v7100_v27  ;;  %v7106_v11 = vpop.f32.mrf.mxu1  ;;  %v2316_v27 = vld [vmem:[%s6564_s15 + $0x100] sm:$0xff] }
 0x18c   : > { %10134 = vst [vmem:[#allocation41_spill] sm:$0xff] %v7106_v11  ;;  %v6074_v42 = vpop.eup %6073 }
 0x190   : > { %v7108_v21 = vpop.f32.mrf.mxu0  ;;  %5382 = vmatmul.msk.f32.gmra.mxu1 %vm476_vm0, %v1418_v14  ;;  %5446 = vmatmul.msk.f32.gmra.mxu2 %vm476_vm0, %v1418_v14 }
 0x191   : > { %10135 = vst [vmem:[#allocation42_spill] sm:$0xff] %v7108_v21  ;;  %5510 = vmatmul.msk.f32.gmra.mxu3 %vm476_vm0, %v1418_v14  ;;  %v7120_v15 = vpop.f32.mrf.mxu2  ;;  %v1419_v21 = vadd.f32 %v1321_v18, %v907_v54  ;;  %v7145_v18 = vadd.f32 %v6988_v8, %v6616_v55 }
 0x192   : > { %5577 = vmatmul.msk.f32.gmra.mxu0 %vm2354_vm1, %v2315_v36  ;;  %10136 = vst [vmem:[#allocation43_spill] sm:$0xff] %v7120_v15  ;;  %v7122_v9 = vpop.f32.mrf.mxu3  ;;  %v1229_v36 = vadd.f32 1.0, %v6070_v38  ;;  %v976_v15 = vand.u32 2147483647, %v7126_v0 }
 0x193   : > { %v977_v4 = vand.u32 2147483647, %v7145_v18 }
 0x194   : > { %6075 = vlog2.f32 %v1229_v36  ;;  %v1040_v54 = vsub.f32 0.0, %v976_v15  ;;  %v1230_v36 = vadd.f32 1.0, %v6074_v42  ;;  %v909_v15 = vmax.f32 %v7066_v23, 0.0 }
 0x195   : > { %v7128_v14 = vpop.f32.mrf.mxu1  ;;  %6077 = vpow2.f32 %v1136_v26 }
 0x196   : > { %10137 = vst [vmem:[#allocation44_spill] sm:$0xff] %v7128_v14  ;;  %v1138_v37 = vmul.f32 1.442695, %v1040_v54  ;;  %6079 = vlog2.f32 %v1230_v36  ;;  %v7164_v54 = vadd.f32 %v6988_v8, %v6631_v6 }
 0x198   : > { %v7130_v11 = vpop.f32.mrf.mxu0  ;;  %5383 = vmatmul.msk.f32.gmra.mxu1 %vm476_vm0, %v1419_v21  ;;  %5447 = vmatmul.msk.f32.gmra.mxu2 %vm476_vm0, %v1419_v21  ;;  %6081 = vpow2.f32 %v1138_v37  ;;  %v910_v37 = vmax.f32 %v7085_v61, 0.0 }
 0x199   : > { %10138 = vst [vmem:[#allocation45_spill] sm:$0xff] %v7130_v11  ;;  %5511 = vmatmul.msk.f32.gmra.mxu3 %vm476_vm0, %v1419_v21  ;;  %v1420_v21 = vadd.f32 %v1323_v62, %v908_v10  ;;  %v1041_v62 = vsub.f32 0.0, %v977_v4 }
 0x19a   : > { %5578 = vmatmul.msk.f32.gmra.mxu0 %vm2354_vm1, %v2316_v27  ;;  %v2317_v27 = vld [vmem:[%s6564_s15 + $0x108] sm:$0xff]  ;;  %v6076_v14 = vpop.eup %6075 }
 0x19b   : > { %v7139_v28 = vpop.f32.mrf.mxu2  ;;  %v6078_v55 = vpop.eup %6077  ;;  %v1325_v26 = vmul.f32 0.6931472, %v6076_v14  ;;  %v1140_v23 = vmul.f32 1.442695, %v1041_v62  ;;  %v978_v14 = vand.u32 2147483647, %v7164_v54 }
 0x19c   : > { %v7141_v38 = vpop.f32.mrf.mxu3 }
 0x19d   : > { %10139 = vst [vmem:[#allocation46_spill] sm:$0xff] %v7141_v38  ;;  %v7147_v17 = vpop.f32.mrf.mxu1  ;;  %v6080_v38 = vpop.eup %6079 }
 0x19e   : > { %10140 = vst [vmem:[#allocation47_spill] sm:$0xff] %v7147_v17  ;;  %v6082_v6 = vpop.eup %6081  ;;  %v1327_v4 = vmul.f32 0.6931472, %v6080_v38 }
 0x1a0   : > { %v7149_v11 = vpop.f32.mrf.mxu0  ;;  %5384 = vmatmul.msk.f32.gmra.mxu1 %vm476_vm0, %v1420_v21  ;;  %5448 = vmatmul.msk.f32.gmra.mxu2 %vm476_vm0, %v1420_v21 }
 0x1a1   : > { %10141 = vst [vmem:[#allocation48_spill] sm:$0xff] %v7149_v11  ;;  %5512 = vmatmul.msk.f32.gmra.mxu3 %vm476_vm0, %v1420_v21  ;;  %v1231_v11 = vadd.f32 1.0, %v6078_v55  ;;  %v1421_v21 = vadd.f32 %v1325_v26, %v909_v15  ;;  %v1042_v15 = vsub.f32 0.0, %v978_v14  ;;  %v7181_v26 = vadd.f32 %v6988_v8, %v6647_v25 }
 0x1a2   : > { %5579 = vmatmul.msk.f32.gmra.mxu0 %vm2354_vm1, %v2317_v27  ;;  %v2318_v27 = vld [vmem:[%s6564_s15 + $0x110] sm:$0xff] }
 0x1a3   : > { %v7158_v42 = vpop.f32.mrf.mxu2  ;;  %6083 = vlog2.f32 %v1231_v11  ;;  %v1142_v61 = vmul.f32 1.442695, %v1042_v15  ;;  %v979_v38 = vand.u32 2147483647, %v7181_v26 }
 0x1a4   : > { %v7160_v10 = vpop.f32.mrf.mxu3  ;;  %6085 = vpow2.f32 %v1140_v23  ;;  %v911_v23 = vmax.f32 %v7104_v44, 0.0 }
 0x1a5   : > { %10142 = vst [vmem:[#allocation49_spill] sm:$0xff] %v7160_v10  ;;  %v7166_v36 = vpop.f32.mrf.mxu1 }
 0x1a6   : > { %10143 = vst [vmem:[#allocation50_spill] sm:$0xff] %v7166_v36 }
 0x1a8   : > { %v7168_v17 = vpop.f32.mrf.mxu0  ;;  %5385 = vmatmul.msk.f32.gmra.mxu1 %vm476_vm0, %v1421_v21  ;;  %5449 = vmatmul.msk.f32.gmra.mxu2 %vm476_vm0, %v1421_v21 }
 0x1a9   : > { %10144 = vst [vmem:[#allocation51_spill] sm:$0xff] %v7168_v17  ;;  %5513 = vmatmul.msk.f32.gmra.mxu3 %vm476_vm0, %v1421_v21  ;;  %v1232_v17 = vadd.f32 1.0, %v6082_v6  ;;  %v1422_v21 = vadd.f32 %v1327_v4, %v910_v37  ;;  %v6084_v10 = vpop.eup %6083  ;;  %v1043_v37 = vsub.f32 0.0, %v979_v38  ;;  %v7200_v4 = vadd.f32 %v6988_v8, %v6664_v48 }
 0x1aa   : > { %5580 = vmatmul.msk.f32.gmra.mxu0 %vm2354_vm1, %v2318_v27  ;;  %v2319_v27 = vld [vmem:[%s6564_s15 + $0x118] sm:$0xff]  ;;  %v6086_v25 = vpop.eup %6085  ;;  %v1329_v14 = vmul.f32 0.6931472, %v6084_v10 }
 0x1ab   : > { %v7177_v55 = vpop.f32.mrf.mxu2  ;;  %6087 = vlog2.f32 %v1232_v17  ;;  %v1144_v44 = vmul.f32 1.442695, %v1043_v37  ;;  %v980_v10 = vand.u32 2147483647, %v7200_v4 }
 0x1ac   : > { %v7183_v62 = vpop.f32.mrf.mxu3  ;;  %6089 = vpow2.f32 %v1142_v61  ;;  %v912_v61 = vmax.f32 %v7126_v0, 0.0 }
 0x1ad   : > { %10145 = vst [vmem:[#allocation52_spill] sm:$0xff] %v7183_v62  ;;  %v7185_v11 = vpop.f32.mrf.mxu1 }
 0x1ae   : > { %10146 = vst [vmem:[#allocation53_spill] sm:$0xff] %v7185_v11 }
 0x1b0   : > { %v7187_v36 = vpop.f32.mrf.mxu0  ;;  %5386 = vmatmul.msk.f32.gmra.mxu1 %vm476_vm0, %v1422_v21  ;;  %5450 = vmatmul.msk.f32.gmra.mxu2 %vm476_vm0, %v1422_v21 }
 0x1b1   : > { %10147 = vst [vmem:[#allocation54_spill] sm:$0xff] %v7187_v36  ;;  %5514 = vmatmul.msk.f32.gmra.mxu3 %vm476_vm0, %v1422_v21  ;;  %v1233_v36 = vadd.f32 1.0, %v6086_v25  ;;  %v1423_v21 = vadd.f32 %v1329_v14, %v911_v23  ;;  %v6088_v62 = vpop.eup %6087  ;;  %v1044_v23 = vsub.f32 0.0, %v980_v10  ;;  %v7219_v14 = vadd.f32 %v6988_v8, %v6680_v2 }
 0x1b2   : > { %5581 = vmatmul.msk.f32.gmra.mxu0 %vm2354_vm1, %v2319_v27  ;;  %v2320_v27 = vld [vmem:[%s6564_s15 + $0x120] sm:$0xff]  ;;  %v6090_v48 = vpop.eup %6089  ;;  %v1331_v38 = vmul.f32 0.6931472, %v6088_v62 }
 0x1b3   : > { %v7196_v6 = vpop.f32.mrf.mxu2  ;;  %6091 = vlog2.f32 %v1233_v36  ;;  %v1146_v0 = vmul.f32 1.442695, %v1044_v23  ;;  %v981_v62 = vand.u32 2147483647, %v7219_v14 }
 0x1b4   : > { %v7202_v15 = vpop.f32.mrf.mxu3  ;;  %6093 = vpow2.f32 %v1144_v44  ;;  %v913_v44 = vmax.f32 %v7145_v18, 0.0 }
 0x1b5   : > { %10148 = vst [vmem:[#allocation55_spill] sm:$0xff] %v7202_v15  ;;  %v7204_v17 = vpop.f32.mrf.mxu1 }
 0x1b6   : > { %10149 = vst [vmem:[#allocation56_spill] sm:$0xff] %v7204_v17 }
 0x1b8   : > { %v7206_v11 = vpop.f32.mrf.mxu0  ;;  %5387 = vmatmul.msk.f32.gmra.mxu1 %vm476_vm0, %v1423_v21  ;;  %5451 = vmatmul.msk.f32.gmra.mxu2 %vm476_vm0, %v1423_v21 }
 0x1b9   : > { %10150 = vst [vmem:[#allocation57_spill] sm:$0xff] %v7206_v11  ;;  %5515 = vmatmul.msk.f32.gmra.mxu3 %vm476_vm0, %v1423_v21  ;;  %v1234_v11 = vadd.f32 1.0, %v6090_v48  ;;  %v1424_v21 = vadd.f32 %v1331_v38, %v912_v61  ;;  %v6092_v15 = vpop.eup %6091  ;;  %v1045_v61 = vsub.f32 0.0, %v981_v62  ;;  %v7238_v38 = vadd.f32 %v6988_v8, %v6696_v33 }
 0x1ba   : > { %5582 = vmatmul.msk.f32.gmra.mxu0 %vm2354_vm1, %v2320_v27  ;;  %v2321_v27 = vld [vmem:[%s6564_s15 + $0x128] sm:$0xff]  ;;  %v6094_v2 = vpop.eup %6093  ;;  %v1333_v10 = vmul.f32 0.6931472, %v6092_v15 }
 0x1bb   : > { %v7215_v25 = vpop.f32.mrf.mxu2  ;;  %6095 = vlog2.f32 %v1234_v11  ;;  %v1148_v18 = vmul.f32 1.442695, %v1045_v61  ;;  %v982_v15 = vand.u32 2147483647, %v7238_v38 }
 0x1bc   : > { %v7221_v37 = vpop.f32.mrf.mxu3  ;;  %6097 = vpow2.f32 %v1146_v0  ;;  %v914_v0 = vmax.f32 %v7164_v54, 0.0 }
 0x1bd   : > { %10151 = vst [vmem:[#allocation58_spill] sm:$0xff] %v7221_v37  ;;  %v7223_v36 = vpop.f32.mrf.mxu1 }
 0x1be   : > { %10152 = vst [vmem:[#allocation59_spill] sm:$0xff] %v7223_v36 }
 0x1c0   : > { %v7225_v17 = vpop.f32.mrf.mxu0  ;;  %5388 = vmatmul.msk.f32.gmra.mxu1 %vm476_vm0, %v1424_v21  ;;  %5452 = vmatmul.msk.f32.gmra.mxu2 %vm476_vm0, %v1424_v21 }
 0x1c1   : > { %10153 = vst [vmem:[#allocation60_spill] sm:$0xff] %v7225_v17  ;;  %5516 = vmatmul.msk.f32.gmra.mxu3 %vm476_vm0, %v1424_v21  ;;  %v1235_v17 = vadd.f32 1.0, %v6094_v2  ;;  %v1425_v21 = vadd.f32 %v1333_v10, %v913_v44  ;;  %v6096_v37 = vpop.eup %6095  ;;  %v1046_v44 = vsub.f32 0.0, %v982_v15  ;;  %v7257_v10 = vadd.f32 %v6988_v8, %v6712_v57 }
 0x1c2   : > { %5583 = vmatmul.msk.f32.gmra.mxu0 %vm2354_vm1, %v2321_v27  ;;  %v2322_v27 = vld [vmem:[%s6564_s15 + $0x130] sm:$0xff]  ;;  %v6098_v33 = vpop.eup %6097  ;;  %v1335_v62 = vmul.f32 0.6931472, %v6096_v37 }
 0x1c3   : > { %v7234_v48 = vpop.f32.mrf.mxu2  ;;  %6099 = vlog2.f32 %v1235_v17  ;;  %v1150_v54 = vmul.f32 1.442695, %v1046_v44  ;;  %v983_v37 = vand.u32 2147483647, %v7257_v10 }
 0x1c4   : > { %v7240_v23 = vpop.f32.mrf.mxu3  ;;  %6101 = vpow2.f32 %v1148_v18  ;;  %v915_v18 = vmax.f32 %v7181_v26, 0.0 }
 0x1c5   : > { %10154 = vst [vmem:[#allocation61_spill] sm:$0xff] %v7240_v23  ;;  %v7242_v11 = vpop.f32.mrf.mxu1 }
 0x1c6   : > { %10155 = vst [vmem:[#allocation62_spill] sm:$0xff] %v7242_v11 }
 0x1c8   : > { %v7244_v36 = vpop.f32.mrf.mxu0  ;;  %5389 = vmatmul.msk.f32.gmra.mxu1 %vm476_vm0, %v1425_v21  ;;  %5453 = vmatmul.msk.f32.gmra.mxu2 %vm476_vm0, %v1425_v21 }
 0x1c9   : > { %10156 = vst [vmem:[#allocation63_spill] sm:$0xff] %v7244_v36  ;;  %5517 = vmatmul.msk.f32.gmra.mxu3 %vm476_vm0, %v1425_v21  ;;  %v1236_v36 = vadd.f32 1.0, %v6098_v33  ;;  %v1426_v21 = vadd.f32 %v1335_v62, %v914_v0  ;;  %v6100_v23 = vpop.eup %6099  ;;  %v1047_v0 = vsub.f32 0.0, %v983_v37  ;;  %v7276_v62 = vadd.f32 %v6988_v8, %v6729_v5 }
 0x1ca   : > { %5584 = vmatmul.msk.f32.gmra.mxu0 %vm2354_vm1, %v2322_v27  ;;  %v2323_v27 = vld [vmem:[%s6564_s15 + $0x138] sm:$0xff]  ;;  %v6102_v57 = vpop.eup %6101  ;;  %v1337_v15 = vmul.f32 0.6931472, %v6100_v23 }
 0x1cb   : > { %v7253_v2 = vpop.f32.mrf.mxu2  ;;  %6103 = vlog2.f32 %v1236_v36  ;;  %v1152_v26 = vmul.f32 1.442695, %v1047_v0  ;;  %v984_v23 = vand.u32 2147483647, %v7276_v62 }
 0x1cc   : > { %v7259_v61 = vpop.f32.mrf.mxu3  ;;  %6105 = vpow2.f32 %v1150_v54  ;;  %v916_v54 = vmax.f32 %v7200_v4, 0.0 }
 0x1cd   : > { %10157 = vst [vmem:[#allocation64_spill] sm:$0xff] %v7259_v61  ;;  %v7261_v17 = vpop.f32.mrf.mxu1 }
 0x1ce   : > { %10158 = vst [vmem:[#allocation65_spill] sm:$0xff] %v7261_v17 }
 0x1d0   : > { %v7263_v11 = vpop.f32.mrf.mxu0  ;;  %5390 = vmatmul.msk.f32.gmra.mxu1 %vm476_vm0, %v1426_v21  ;;  %5454 = vmatmul.msk.f32.gmra.mxu2 %vm476_vm0, %v1426_v21 }
 0x1d1   : > { %10159 = vst [vmem:[#allocation66_spill] sm:$0xff] %v7263_v11  ;;  %5518 = vmatmul.msk.f32.gmra.mxu3 %vm476_vm0, %v1426_v21  ;;  %v1237_v11 = vadd.f32 1.0, %v6102_v57  ;;  %v1427_v21 = vadd.f32 %v1337_v15, %v915_v18  ;;  %v6104_v61 = vpop.eup %6103  ;;  %v1048_v18 = vsub.f32 0.0, %v984_v23  ;;  %v7295_v15 = vadd.f32 %v6988_v8, %v6745_v58 }
 0x1d2   : > { %5585 = vmatmul.msk.f32.gmra.mxu0 %vm2354_vm1, %v2323_v27  ;;  %v2324_v27 = vld [vmem:[%s6564_s15 + $0x140] sm:$0xff]  ;;  %v6106_v5 = vpop.eup %6105  ;;  %v1339_v37 = vmul.f32 0.6931472, %v6104_v61 }
 0x1d3   : > { %v7272_v33 = vpop.f32.mrf.mxu2  ;;  %6107 = vlog2.f32 %v1237_v11  ;;  %v1154_v4 = vmul.f32 1.442695, %v1048_v18  ;;  %v985_v61 = vand.u32 2147483647, %v7295_v15 }
 0x1d4   : > { %v7278_v44 = vpop.f32.mrf.mxu3  ;;  %6109 = vpow2.f32 %v1152_v26  ;;  %v917_v26 = vmax.f32 %v7219_v14, 0.0 }
 0x1d5   : > { %10160 = vst [vmem:[#allocation67_spill] sm:$0xff] %v7278_v44  ;;  %v7280_v36 = vpop.f32.mrf.mxu1 }
 0x1d6   : > { %10161 = vst [vmem:[#allocation68_spill] sm:$0xff] %v7280_v36 }
 0x1d8   : > { %v7282_v17 = vpop.f32.mrf.mxu0  ;;  %5391 = vmatmul.msk.f32.gmra.mxu1 %vm476_vm0, %v1427_v21  ;;  %5455 = vmatmul.msk.f32.gmra.mxu2 %vm476_vm0, %v1427_v21 }
 0x1d9   : > { %10162 = vst [vmem:[#allocation69_spill] sm:$0xff] %v7282_v17  ;;  %5519 = vmatmul.msk.f32.gmra.mxu3 %vm476_vm0, %v1427_v21  ;;  %v1238_v17 = vadd.f32 1.0, %v6106_v5  ;;  %v1428_v21 = vadd.f32 %v1339_v37, %v916_v54  ;;  %v6108_v44 = vpop.eup %6107  ;;  %v1049_v54 = vsub.f32 0.0, %v985_v61  ;;  %v7314_v37 = vadd.f32 %v6988_v8, %v6761_v34 }
 0x1da   : > { %5586 = vmatmul.msk.f32.gmra.mxu0 %vm2354_vm1, %v2324_v27  ;;  %v2325_v27 = vld [vmem:[%s6564_s15 + $0x148] sm:$0xff]  ;;  %v6110_v58 = vpop.eup %6109  ;;  %v1341_v23 = vmul.f32 0.6931472, %v6108_v44 }
 0x1db   : > { %v7291_v57 = vpop.f32.mrf.mxu2  ;;  %6111 = vlog2.f32 %v1238_v17  ;;  %v1156_v14 = vmul.f32 1.442695, %v1049_v54  ;;  %v986_v44 = vand.u32 2147483647, %v7314_v37 }
 0x1dc   : > { %v7297_v0 = vpop.f32.mrf.mxu3  ;;  %6113 = vpow2.f32 %v1154_v4  ;;  %v918_v4 = vmax.f32 %v7238_v38, 0.0 }
 0x1dd   : > { %10163 = vst [vmem:[#allocation70_spill] sm:$0xff] %v7297_v0  ;;  %v7299_v11 = vpop.f32.mrf.mxu1 }
 0x1de   : > { %10164 = vst [vmem:[#allocation71_spill] sm:$0xff] %v7299_v11 }
 0x1e0   : > { %v7301_v36 = vpop.f32.mrf.mxu0  ;;  %5392 = vmatmul.msk.f32.gmra.mxu1 %vm476_vm0, %v1428_v21  ;;  %5456 = vmatmul.msk.f32.gmra.mxu2 %vm476_vm0, %v1428_v21 }
 0x1e1   : > { %10165 = vst [vmem:[#allocation72_spill] sm:$0xff] %v7301_v36  ;;  %5520 = vmatmul.msk.f32.gmra.mxu3 %vm476_vm0, %v1428_v21  ;;  %v1239_v36 = vadd.f32 1.0, %v6110_v58  ;;  %v1429_v21 = vadd.f32 %v1341_v23, %v917_v26  ;;  %v6112_v0 = vpop.eup %6111  ;;  %v1050_v26 = vsub.f32 0.0, %v986_v44  ;;  %v7333_v23 = vadd.f32 %v6988_v8, %v6784_v13 }
 0x1e2   : > { %5587 = vmatmul.msk.f32.gmra.mxu0 %vm2354_vm1, %v2325_v27  ;;  %v2326_v27 = vld [vmem:[%s6564_s15 + $0x150] sm:$0xff]  ;;  %v6114_v34 = vpop.eup %6113  ;;  %v1343_v61 = vmul.f32 0.6931472, %v6112_v0 }
 0x1e3   : > { %v7310_v5 = vpop.f32.mrf.mxu2  ;;  %6115 = vlog2.f32 %v1239_v36  ;;  %v1158_v38 = vmul.f32 1.442695, %v1050_v26  ;;  %v987_v0 = vand.u32 2147483647, %v7333_v23 }
 0x1e4   : > { %v7316_v18 = vpop.f32.mrf.mxu3  ;;  %6117 = vpow2.f32 %v1156_v14  ;;  %v919_v14 = vmax.f32 %v7257_v10, 0.0 }
 0x1e5   : > { %10166 = vst [vmem:[#allocation73_spill] sm:$0xff] %v7316_v18  ;;  %v7318_v17 = vpop.f32.mrf.mxu1 }
 0x1e6   : > { %10167 = vst [vmem:[#allocation74_spill] sm:$0xff] %v7318_v17 }
 0x1e8   : > { %v7320_v11 = vpop.f32.mrf.mxu0  ;;  %5393 = vmatmul.msk.f32.gmra.mxu1 %vm476_vm0, %v1429_v21  ;;  %5457 = vmatmul.msk.f32.gmra.mxu2 %vm476_vm0, %v1429_v21 }
 0x1e9   : > { %10168 = vst [vmem:[#allocation75_spill] sm:$0xff] %v7320_v11  ;;  %5521 = vmatmul.msk.f32.gmra.mxu3 %vm476_vm0, %v1429_v21  ;;  %v1240_v11 = vadd.f32 1.0, %v6114_v34  ;;  %v1430_v21 = vadd.f32 %v1343_v61, %v918_v4  ;;  %v6116_v18 = vpop.eup %6115  ;;  %v1051_v4 = vsub.f32 0.0, %v987_v0  ;;  %v7352_v61 = vadd.f32 %v6988_v8, %v6807_v12 }
 0x1ea   : > { %5588 = vmatmul.msk.f32.gmra.mxu0 %vm2354_vm1, %v2326_v27  ;;  %v2327_v27 = vld [vmem:[%s6564_s15 + $0x158] sm:$0xff]  ;;  %v6118_v13 = vpop.eup %6117  ;;  %v1345_v44 = vmul.f32 0.6931472, %v6116_v18 }
 0x1eb   : > { %v7329_v58 = vpop.f32.mrf.mxu2  ;;  %6119 = vlog2.f32 %v1240_v11  ;;  %v1160_v10 = vmul.f32 1.442695, %v1051_v4  ;;  %v988_v18 = vand.u32 2147483647, %v7352_v61 }
 0x1ec   : > { %v7335_v54 = vpop.f32.mrf.mxu3  ;;  %6121 = vpow2.f32 %v1158_v38  ;;  %v920_v38 = vmax.f32 %v7276_v62, 0.0 }
 0x1ed   : > { %10169 = vst [vmem:[#allocation76_spill] sm:$0xff] %v7335_v54  ;;  %v7337_v36 = vpop.f32.mrf.mxu1 }
 0x1ee   : > { %10170 = vst [vmem:[#allocation77_spill] sm:$0xff] %v7337_v36 }
 0x1f0   : > { %v7339_v17 = vpop.f32.mrf.mxu0  ;;  %5394 = vmatmul.msk.f32.gmra.mxu1 %vm476_vm0, %v1430_v21  ;;  %5458 = vmatmul.msk.f32.gmra.mxu2 %vm476_vm0, %v1430_v21 }
 0x1f1   : > { %10171 = vst [vmem:[#allocation78_spill] sm:$0xff] %v7339_v17  ;;  %5522 = vmatmul.msk.f32.gmra.mxu3 %vm476_vm0, %v1430_v21  ;;  %v1241_v17 = vadd.f32 1.0, %v6118_v13  ;;  %v1431_v21 = vadd.f32 %v1345_v44, %v919_v14  ;;  %v6120_v54 = vpop.eup %6119  ;;  %v1052_v14 = vsub.f32 0.0, %v988_v18  ;;  %v7371_v44 = vadd.f32 %v6988_v8, %v6828_v22 }
 0x1f2   : > { %5589 = vmatmul.msk.f32.gmra.mxu0 %vm2354_vm1, %v2327_v27  ;;  %v2328_v27 = vld [vmem:[%s6564_s15 + $0x160] sm:$0xff]  ;;  %v6122_v12 = vpop.eup %6121  ;;  %v1347_v0 = vmul.f32 0.6931472, %v6120_v54 }
 0x1f3   : > { %v7348_v34 = vpop.f32.mrf.mxu2  ;;  %6123 = vlog2.f32 %v1241_v17  ;;  %v1162_v62 = vmul.f32 1.442695, %v1052_v14  ;;  %v989_v54 = vand.u32 2147483647, %v7371_v44 }
 0x1f4   : > { %v7354_v26 = vpop.f32.mrf.mxu3  ;;  %6125 = vpow2.f32 %v1160_v10  ;;  %v921_v10 = vmax.f32 %v7295_v15, 0.0 }
 0x1f5   : > { %10172 = vst [vmem:[#allocation79_spill] sm:$0xff] %v7354_v26  ;;  %v7356_v11 = vpop.f32.mrf.mxu1 }
 0x1f6   : > { %10173 = vst [vmem:[#allocation80_spill] sm:$0xff] %v7356_v11 }
 0x1f8   : > { %v7358_v36 = vpop.f32.mrf.mxu0  ;;  %5395 = vmatmul.msk.f32.gmra.mxu1 %vm476_vm0, %v1431_v21  ;;  %5459 = vmatmul.msk.f32.gmra.mxu2 %vm476_vm0, %v1431_v21 }
 0x1f9   : > { %10174 = vst [vmem:[#allocation81_spill] sm:$0xff] %v7358_v36  ;;  %5523 = vmatmul.msk.f32.gmra.mxu3 %vm476_vm0, %v1431_v21  ;;  %v1242_v36 = vadd.f32 1.0, %v6122_v12  ;;  %v1432_v21 = vadd.f32 %v1347_v0, %v920_v38  ;;  %v6124_v26 = vpop.eup %6123  ;;  %v7390_v38 = vadd.f32 %v6988_v8, %v6580_v19  ;;  %v1053_v0 = vsub.f32 0.0, %v989_v54  ;;  %v2350_v19 = vld [vmem:[%s10091_s7 + $0x10] sm:$0xff] }
 0x1fa   : > { %5590 = vmatmul.msk.f32.gmra.mxu0 %vm2354_vm1, %v2328_v27  ;;  %v2329_v27 = vld [vmem:[%s6564_s15 + $0x168] sm:$0xff]  ;;  %v6126_v22 = vpop.eup %6125  ;;  %v1349_v18 = vmul.f32 0.6931472, %v6124_v26  ;;  %2980 = vmatpush.msra.mxu2 %v2350_v19 }
 0x1fb   : > { %v7367_v13 = vpop.f32.mrf.mxu2  ;;  %6127 = vlog2.f32 %v1242_v36  ;;  %v990_v15 = vand.u32 2147483647, %v7390_v38  ;;  %v1164_v26 = vmul.f32 1.442695, %v1053_v0  ;;  %v7415_v0 = vadd.f32 %v6988_v8, %v6590_v29  ;;  %v3239_v29 = vld [vmem:[%s10092_s8 + $0x8] sm:$0xff] }
 0x1fc   : > { %v7373_v4 = vpop.f32.mrf.mxu3  ;;  %6129 = vpow2.f32 %v1162_v62  ;;  %v3238_v62 = vld [vmem:[%s10092_s8] sm:$0xff]  ;;  %3671 = vmatpush.msra.mxu0 %v3239_v29 }
 0x1fd   : > { %10175 = vst [vmem:[#allocation82_spill] sm:$0xff] %v7373_v4  ;;  %v7375_v17 = vpop.f32.mrf.mxu1  ;;  %3462 = vmatpush.msra.mxu3 %v3238_v62  ;;  %v991_v62 = vand.u32 2147483647, %v7415_v0 }
 0x1fe   : > { %10176 = vst [vmem:[#allocation83_spill] sm:$0xff] %v7375_v17 }
 0x200   : > { %v7377_v11 = vpop.f32.mrf.mxu0  ;;  %5396 = vmatmul.msk.f32.gmra.mxu1 %vm476_vm0, %v1432_v21  ;;  %5460 = vmatmul.msk.f32.gmra.mxu2 %vm476_vm0, %v1432_v21 }
 0x201   : > { %10177 = vst [vmem:[#allocation84_spill] sm:$0xff] %v7377_v11  ;;  %5524 = vmatmul.msk.f32.gmra.mxu3 %vm476_vm0, %v1432_v21  ;;  %v1243_v11 = vadd.f32 1.0, %v6126_v22  ;;  %v1433_v21 = vadd.f32 %v1349_v18, %v921_v10  ;;  %v6128_v4 = vpop.eup %6127  ;;  %v922_v22 = vmax.f32 %v7314_v37, 0.0  ;;  %v1054_v18 = vsub.f32 0.0, %v990_v15  ;;  %v2331_v37 = vld [vmem:[%s6564_s15 + $0x178] sm:$0xff] }
 0x202   : > { %5591 = vmatmul.msk.f32.gmra.mxu0 %vm2354_vm1, %v2329_v27  ;;  %v2330_v27 = vld [vmem:[%s6564_s15 + $0x170] sm:$0xff]  ;;  %v6130_v54 = vpop.eup %6129  ;;  %v1351_v10 = vmul.f32 0.6931472, %v6128_v4 }
 0x203   : > { %v7386_v12 = vpop.f32.mrf.mxu2  ;;  %6131 = vlog2.f32 %v1243_v11  ;;  %v1166_v19 = vmul.f32 1.442695, %v1054_v18  ;;  %v7437_v18 = vadd.f32 %v6988_v8, %v6603_v43 }
 0x204   : > { %v7392_v14 = vpop.f32.mrf.mxu3  ;;  %6133 = vpow2.f32 %v1164_v26  ;;  %v923_v26 = vmax.f32 %v7333_v23, 0.0 }
 0x205   : > { %10178 = vst [vmem:[#allocation85_spill] sm:$0xff] %v7392_v14  ;;  %v7394_v36 = vpop.f32.mrf.mxu1  ;;  %v992_v29 = vand.u32 2147483647, %v7437_v18 }
 0x206   : > { %10179 = vst [vmem:[#allocation86_spill] sm:$0xff] %v7394_v36  ;;  %v1434_v36 = vadd.f32 %v1351_v10, %v922_v22  ;;  %v1055_v10 = vsub.f32 0.0, %v991_v62 }
 0x208   : > { %v7396_v17 = vpop.f32.mrf.mxu0  ;;  %5397 = vmatmul.msk.f32.gmra.mxu1 %vm476_vm0, %v1433_v21  ;;  %5461 = vmatmul.msk.f32.gmra.mxu2 %vm476_vm0, %v1433_v21 }
 0x209   : > { %10180 = vst [vmem:[#allocation87_spill] sm:$0xff] %v7396_v17  ;;  %5525 = vmatmul.msk.f32.gmra.mxu3 %vm476_vm0, %v1433_v21  ;;  %v6132_v4 = vpop.eup %6131 }
 0x20a   : > { %5592 = vmatmul.msk.f32.gmra.mxu0 %vm2354_vm1, %v2330_v27  ;;  %v1244_v27 = vadd.f32 1.0, %v6130_v54  ;;  %v6134_v15 = vpop.eup %6133  ;;  %v1353_v54 = vmul.f32 0.6931472, %v6132_v4  ;;  %v1168_v4 = vmul.f32 1.442695, %v1055_v10 }
 0x20b   : > { %v7411_v11 = vpop.f32.mrf.mxu2 }
 0x20c   : > { %v7417_v21 = vpop.f32.mrf.mxu3  ;;  %6135 = vlog2.f32 %v1244_v27  ;;  %v1245_v27 = vadd.f32 1.0, %v6134_v15 }
 0x20d   : > { %10181 = vst [vmem:[#allocation88_spill] sm:$0xff] %v7417_v21  ;;  %v7419_v17 = vpop.f32.mrf.mxu1  ;;  %6137 = vpow2.f32 %v1166_v19  ;;  %v2332_v21 = vld [vmem:[%s6564_s15 + $0x180] sm:$0xff]  ;;  %v924_v19 = vmax.f32 %v7352_v61, 0.0 }
 0x20e   : > { %10182 = vst [vmem:[#allocation89_spill] sm:$0xff] %v7419_v17  ;;  %6139 = vlog2.f32 %v1245_v27 }
 0x20f   : > { %6141 = vpow2.f32 %v1168_v4 }
 0x210   : > { %v7421_v14 = vpop.f32.mrf.mxu0  ;;  %5398 = vmatmul.msk.f32.gmra.mxu1 %vm476_vm0, %v1434_v36  ;;  %5462 = vmatmul.msk.f32.gmra.mxu2 %vm476_vm0, %v1434_v36 }
 0x211   : > { %10183 = vst [vmem:[#allocation90_spill] sm:$0xff] %v7421_v14  ;;  %5526 = vmatmul.msk.f32.gmra.mxu3 %vm476_vm0, %v1434_v36  ;;  %v1435_v14 = vadd.f32 %v1353_v54, %v923_v26  ;;  %v1056_v26 = vsub.f32 0.0, %v992_v29  ;;  %v7456_v54 = vadd.f32 %v6988_v8, %v6618_v56  ;;  %v925_v8 = vmax.f32 %v7371_v44, 0.0 }
 0x212   : > { %5593 = vmatmul.msk.f32.gmra.mxu0 %vm2354_vm1, %v2331_v37  ;;  %v6136_v23 = vpop.eup %6135 }
 0x213   : > { %v7433_v22 = vpop.f32.mrf.mxu2  ;;  %v6138_v43 = vpop.eup %6137  ;;  %v1355_v62 = vmul.f32 0.6931472, %v6136_v23  ;;  %v1170_v61 = vmul.f32 1.442695, %v1056_v26  ;;  %v993_v23 = vand.u32 2147483647, %v7456_v54 }
 0x214   : > { %v7439_v36 = vpop.f32.mrf.mxu3 }
 0x215   : > { %10184 = vst [vmem:[#allocation91_spill] sm:$0xff] %v7439_v36  ;;  %v7441_v37 = vpop.f32.mrf.mxu1  ;;  %v6140_v36 = vpop.eup %6139 }
 0x216   : > { %10185 = vst [vmem:[#allocation92_spill] sm:$0xff] %v7441_v37  ;;  %v6142_v56 = vpop.eup %6141  ;;  %v1357_v4 = vmul.f32 0.6931472, %v6140_v36 }
 0x217   : > { %v1247_v26 = vadd.f32 1.0, %v6142_v56  ;;  %v926_v56 = vmax.f32 %v7390_v38, 0.0 }
 0x218   : > { %v7443_v17 = vpop.f32.mrf.mxu0  ;;  %5399 = vmatmul.msk.f32.gmra.mxu1 %vm476_vm0, %v1435_v14  ;;  %5463 = vmatmul.msk.f32.gmra.mxu2 %vm476_vm0, %v1435_v14  ;;  %v1437_v44 = vadd.f32 %v1357_v4, %v925_v8 }
 0x219   : > { %10186 = vst [vmem:[#allocation93_spill] sm:$0xff] %v7443_v17  ;;  %5527 = vmatmul.msk.f32.gmra.mxu3 %vm476_vm0, %v1435_v14  ;;  %v1246_v17 = vadd.f32 1.0, %v6138_v43  ;;  %v1436_v14 = vadd.f32 %v1355_v62, %v924_v19  ;;  %v1057_v43 = vsub.f32 0.0, %v993_v23  ;;  %v7476_v19 = vld [vmem:[%s10088_s4] ss:$0 sm:$0xff] }
 0x21a   : > { %5594 = vmatmul.msk.f32.gmra.mxu0 %vm2354_vm1, %v2332_v21  ;;  %v2333_v21 = vld [vmem:[%s6564_s15 + $0x188] sm:$0xff] }
 0x21b   : > { %v7452_v15 = vpop.f32.mrf.mxu2  ;;  %6143 = vlog2.f32 %v1246_v17  ;;  %v7480_v17 = vadd.f32 %v7476_v19, %v6633_v7  ;;  %v1172_v23 = vmul.f32 1.442695, %v1057_v43 }
 0x21c   : > { %v7458_v10 = vpop.f32.mrf.mxu3  ;;  %6145 = vpow2.f32 %v1170_v61 }
 0x21d   : > { %v7460_v27 = vpop.f32.mrf.mxu1  ;;  %6147 = vlog2.f32 %v1247_v26 }
 0x21e   : > { %10187 = vst [vmem:[#allocation94_spill] sm:$0xff] %v7460_v27  ;;  %6149 = vpow2.f32 %v1172_v23 }
 0x220   : > { %v7462_v37 = vpop.f32.mrf.mxu0  ;;  %5400 = vmatmul.msk.f32.gmra.mxu1 %vm476_vm0, %v1436_v14  ;;  %5464 = vmatmul.msk.f32.gmra.mxu2 %vm476_vm0, %v1436_v14 }
 0x221   : > { %10188 = vst [vmem:[#allocation95_spill] sm:$0xff] %v7462_v37  ;;  %5528 = vmatmul.msk.f32.gmra.mxu3 %vm476_vm0, %v1436_v14  ;;  %v6144_v61 = vpop.eup %6143  ;;  %v994_v37 = vand.u32 2147483647, %v7480_v17 }
 0x222   : > { %5595 = vmatmul.msk.f32.gmra.mxu0 %vm2354_vm1, %v2333_v21  ;;  %v2334_v21 = vld [vmem:[%s6564_s15 + $0x190] sm:$0xff]  ;;  %v6146_v7 = vpop.eup %6145  ;;  %v1359_v8 = vmul.f32 0.6931472, %v6144_v61 }
 0x223   : > { %v7471_v29 = vpop.f32.mrf.mxu2  ;;  %v1058_v43 = vsub.f32 0.0, %v994_v37  ;;  %v927_v37 = vmax.f32 %v7415_v0, 0.0 }
 0x224   : > { %10189 = vst [vmem:[#allocation96_spill] sm:$0xff] %v7471_v29  ;;  %v7482_v62 = vpop.f32.mrf.mxu3  ;;  %v6148_v29 = vpop.eup %6147 }
 0x225   : > { %10190 = vst [vmem:[#allocation97_spill] sm:$0xff] %v7482_v62  ;;  %v7484_v14 = vpop.f32.mrf.mxu1  ;;  %v1248_v62 = vadd.f32 1.0, %v6146_v7  ;;  %v1174_v38 = vmul.f32 1.442695, %v1058_v43  ;;  %v1361_v23 = vmul.f32 0.6931472, %v6148_v29 }
 0x226   : > { %10191 = vst [vmem:[#allocation98_spill] sm:$0xff] %v7484_v14 }
 0x227   : > { %6151 = vlog2.f32 %v1248_v62 }
 0x228   : > { %v7486_v36 = vpop.f32.mrf.mxu0  ;;  %5401 = vmatmul.msk.f32.gmra.mxu1 %vm476_vm0, %v1437_v44  ;;  %5465 = vmatmul.msk.f32.gmra.mxu2 %vm476_vm0, %v1437_v44  ;;  %6153 = vpow2.f32 %v1174_v38  ;;  %v928_v38 = vmax.f32 %v7437_v18, 0.0 }
 0x229   : > { %10192 = vst [vmem:[#allocation99_spill] sm:$0xff] %v7486_v36  ;;  %5529 = vmatmul.msk.f32.gmra.mxu3 %vm476_vm0, %v1437_v44  ;;  %v7499_v36 = vadd.f32 %v7476_v19, %v6650_v31  ;;  %v1438_v44 = vadd.f32 %v1359_v8, %v926_v56  ;;  %v6150_v31 = vpop.eup %6149  ;;  %v7518_v8 = vadd.f32 %v7476_v19, %v6666_v49 }
 0x22a   : > { %5596 = vmatmul.msk.f32.gmra.mxu0 %vm2354_vm1, %v2334_v21  ;;  %v2335_v21 = vld [vmem:[%s6564_s15 + $0x198] sm:$0xff] }
 0x22b   : > { %v7495_v4 = vpop.f32.mrf.mxu2  ;;  %v995_v61 = vand.u32 2147483647, %v7499_v36  ;;  %v996_v29 = vand.u32 2147483647, %v7518_v8 }
 0x22c   : > { %v7501_v14 = vpop.f32.mrf.mxu3 }
 0x22d   : > { %10193 = vst [vmem:[#allocation100_spill] sm:$0xff] %v7501_v14  ;;  %v7503_v26 = vpop.f32.mrf.mxu1  ;;  %v1059_v56 = vsub.f32 0.0, %v995_v61  ;;  %v6152_v14 = vpop.eup %6151 }
 0x22e   : > { %10194 = vst [vmem:[#allocation101_spill] sm:$0xff] %v7503_v26  ;;  %v6154_v49 = vpop.eup %6153  ;;  %v1363_v61 = vmul.f32 0.6931472, %v6152_v14 }
 0x22f   : > { %v1176_v0 = vmul.f32 1.442695, %v1059_v56 }
 0x230   : > { %v7505_v27 = vpop.f32.mrf.mxu0  ;;  %5402 = vmatmul.msk.f32.gmra.mxu1 %vm476_vm0, %v1438_v44  ;;  %5466 = vmatmul.msk.f32.gmra.mxu2 %vm476_vm0, %v1438_v44 }
 0x231   : > { %10195 = vst [vmem:[#allocation102_spill] sm:$0xff] %v7505_v27  ;;  %5530 = vmatmul.msk.f32.gmra.mxu3 %vm476_vm0, %v1438_v44  ;;  %v1249_v27 = vadd.f32 1.0, %v6150_v31  ;;  %v1439_v44 = vadd.f32 %v1361_v23, %v927_v37  ;;  %v1060_v37 = vsub.f32 0.0, %v996_v29  ;;  %v7537_v23 = vadd.f32 %v7476_v19, %v6682_v3 }
 0x232   : > { %5597 = vmatmul.msk.f32.gmra.mxu0 %vm2354_vm1, %v2335_v21  ;;  %v2336_v21 = vld [vmem:[%s6564_s15 + $0x1a0] sm:$0xff] }
 0x233   : > { %v7514_v7 = vpop.f32.mrf.mxu2  ;;  %6155 = vlog2.f32 %v1249_v27  ;;  %v1178_v18 = vmul.f32 1.442695, %v1060_v37  ;;  %v997_v14 = vand.u32 2147483647, %v7537_v23 }
 0x234   : > { %v7520_v43 = vpop.f32.mrf.mxu3  ;;  %6157 = vpow2.f32 %v1176_v0  ;;  %v929_v0 = vmax.f32 %v7456_v54, 0.0 }
 0x235   : > { %10196 = vst [vmem:[#allocation103_spill] sm:$0xff] %v7520_v43  ;;  %v7522_v62 = vpop.f32.mrf.mxu1 }
 0x236   : > { %10197 = vst [vmem:[#allocation104_spill] sm:$0xff] %v7522_v62 }
 0x238   : > { %v7524_v26 = vpop.f32.mrf.mxu0  ;;  %5403 = vmatmul.msk.f32.gmra.mxu1 %vm476_vm0, %v1439_v44  ;;  %5467 = vmatmul.msk.f32.gmra.mxu2 %vm476_vm0, %v1439_v44 }
 0x239   : > { %10198 = vst [vmem:[#allocation105_spill] sm:$0xff] %v7524_v26  ;;  %5531 = vmatmul.msk.f32.gmra.mxu3 %vm476_vm0, %v1439_v44  ;;  %v1250_v26 = vadd.f32 1.0, %v6154_v49  ;;  %v1440_v44 = vadd.f32 %v1363_v61, %v928_v38  ;;  %v6156_v43 = vpop.eup %6155  ;;  %v1061_v38 = vsub.f32 0.0, %v997_v14  ;;  %v7556_v61 = vadd.f32 %v7476_v19, %v6698_v35 }
 0x23a   : > { %5598 = vmatmul.msk.f32.gmra.mxu0 %vm2354_vm1, %v2336_v21  ;;  %v2337_v21 = vld [vmem:[%s6564_s15 + $0x1a8] sm:$0xff]  ;;  %v6158_v3 = vpop.eup %6157  ;;  %v1365_v29 = vmul.f32 0.6931472, %v6156_v43 }
 0x23b   : > { %v7533_v31 = vpop.f32.mrf.mxu2  ;;  %6159 = vlog2.f32 %v1250_v26  ;;  %v1180_v54 = vmul.f32 1.442695, %v1061_v38  ;;  %v998_v43 = vand.u32 2147483647, %v7556_v61 }
 0x23c   : > { %v7539_v56 = vpop.f32.mrf.mxu3  ;;  %6161 = vpow2.f32 %v1178_v18  ;;  %v930_v18 = vmax.f32 %v7480_v17, 0.0 }
 0x23d   : > { %10199 = vst [vmem:[#allocation106_spill] sm:$0xff] %v7539_v56  ;;  %v7541_v27 = vpop.f32.mrf.mxu1 }
 0x23e   : > { %10200 = vst [vmem:[#allocation107_spill] sm:$0xff] %v7541_v27 }
 0x240   : > { %v7543_v62 = vpop.f32.mrf.mxu0  ;;  %5404 = vmatmul.msk.f32.gmra.mxu1 %vm476_vm0, %v1440_v44  ;;  %5468 = vmatmul.msk.f32.gmra.mxu2 %vm476_vm0, %v1440_v44 }
 0x241   : > { %10201 = vst [vmem:[#allocation108_spill] sm:$0xff] %v7543_v62  ;;  %5532 = vmatmul.msk.f32.gmra.mxu3 %vm476_vm0, %v1440_v44  ;;  %v1251_v62 = vadd.f32 1.0, %v6158_v3  ;;  %v1441_v44 = vadd.f32 %v1365_v29, %v929_v0  ;;  %v6160_v56 = vpop.eup %6159  ;;  %v1062_v0 = vsub.f32 0.0, %v998_v43  ;;  %v7575_v29 = vadd.f32 %v7476_v19, %v6714_v63 }
 0x242   : > { %5599 = vmatmul.msk.f32.gmra.mxu0 %vm2354_vm1, %v2337_v21  ;;  %v2338_v21 = vld [vmem:[%s6564_s15 + $0x1b0] sm:$0xff]  ;;  %v6162_v35 = vpop.eup %6161  ;;  %v1367_v14 = vmul.f32 0.6931472, %v6160_v56 }
 0x243   : > { %v7552_v49 = vpop.f32.mrf.mxu2  ;;  %6163 = vlog2.f32 %v1251_v62  ;;  %v1182_v17 = vmul.f32 1.442695, %v1062_v0  ;;  %v999_v56 = vand.u32 2147483647, %v7575_v29 }
 0x244   : > { %v7558_v37 = vpop.f32.mrf.mxu3  ;;  %6165 = vpow2.f32 %v1180_v54  ;;  %v931_v54 = vmax.f32 %v7499_v36, 0.0 }
 0x245   : > { %10202 = vst [vmem:[#allocation109_spill] sm:$0xff] %v7558_v37  ;;  %v7560_v26 = vpop.f32.mrf.mxu1 }
 0x246   : > { %10203 = vst [vmem:[#allocation110_spill] sm:$0xff] %v7560_v26 }
 0x248   : > { %v7562_v27 = vpop.f32.mrf.mxu0  ;;  %5405 = vmatmul.msk.f32.gmra.mxu1 %vm476_vm0, %v1441_v44  ;;  %5469 = vmatmul.msk.f32.gmra.mxu2 %vm476_vm0, %v1441_v44 }
 0x249   : > { %10204 = vst [vmem:[#allocation111_spill] sm:$0xff] %v7562_v27  ;;  %5533 = vmatmul.msk.f32.gmra.mxu3 %vm476_vm0, %v1441_v44  ;;  %v1252_v27 = vadd.f32 1.0, %v6162_v35  ;;  %v1442_v44 = vadd.f32 %v1367_v14, %v930_v18  ;;  %v6164_v37 = vpop.eup %6163  ;;  %v1063_v18 = vsub.f32 0.0, %v999_v56  ;;  %v7594_v14 = vadd.f32 %v7476_v19, %v6731_v32 }
 0x24a   : > { %5600 = vmatmul.msk.f32.gmra.mxu0 %vm2354_vm1, %v2338_v21  ;;  %v2339_v21 = vld [vmem:[%s6564_s15 + $0x1b8] sm:$0xff]  ;;  %v6166_v63 = vpop.eup %6165  ;;  %v1369_v43 = vmul.f32 0.6931472, %v6164_v37 }
 0x24b   : > { %v7571_v3 = vpop.f32.mrf.mxu2  ;;  %6167 = vlog2.f32 %v1252_v27  ;;  %v1184_v36 = vmul.f32 1.442695, %v1063_v18  ;;  %v1000_v37 = vand.u32 2147483647, %v7594_v14 }
 0x24c   : > { %v7577_v38 = vpop.f32.mrf.mxu3  ;;  %6169 = vpow2.f32 %v1182_v17  ;;  %v932_v17 = vmax.f32 %v7518_v8, 0.0 }
 0x24d   : > { %10205 = vst [vmem:[#allocation112_spill] sm:$0xff] %v7577_v38  ;;  %v7579_v62 = vpop.f32.mrf.mxu1 }
 0x24e   : > { %10206 = vst [vmem:[#allocation113_spill] sm:$0xff] %v7579_v62 }
 0x250   : > { %v7581_v26 = vpop.f32.mrf.mxu0  ;;  %5406 = vmatmul.msk.f32.gmra.mxu1 %vm476_vm0, %v1442_v44  ;;  %5470 = vmatmul.msk.f32.gmra.mxu2 %vm476_vm0, %v1442_v44 }
 0x251   : > { %10207 = vst [vmem:[#allocation114_spill] sm:$0xff] %v7581_v26  ;;  %5534 = vmatmul.msk.f32.gmra.mxu3 %vm476_vm0, %v1442_v44  ;;  %v1253_v26 = vadd.f32 1.0, %v6166_v63  ;;  %v1443_v44 = vadd.f32 %v1369_v43, %v931_v54  ;;  %v6168_v38 = vpop.eup %6167  ;;  %v1064_v54 = vsub.f32 0.0, %v1000_v37  ;;  %v7613_v43 = vadd.f32 %v7476_v19, %v6747_v1 }
 0x252   : > { %5601 = vmatmul.msk.f32.gmra.mxu0 %vm2354_vm1, %v2339_v21  ;;  %v2340_v21 = vld [vmem:[%s6564_s15 + $0x1c0] sm:$0xff]  ;;  %v6170_v32 = vpop.eup %6169  ;;  %v1371_v56 = vmul.f32 0.6931472, %v6168_v38 }
 0x253   : > { %v7590_v35 = vpop.f32.mrf.mxu2  ;;  %6171 = vlog2.f32 %v1253_v26  ;;  %v1186_v8 = vmul.f32 1.442695, %v1064_v54  ;;  %v1001_v38 = vand.u32 2147483647, %v7613_v43 }
 0x254   : > { %v7596_v0 = vpop.f32.mrf.mxu3  ;;  %6173 = vpow2.f32 %v1184_v36  ;;  %v933_v36 = vmax.f32 %v7537_v23, 0.0 }
 0x255   : > { %10208 = vst [vmem:[#allocation115_spill] sm:$0xff] %v7596_v0  ;;  %v7598_v27 = vpop.f32.mrf.mxu1 }
 0x256   : > { %10209 = vst [vmem:[#allocation116_spill] sm:$0xff] %v7598_v27 }
 0x258   : > { %v7600_v62 = vpop.f32.mrf.mxu0  ;;  %5407 = vmatmul.msk.f32.gmra.mxu1 %vm476_vm0, %v1443_v44  ;;  %5471 = vmatmul.msk.f32.gmra.mxu2 %vm476_vm0, %v1443_v44 }
 0x259   : > { %10210 = vst [vmem:[#allocation117_spill] sm:$0xff] %v7600_v62  ;;  %5535 = vmatmul.msk.f32.gmra.mxu3 %vm476_vm0, %v1443_v44  ;;  %v1254_v62 = vadd.f32 1.0, %v6170_v32  ;;  %v1444_v44 = vadd.f32 %v1371_v56, %v932_v17  ;;  %v6172_v0 = vpop.eup %6171  ;;  %v1065_v17 = vsub.f32 0.0, %v1001_v38  ;;  %v7632_v56 = vadd.f32 %v7476_v19, %v6763_v46 }
 0x25a   : > { %5602 = vmatmul.msk.f32.gmra.mxu0 %vm2354_vm1, %v2340_v21  ;;  %v2341_v21 = vld [vmem:[%s6564_s15 + $0x1c8] sm:$0xff]  ;;  %v6174_v1 = vpop.eup %6173  ;;  %v1373_v37 = vmul.f32 0.6931472, %v6172_v0 }
 0x25b   : > { %v7609_v63 = vpop.f32.mrf.mxu2  ;;  %6175 = vlog2.f32 %v1254_v62  ;;  %v1188_v23 = vmul.f32 1.442695, %v1065_v17  ;;  %v1002_v0 = vand.u32 2147483647, %v7632_v56 }
 0x25c   : > { %v7615_v18 = vpop.f32.mrf.mxu3  ;;  %6177 = vpow2.f32 %v1186_v8  ;;  %v934_v8 = vmax.f32 %v7556_v61, 0.0 }
 0x25d   : > { %10211 = vst [vmem:[#allocation118_spill] sm:$0xff] %v7615_v18  ;;  %v7617_v26 = vpop.f32.mrf.mxu1 }
 0x25e   : > { %10212 = vst [vmem:[#allocation119_spill] sm:$0xff] %v7617_v26 }
 0x260   : > { %v7619_v27 = vpop.f32.mrf.mxu0  ;;  %5408 = vmatmul.msk.f32.gmra.mxu1 %vm476_vm0, %v1444_v44  ;;  %5472 = vmatmul.msk.f32.gmra.mxu2 %vm476_vm0, %v1444_v44 }
 0x261   : > { %10213 = vst [vmem:[#allocation120_spill] sm:$0xff] %v7619_v27  ;;  %5536 = vmatmul.msk.f32.gmra.mxu3 %vm476_vm0, %v1444_v44  ;;  %v1255_v27 = vadd.f32 1.0, %v6174_v1  ;;  %v1445_v44 = vadd.f32 %v1373_v37, %v933_v36  ;;  %v6176_v18 = vpop.eup %6175  ;;  %v1066_v36 = vsub.f32 0.0, %v1002_v0  ;;  %v7651_v37 = vadd.f32 %v7476_v19, %v6788_v40 }
 0x262   : > { %5603 = vmatmul.msk.f32.gmra.mxu0 %vm2354_vm1, %v2341_v21  ;;  %v2342_v21 = vld [vmem:[%s6564_s15 + $0x1d0] sm:$0xff]  ;;  %v6178_v46 = vpop.eup %6177  ;;  %v1375_v38 = vmul.f32 0.6931472, %v6176_v18 }
 0x263   : > { %v7628_v32 = vpop.f32.mrf.mxu2  ;;  %6179 = vlog2.f32 %v1255_v27  ;;  %v1190_v61 = vmul.f32 1.442695, %v1066_v36  ;;  %v1003_v18 = vand.u32 2147483647, %v7651_v37 }
 0x264   : > { %v7634_v54 = vpop.f32.mrf.mxu3  ;;  %6181 = vpow2.f32 %v1188_v23  ;;  %v935_v23 = vmax.f32 %v7575_v29, 0.0 }
 0x265   : > { %10214 = vst [vmem:[#allocation121_spill] sm:$0xff] %v7634_v54  ;;  %v7636_v62 = vpop.f32.mrf.mxu1 }
 0x266   : > { %10215 = vst [vmem:[#allocation122_spill] sm:$0xff] %v7636_v62 }
 0x268   : > { %v7638_v26 = vpop.f32.mrf.mxu0  ;;  %5409 = vmatmul.msk.f32.gmra.mxu1 %vm476_vm0, %v1445_v44  ;;  %5473 = vmatmul.msk.f32.gmra.mxu2 %vm476_vm0, %v1445_v44 }
 0x269   : > { %10216 = vst [vmem:[#allocation123_spill] sm:$0xff] %v7638_v26  ;;  %5537 = vmatmul.msk.f32.gmra.mxu3 %vm476_vm0, %v1445_v44  ;;  %v1256_v26 = vadd.f32 1.0, %v6178_v46  ;;  %v1446_v44 = vadd.f32 %v1375_v38, %v934_v8  ;;  %v6180_v54 = vpop.eup %6179  ;;  %v1067_v8 = vsub.f32 0.0, %v1003_v18  ;;  %v7670_v38 = vadd.f32 %v7476_v19, %v6811_v24 }
 0x26a   : > { %5604 = vmatmul.msk.f32.gmra.mxu0 %vm2354_vm1, %v2342_v21  ;;  %v2343_v21 = vld [vmem:[%s6564_s15 + $0x1d8] sm:$0xff]  ;;  %v6182_v40 = vpop.eup %6181  ;;  %v1377_v0 = vmul.f32 0.6931472, %v6180_v54 }
 0x26b   : > { %v7647_v1 = vpop.f32.mrf.mxu2  ;;  %6183 = vlog2.f32 %v1256_v26  ;;  %v1192_v29 = vmul.f32 1.442695, %v1067_v8  ;;  %v1004_v54 = vand.u32 2147483647, %v7670_v38 }
 0x26c   : > { %v7653_v17 = vpop.f32.mrf.mxu3  ;;  %6185 = vpow2.f32 %v1190_v61  ;;  %v936_v61 = vmax.f32 %v7594_v14, 0.0 }
 0x26d   : > { %10217 = vst [vmem:[#allocation124_spill] sm:$0xff] %v7653_v17  ;;  %v7655_v27 = vpop.f32.mrf.mxu1 }
 0x26e   : > { %10218 = vst [vmem:[#allocation125_spill] sm:$0xff] %v7655_v27 }
 0x270   : > { %v7657_v62 = vpop.f32.mrf.mxu0  ;;  %5410 = vmatmul.msk.f32.gmra.mxu1 %vm476_vm0, %v1446_v44  ;;  %5474 = vmatmul.msk.f32.gmra.mxu2 %vm476_vm0, %v1446_v44 }
 0x271   : > { %10219 = vst [vmem:[#allocation126_spill] sm:$0xff] %v7657_v62  ;;  %5538 = vmatmul.msk.f32.gmra.mxu3 %vm476_vm0, %v1446_v44  ;;  %v1257_v62 = vadd.f32 1.0, %v6182_v40  ;;  %v1447_v44 = vadd.f32 %v1377_v0, %v935_v23  ;;  %v6184_v17 = vpop.eup %6183  ;;  %v1068_v23 = vsub.f32 0.0, %v1004_v54  ;;  %v10225_v0 = vld [vmem:[#allocation3_spill] sm:$0xff] }
 0x272   : > { %5605 = vmatmul.msk.f32.gmra.mxu0 %vm2354_vm1, %v2343_v21  ;;  %v2344_v21 = vld [vmem:[%s6564_s15 + $0x1e0] sm:$0xff]  ;;  %v6186_v24 = vpop.eup %6185  ;;  %v1379_v18 = vmul.f32 0.6931472, %v6184_v17  ;;  %v7689_v8 = vadd.f32 %v7476_v19, %v10225_v0 }
 0x273   : > { %v7666_v46 = vpop.f32.mrf.mxu2  ;;  %6187 = vlog2.f32 %v1257_v62  ;;  %v1194_v14 = vmul.f32 1.442695, %v1068_v23 }
 0x274   : > { %10220 = vst [vmem:[#allocation127_spill] sm:$0xff] %v7666_v46  ;;  %v7672_v36 = vpop.f32.mrf.mxu3  ;;  %6189 = vpow2.f32 %v1192_v29  ;;  %v1005_v17 = vand.u32 2147483647, %v7689_v8  ;;  %v937_v29 = vmax.f32 %v7613_v43, 0.0 }
 0x275   : > { %10221 = vst [vmem:[#allocation128_spill] sm:$0xff] %v7672_v36  ;;  %v7674_v26 = vpop.f32.mrf.mxu1 }
 0x276   : > { %10222 = vst [vmem:[#allocation129_spill] sm:$0xff] %v7674_v26 }
 0x278   : > { %v7676_v27 = vpop.f32.mrf.mxu0  ;;  %5411 = vmatmul.msk.f32.gmra.mxu1 %vm476_vm0, %v1447_v44  ;;  %5475 = vmatmul.msk.f32.gmra.mxu2 %vm476_vm0, %v1447_v44 }
 0x279   : > { %10223 = vst [vmem:[#allocation130_spill] sm:$0xff] %v7676_v27  ;;  %5539 = vmatmul.msk.f32.gmra.mxu3 %vm476_vm0, %v1447_v44  ;;  %v1258_v27 = vadd.f32 1.0, %v6186_v24  ;;  %v1448_v44 = vadd.f32 %v1379_v18, %v936_v61  ;;  %v6188_v36 = vpop.eup %6187  ;;  %v1069_v61 = vsub.f32 0.0, %v1005_v17 }
 0x27a   : > { %5606 = vmatmul.msk.f32.gmra.mxu0 %vm2354_vm1, %v2344_v21  ;;  %v2345_v21 = vld [vmem:[%s6564_s15 + $0x1e8] sm:$0xff]  ;;  %v6190_v19 = vpop.eup %6189  ;;  %v1381_v54 = vmul.f32 0.6931472, %v6188_v36  ;;  %v938_v36 = vmax.f32 %v7632_v56, 0.0 }
 0x27b   : > { %v7685_v40 = vpop.f32.mrf.mxu2  ;;  %6191 = vlog2.f32 %v1258_v27  ;;  %v1259_v23 = vadd.f32 1.0, %v6190_v19  ;;  %v2346_v27 = vld [vmem:[%s6564_s15 + $0x1f0] sm:$0xff]  ;;  %v3243_v56 = vld [vmem:[%s10092_s8 + $0x28] sm:$0x1] }
 0x27c   : > { %10224 = vst [vmem:[#allocation131_spill] sm:$0xff] %v7685_v40  ;;  %v7691_v46 = vpop.f32.mrf.mxu3  ;;  %6193 = vpow2.f32 %v1194_v14  ;;  %v1449_v40 = vadd.f32 %v1381_v54, %v937_v29  ;;  %5868 = vmatpush.msk.msrb.mxu1 %vm3437_vm2, %v3243_v56  ;;  %v940_v56 = vmax.f32 %v7670_v38, 0.0  ;;  %v941_v38 = vmax.f32 %v7689_v8, 0.0 }
 0x27d   : > { %v7693_v62 = vpop.f32.mrf.mxu1  ;;  %6195 = vlog2.f32 %v1259_v23  ;;  %v2347_v23 = vld [vmem:[%s6564_s15 + $0x1f8] sm:$0xff] }
 0x27e   : > { %10226 = vst [vmem:[#allocation3_spill] sm:$0xff] %v7693_v62  ;;  %v1196_v62 = vmul.f32 1.442695, %v1069_v61 }
 0x280   : > { %v7695_v26 = vpop.f32.mrf.mxu0  ;;  %5412 = vmatmul.msk.f32.gmra.mxu1 %vm476_vm0, %v1448_v44  ;;  %5476 = vmatmul.msk.f32.gmra.mxu2 %vm476_vm0, %v1448_v44  ;;  %6197 = vpow2.f32 %v1196_v62 }
 0x281   : > { %10227 = vst [vmem:[#allocation132_spill] sm:$0xff] %v7695_v26  ;;  %5540 = vmatmul.msk.f32.gmra.mxu3 %vm476_vm0, %v1448_v44  ;;  %v6192_v44 = vpop.eup %6191 }
 0x282   : > { %5607 = vmatmul.msk.f32.gmra.mxu0 %vm2354_vm1, %v2345_v21  ;;  %v6194_v43 = vpop.eup %6193  ;;  %v1383_v21 = vmul.f32 0.6931472, %v6192_v44 }
 0x283   : > { %v7704_v24 = vpop.f32.mrf.mxu2  ;;  %v1260_v19 = vadd.f32 1.0, %v6194_v43 }
 0x284   : > { %10228 = vst [vmem:[#allocation133_spill] sm:$0xff] %v7704_v24  ;;  %v7706_v18 = vpop.f32.mrf.mxu3  ;;  %v1450_v54 = vadd.f32 %v1383_v21, %v938_v36 }
 0x285   : > { %v7708_v0 = vpop.f32.mrf.mxu1  ;;  %6199 = vlog2.f32 %v1260_v19 }
 0x288   : > { %v7710_v26 = vpop.f32.mrf.mxu0  ;;  %5413 = vmatmul.msk.f32.gmra.mxu1 %vm476_vm0, %v1449_v40  ;;  %5477 = vmatmul.msk.f32.gmra.mxu2 %vm476_vm0, %v1449_v40 }
 0x289   : > { %10229 = vst [vmem:[#allocation134_spill] sm:$0xff] %v7710_v26  ;;  %5541 = vmatmul.msk.f32.gmra.mxu3 %vm476_vm0, %v1449_v40  ;;  %v6196_v40 = vpop.eup %6195 }
 0x28a   : > { %5608 = vmatmul.msk.f32.gmra.mxu0 %vm2354_vm1, %v2346_v27  ;;  %v6198_v62 = vpop.eup %6197  ;;  %v939_v27 = vmax.f32 %v7651_v37, 0.0  ;;  %v1385_v44 = vmul.f32 0.6931472, %v6196_v40  ;;  %v3174_v40 = vld [vmem:[%s7746_s26] sm:$0xff] }
 0x28b   : > { %v7718_v14 = vpop.f32.mrf.mxu2  ;;  %v1261_v21 = vadd.f32 1.0, %v6198_v62  ;;  %v6200_v37 = vpop.eup %6199 }
 0x28c   : > { %10230 = vst [vmem:[#allocation135_spill] sm:$0xff] %v7718_v14  ;;  %v7720_v17 = vpop.f32.mrf.mxu3  ;;  %v1387_v62 = vmul.f32 0.6931472, %v6200_v37 }
 0x28d   : > { %v7722_v29 = vpop.f32.mrf.mxu1  ;;  %6201 = vlog2.f32 %v1261_v21  ;;  %v3175_v21 = vld [vmem:[%s7746_s26 + $0x8] sm:$0xff] }
 0x28e   : > { %v1452_v14 = vadd.f32 %v1387_v62, %v940_v56 }
 0x290   : > { %v7724_v61 = vpop.f32.mrf.mxu0  ;;  %5414 = vmatmul.msk.f32.gmra.mxu1 %vm476_vm0, %v1450_v54  ;;  %5478 = vmatmul.msk.f32.gmra.mxu2 %vm476_vm0, %v1450_v54 }
 0x291   : > { %10231 = vst [vmem:[#allocation136_spill] sm:$0xff] %v7724_v61  ;;  %5542 = vmatmul.msk.f32.gmra.mxu3 %vm476_vm0, %v1450_v54  ;;  %v1451_v54 = vadd.f32 %v1385_v44, %v939_v27 }
 0x292   : > { %5609 = vmatmul.msk.f32.gmra.mxu0 %vm2354_vm1, %v2347_v23 }
 0x293   : > { %v7736_v43 = vpop.f32.mrf.mxu2 }
 0x294   : > { %10232 = vst [vmem:[#allocation137_spill] sm:$0xff] %v7736_v43  ;;  %v7738_v36 = vpop.f32.mrf.mxu3 }
 0x295   : > { %v7740_v19 = vpop.f32.mrf.mxu1 }
 0x296   : > { %10233 = vst [vmem:[#allocation138_spill] sm:$0xff] %v7740_v19  ;;  %v6222_v19 = vld [vmem:[%s6564_s15 + $0x88] sm:$0xff] }
 0x298   : > { %v7748_v23 = vpop.f32.mrf.mxu0  ;;  %5415 = vmatmul.msk.f32.gmra.mxu1 %vm476_vm0, %v1451_v54  ;;  %5479 = vmatmul.msk.f32.gmra.mxu2 %vm476_vm0, %v1451_v54 }
 0x299   : > { %10234 = vst [vmem:[#allocation139_spill] sm:$0xff] %v7748_v23  ;;  %5543 = vmatmul.msk.f32.gmra.mxu3 %vm476_vm0, %v1451_v54  ;;  %v6202_v23 = vpop.eup %6201 }
 0x29a   : > { %5804 = vmatmul.msk.f32.vlgmr.msra.gmra.mxu0 %vm3244_vm3, %v3174_v40  ;;  %v1389_v54 = vmul.f32 0.6931472, %v6202_v23 }
 0x29b   : > { %v7756_v43 = vpop.f32.mrf.mxu2 }
 0x29c   : > { %10235 = vst [vmem:[#allocation140_spill] sm:$0xff] %v7756_v43  ;;  %v7758_v27 = vpop.f32.mrf.mxu3  ;;  %v1453_v43 = vadd.f32 %v1389_v54, %v941_v38  ;;  %v6205_v54 = vld [vmem:[%s6564_s15] sm:$0xff] }
 0x29d   : > { %10236 = vst [vmem:[#allocation141_spill] sm:$0xff] %v7758_v27  ;;  %v7760_v44 = vpop.f32.mrf.mxu1 }
 0x29e   : > { %10237 = vst [vmem:[#allocation142_spill] sm:$0xff] %v7760_v44 }
 0x2a0   : > { %v7762_v24 = vpop.f32.mrf.mxu0  ;;  %5416 = vmatmul.msk.f32.gmra.mxu1 %vm476_vm0, %v1452_v14  ;;  %5480 = vmatmul.msk.f32.gmra.mxu2 %vm476_vm0, %v1452_v14 }
 0x2a1   : > { %10238 = vst [vmem:[#allocation143_spill] sm:$0xff] %v7762_v24  ;;  %5544 = vmatmul.msk.f32.gmra.mxu3 %vm476_vm0, %v1452_v14  ;;  %v3176_v14 = vld [vmem:[%s7746_s26 + $0x10] sm:$0xff] }
 0x2a2   : > { %5805 = vmatmul.msk.f32.gmra.mxu0 %vm3244_vm3, %v3175_v21 }
 0x2a3   : > { %v7770_v37 = vpop.f32.mrf.mxu2 }
 0x2a4   : > { %10239 = vst [vmem:[#allocation144_spill] sm:$0xff] %v7770_v37  ;;  %v7772_v56 = vpop.f32.mrf.mxu3 }
 0x2a5   : > { %10240 = vst [vmem:[#allocation145_spill] sm:$0xff] %v7772_v56  ;;  %v7774_v62 = vpop.f32.mrf.mxu1  ;;  %v6221_v56 = vld [vmem:[%s6564_s15 + $0x80] sm:$0xff] }
 0x2a6   : > { %10241 = vst [vmem:[#allocation146_spill] sm:$0xff] %v7774_v62  ;;  %v10311_v62 = vld [vmem:[#allocation5_spill] sm:$0xff] }
 0x2a8   : > { %v7776_v24 = vpop.f32.mrf.mxu0  ;;  %5417 = vmatmul.msk.f32.gmra.mxu1 %vm476_vm0, %v1453_v43  ;;  %5481 = vmatmul.msk.f32.gmra.mxu2 %vm476_vm0, %v1453_v43 }
 0x2a9   : > { %10242 = vst [vmem:[#allocation147_spill] sm:$0xff] %v7776_v24  ;;  %5545 = vmatmul.msk.f32.gmra.mxu3 %vm476_vm0, %v1453_v43  ;;  %v3177_v24 = vld [vmem:[%s7746_s26 + $0x18] sm:$0xff] }
 0x2aa   : > { %5806 = vmatmul.msk.f32.gmra.mxu0 %vm3244_vm3, %v3176_v14 }
 0x2ab   : > { %v7783_v8 = vpop.f32.mrf.mxu2 }
 0x2ac   : > { %10243 = vst [vmem:[#allocation148_spill] sm:$0xff] %v7783_v8  ;;  %v7785_v23 = vpop.f32.mrf.mxu3 }
 0x2ad   : > { %10244 = vst [vmem:[#allocation149_spill] sm:$0xff] %v7785_v23  ;;  %v7787_v37 = vpop.f32.mrf.mxu1  ;;  %v3189_v23 = vld [vmem:[%s7746_s26 + $0x78] sm:$0xff] }
 0x2ae   : > { %10245 = vst [vmem:[#allocation150_spill] sm:$0xff] %v7787_v37 }
 0x2b0   : > { %v7789_v38 = vpop.f32.mrf.mxu0  ;;  %5610 = vmatmul.msk.f32.vlgmr.msra.gmra.mxu1 %vm2354_vm1, %v6205_v54  ;;  %5674 = vmatmul.msk.f32.vlgmr.msra.gmra.mxu2 %vm2354_vm1, %v6205_v54  ;;  %v3178_v54 = vld [vmem:[%s7746_s26 + $0x20] sm:$0xff] }
 0x2b1   : > { %10246 = vst [vmem:[#allocation151_spill] sm:$0xff] %v7789_v38  ;;  %5739 = vmatmul.msk.f32.vlgmr.msra.gmra.mxu3 %vm3244_vm3, %v3174_v40  ;;  %v6206_v38 = vld [vmem:[%s6564_s15 + $0x8] sm:$0xff] }
 0x2b2   : > { %5807 = vmatmul.msk.f32.gmra.mxu0 %vm3244_vm3, %v3177_v24 }
 0x2b3   : > { %v7797_v43 = vpop.f32.mrf.mxu2 }
 0x2b4   : > { %10247 = vst [vmem:[#allocation152_spill] sm:$0xff] %v7797_v43  ;;  %v7799_v8 = vpop.f32.mrf.mxu3 }
 0x2b5   : > { %10248 = vst [vmem:[#allocation153_spill] sm:$0xff] %v7799_v8  ;;  %v7801_v61 = vpop.f32.mrf.mxu1 }
 0x2b6   : > { %10249 = vst [vmem:[#allocation154_spill] sm:$0xff] %v7801_v61 }
 0x2b8   : > { %v7803_v37 = vpop.f32.mrf.mxu0  ;;  %5611 = vmatmul.msk.f32.gmra.mxu1 %vm2354_vm1, %v6206_v38  ;;  %5675 = vmatmul.msk.f32.gmra.mxu2 %vm2354_vm1, %v6206_v38  ;;  %v3179_v38 = vld [vmem:[%s7746_s26 + $0x28] sm:$0xff] }
 0x2b9   : > { %10250 = vst [vmem:[#allocation155_spill] sm:$0xff] %v7803_v37  ;;  %5740 = vmatmul.msk.f32.gmra.mxu3 %vm3244_vm3, %v3175_v21  ;;  %v6207_v37 = vld [vmem:[%s6564_s15 + $0x10] sm:$0xff] }
 0x2ba   : > { %5808 = vmatmul.msk.f32.gmra.mxu0 %vm3244_vm3, %v3178_v54 }
 0x2bb   : > { %v7811_v40 = vpop.f32.mrf.mxu2 }
 0x2bc   : > { %10251 = vst [vmem:[#allocation156_spill] sm:$0xff] %v7811_v40  ;;  %v7813_v43 = vpop.f32.mrf.mxu3 }
 0x2bd   : > { %10252 = vst [vmem:[#allocation157_spill] sm:$0xff] %v7813_v43  ;;  %v7815_v8 = vpop.f32.mrf.mxu1 }
 0x2be   : > { %10253 = vst [vmem:[#allocation158_spill] sm:$0xff] %v7815_v8 }
 0x2c0   : > { %v7817_v61 = vpop.f32.mrf.mxu0  ;;  %5612 = vmatmul.msk.f32.gmra.mxu1 %vm2354_vm1, %v6207_v37  ;;  %5676 = vmatmul.msk.f32.gmra.mxu2 %vm2354_vm1, %v6207_v37  ;;  %v3180_v37 = vld [vmem:[%s7746_s26 + $0x30] sm:$0xff] }
 0x2c1   : > { %10254 = vst [vmem:[#allocation159_spill] sm:$0xff] %v7817_v61  ;;  %5741 = vmatmul.msk.f32.gmra.mxu3 %vm3244_vm3, %v3176_v14  ;;  %v6208_v61 = vld [vmem:[%s6564_s15 + $0x18] sm:$0xff] }
 0x2c2   : > { %5809 = vmatmul.msk.f32.gmra.mxu0 %vm3244_vm3, %v3179_v38 }
 0x2c3   : > { %v7825_v21 = vpop.f32.mrf.mxu2 }
 0x2c4   : > { %10255 = vst [vmem:[#allocation160_spill] sm:$0xff] %v7825_v21  ;;  %v7827_v40 = vpop.f32.mrf.mxu3 }
 0x2c5   : > { %10256 = vst [vmem:[#allocation161_spill] sm:$0xff] %v7827_v40  ;;  %v7829_v43 = vpop.f32.mrf.mxu1 }
 0x2c6   : > { %10257 = vst [vmem:[#allocation162_spill] sm:$0xff] %v7829_v43 }
 0x2c8   : > { %v7831_v8 = vpop.f32.mrf.mxu0  ;;  %5613 = vmatmul.msk.f32.gmra.mxu1 %vm2354_vm1, %v6208_v61  ;;  %5677 = vmatmul.msk.f32.gmra.mxu2 %vm2354_vm1, %v6208_v61  ;;  %v3181_v61 = vld [vmem:[%s7746_s26 + $0x38] sm:$0xff] }
 0x2c9   : > { %10258 = vst [vmem:[#allocation163_spill] sm:$0xff] %v7831_v8  ;;  %5742 = vmatmul.msk.f32.gmra.mxu3 %vm3244_vm3, %v3177_v24  ;;  %v6209_v8 = vld [vmem:[%s6564_s15 + $0x20] sm:$0xff] }
 0x2ca   : > { %5810 = vmatmul.msk.f32.gmra.mxu0 %vm3244_vm3, %v3180_v37 }
 0x2cb   : > { %v7839_v14 = vpop.f32.mrf.mxu2 }
 0x2cc   : > { %10259 = vst [vmem:[#allocation164_spill] sm:$0xff] %v7839_v14  ;;  %v7841_v21 = vpop.f32.mrf.mxu3 }
 0x2cd   : > { %10260 = vst [vmem:[#allocation165_spill] sm:$0xff] %v7841_v21  ;;  %v7843_v40 = vpop.f32.mrf.mxu1 }
 0x2ce   : > { %10261 = vst [vmem:[#allocation166_spill] sm:$0xff] %v7843_v40 }
 0x2d0   : > { %v7845_v43 = vpop.f32.mrf.mxu0  ;;  %5614 = vmatmul.msk.f32.gmra.mxu1 %vm2354_vm1, %v6209_v8  ;;  %5678 = vmatmul.msk.f32.gmra.mxu2 %vm2354_vm1, %v6209_v8  ;;  %v3182_v8 = vld [vmem:[%s7746_s26 + $0x40] sm:$0xff] }
 0x2d1   : > { %10262 = vst [vmem:[#allocation167_spill] sm:$0xff] %v7845_v43  ;;  %5743 = vmatmul.msk.f32.gmra.mxu3 %vm3244_vm3, %v3178_v54  ;;  %v6210_v43 = vld [vmem:[%s6564_s15 + $0x28] sm:$0xff] }
 0x2d2   : > { %5811 = vmatmul.msk.f32.gmra.mxu0 %vm3244_vm3, %v3181_v61 }
 0x2d3   : > { %v7853_v24 = vpop.f32.mrf.mxu2 }
 0x2d4   : > { %10263 = vst [vmem:[#allocation168_spill] sm:$0xff] %v7853_v24  ;;  %v7855_v14 = vpop.f32.mrf.mxu3 }
 0x2d5   : > { %10264 = vst [vmem:[#allocation169_spill] sm:$0xff] %v7855_v14  ;;  %v7857_v21 = vpop.f32.mrf.mxu1 }
 0x2d6   : > { %10265 = vst [vmem:[#allocation170_spill] sm:$0xff] %v7857_v21 }
 0x2d8   : > { %v7859_v40 = vpop.f32.mrf.mxu0  ;;  %5615 = vmatmul.msk.f32.gmra.mxu1 %vm2354_vm1, %v6210_v43  ;;  %5679 = vmatmul.msk.f32.gmra.mxu2 %vm2354_vm1, %v6210_v43  ;;  %v3183_v43 = vld [vmem:[%s7746_s26 + $0x48] sm:$0xff] }
 0x2d9   : > { %10266 = vst [vmem:[#allocation171_spill] sm:$0xff] %v7859_v40  ;;  %5744 = vmatmul.msk.f32.gmra.mxu3 %vm3244_vm3, %v3179_v38  ;;  %v6211_v40 = vld [vmem:[%s6564_s15 + $0x30] sm:$0xff] }
 0x2da   : > { %5812 = vmatmul.msk.f32.gmra.mxu0 %vm3244_vm3, %v3182_v8 }
 0x2db   : > { %v7867_v54 = vpop.f32.mrf.mxu2 }
 0x2dc   : > { %10267 = vst [vmem:[#allocation172_spill] sm:$0xff] %v7867_v54  ;;  %v7869_v24 = vpop.f32.mrf.mxu3 }
 0x2dd   : > { %10268 = vst [vmem:[#allocation173_spill] sm:$0xff] %v7869_v24  ;;  %v7871_v14 = vpop.f32.mrf.mxu1 }
 0x2de   : > { %10269 = vst [vmem:[#allocation174_spill] sm:$0xff] %v7871_v14 }
 0x2e0   : > { %v7873_v21 = vpop.f32.mrf.mxu0  ;;  %5616 = vmatmul.msk.f32.gmra.mxu1 %vm2354_vm1, %v6211_v40  ;;  %5680 = vmatmul.msk.f32.gmra.mxu2 %vm2354_vm1, %v6211_v40  ;;  %v3184_v40 = vld [vmem:[%s7746_s26 + $0x50] sm:$0xff] }
 0x2e1   : > { %10270 = vst [vmem:[#allocation175_spill] sm:$0xff] %v7873_v21  ;;  %5745 = vmatmul.msk.f32.gmra.mxu3 %vm3244_vm3, %v3180_v37  ;;  %v6212_v21 = vld [vmem:[%s6564_s15 + $0x38] sm:$0xff] }
 0x2e2   : > { %5813 = vmatmul.msk.f32.gmra.mxu0 %vm3244_vm3, %v3183_v43 }
 0x2e3   : > { %v7881_v38 = vpop.f32.mrf.mxu2 }
 0x2e4   : > { %10271 = vst [vmem:[#allocation176_spill] sm:$0xff] %v7881_v38  ;;  %v7883_v54 = vpop.f32.mrf.mxu3 }
 0x2e5   : > { %10272 = vst [vmem:[#allocation177_spill] sm:$0xff] %v7883_v54  ;;  %v7885_v24 = vpop.f32.mrf.mxu1 }
 0x2e6   : > { %10273 = vst [vmem:[#allocation178_spill] sm:$0xff] %v7885_v24 }
 0x2e8   : > { %v7887_v14 = vpop.f32.mrf.mxu0  ;;  %5617 = vmatmul.msk.f32.gmra.mxu1 %vm2354_vm1, %v6212_v21  ;;  %5681 = vmatmul.msk.f32.gmra.mxu2 %vm2354_vm1, %v6212_v21  ;;  %v3185_v21 = vld [vmem:[%s7746_s26 + $0x58] sm:$0xff] }
 0x2e9   : > { %10274 = vst [vmem:[#allocation179_spill] sm:$0xff] %v7887_v14  ;;  %5746 = vmatmul.msk.f32.gmra.mxu3 %vm3244_vm3, %v3181_v61  ;;  %v6213_v14 = vld [vmem:[%s6564_s15 + $0x40] sm:$0xff] }
 0x2ea   : > { %5814 = vmatmul.msk.f32.gmra.mxu0 %vm3244_vm3, %v3184_v40 }
 0x2eb   : > { %v7895_v37 = vpop.f32.mrf.mxu2 }
 0x2ec   : > { %10275 = vst [vmem:[#allocation180_spill] sm:$0xff] %v7895_v37  ;;  %v7897_v38 = vpop.f32.mrf.mxu3 }
 0x2ed   : > { %10276 = vst [vmem:[#allocation181_spill] sm:$0xff] %v7897_v38  ;;  %v7899_v54 = vpop.f32.mrf.mxu1 }
 0x2ee   : > { %10277 = vst [vmem:[#allocation182_spill] sm:$0xff] %v7899_v54 }
 0x2f0   : > { %v7901_v24 = vpop.f32.mrf.mxu0  ;;  %5618 = vmatmul.msk.f32.gmra.mxu1 %vm2354_vm1, %v6213_v14  ;;  %5682 = vmatmul.msk.f32.gmra.mxu2 %vm2354_vm1, %v6213_v14  ;;  %v3186_v14 = vld [vmem:[%s7746_s26 + $0x60] sm:$0xff] }
 0x2f1   : > { %10278 = vst [vmem:[#allocation183_spill] sm:$0xff] %v7901_v24  ;;  %5747 = vmatmul.msk.f32.gmra.mxu3 %vm3244_vm3, %v3182_v8  ;;  %v6214_v24 = vld [vmem:[%s6564_s15 + $0x48] sm:$0xff] }
 0x2f2   : > { %5815 = vmatmul.msk.f32.gmra.mxu0 %vm3244_vm3, %v3185_v21 }
 0x2f3   : > { %v7909_v61 = vpop.f32.mrf.mxu2 }
 0x2f4   : > { %10279 = vst [vmem:[#allocation184_spill] sm:$0xff] %v7909_v61  ;;  %v7911_v37 = vpop.f32.mrf.mxu3 }
 0x2f5   : > { %10280 = vst [vmem:[#allocation185_spill] sm:$0xff] %v7911_v37  ;;  %v7913_v38 = vpop.f32.mrf.mxu1 }
 0x2f6   : > { %10281 = vst [vmem:[#allocation186_spill] sm:$0xff] %v7913_v38 }
 0x2f8   : > { %v7915_v54 = vpop.f32.mrf.mxu0  ;;  %5619 = vmatmul.msk.f32.gmra.mxu1 %vm2354_vm1, %v6214_v24  ;;  %5683 = vmatmul.msk.f32.gmra.mxu2 %vm2354_vm1, %v6214_v24  ;;  %v3187_v24 = vld [vmem:[%s7746_s26 + $0x68] sm:$0xff] }
 0x2f9   : > { %10282 = vst [vmem:[#allocation187_spill] sm:$0xff] %v7915_v54  ;;  %5748 = vmatmul.msk.f32.gmra.mxu3 %vm3244_vm3, %v3183_v43  ;;  %v6215_v54 = vld [vmem:[%s6564_s15 + $0x50] sm:$0xff] }
 0x2fa   : > { %5816 = vmatmul.msk.f32.gmra.mxu0 %vm3244_vm3, %v3186_v14 }
 0x2fb   : > { %v7923_v8 = vpop.f32.mrf.mxu2 }
 0x2fc   : > { %10283 = vst [vmem:[#allocation188_spill] sm:$0xff] %v7923_v8  ;;  %v7925_v61 = vpop.f32.mrf.mxu3 }
 0x2fd   : > { %10284 = vst [vmem:[#allocation189_spill] sm:$0xff] %v7925_v61  ;;  %v7927_v37 = vpop.f32.mrf.mxu1 }
 0x2fe   : > { %10285 = vst [vmem:[#allocation190_spill] sm:$0xff] %v7927_v37 }
 0x300   : > { %v7929_v38 = vpop.f32.mrf.mxu0  ;;  %5620 = vmatmul.msk.f32.gmra.mxu1 %vm2354_vm1, %v6215_v54  ;;  %5684 = vmatmul.msk.f32.gmra.mxu2 %vm2354_vm1, %v6215_v54  ;;  %v3188_v54 = vld [vmem:[%s7746_s26 + $0x70] sm:$0xff] }
 0x301   : > { %10286 = vst [vmem:[#allocation191_spill] sm:$0xff] %v7929_v38  ;;  %5749 = vmatmul.msk.f32.gmra.mxu3 %vm3244_vm3, %v3184_v40  ;;  %v6216_v38 = vld [vmem:[%s6564_s15 + $0x58] sm:$0xff] }
 0x302   : > { %5817 = vmatmul.msk.f32.gmra.mxu0 %vm3244_vm3, %v3187_v24  ;;  %v4473_v40 = vld [vmem:[%s10093_s9 + $0x78] sm:$0xff] }
 0x303   : > { %v7937_v43 = vpop.f32.mrf.mxu2  ;;  %4506 = vmatpush.msrb.mxu2 %v4473_v40 }
 0x304   : > { %10287 = vst [vmem:[#allocation192_spill] sm:$0xff] %v7937_v43  ;;  %v7939_v8 = vpop.f32.mrf.mxu3  ;;  %v4489_v43 = vld [vmem:[%s10093_s9 + $0xf8] sm:$0xff] }
 0x305   : > { %10288 = vst [vmem:[#allocation193_spill] sm:$0xff] %v7939_v8  ;;  %v7941_v61 = vpop.f32.mrf.mxu1  ;;  %4715 = vmatpush.msrb.mxu3 %v4489_v43  ;;  %v6217_v8 = vld [vmem:[%s6564_s15 + $0x60] sm:$0xff]  ;;  %v4505_v43 = vld [vmem:[%s10093_s9 + $0x178] sm:$0xff] }
 0x306   : > { %10289 = vst [vmem:[#allocation194_spill] sm:$0xff] %v7941_v61  ;;  %4924 = vmatpush.msrb.mxu0 %v4505_v43 }
 0x308   : > { %v7943_v37 = vpop.f32.mrf.mxu0  ;;  %5621 = vmatmul.msk.f32.gmra.mxu1 %vm2354_vm1, %v6216_v38  ;;  %5685 = vmatmul.msk.f32.gmra.mxu2 %vm2354_vm1, %v6216_v38 }
 0x309   : > { %10290 = vst [vmem:[#allocation195_spill] sm:$0xff] %v7943_v37  ;;  %5750 = vmatmul.msk.f32.gmra.mxu3 %vm3244_vm3, %v3185_v21 }
 0x30a   : > { %5818 = vmatmul.msk.f32.gmra.mxu0 %vm3244_vm3, %v3188_v54 }
 0x30b   : > { %v7957_v37 = vpop.f32.mrf.mxu2 }
 0x30c   : > { %10291 = vst [vmem:[#allocation196_spill] sm:$0xff] %v7957_v37  ;;  %v7959_v61 = vpop.f32.mrf.mxu3 }
 0x30d   : > { %10292 = vst [vmem:[#allocation197_spill] sm:$0xff] %v7959_v61  ;;  %v7961_v38 = vpop.f32.mrf.mxu1  ;;  %v6219_v61 = vld [vmem:[%s6564_s15 + $0x70] sm:$0xff] }
 0x30e   : > { %10293 = vst [vmem:[#allocation198_spill] sm:$0xff] %v7961_v38 }
 0x310   : > { %v7963_v21 = vpop.f32.mrf.mxu0  ;;  %5622 = vmatmul.msk.f32.gmra.mxu1 %vm2354_vm1, %v6217_v8  ;;  %5686 = vmatmul.msk.f32.gmra.mxu2 %vm2354_vm1, %v6217_v8  ;;  %v6218_v8 = vld [vmem:[%s6564_s15 + $0x68] sm:$0xff] }
 0x311   : > { %10294 = vst [vmem:[#allocation199_spill] sm:$0xff] %v7963_v21  ;;  %5751 = vmatmul.msk.f32.gmra.mxu3 %vm3244_vm3, %v3186_v14  ;;  %v3190_v14 = vld [vmem:[%s7746_s26 + $0x80] sm:$0xff] }
 0x312   : > { %5819 = vmatmul.msk.f32.gmra.mxu0 %vm3244_vm3, %v3189_v23 }
 0x313   : > { %v7974_v40 = vpop.f32.mrf.mxu2 }
 0x314   : > { %10295 = vst [vmem:[#allocation200_spill] sm:$0xff] %v7974_v40  ;;  %v7976_v37 = vpop.f32.mrf.mxu3 }
 0x315   : > { %10296 = vst [vmem:[#allocation201_spill] sm:$0xff] %v7976_v37  ;;  %v7978_v21 = vpop.f32.mrf.mxu1 }
 0x316   : > { %10297 = vst [vmem:[#allocation202_spill] sm:$0xff] %v7978_v21 }
 0x318   : > { %v7980_v38 = vpop.f32.mrf.mxu0  ;;  %5623 = vmatmul.msk.f32.gmra.mxu1 %vm2354_vm1, %v6218_v8  ;;  %5687 = vmatmul.msk.f32.gmra.mxu2 %vm2354_vm1, %v6218_v8  ;;  %v3191_v8 = vld [vmem:[%s7746_s26 + $0x88] sm:$0xff] }
 0x319   : > { %10298 = vst [vmem:[#allocation203_spill] sm:$0xff] %v7980_v38  ;;  %5752 = vmatmul.msk.f32.gmra.mxu3 %vm3244_vm3, %v3187_v24  ;;  %v6220_v38 = vld [vmem:[%s6564_s15 + $0x78] sm:$0xff] }
 0x31a   : > { %5820 = vmatmul.msk.f32.gmra.mxu0 %vm3244_vm3, %v3190_v14 }
 0x31b   : > { %v7988_v43 = vpop.f32.mrf.mxu2 }
 0x31c   : > { %10299 = vst [vmem:[#allocation204_spill] sm:$0xff] %v7988_v43  ;;  %v7990_v40 = vpop.f32.mrf.mxu3 }
 0x31d   : > { %10300 = vst [vmem:[#allocation205_spill] sm:$0xff] %v7990_v40  ;;  %v7992_v37 = vpop.f32.mrf.mxu1 }
 0x31e   : > { %10301 = vst [vmem:[#allocation206_spill] sm:$0xff] %v7992_v37 }
 0x320   : > { %v7994_v21 = vpop.f32.mrf.mxu0  ;;  %5624 = vmatmul.msk.f32.gmra.mxu1 %vm2354_vm1, %v6219_v61  ;;  %5688 = vmatmul.msk.f32.gmra.mxu2 %vm2354_vm1, %v6219_v61  ;;  %v3192_v61 = vld [vmem:[%s7746_s26 + $0x90] sm:$0xff] }
 0x321   : > { %10302 = vst [vmem:[#allocation207_spill] sm:$0xff] %v7994_v21  ;;  %5753 = vmatmul.msk.f32.gmra.mxu3 %vm3244_vm3, %v3188_v54  ;;  %v8013_v21 = vld [vmem:[%s10090_s6] sm:$0x7]  ;;  %v4472_v54 = vld [vmem:[%s10093_s9 + $0x70] sm:$0xff] }
 0x322   : > { %5821 = vmatmul.msk.f32.gmra.mxu0 %vm3244_vm3, %v3191_v8  ;;  %4507 = vmatpush.msrb.mxu2 %v4472_v54  ;;  %v4504_v54 = vld [vmem:[%s10093_s9 + $0x170] sm:$0xff] }
 0x323   : > { %v8002_v24 = vpop.f32.mrf.mxu2  ;;  %4925 = vmatpush.msrb.mxu0 %v4504_v54 }
 0x324   : > { %10303 = vst [vmem:[#allocation208_spill] sm:$0xff] %v8002_v24  ;;  %v8004_v43 = vpop.f32.mrf.mxu3  ;;  %v4488_v24 = vld [vmem:[%s10093_s9 + $0xf0] sm:$0xff] }
 0x325   : > { %10304 = vst [vmem:[#allocation209_spill] sm:$0xff] %v8004_v43  ;;  %v8006_v40 = vpop.f32.mrf.mxu1  ;;  %4716 = vmatpush.msrb.mxu3 %v4488_v24  ;;  %v3193_v24 = vld [vmem:[%s7746_s26 + $0x98] sm:$0xff] }
 0x326   : > { %10305 = vst [vmem:[#allocation210_spill] sm:$0xff] %v8006_v40  ;;  %v8028_v40 = vperm.slane %v8013_v21, 0 }
 0x328   : > { %v8008_v37 = vpop.f32.mrf.mxu0  ;;  %5625 = vmatmul.msk.f32.gmra.mxu1 %vm2354_vm1, %v6220_v38  ;;  %5689 = vmatmul.msk.f32.gmra.mxu2 %vm2354_vm1, %v6220_v38  ;;  %v1675_v26 = vadd.f32 %v10311_v62, %v8028_v40 }
 0x329   : > { %10306 = vst [vmem:[#allocation211_spill] sm:$0xff] %v8008_v37  ;;  %5754 = vmatmul.msk.f32.gmra.mxu3 %vm3244_vm3, %v3189_v23 }
 0x32a   : > { %5822 = vmatmul.msk.f32.gmra.mxu0 %vm3244_vm3, %v3192_v61 }
 0x32b   : > { %v8030_v38 = vpop.f32.mrf.mxu2 }
 0x32c   : > { %10307 = vst [vmem:[#allocation212_spill] sm:$0xff] %v8030_v38  ;;  %v8032_v43 = vpop.f32.mrf.mxu3  ;;  %v10312_v38 = vld [vmem:[#allocation2_spill] sm:$0xff] }
 0x32d   : > { %10308 = vst [vmem:[#allocation213_spill] sm:$0xff] %v8032_v43  ;;  %v8034_v23 = vpop.f32.mrf.mxu1  ;;  %v4074_v43 = vmul.f32 %v10312_v38, %v1675_v26  ;;  %v3194_v26 = vld [vmem:[%s7746_s26 + $0xa0] sm:$0xff] }
 0x32e   : > { %10309 = vst [vmem:[#allocation214_spill] sm:$0xff] %v8034_v23 }
 0x330   : > { %v8036_v37 = vpop.f32.mrf.mxu0  ;;  %5626 = vmatmul.msk.f32.gmra.mxu1 %vm2354_vm1, %v6221_v56  ;;  %5690 = vmatmul.msk.f32.gmra.mxu2 %vm2354_vm1, %v6221_v56 }
 0x331   : > { %10310 = vst [vmem:[#allocation215_spill] sm:$0xff] %v8036_v37  ;;  %5755 = vmatmul.msk.f32.gmra.mxu3 %vm3244_vm3, %v3190_v14  ;;  %v10317_v14 = vld [vmem:[#allocation9_spill] sm:$0xff] }
 0x332   : > { %5823 = vmatmul.msk.f32.gmra.mxu0 %vm3244_vm3, %v3193_v24  ;;  %v1678_v27 = vadd.f32 %v10317_v14, %v8028_v40 }
 0x333   : > { %v8050_v62 = vpop.f32.mrf.mxu2 }
 0x334   : > { %10313 = vst [vmem:[#allocation5_spill] sm:$0xff] %v8050_v62  ;;  %v3464_v37 = vpop.f32.mrf.mxu3 }
 0x335   : > { %v8052_v23 = vmul.f32 %v4074_v43, %v3464_v37  ;;  %v8054_v44 = vpop.f32.mrf.mxu1  ;;  %v10318_v37 = vld [vmem:[#allocation4_spill] sm:$0xff] }
 0x336   : > { %10315 = vst [vmem:[#allocation216_spill] sm:$0xff] %v8054_v44  ;;  %v4077_v43 = vmul.f32 %v10318_v37, %v1678_v27  ;;  %v6223_v44 = vld [vmem:[%s6564_s15 + $0x90] sm:$0xff]  ;;  %v3195_v27 = vld [vmem:[%s7746_s26 + $0xa8] sm:$0xff] }
 0x337   : > { %10314 = vst [vmem:[#allocation2_spill] sm:$0xff] %v8052_v23 }
 0x338   : > { %v8056_v56 = vpop.f32.mrf.mxu0  ;;  %5627 = vmatmul.msk.f32.gmra.mxu1 %vm2354_vm1, %v6222_v19  ;;  %5691 = vmatmul.msk.f32.gmra.mxu2 %vm2354_vm1, %v6222_v19  ;;  %v1681_v19 = vadd.f32 %v6894_v47, %v8028_v40 }
 0x339   : > { %10316 = vst [vmem:[#allocation217_spill] sm:$0xff] %v8056_v56  ;;  %5756 = vmatmul.msk.f32.gmra.mxu3 %vm3244_vm3, %v3191_v8  ;;  %v10323_v8 = vld [vmem:[#allocation7_spill] sm:$0xff] }
 0x33a   : > { %5824 = vmatmul.msk.f32.gmra.mxu0 %vm3244_vm3, %v3194_v26  ;;  %v4080_v37 = vmul.f32 %v10323_v8, %v1681_v19 }
 0x33b   : > { %v8067_v38 = vpop.f32.mrf.mxu2 }
 0x33c   : > { %10319 = vst [vmem:[#allocation9_spill] sm:$0xff] %v8067_v38  ;;  %v3467_v54 = vpop.f32.mrf.mxu3 }
 0x33d   : > { %v8069_v62 = vmul.f32 %v4077_v43, %v3467_v54  ;;  %v8071_v56 = vpop.f32.mrf.mxu1 }
 0x33e   : > { %10321 = vst [vmem:[#allocation218_spill] sm:$0xff] %v8071_v56  ;;  %v1684_v56 = vadd.f32 %v6917_v60, %v8028_v40  ;;  %v4487_v60 = vld [vmem:[%s10093_s9 + $0xe8] sm:$0xff] }
 0x33f   : > { %10320 = vst [vmem:[#allocation4_spill] sm:$0xff] %v8069_v62  ;;  %v6224_v62 = vld [vmem:[%s6564_s15 + $0x98] sm:$0xff]  ;;  %4717 = vmatpush.msrb.mxu3 %v4487_v60 }
 0x340   : > { %v8073_v14 = vpop.f32.mrf.mxu0  ;;  %5628 = vmatmul.msk.f32.gmra.mxu1 %vm2354_vm1, %v6223_v44  ;;  %5692 = vmatmul.msk.f32.gmra.mxu2 %vm2354_vm1, %v6223_v44  ;;  %v3196_v44 = vld [vmem:[%s7746_s26 + $0xb0] sm:$0xff]  ;;  %v4083_v19 = vmul.f32 %v6881_v51, %v1684_v56  ;;  %v4503_v51 = vld [vmem:[%s10093_s9 + $0x168] sm:$0xff] }
 0x341   : > { %10322 = vst [vmem:[#allocation219_spill] sm:$0xff] %v8073_v14  ;;  %5757 = vmatmul.msk.f32.gmra.mxu3 %vm3244_vm3, %v3192_v61  ;;  %v4471_v61 = vld [vmem:[%s10093_s9 + $0x68] sm:$0xff]  ;;  %4926 = vmatpush.msrb.mxu0 %v4503_v51  ;;  %v10330_v56 = vld [vmem:[#allocation12_spill] sm:$0xff]  ;;  %v3198_v51 = vld [vmem:[%s7746_s26 + $0xc0] sm:$0xff] }
 0x342   : > { %5825 = vmatmul.msk.f32.gmra.mxu0 %vm3244_vm3, %v3195_v27  ;;  %4508 = vmatpush.msrb.mxu2 %v4471_v61  ;;  %v3197_v61 = vld [vmem:[%s7746_s26 + $0xb8] sm:$0xff] }
 0x343   : > { %v8084_v43 = vpop.f32.mrf.mxu2 }
 0x344   : > { %10324 = vst [vmem:[#allocation7_spill] sm:$0xff] %v8084_v43  ;;  %v3470_v54 = vpop.f32.mrf.mxu3  ;;  %v1687_v43 = vadd.f32 %v6938_v16, %v8028_v40 }
 0x345   : > { %v8086_v38 = vmul.f32 %v4080_v37, %v3470_v54  ;;  %v8088_v14 = vpop.f32.mrf.mxu1 }
 0x346   : > { %10326 = vst [vmem:[#allocation221_spill] sm:$0xff] %v8088_v14  ;;  %v6225_v14 = vld [vmem:[%s6564_s15 + $0xa0] sm:$0xff]  ;;  %v4086_v60 = vmul.f32 %v10330_v56, %v1687_v43  ;;  %v8138_v43 = vperm.slane %v8013_v21, 1  ;;  %v10334_v56 = vld [vmem:[#allocation15_spill] sm:$0xff] }
 0x347   : > { %10325 = vst [vmem:[#allocation220_spill] sm:$0xff] %v8086_v38  ;;  %v8152_v38 = vperm.slane %v8013_v21, 2 }
 0x348   : > { %v3691_v47 = vpop.f32.mrf.mxu0  ;;  %5629 = vmatmul.msk.f32.gmra.mxu1 %vm2354_vm1, %v6224_v62  ;;  %5693 = vmatmul.msk.f32.gmra.mxu2 %vm2354_vm1, %v6224_v62 }
 0x349   : > { %5758 = vmatmul.msk.f32.gmra.mxu3 %vm3244_vm3, %v3193_v24 }
 0x34a   : > { %5826 = vmatmul.msk.f32.gmra.mxu0 %vm3244_vm3, %v3196_v44 }
 0x34b   : > { %v8105_v8 = vpop.f32.mrf.mxu2 }
 0x34c   : > { %10327 = vst [vmem:[#allocation222_spill] sm:$0xff] %v8105_v8  ;;  %v3473_v62 = vpop.f32.mrf.mxu3 }
 0x34d   : > { %v8107_v37 = vmul.f32 %v4083_v19, %v3473_v62  ;;  %v8109_v24 = vpop.f32.mrf.mxu1 }
 0x34e   : > { %10329 = vst [vmem:[#allocation224_spill] sm:$0xff] %v8109_v24  ;;  %v6226_v24 = vld [vmem:[%s6564_s15 + $0xa8] sm:$0xff] }
 0x34f   : > { %10328 = vst [vmem:[#allocation223_spill] sm:$0xff] %v8107_v37 }
 0x350   : > { %v3694_v54 = vpop.f32.mrf.mxu0  ;;  %5630 = vmatmul.msk.f32.gmra.mxu1 %vm2354_vm1, %v6225_v14  ;;  %5694 = vmatmul.msk.f32.gmra.mxu2 %vm2354_vm1, %v6225_v14 }
 0x351   : > { %5759 = vmatmul.msk.f32.gmra.mxu3 %vm3244_vm3, %v3194_v26  ;;  %v1690_v26 = vadd.f32 %v6961_v50, %v8028_v40  ;;  %v1902_v50 = vadd.f32 %v7000_v41, %v8138_v43  ;;  %v3199_v41 = vld [vmem:[%s7746_s26 + $0xc8] sm:$0xff] }
 0x352   : > { %5827 = vmatmul.msk.f32.gmra.mxu0 %vm3244_vm3, %v3197_v61 }
 0x353   : > { %v8123_v16 = vpop.f32.mrf.mxu2 }
 0x354   : > { %10331 = vst [vmem:[#allocation12_spill] sm:$0xff] %v8123_v16  ;;  %v3476_v19 = vpop.f32.mrf.mxu3 }
 0x355   : > { %v8125_v62 = vmul.f32 %v4086_v60, %v3476_v19  ;;  %v8127_v8 = vpop.f32.mrf.mxu1  ;;  %v4089_v60 = vmul.f32 %v10334_v56, %v1690_v26  ;;  %v6227_v26 = vld [vmem:[%s6564_s15 + $0xb0] sm:$0xff]  ;;  %v10339_v56 = vld [vmem:[#allocation18_spill] sm:$0xff] }
 0x356   : > { %10333 = vst [vmem:[#allocation226_spill] sm:$0xff] %v8127_v8 }
 0x357   : > { %10332 = vst [vmem:[#allocation225_spill] sm:$0xff] %v8125_v62 }
 0x358   : > { %v3697_v14 = vpop.f32.mrf.mxu0  ;;  %5631 = vmatmul.msk.f32.gmra.mxu1 %vm2354_vm1, %v6226_v24  ;;  %5695 = vmatmul.msk.f32.gmra.mxu2 %vm2354_vm1, %v6226_v24 }
 0x359   : > { %5760 = vmatmul.msk.f32.gmra.mxu3 %vm3244_vm3, %v3195_v27  ;;  %v1693_v27 = vadd.f32 %v6983_v39, %v8028_v40 }
 0x35a   : > { %5828 = vmatmul.msk.f32.gmra.mxu0 %vm3244_vm3, %v3198_v51 }
 0x35b   : > { %v8141_v19 = vpop.f32.mrf.mxu2  ;;  %v4092_v21 = vmul.f32 %v10339_v56, %v1693_v27  ;;  %v3200_v27 = vld [vmem:[%s7746_s26 + $0xd0] sm:$0xff] }
 0x35c   : > { %10335 = vst [vmem:[#allocation15_spill] sm:$0xff] %v8141_v19  ;;  %v3479_v16 = vpop.f32.mrf.mxu3 }
 0x35d   : > { %v8145_v8 = vmul.f32 %v4089_v60, %v3479_v16  ;;  %v2791_v24 = vpop.f32.mrf.mxu1  ;;  %v10338_v16 = vld [vmem:[#allocation26_spill] sm:$0xff] }
 0x35e   : > { %v4093_v62 = vmul.f32 %v2791_v24, %v1902_v50  ;;  %v2111_v39 = vadd.f32 %v10338_v16, %v8152_v38  ;;  %v6228_v16 = vld [vmem:[%s6564_s15 + $0xb8] sm:$0xff] }
 0x35f   : > { %10336 = vst [vmem:[#allocation227_spill] sm:$0xff] %v8145_v8 }
 0x360   : > { %v8147_v37 = vpop.f32.mrf.mxu0  ;;  %v8154_v23 = vmul.f32 %v4093_v62, %v3691_v47  ;;  %5632 = vmatmul.msk.f32.gmra.mxu1 %vm2354_vm1, %v6227_v26  ;;  %5696 = vmatmul.msk.f32.gmra.mxu2 %vm2354_vm1, %v6227_v26  ;;  %v1905_v47 = vadd.f32 %v7022_v30, %v8138_v43  ;;  %v4470_v30 = vld [vmem:[%s10093_s9 + $0x60] sm:$0xff] }
 0x361   : > { %5761 = vmatmul.msk.f32.gmra.mxu3 %vm3244_vm3, %v3196_v44  ;;  %4509 = vmatpush.msrb.mxu2 %v4470_v30 }
 0x362   : > { %10337 = vst [vmem:[#allocation228_spill] sm:$0xff] %v8154_v23  ;;  %5829 = vmatmul.msk.f32.gmra.mxu0 %vm3244_vm3, %v3199_v41  ;;  %v1696_v23 = vadd.f32 %v7011_v52, %v8028_v40  ;;  %v4486_v52 = vld [vmem:[%s10093_s9 + $0xe0] sm:$0xff] }
 0x363   : > { %v3000_v60 = vpop.f32.mrf.mxu2  ;;  %4718 = vmatpush.msrb.mxu3 %v4486_v52  ;;  %v6229_v52 = vld [vmem:[%s6564_s15 + $0xc0] sm:$0xff] }
 0x364   : > { %v8167_v62 = vmul.f32 %v3000_v60, %v2111_v39  ;;  %v3482_v50 = vpop.f32.mrf.mxu3  ;;  %v10343_v39 = vld [vmem:[#allocation21_spill] sm:$0xff] }
 0x365   : > { %v8169_v24 = vmul.f32 %v4092_v21, %v3482_v50  ;;  %v2794_v26 = vpop.f32.mrf.mxu1  ;;  %v4095_v56 = vmul.f32 %v10343_v39, %v1696_v23  ;;  %v1908_v21 = vadd.f32 %v7041_v20, %v8138_v43  ;;  %v3201_v23 = vld [vmem:[%s7746_s26 + $0xd8] sm:$0xff]  ;;  %v4502_v20 = vld [vmem:[%s10093_s9 + $0x160] sm:$0xff] }
 0x366   : > { %10340 = vst [vmem:[#allocation26_spill] sm:$0xff] %v8167_v62  ;;  %v4096_v19 = vmul.f32 %v2794_v26, %v1905_v47  ;;  %4927 = vmatpush.msrb.mxu0 %v4502_v20  ;;  %v6230_v20 = vld [vmem:[%s6564_s15 + $0xc8] sm:$0xff] }
 0x368   : > { %v3703_v44 = vpop.f32.mrf.mxu0  ;;  %v8173_v8 = vmul.f32 %v4096_v19, %v3694_v54  ;;  %5633 = vmatmul.msk.f32.gmra.mxu1 %vm2354_vm1, %v6228_v16  ;;  %5697 = vmatmul.msk.f32.gmra.mxu2 %vm2354_vm1, %v6228_v16  ;;  %v10342_v54 = vld [vmem:[#allocation28_spill] sm:$0xff] }
 0x369   : > { %5762 = vmatmul.msk.f32.gmra.mxu3 %vm3244_vm3, %v3197_v61  ;;  %v2114_v19 = vadd.f32 %v10342_v54, %v8152_v38 }
 0x36a   : > { %10341 = vst [vmem:[#allocation18_spill] sm:$0xff] %v8173_v8  ;;  %5830 = vmatmul.msk.f32.gmra.mxu0 %vm3244_vm3, %v3200_v27  ;;  %v10345_v8 = vld [vmem:[#allocation29_spill] sm:$0xff] }
 0x36b   : > { %v3003_v61 = vpop.f32.mrf.mxu2  ;;  %v1699_v54 = vadd.f32 %v10345_v8, %v8028_v40 }
 0x36c   : > { %v8192_v60 = vmul.f32 %v3003_v61, %v2114_v19  ;;  %v3485_v47 = vpop.f32.mrf.mxu3  ;;  %v10347_v19 = vld [vmem:[#allocation31_spill] sm:$0xff]  ;;  %v1911_v61 = vadd.f32 %v7060_v59, %v8138_v43  ;;  %v3202_v59 = vld [vmem:[%s7746_s26 + $0xe0] sm:$0xff] }
 0x36d   : > { %v8194_v50 = vmul.f32 %v4095_v56, %v3485_v47  ;;  %v2797_v26 = vpop.f32.mrf.mxu1  ;;  %v2117_v8 = vadd.f32 %v10347_v19, %v8152_v38 }
 0x36e   : > { %10344 = vst [vmem:[#allocation28_spill] sm:$0xff] %v8192_v60  ;;  %v4099_v16 = vmul.f32 %v2797_v26, %v1908_v21  ;;  %v10350_v60 = vld [vmem:[#allocation32_spill] sm:$0xff] }
 0x370   : > { %v3706_v62 = vpop.f32.mrf.mxu0  ;;  %v8198_v30 = vmul.f32 %v4099_v16, %v3697_v14  ;;  %5634 = vmatmul.msk.f32.gmra.mxu1 %vm2354_vm1, %v6229_v52  ;;  %5698 = vmatmul.msk.f32.gmra.mxu2 %vm2354_vm1, %v6229_v52  ;;  %v10348_v14 = vld [vmem:[#allocation22_spill] sm:$0xff] }
 0x371   : > { %5763 = vmatmul.msk.f32.gmra.mxu3 %vm3244_vm3, %v3198_v51  ;;  %v4098_v39 = vmul.f32 %v10348_v14, %v1699_v54  ;;  %v10352_v54 = vld [vmem:[#allocation34_spill] sm:$0xff]  ;;  %v10353_v14 = vld [vmem:[#allocation25_spill] sm:$0xff] }
 0x372   : > { %10346 = vst [vmem:[#allocation21_spill] sm:$0xff] %v8198_v30  ;;  %5831 = vmatmul.msk.f32.gmra.mxu0 %vm3244_vm3, %v3201_v23  ;;  %v1702_v30 = vadd.f32 %v10350_v60, %v8028_v40 }
 0x373   : > { %v3006_v56 = vpop.f32.mrf.mxu2 }
 0x374   : > { %v8214_v21 = vmul.f32 %v3006_v56, %v2117_v8  ;;  %v3488_v51 = vpop.f32.mrf.mxu3  ;;  %v2120_v8 = vadd.f32 %v10352_v54, %v8152_v38  ;;  %v4101_v60 = vmul.f32 %v10353_v14, %v1702_v30  ;;  %v6231_v54 = vld [vmem:[%s6564_s15 + $0xd0] sm:$0xff]  ;;  %v10357_v30 = vld [vmem:[#allocation37_spill] sm:$0xff]  ;;  %v10358_v14 = vld [vmem:[#allocation27_spill] sm:$0xff] }
 0x375   : > { %v8216_v47 = vmul.f32 %v4098_v39, %v3488_v51  ;;  %v2800_v26 = vpop.f32.mrf.mxu1 }
 0x376   : > { %10349 = vst [vmem:[#allocation29_spill] sm:$0xff] %v8214_v21  ;;  %v4102_v16 = vmul.f32 %v2800_v26, %v1911_v61 }
 0x378   : > { %v3709_v52 = vpop.f32.mrf.mxu0  ;;  %v8221_v19 = vmul.f32 %v4102_v16, %v8147_v37  ;;  %5635 = vmatmul.msk.f32.gmra.mxu1 %vm2354_vm1, %v6230_v20  ;;  %5699 = vmatmul.msk.f32.gmra.mxu2 %vm2354_vm1, %v6230_v20  ;;  %v1914_v37 = vadd.f32 %v7079_v45, %v8138_v43  ;;  %v10355_v20 = vld [vmem:[#allocation35_spill] sm:$0xff] }
 0x379   : > { %5764 = vmatmul.msk.f32.gmra.mxu3 %vm3244_vm3, %v3199_v41  ;;  %v1705_v21 = vadd.f32 %v10355_v20, %v8028_v40  ;;  %v8248_v45 = vld [vmem:[%s7746_s26 + $0xe8] sm:$0xff] }
 0x37a   : > { %10351 = vst [vmem:[#allocation31_spill] sm:$0xff] %v8221_v19  ;;  %5832 = vmatmul.msk.f32.gmra.mxu0 %vm3244_vm3, %v3202_v59 }
 0x37b   : > { %v3009_v39 = vpop.f32.mrf.mxu2 }
 0x37c   : > { %v8234_v56 = vmul.f32 %v3009_v39, %v2120_v8  ;;  %v3491_v61 = vpop.f32.mrf.mxu3  ;;  %v2123_v8 = vadd.f32 %v10357_v30, %v8152_v38  ;;  %v1917_v39 = vadd.f32 %v7098_v53, %v8138_v43  ;;  %v6232_v30 = vld [vmem:[%s6564_s15 + $0xd8] sm:$0xff]  ;;  %v8272_v53 = vld [vmem:[%s7746_s26 + $0xf0] sm:$0xff] }
 0x37d   : > { %v8236_v51 = vmul.f32 %v4101_v60, %v3491_v61  ;;  %v2803_v26 = vpop.f32.mrf.mxu1 }
 0x37e   : > { %10354 = vst [vmem:[#allocation22_spill] sm:$0xff] %v8234_v56  ;;  %v4105_v16 = vmul.f32 %v2803_v26, %v1914_v37 }
 0x380   : > { %v8238_v41 = vpop.f32.mrf.mxu0  ;;  %v8242_v19 = vmul.f32 %v4105_v16, %v3703_v44  ;;  %5636 = vmatmul.msk.f32.gmra.mxu1 %vm2354_vm1, %v6231_v54  ;;  %5700 = vmatmul.msk.f32.gmra.mxu2 %vm2354_vm1, %v6231_v54  ;;  %v4104_v44 = vmul.f32 %v10358_v14, %v1705_v21  ;;  %v10361_v54 = vld [vmem:[#allocation38_spill] sm:$0xff]  ;;  %v4469_v21 = vld [vmem:[%s10093_s9 + $0x58] sm:$0xff] }
 0x381   : > { %5765 = vmatmul.msk.f32.gmra.mxu3 %vm3244_vm3, %v3200_v27  ;;  %v1708_v56 = vadd.f32 %v10361_v54, %v8028_v40  ;;  %4510 = vmatpush.msrb.mxu2 %v4469_v21 }
 0x382   : > { %10356 = vst [vmem:[#allocation32_spill] sm:$0xff] %v8242_v19  ;;  %5833 = vmatmul.msk.f32.gmra.mxu0 %vm3244_vm3, %v8248_v45 }
 0x383   : > { %v3012_v60 = vpop.f32.mrf.mxu2 }
 0x384   : > { %v8258_v37 = vmul.f32 %v3012_v60, %v2123_v8  ;;  %v3494_v61 = vpop.f32.mrf.mxu3  ;;  %v10363_v8 = vld [vmem:[#allocation40_spill] sm:$0xff] }
 0x385   : > { %v8260_v26 = vmul.f32 %v4104_v44, %v3494_v61  ;;  %v2806_v16 = vpop.f32.mrf.mxu1  ;;  %v2126_v14 = vadd.f32 %v10363_v8, %v8152_v38  ;;  %v10364_v44 = vld [vmem:[#allocation30_spill] sm:$0xff] }
 0x386   : > { %10359 = vst [vmem:[#allocation34_spill] sm:$0xff] %v8258_v37  ;;  %v4108_v27 = vmul.f32 %v2806_v16, %v1917_v39  ;;  %v10365_v39 = vld [vmem:[#allocation43_spill] sm:$0xff] }
 0x387   : > { %10360 = vst [vmem:[#allocation25_spill] sm:$0xff] %v8260_v26  ;;  %v1920_v61 = vadd.f32 %v10365_v39, %v8138_v43  ;;  %v10367_v26 = vld [vmem:[#allocation41_spill] sm:$0xff] }
 0x388   : > { %v8262_v20 = vpop.f32.mrf.mxu0  ;;  %v8266_v19 = vmul.f32 %v4108_v27, %v3706_v62  ;;  %5637 = vmatmul.msk.f32.gmra.mxu1 %vm2354_vm1, %v6232_v30  ;;  %5701 = vmatmul.msk.f32.gmra.mxu2 %vm2354_vm1, %v6232_v30  ;;  %v4485_v62 = vld [vmem:[%s10093_s9 + $0xd8] sm:$0xff]  ;;  %v1711_v8 = vadd.f32 %v10367_v26, %v8028_v40 }
 0x389   : > { %5766 = vmatmul.msk.f32.gmra.mxu3 %vm3244_vm3, %v3201_v23  ;;  %v4107_v23 = vmul.f32 %v10364_v44, %v1708_v56  ;;  %v3205_v56 = vld [vmem:[%s7746_s26 + $0xf8] sm:$0xff] }
 0x38a   : > { %10362 = vst [vmem:[#allocation35_spill] sm:$0xff] %v8266_v19  ;;  %5834 = vmatmul.msk.f32.gmra.mxu0 %vm3244_vm3, %v8272_v53  ;;  %4719 = vmatpush.msrb.mxu3 %v4485_v62  ;;  %v6233_v62 = vld [vmem:[%s6564_s15 + $0xe0] sm:$0xff]  ;;  %v10368_v26 = vld [vmem:[#allocation33_spill] sm:$0xff] }
 0x38b   : > { %v3015_v60 = vpop.f32.mrf.mxu2  ;;  %v4110_v44 = vmul.f32 %v10368_v26, %v1711_v8  ;;  %v10372_v8 = vld [vmem:[#allocation46_spill] sm:$0xff] }
 0x38c   : > { %v8288_v16 = vmul.f32 %v3015_v60, %v2126_v14  ;;  %v3497_v27 = vpop.f32.mrf.mxu3  ;;  %v3240_v14 = vld [vmem:[%s10092_s8 + $0x10] sm:$0xff] }
 0x38d   : > { %v8290_v54 = vmul.f32 %v4107_v23, %v3497_v27  ;;  %v2809_v30 = vpop.f32.mrf.mxu1  ;;  %3880 = vmatpush.msrb.mxu1 %v3240_v14  ;;  %v1923_v23 = vadd.f32 %v7139_v28, %v8138_v43  ;;  %v3206_v28 = vld [vmem:[%s7746_s26 + $0x100] sm:$0xff] }
 0x38e   : > { %10366 = vst [vmem:[#allocation37_spill] sm:$0xff] %v8288_v16  ;;  %v4111_v37 = vmul.f32 %v2809_v30, %v1920_v61  ;;  %v10370_v16 = vld [vmem:[#allocation44_spill] sm:$0xff] }
 0x390   : > { %v3718_v19 = vpop.f32.mrf.mxu0  ;;  %v8294_v21 = vmul.f32 %v4111_v37, %v3709_v52  ;;  %5638 = vmatmul.msk.f32.gmra.mxu1 %vm2354_vm1, %v6233_v62  ;;  %5702 = vmatmul.msk.f32.gmra.mxu2 %vm2354_vm1, %v6233_v62  ;;  %v4501_v52 = vld [vmem:[%s10093_s9 + $0x158] sm:$0xff]  ;;  %v2129_v37 = vadd.f32 %v7122_v9, %v8152_v38  ;;  %v1714_v9 = vadd.f32 %v10370_v16, %v8028_v40  ;;  %v10373_v16 = vld [vmem:[#allocation36_spill] sm:$0xff] }
 0x391   : > { %5767 = vmatmul.msk.f32.gmra.mxu3 %vm3244_vm3, %v3202_v59  ;;  %4928 = vmatpush.msrb.mxu0 %v4501_v52  ;;  %v6234_v52 = vld [vmem:[%s6564_s15 + $0xe8] sm:$0xff] }
 0x392   : > { %5835 = vmatmul.msk.f32.gmra.mxu0 %vm3244_vm3, %v3205_v56  ;;  %v4113_v26 = vmul.f32 %v10373_v16, %v1714_v9  ;;  %v10377_v9 = vld [vmem:[#allocation49_spill] sm:$0xff]  ;;  %v10378_v16 = vld [vmem:[#allocation39_spill] sm:$0xff] }
 0x393   : > { %v3018_v59 = vpop.f32.mrf.mxu2 }
 0x394   : > { %v8313_v60 = vmul.f32 %v3018_v59, %v2129_v37  ;;  %v3500_v39 = vpop.f32.mrf.mxu3  ;;  %v2132_v37 = vadd.f32 %v10372_v8, %v8152_v38  ;;  %v6235_v8 = vld [vmem:[%s6564_s15 + $0xf0] sm:$0xff] }
 0x395   : > { %v8315_v61 = vmul.f32 %v4110_v44, %v3500_v39  ;;  %v2812_v27 = vpop.f32.mrf.mxu1  ;;  %v1926_v44 = vadd.f32 %v7158_v42, %v8138_v43  ;;  %v3207_v42 = vld [vmem:[%s7746_s26 + $0x108] sm:$0xff] }
 0x396   : > { %10369 = vst [vmem:[#allocation27_spill] sm:$0xff] %v8313_v60  ;;  %v4114_v30 = vmul.f32 %v2812_v27, %v1923_v23 }
 0x398   : > { %v3721_v62 = vpop.f32.mrf.mxu0  ;;  %v8320_v14 = vmul.f32 %v4114_v30, %v8238_v41  ;;  %5639 = vmatmul.msk.f32.gmra.mxu1 %vm2354_vm1, %v6234_v52  ;;  %5703 = vmatmul.msk.f32.gmra.mxu2 %vm2354_vm1, %v6234_v52  ;;  %v10375_v52 = vld [vmem:[#allocation47_spill] sm:$0xff] }
 0x399   : > { %5768 = vmatmul.msk.f32.gmra.mxu3 %vm3244_vm3, %v8248_v45  ;;  %v1717_v60 = vadd.f32 %v10375_v52, %v8028_v40 }
 0x39a   : > { %10371 = vst [vmem:[#allocation38_spill] sm:$0xff] %v8320_v14  ;;  %5836 = vmatmul.msk.f32.gmra.mxu0 %vm3244_vm3, %v3206_v28 }
 0x39b   : > { %v3021_v41 = vpop.f32.mrf.mxu2 }
 0x39c   : > { %v8334_v59 = vmul.f32 %v3021_v41, %v2132_v37  ;;  %v3503_v23 = vpop.f32.mrf.mxu3  ;;  %v2135_v37 = vadd.f32 %v10377_v9, %v8152_v38  ;;  %v1929_v41 = vadd.f32 %v7177_v55, %v8138_v43  ;;  %v6236_v9 = vld [vmem:[%s6564_s15 + $0xf8] sm:$0xff]  ;;  %v4468_v55 = vld [vmem:[%s10093_s9 + $0x50] sm:$0xff] }
 0x39d   : > { %v8336_v39 = vmul.f32 %v4113_v26, %v3503_v23  ;;  %v2815_v27 = vpop.f32.mrf.mxu1  ;;  %v4116_v26 = vmul.f32 %v10378_v16, %v1717_v60  ;;  %v3208_v60 = vld [vmem:[%s7746_s26 + $0x110] sm:$0xff]  ;;  %4511 = vmatpush.msrb.mxu2 %v4468_v55 }
 0x39e   : > { %10374 = vst [vmem:[#allocation40_spill] sm:$0xff] %v8334_v59  ;;  %v4117_v30 = vmul.f32 %v2815_v27, %v1926_v44 }
 0x3a0   : > { %v3724_v45 = vpop.f32.mrf.mxu0  ;;  %v8341_v14 = vmul.f32 %v4117_v30, %v8262_v20  ;;  %5640 = vmatmul.msk.f32.gmra.mxu1 %vm2354_vm1, %v6235_v8  ;;  %5704 = vmatmul.msk.f32.gmra.mxu2 %vm2354_vm1, %v6235_v8  ;;  %v10380_v8 = vld [vmem:[#allocation50_spill] sm:$0xff] }
 0x3a1   : > { %5769 = vmatmul.msk.f32.gmra.mxu3 %vm3244_vm3, %v8272_v53  ;;  %v1720_v59 = vadd.f32 %v10380_v8, %v8028_v40 }
 0x3a2   : > { %10376 = vst [vmem:[#allocation30_spill] sm:$0xff] %v8341_v14  ;;  %5837 = vmatmul.msk.f32.gmra.mxu0 %vm3244_vm3, %v3207_v42 }
 0x3a3   : > { %v3024_v20 = vpop.f32.mrf.mxu2 }
 0x3a4   : > { %v8355_v44 = vmul.f32 %v3024_v20, %v2135_v37  ;;  %v3506_v23 = vpop.f32.mrf.mxu3  ;;  %v10382_v37 = vld [vmem:[#allocation52_spill] sm:$0xff] }
 0x3a5   : > { %v8357_v27 = vmul.f32 %v4116_v26, %v3506_v23  ;;  %v2818_v30 = vpop.f32.mrf.mxu1  ;;  %v2138_v16 = vadd.f32 %v10382_v37, %v8152_v38  ;;  %v10383_v26 = vld [vmem:[#allocation42_spill] sm:$0xff] }
 0x3a6   : > { %10379 = vst [vmem:[#allocation43_spill] sm:$0xff] %v8355_v44  ;;  %v4120_v52 = vmul.f32 %v2818_v30, %v1929_v41  ;;  %v4119_v20 = vmul.f32 %v10383_v26, %v1720_v59  ;;  %v1932_v41 = vadd.f32 %v7196_v6, %v8138_v43  ;;  %v3209_v59 = vld [vmem:[%s7746_s26 + $0x118] sm:$0xff]  ;;  %v4500_v6 = vld [vmem:[%s10093_s9 + $0x150] sm:$0xff] }
 0x3a7   : > { %4929 = vmatpush.msrb.mxu0 %v4500_v6  ;;  %v6238_v6 = vld [vmem:[%s6564_s15 + $0x108] sm:$0xff] }
 0x3a8   : > { %v3727_v53 = vpop.f32.mrf.mxu0  ;;  %v8361_v14 = vmul.f32 %v4120_v52, %v3718_v19  ;;  %5641 = vmatmul.msk.f32.gmra.mxu1 %vm2354_vm1, %v6236_v9  ;;  %5705 = vmatmul.msk.f32.gmra.mxu2 %vm2354_vm1, %v6236_v9  ;;  %v4484_v19 = vld [vmem:[%s10093_s9 + $0xd0] sm:$0xff] }
 0x3a9   : > { %5770 = vmatmul.msk.f32.gmra.mxu3 %vm3244_vm3, %v3205_v56 }
 0x3aa   : > { %10381 = vst [vmem:[#allocation41_spill] sm:$0xff] %v8361_v14  ;;  %5838 = vmatmul.msk.f32.gmra.mxu0 %vm3244_vm3, %v3208_v60  ;;  %4720 = vmatpush.msrb.mxu3 %v4484_v19  ;;  %v10385_v14 = vld [vmem:[#allocation53_spill] sm:$0xff]  ;;  %v6237_v19 = vld [vmem:[%s6564_s15 + $0x100] sm:$0xff] }
 0x3ab   : > { %v3027_v56 = vpop.f32.mrf.mxu2  ;;  %v1723_v37 = vadd.f32 %v10385_v14, %v8028_v40 }
 0x3ac   : > { %v8380_v23 = vmul.f32 %v3027_v56, %v2138_v16  ;;  %v3509_v30 = vpop.f32.mrf.mxu3  ;;  %v10387_v16 = vld [vmem:[#allocation55_spill] sm:$0xff]  ;;  %v1935_v56 = vadd.f32 %v7215_v25, %v8138_v43  ;;  %v3210_v25 = vld [vmem:[%s7746_s26 + $0x120] sm:$0xff] }
 0x3ad   : > { %v8382_v52 = vmul.f32 %v4119_v20, %v3509_v30  ;;  %v2821_v8 = vpop.f32.mrf.mxu1  ;;  %v2141_v14 = vadd.f32 %v10387_v16, %v8152_v38 }
 0x3ae   : > { %10384 = vst [vmem:[#allocation33_spill] sm:$0xff] %v8380_v23  ;;  %v4123_v9 = vmul.f32 %v2821_v8, %v1932_v41  ;;  %v10390_v23 = vld [vmem:[#allocation56_spill] sm:$0xff] }
 0x3b0   : > { %v3730_v44 = vpop.f32.mrf.mxu0  ;;  %v8386_v55 = vmul.f32 %v4123_v9, %v3721_v62  ;;  %5642 = vmatmul.msk.f32.gmra.mxu1 %vm2354_vm1, %v6237_v19  ;;  %5706 = vmatmul.msk.f32.gmra.mxu2 %vm2354_vm1, %v6237_v19  ;;  %v10388_v62 = vld [vmem:[#allocation45_spill] sm:$0xff] }
 0x3b1   : > { %5771 = vmatmul.msk.f32.gmra.mxu3 %vm3244_vm3, %v3206_v28  ;;  %v4122_v26 = vmul.f32 %v10388_v62, %v1723_v37  ;;  %v10392_v37 = vld [vmem:[#allocation58_spill] sm:$0xff]  ;;  %v10393_v62 = vld [vmem:[#allocation48_spill] sm:$0xff] }
 0x3b2   : > { %10386 = vst [vmem:[#allocation44_spill] sm:$0xff] %v8386_v55  ;;  %5839 = vmatmul.msk.f32.gmra.mxu0 %vm3244_vm3, %v3209_v59  ;;  %v1726_v55 = vadd.f32 %v10390_v23, %v8028_v40 }
 0x3b3   : > { %v3030_v20 = vpop.f32.mrf.mxu2 }
 0x3b4   : > { %v8402_v41 = vmul.f32 %v3030_v20, %v2141_v14  ;;  %v3512_v28 = vpop.f32.mrf.mxu3  ;;  %v2144_v14 = vadd.f32 %v10392_v37, %v8152_v38  ;;  %v6239_v37 = vld [vmem:[%s6564_s15 + $0x110] sm:$0xff] }
 0x3b5   : > { %v8404_v30 = vmul.f32 %v4122_v26, %v3512_v28  ;;  %v2824_v8 = vpop.f32.mrf.mxu1  ;;  %v4125_v26 = vmul.f32 %v10393_v62, %v1726_v55  ;;  %v10397_v55 = vld [vmem:[#allocation61_spill] sm:$0xff]  ;;  %v10398_v62 = vld [vmem:[#allocation51_spill] sm:$0xff] }
 0x3b6   : > { %10389 = vst [vmem:[#allocation46_spill] sm:$0xff] %v8402_v41  ;;  %v4126_v9 = vmul.f32 %v2824_v8, %v1935_v56 }
 0x3b8   : > { %v3733_v19 = vpop.f32.mrf.mxu0  ;;  %v8408_v16 = vmul.f32 %v4126_v9, %v3724_v45  ;;  %5643 = vmatmul.msk.f32.gmra.mxu1 %vm2354_vm1, %v6238_v6  ;;  %5707 = vmatmul.msk.f32.gmra.mxu2 %vm2354_vm1, %v6238_v6  ;;  %v1938_v45 = vadd.f32 %v7234_v48, %v8138_v43  ;;  %v10395_v6 = vld [vmem:[#allocation59_spill] sm:$0xff] }
 0x3b9   : > { %5772 = vmatmul.msk.f32.gmra.mxu3 %vm3244_vm3, %v3207_v42  ;;  %v1729_v41 = vadd.f32 %v10395_v6, %v8028_v40  ;;  %v3211_v48 = vld [vmem:[%s7746_s26 + $0x128] sm:$0xff] }
 0x3ba   : > { %10391 = vst [vmem:[#allocation36_spill] sm:$0xff] %v8408_v16  ;;  %5840 = vmatmul.msk.f32.gmra.mxu0 %vm3244_vm3, %v3210_v25 }
 0x3bb   : > { %v3033_v23 = vpop.f32.mrf.mxu2 }
 0x3bc   : > { %v8421_v20 = vmul.f32 %v3033_v23, %v2144_v14  ;;  %v3515_v56 = vpop.f32.mrf.mxu3  ;;  %v2147_v14 = vadd.f32 %v10397_v55, %v8152_v38  ;;  %v6240_v55 = vld [vmem:[%s6564_s15 + $0x118] sm:$0xff] }
 0x3bd   : > { %v8423_v28 = vmul.f32 %v4125_v26, %v3515_v56  ;;  %v2827_v8 = vpop.f32.mrf.mxu1  ;;  %v4128_v26 = vmul.f32 %v10398_v62, %v1729_v41  ;;  %v3212_v41 = vld [vmem:[%s7746_s26 + $0x130] sm:$0xff] }
 0x3be   : > { %10394 = vst [vmem:[#allocation47_spill] sm:$0xff] %v8421_v20  ;;  %v4129_v9 = vmul.f32 %v2827_v8, %v1938_v45 }
 0x3c0   : > { %v3736_v42 = vpop.f32.mrf.mxu0  ;;  %v8427_v16 = vmul.f32 %v4129_v9, %v3727_v53  ;;  %5644 = vmatmul.msk.f32.gmra.mxu1 %vm2354_vm1, %v6239_v37  ;;  %5708 = vmatmul.msk.f32.gmra.mxu2 %vm2354_vm1, %v6239_v37  ;;  %v1941_v53 = vadd.f32 %v7253_v2, %v8138_v43  ;;  %v10400_v37 = vld [vmem:[#allocation62_spill] sm:$0xff]  ;;  %v4467_v2 = vld [vmem:[%s10093_s9 + $0x48] sm:$0xff] }
 0x3c1   : > { %5773 = vmatmul.msk.f32.gmra.mxu3 %vm3244_vm3, %v3208_v60  ;;  %v1732_v20 = vadd.f32 %v10400_v37, %v8028_v40  ;;  %4512 = vmatpush.msrb.mxu2 %v4467_v2 }
 0x3c2   : > { %10396 = vst [vmem:[#allocation49_spill] sm:$0xff] %v8427_v16  ;;  %5841 = vmatmul.msk.f32.gmra.mxu0 %vm3244_vm3, %v3211_v48 }
 0x3c3   : > { %v3036_v23 = vpop.f32.mrf.mxu2 }
 0x3c4   : > { %v8440_v45 = vmul.f32 %v3036_v23, %v2147_v14  ;;  %v3518_v56 = vpop.f32.mrf.mxu3  ;;  %v10402_v14 = vld [vmem:[#allocation64_spill] sm:$0xff] }
 0x3c5   : > { %v8442_v8 = vmul.f32 %v4128_v26, %v3518_v56  ;;  %v2830_v9 = vpop.f32.mrf.mxu1  ;;  %v2150_v62 = vadd.f32 %v10402_v14, %v8152_v38  ;;  %v10403_v26 = vld [vmem:[#allocation54_spill] sm:$0xff] }
 0x3c6   : > { %10399 = vst [vmem:[#allocation39_spill] sm:$0xff] %v8440_v45  ;;  %v4132_v6 = vmul.f32 %v2830_v9, %v1941_v53  ;;  %v4131_v23 = vmul.f32 %v10403_v26, %v1732_v20  ;;  %v1944_v53 = vadd.f32 %v7272_v33, %v8138_v43  ;;  %v3213_v20 = vld [vmem:[%s7746_s26 + $0x138] sm:$0xff]  ;;  %v4499_v33 = vld [vmem:[%s10093_s9 + $0x148] sm:$0xff] }
 0x3c7   : > { %4930 = vmatpush.msrb.mxu0 %v4499_v33  ;;  %v6242_v33 = vld [vmem:[%s6564_s15 + $0x128] sm:$0xff] }
 0x3c8   : > { %v3739_v60 = vpop.f32.mrf.mxu0  ;;  %v8446_v16 = vmul.f32 %v4132_v6, %v3730_v44  ;;  %5645 = vmatmul.msk.f32.gmra.mxu1 %vm2354_vm1, %v6240_v55  ;;  %5709 = vmatmul.msk.f32.gmra.mxu2 %vm2354_vm1, %v6240_v55  ;;  %v4483_v44 = vld [vmem:[%s10093_s9 + $0xc8] sm:$0xff] }
 0x3c9   : > { %5774 = vmatmul.msk.f32.gmra.mxu3 %vm3244_vm3, %v3209_v59 }
 0x3ca   : > { %10401 = vst [vmem:[#allocation50_spill] sm:$0xff] %v8446_v16  ;;  %5842 = vmatmul.msk.f32.gmra.mxu0 %vm3244_vm3, %v3212_v41  ;;  %4721 = vmatpush.msrb.mxu3 %v4483_v44  ;;  %v10405_v16 = vld [vmem:[#allocation65_spill] sm:$0xff]  ;;  %v6241_v44 = vld [vmem:[%s6564_s15 + $0x120] sm:$0xff] }
 0x3cb   : > { %v3039_v59 = vpop.f32.mrf.mxu2  ;;  %v1735_v14 = vadd.f32 %v10405_v16, %v8028_v40 }
 0x3cc   : > { %v8465_v56 = vmul.f32 %v3039_v59, %v2150_v62  ;;  %v3521_v9 = vpop.f32.mrf.mxu3  ;;  %v10407_v62 = vld [vmem:[#allocation67_spill] sm:$0xff]  ;;  %v1947_v59 = vadd.f32 %v7291_v57, %v8138_v43  ;;  %v3214_v57 = vld [vmem:[%s7746_s26 + $0x140] sm:$0xff] }
 0x3cd   : > { %v8467_v6 = vmul.f32 %v4131_v23, %v3521_v9  ;;  %v2833_v37 = vpop.f32.mrf.mxu1  ;;  %v2153_v16 = vadd.f32 %v10407_v62, %v8152_v38 }
 0x3ce   : > { %10404 = vst [vmem:[#allocation52_spill] sm:$0xff] %v8465_v56  ;;  %v4135_v55 = vmul.f32 %v2833_v37, %v1944_v53  ;;  %v10410_v56 = vld [vmem:[#allocation68_spill] sm:$0xff] }
 0x3d0   : > { %v3742_v45 = vpop.f32.mrf.mxu0  ;;  %v8471_v2 = vmul.f32 %v4135_v55, %v3733_v19  ;;  %5646 = vmatmul.msk.f32.gmra.mxu1 %vm2354_vm1, %v6241_v44  ;;  %5710 = vmatmul.msk.f32.gmra.mxu2 %vm2354_vm1, %v6241_v44  ;;  %v10408_v19 = vld [vmem:[#allocation57_spill] sm:$0xff] }
 0x3d1   : > { %5775 = vmatmul.msk.f32.gmra.mxu3 %vm3244_vm3, %v3210_v25  ;;  %v4134_v26 = vmul.f32 %v10408_v19, %v1735_v14  ;;  %v10412_v14 = vld [vmem:[#allocation70_spill] sm:$0xff]  ;;  %v10413_v19 = vld [vmem:[#allocation60_spill] sm:$0xff] }
 0x3d2   : > { %10406 = vst [vmem:[#allocation42_spill] sm:$0xff] %v8471_v2  ;;  %5843 = vmatmul.msk.f32.gmra.mxu0 %vm3244_vm3, %v3213_v20  ;;  %v1738_v2 = vadd.f32 %v10410_v56, %v8028_v40 }
 0x3d3   : > { %v3042_v23 = vpop.f32.mrf.mxu2 }
 0x3d4   : > { %v8487_v53 = vmul.f32 %v3042_v23, %v2153_v16  ;;  %v3524_v25 = vpop.f32.mrf.mxu3  ;;  %v2156_v16 = vadd.f32 %v10412_v14, %v8152_v38  ;;  %v6243_v14 = vld [vmem:[%s6564_s15 + $0x130] sm:$0xff] }
 0x3d5   : > { %v8489_v9 = vmul.f32 %v4134_v26, %v3524_v25  ;;  %v2836_v37 = vpop.f32.mrf.mxu1  ;;  %v4137_v26 = vmul.f32 %v10413_v19, %v1738_v2  ;;  %v10417_v2 = vld [vmem:[#allocation73_spill] sm:$0xff]  ;;  %v10418_v19 = vld [vmem:[#allocation63_spill] sm:$0xff] }
 0x3d6   : > { %10409 = vst [vmem:[#allocation53_spill] sm:$0xff] %v8487_v53  ;;  %v4138_v55 = vmul.f32 %v2836_v37, %v1947_v59 }
 0x3d8   : > { %v3745_v44 = vpop.f32.mrf.mxu0  ;;  %v8493_v62 = vmul.f32 %v4138_v55, %v3736_v42  ;;  %5647 = vmatmul.msk.f32.gmra.mxu1 %vm2354_vm1, %v6242_v33  ;;  %5711 = vmatmul.msk.f32.gmra.mxu2 %vm2354_vm1, %v6242_v33  ;;  %v1950_v42 = vadd.f32 %v7310_v5, %v8138_v43  ;;  %v10415_v33 = vld [vmem:[#allocation71_spill] sm:$0xff] }
 0x3d9   : > { %5776 = vmatmul.msk.f32.gmra.mxu3 %vm3244_vm3, %v3211_v48  ;;  %v1741_v53 = vadd.f32 %v10415_v33, %v8028_v40  ;;  %v3215_v5 = vld [vmem:[%s7746_s26 + $0x148] sm:$0xff] }
 0x3da   : > { %10411 = vst [vmem:[#allocation55_spill] sm:$0xff] %v8493_v62  ;;  %5844 = vmatmul.msk.f32.gmra.mxu0 %vm3244_vm3, %v3214_v57 }
 0x3db   : > { %v3045_v56 = vpop.f32.mrf.mxu2 }
 0x3dc   : > { %v8506_v23 = vmul.f32 %v3045_v56, %v2156_v16  ;;  %v3527_v59 = vpop.f32.mrf.mxu3  ;;  %v2159_v16 = vadd.f32 %v10417_v2, %v8152_v38  ;;  %v6244_v2 = vld [vmem:[%s6564_s15 + $0x138] sm:$0xff] }
 0x3dd   : > { %v8508_v25 = vmul.f32 %v4137_v26, %v3527_v59  ;;  %v2839_v37 = vpop.f32.mrf.mxu1  ;;  %v4140_v26 = vmul.f32 %v10418_v19, %v1741_v53  ;;  %v3216_v53 = vld [vmem:[%s7746_s26 + $0x150] sm:$0xff] }
 0x3de   : > { %10414 = vst [vmem:[#allocation45_spill] sm:$0xff] %v8506_v23  ;;  %v4141_v55 = vmul.f32 %v2839_v37, %v1950_v42 }
 0x3e0   : > { %v3748_v48 = vpop.f32.mrf.mxu0  ;;  %v8512_v62 = vmul.f32 %v4141_v55, %v3739_v60  ;;  %5648 = vmatmul.msk.f32.gmra.mxu1 %vm2354_vm1, %v6243_v14  ;;  %5712 = vmatmul.msk.f32.gmra.mxu2 %vm2354_vm1, %v6243_v14  ;;  %v1953_v60 = vadd.f32 %v7329_v58, %v8138_v43  ;;  %v10420_v14 = vld [vmem:[#allocation74_spill] sm:$0xff] }
 0x3e1   : > { %5777 = vmatmul.msk.f32.gmra.mxu3 %vm3244_vm3, %v3212_v41  ;;  %v1744_v23 = vadd.f32 %v10420_v14, %v8028_v40  ;;  %v4466_v58 = vld [vmem:[%s10093_s9 + $0x40] sm:$0xff] }
 0x3e2   : > { %10416 = vst [vmem:[#allocation56_spill] sm:$0xff] %v8512_v62  ;;  %5845 = vmatmul.msk.f32.gmra.mxu0 %vm3244_vm3, %v3215_v5  ;;  %4513 = vmatpush.msrb.mxu2 %v4466_v58 }
 0x3e3   : > { %v3048_v56 = vpop.f32.mrf.mxu2 }
 0x3e4   : > { %v8525_v42 = vmul.f32 %v3048_v56, %v2159_v16  ;;  %v3530_v59 = vpop.f32.mrf.mxu3  ;;  %v10422_v16 = vld [vmem:[#allocation76_spill] sm:$0xff] }
 0x3e5   : > { %v8527_v37 = vmul.f32 %v4140_v26, %v3530_v59  ;;  %v2842_v55 = vpop.f32.mrf.mxu1  ;;  %v2162_v19 = vadd.f32 %v10422_v16, %v8152_v38  ;;  %v10423_v26 = vld [vmem:[#allocation66_spill] sm:$0xff] }
 0x3e6   : > { %10419 = vst [vmem:[#allocation58_spill] sm:$0xff] %v8525_v42  ;;  %v4144_v33 = vmul.f32 %v2842_v55, %v1953_v60  ;;  %v4143_v56 = vmul.f32 %v10423_v26, %v1744_v23  ;;  %v1956_v60 = vadd.f32 %v7348_v34, %v8138_v43  ;;  %v3217_v23 = vld [vmem:[%s7746_s26 + $0x158] sm:$0xff]  ;;  %v4498_v34 = vld [vmem:[%s10093_s9 + $0x140] sm:$0xff] }
 0x3e7   : > { %4931 = vmatpush.msrb.mxu0 %v4498_v34  ;;  %v6246_v34 = vld [vmem:[%s6564_s15 + $0x148] sm:$0xff] }
 0x3e8   : > { %v3751_v41 = vpop.f32.mrf.mxu0  ;;  %v8531_v62 = vmul.f32 %v4144_v33, %v3742_v45  ;;  %5649 = vmatmul.msk.f32.gmra.mxu1 %vm2354_vm1, %v6244_v2  ;;  %5713 = vmatmul.msk.f32.gmra.mxu2 %vm2354_vm1, %v6244_v2  ;;  %v4482_v45 = vld [vmem:[%s10093_s9 + $0xc0] sm:$0xff] }
 0x3e9   : > { %5778 = vmatmul.msk.f32.gmra.mxu3 %vm3244_vm3, %v3213_v20 }
 0x3ea   : > { %10421 = vst [vmem:[#allocation48_spill] sm:$0xff] %v8531_v62  ;;  %5846 = vmatmul.msk.f32.gmra.mxu0 %vm3244_vm3, %v3216_v53  ;;  %4722 = vmatpush.msrb.mxu3 %v4482_v45  ;;  %v10425_v62 = vld [vmem:[#allocation77_spill] sm:$0xff]  ;;  %v6245_v45 = vld [vmem:[%s6564_s15 + $0x140] sm:$0xff] }
 0x3eb   : > { %v3051_v20 = vpop.f32.mrf.mxu2  ;;  %v1747_v16 = vadd.f32 %v10425_v62, %v8028_v40 }
 0x3ec   : > { %v8550_v59 = vmul.f32 %v3051_v20, %v2162_v19  ;;  %v3533_v55 = vpop.f32.mrf.mxu3  ;;  %v10427_v19 = vld [vmem:[#allocation79_spill] sm:$0xff]  ;;  %v1959_v20 = vadd.f32 %v7367_v13, %v8138_v43  ;;  %v3218_v13 = vld [vmem:[%s7746_s26 + $0x160] sm:$0xff] }
 0x3ed   : > { %v8552_v33 = vmul.f32 %v4143_v56, %v3533_v55  ;;  %v2845_v14 = vpop.f32.mrf.mxu1  ;;  %v2165_v62 = vadd.f32 %v10427_v19, %v8152_v38 }
 0x3ee   : > { %10424 = vst [vmem:[#allocation59_spill] sm:$0xff] %v8550_v59  ;;  %v4147_v2 = vmul.f32 %v2845_v14, %v1956_v60 }
 0x3f0   : > { %v3754_v42 = vpop.f32.mrf.mxu0  ;;  %v8556_v58 = vmul.f32 %v4147_v2, %v3745_v44  ;;  %5650 = vmatmul.msk.f32.gmra.mxu1 %vm2354_vm1, %v6245_v45  ;;  %5714 = vmatmul.msk.f32.gmra.mxu2 %vm2354_vm1, %v6245_v45  ;;  %v10428_v44 = vld [vmem:[#allocation69_spill] sm:$0xff]  ;;  %v10430_v45 = vld [vmem:[#allocation80_spill] sm:$0xff] }
 0x3f1   : > { %5779 = vmatmul.msk.f32.gmra.mxu3 %vm3244_vm3, %v3214_v57  ;;  %v4146_v26 = vmul.f32 %v10428_v44, %v1747_v16  ;;  %v1750_v59 = vadd.f32 %v10430_v45, %v8028_v40  ;;  %v10432_v16 = vld [vmem:[#allocation82_spill] sm:$0xff]  ;;  %v10433_v44 = vld [vmem:[#allocation72_spill] sm:$0xff] }
 0x3f2   : > { %10426 = vst [vmem:[#allocation61_spill] sm:$0xff] %v8556_v58  ;;  %5847 = vmatmul.msk.f32.gmra.mxu0 %vm3244_vm3, %v3217_v23 }
 0x3f3   : > { %v3054_v56 = vpop.f32.mrf.mxu2 }
 0x3f4   : > { %v8572_v60 = vmul.f32 %v3054_v56, %v2165_v62  ;;  %v3536_v57 = vpop.f32.mrf.mxu3  ;;  %v2168_v62 = vadd.f32 %v10432_v16, %v8152_v38  ;;  %v10437_v16 = vld [vmem:[#allocation85_spill] sm:$0xff] }
 0x3f5   : > { %v8574_v55 = vmul.f32 %v4146_v26, %v3536_v57  ;;  %v2848_v14 = vpop.f32.mrf.mxu1  ;;  %v4149_v26 = vmul.f32 %v10433_v44, %v1750_v59  ;;  %v3219_v59 = vld [vmem:[%s7746_s26 + $0x168] sm:$0xff] }
 0x3f6   : > { %10429 = vst [vmem:[#allocation51_spill] sm:$0xff] %v8572_v60  ;;  %v4150_v2 = vmul.f32 %v2848_v14, %v1959_v20  ;;  %v10438_v44 = vld [vmem:[#allocation75_spill] sm:$0xff] }
 0x3f8   : > { %v3757_v58 = vpop.f32.mrf.mxu0  ;;  %v8578_v19 = vmul.f32 %v4150_v2, %v3748_v48  ;;  %5651 = vmatmul.msk.f32.gmra.mxu1 %vm2354_vm1, %v6246_v34  ;;  %5715 = vmatmul.msk.f32.gmra.mxu2 %vm2354_vm1, %v6246_v34  ;;  %v1962_v48 = vadd.f32 %v7386_v12, %v8138_v43 }
 0x3f9   : > { %5780 = vmatmul.msk.f32.gmra.mxu3 %vm3244_vm3, %v3215_v5  ;;  %v10435_v5 = vld [vmem:[#allocation83_spill] sm:$0xff] }
 0x3fa   : > { %10431 = vst [vmem:[#allocation62_spill] sm:$0xff] %v8578_v19  ;;  %5848 = vmatmul.msk.f32.gmra.mxu0 %vm3244_vm3, %v3218_v13  ;;  %v1753_v34 = vadd.f32 %v10435_v5, %v8028_v40  ;;  %v6247_v19 = vld [vmem:[%s6564_s15 + $0x150] sm:$0xff] }
 0x3fb   : > { %v3057_v56 = vpop.f32.mrf.mxu2 }
 0x3fc   : > { %v8591_v20 = vmul.f32 %v3057_v56, %v2168_v62  ;;  %v3539_v57 = vpop.f32.mrf.mxu3  ;;  %v2171_v62 = vadd.f32 %v10437_v16, %v8152_v38  ;;  %v1965_v56 = vadd.f32 %v7411_v11, %v8138_v43  ;;  %v4465_v11 = vld [vmem:[%s10093_s9 + $0x38] sm:$0xff]  ;;  %v10441_v16 = vld [vmem:[#allocation88_spill] sm:$0xff] }
 0x3fd   : > { %v8593_v14 = vmul.f32 %v4149_v26, %v3539_v57  ;;  %v2851_v2 = vpop.f32.mrf.mxu1  ;;  %v4152_v26 = vmul.f32 %v10438_v44, %v1753_v34  ;;  %v3220_v34 = vld [vmem:[%s7746_s26 + $0x170] sm:$0xff]  ;;  %4514 = vmatpush.msrb.mxu2 %v4465_v11 }
 0x3fe   : > { %10434 = vst [vmem:[#allocation64_spill] sm:$0xff] %v8591_v20  ;;  %v4153_v45 = vmul.f32 %v2851_v2, %v1962_v48 }
 0x400   : > { %v8597_v60 = vmul.f32 %v4153_v45, %v3751_v41  ;;  %5652 = vmatmul.msk.f32.gmra.mxu1 %vm2354_vm1, %v6247_v19  ;;  %5716 = vmatmul.msk.f32.gmra.mxu2 %vm2354_vm1, %v6247_v19  ;;  %v3760_v12 = vpop.f32.mrf.mxu0  ;;  %v10440_v45 = vld [vmem:[#allocation86_spill] sm:$0xff] }
 0x401   : > { %5781 = vmatmul.msk.f32.gmra.mxu3 %vm3244_vm3, %v3216_v53  ;;  %v1756_v5 = vadd.f32 %v10440_v45, %v8028_v40 }
 0x402   : > { %10436 = vst [vmem:[#allocation54_spill] sm:$0xff] %v8597_v60  ;;  %5849 = vmatmul.msk.f32.gmra.mxu0 %vm3244_vm3, %v3219_v59  ;;  %v6248_v60 = vld [vmem:[%s6564_s15 + $0x158] sm:$0xff] }
 0x403   : > { %v3060_v41 = vpop.f32.mrf.mxu2 }
 0x404   : > { %v8610_v48 = vmul.f32 %v3060_v41, %v2171_v62  ;;  %v3542_v19 = vpop.f32.mrf.mxu3  ;;  %v2174_v62 = vadd.f32 %v10441_v16, %v8152_v38  ;;  %v1968_v41 = vadd.f32 %v7433_v22, %v8138_v43  ;;  %v4497_v22 = vld [vmem:[%s10093_s9 + $0x138] sm:$0xff] }
 0x405   : > { %v8612_v57 = vmul.f32 %v4152_v26, %v3542_v19  ;;  %v2854_v2 = vpop.f32.mrf.mxu1  ;;  %4932 = vmatpush.msrb.mxu0 %v4497_v22  ;;  %v6250_v22 = vld [vmem:[%s6564_s15 + $0x168] sm:$0xff] }
 0x406   : > { %10439 = vst [vmem:[#allocation65_spill] sm:$0xff] %v8610_v48  ;;  %v4156_v53 = vmul.f32 %v2854_v2, %v1965_v56  ;;  %v10444_v48 = vld [vmem:[#allocation89_spill] sm:$0xff] }
 0x407   : > { %v1759_v16 = vadd.f32 %v10444_v48, %v8028_v40 }
 0x408   : > { %v8616_v20 = vmul.f32 %v4156_v53, %v3754_v42  ;;  %5653 = vmatmul.msk.f32.gmra.mxu1 %vm2354_vm1, %v6248_v60  ;;  %5717 = vmatmul.msk.f32.gmra.mxu2 %vm2354_vm1, %v6248_v60  ;;  %v4481_v42 = vld [vmem:[%s10093_s9 + $0xb8] sm:$0xff]  ;;  %v10442_v60 = vld [vmem:[#allocation78_spill] sm:$0xff]  ;;  %v3763_v26 = vpop.f32.mrf.mxu0 }
 0x409   : > { %5782 = vmatmul.msk.f32.gmra.mxu3 %vm3244_vm3, %v3217_v23  ;;  %v4155_v44 = vmul.f32 %v10442_v60, %v1756_v5  ;;  %v3221_v5 = vld [vmem:[%s7746_s26 + $0x178] sm:$0xff] }
 0x40a   : > { %5850 = vmatmul.msk.f32.gmra.mxu0 %vm3244_vm3, %v3220_v34  ;;  %4723 = vmatpush.msrb.mxu3 %v4481_v42  ;;  %v6249_v42 = vld [vmem:[%s6564_s15 + $0x160] sm:$0xff] }
 0x40b   : > { %v3063_v23 = vpop.f32.mrf.mxu2 }
 0x40c   : > { %v8635_v56 = vmul.f32 %v3063_v23, %v2174_v62  ;;  %v3545_v19 = vpop.f32.mrf.mxu3  ;;  %v10446_v62 = vld [vmem:[#allocation91_spill] sm:$0xff]  ;;  %v1971_v23 = vadd.f32 %v7452_v15, %v8138_v43  ;;  %v3222_v15 = vld [vmem:[%s7746_s26 + $0x180] sm:$0xff] }
 0x40d   : > { %v8637_v2 = vmul.f32 %v4155_v44, %v3545_v19  ;;  %v2857_v53 = vpop.f32.mrf.mxu1  ;;  %v2177_v48 = vadd.f32 %v10446_v62, %v8152_v38 }
 0x40e   : > { %10443 = vst [vmem:[#allocation67_spill] sm:$0xff] %v8635_v56  ;;  %v4159_v45 = vmul.f32 %v2857_v53, %v1968_v41  ;;  %v10449_v56 = vld [vmem:[#allocation92_spill] sm:$0xff] }
 0x410   : > { %v8641_v11 = vmul.f32 %v4159_v45, %v3757_v58  ;;  %5654 = vmatmul.msk.f32.gmra.mxu1 %vm2354_vm1, %v6249_v42  ;;  %5718 = vmatmul.msk.f32.gmra.mxu2 %vm2354_vm1, %v6249_v42  ;;  %v10447_v58 = vld [vmem:[#allocation81_spill] sm:$0xff]  ;;  %v3766_v45 = vpop.f32.mrf.mxu0 }
 0x411   : > { %5783 = vmatmul.msk.f32.gmra.mxu3 %vm3244_vm3, %v3218_v13  ;;  %v4158_v60 = vmul.f32 %v10447_v58, %v1759_v16  ;;  %v2180_v16 = vadd.f32 %v7458_v10, %v8152_v38  ;;  %v6251_v10 = vld [vmem:[%s6564_s15 + $0x170] sm:$0xff] }
 0x412   : > { %10445 = vst [vmem:[#allocation57_spill] sm:$0xff] %v8641_v11  ;;  %5851 = vmatmul.msk.f32.gmra.mxu0 %vm3244_vm3, %v3221_v5  ;;  %v1762_v11 = vadd.f32 %v10449_v56, %v8028_v40 }
 0x413   : > { %v3066_v44 = vpop.f32.mrf.mxu2 }
 0x414   : > { %v8657_v41 = vmul.f32 %v3066_v44, %v2177_v48  ;;  %v3548_v13 = vpop.f32.mrf.mxu3  ;;  %v10451_v48 = vld [vmem:[#allocation84_spill] sm:$0xff] }
 0x415   : > { %v8659_v19 = vmul.f32 %v4158_v60, %v3548_v13  ;;  %v2860_v53 = vpop.f32.mrf.mxu1  ;;  %v4161_v58 = vmul.f32 %v10451_v48, %v1762_v11  ;;  %v3223_v11 = vld [vmem:[%s7746_s26 + $0x188] sm:$0xff] }
 0x416   : > { %10448 = vst [vmem:[#allocation68_spill] sm:$0xff] %v8657_v41  ;;  %v4162_v42 = vmul.f32 %v2860_v53, %v1971_v23 }
 0x418   : > { %v8663_v62 = vmul.f32 %v4162_v42, %v3760_v12  ;;  %5655 = vmatmul.msk.f32.gmra.mxu1 %vm2354_vm1, %v6250_v22  ;;  %5719 = vmatmul.msk.f32.gmra.mxu2 %vm2354_vm1, %v6250_v22  ;;  %v10452_v12 = vld [vmem:[#allocation96_spill] sm:$0xff]  ;;  %v3769_v41 = vpop.f32.mrf.mxu0 }
 0x419   : > { %5784 = vmatmul.msk.f32.gmra.mxu3 %vm3244_vm3, %v3219_v59  ;;  %v1974_v60 = vadd.f32 %v10452_v12, %v8138_v43  ;;  %v10454_v59 = vld [vmem:[#allocation94_spill] sm:$0xff] }
 0x41a   : > { %10450 = vst [vmem:[#allocation70_spill] sm:$0xff] %v8663_v62  ;;  %5852 = vmatmul.msk.f32.gmra.mxu0 %vm3244_vm3, %v3222_v15  ;;  %v1765_v22 = vadd.f32 %v10454_v59, %v8028_v40 }
 0x41b   : > { %v3069_v56 = vpop.f32.mrf.mxu2 }
 0x41c   : > { %v8676_v44 = vmul.f32 %v3069_v56, %v2180_v16  ;;  %v3551_v23 = vpop.f32.mrf.mxu3  ;;  %v10456_v16 = vld [vmem:[#allocation97_spill] sm:$0xff] }
 0x41d   : > { %v8678_v13 = vmul.f32 %v4161_v58, %v3551_v23  ;;  %v2863_v53 = vpop.f32.mrf.mxu1  ;;  %v2183_v48 = vadd.f32 %v10456_v16, %v8152_v38  ;;  %v10457_v58 = vld [vmem:[#allocation87_spill] sm:$0xff]  ;;  %v4464_v16 = vld [vmem:[%s10093_s9 + $0x30] sm:$0xff] }
 0x41e   : > { %10453 = vst [vmem:[#allocation60_spill] sm:$0xff] %v8676_v44  ;;  %v4165_v42 = vmul.f32 %v2863_v53, %v1974_v60  ;;  %v4164_v56 = vmul.f32 %v10457_v58, %v1765_v22  ;;  %v3224_v22 = vld [vmem:[%s7746_s26 + $0x190] sm:$0xff]  ;;  %4515 = vmatpush.msrb.mxu2 %v4464_v16  ;;  %v6253_v16 = vld [vmem:[%s6564_s15 + $0x180] sm:$0xff] }
 0x420   : > { %v8682_v62 = vmul.f32 %v4165_v42, %v3763_v26  ;;  %5656 = vmatmul.msk.f32.gmra.mxu1 %vm2354_vm1, %v6251_v10  ;;  %5720 = vmatmul.msk.f32.gmra.mxu2 %vm2354_vm1, %v6251_v10  ;;  %v1977_v26 = vadd.f32 %v7495_v4, %v8138_v43  ;;  %v3772_v4 = vpop.f32.mrf.mxu0 }
 0x421   : > { %5785 = vmatmul.msk.f32.gmra.mxu3 %vm3244_vm3, %v3220_v34  ;;  %v10459_v34 = vld [vmem:[#allocation98_spill] sm:$0xff] }
 0x422   : > { %10455 = vst [vmem:[#allocation71_spill] sm:$0xff] %v8682_v62  ;;  %5853 = vmatmul.msk.f32.gmra.mxu0 %vm3244_vm3, %v3223_v11  ;;  %v1768_v10 = vadd.f32 %v10459_v34, %v8028_v40  ;;  %v6252_v62 = vld [vmem:[%s6564_s15 + $0x178] sm:$0xff] }
 0x423   : > { %v3072_v12 = vpop.f32.mrf.mxu2 }
 0x424   : > { %v8695_v60 = vmul.f32 %v3072_v12, %v2183_v48  ;;  %v3554_v23 = vpop.f32.mrf.mxu3  ;;  %v10461_v48 = vld [vmem:[#allocation100_spill] sm:$0xff]  ;;  %v1980_v12 = vadd.f32 %v7514_v7, %v8138_v43 }
 0x425   : > { %v8697_v53 = vmul.f32 %v4164_v56, %v3554_v23  ;;  %v2866_v42 = vpop.f32.mrf.mxu1  ;;  %v2186_v58 = vadd.f32 %v10461_v48, %v8152_v38  ;;  %v4496_v7 = vld [vmem:[%s10093_s9 + $0x130] sm:$0xff] }
 0x426   : > { %10458 = vst [vmem:[#allocation73_spill] sm:$0xff] %v8695_v60  ;;  %v4168_v59 = vmul.f32 %v2866_v42, %v1977_v26  ;;  %v10464_v60 = vld [vmem:[#allocation101_spill] sm:$0xff]  ;;  %4933 = vmatpush.msrb.mxu0 %v4496_v7  ;;  %v6254_v7 = vld [vmem:[%s6564_s15 + $0x188] sm:$0xff] }
 0x428   : > { %v8701_v44 = vmul.f32 %v4168_v59, %v3766_v45  ;;  %5657 = vmatmul.msk.f32.gmra.mxu1 %vm2354_vm1, %v6252_v62  ;;  %5721 = vmatmul.msk.f32.gmra.mxu2 %vm2354_vm1, %v6252_v62  ;;  %v4480_v45 = vld [vmem:[%s10093_s9 + $0xb0] sm:$0xff]  ;;  %v10462_v62 = vld [vmem:[#allocation90_spill] sm:$0xff] }
 0x429   : > { %5786 = vmatmul.msk.f32.gmra.mxu3 %vm3244_vm3, %v3221_v5  ;;  %v4167_v5 = vmul.f32 %v10462_v62, %v1768_v10  ;;  %v3225_v10 = vld [vmem:[%s7746_s26 + $0x198] sm:$0xff] }
 0x42a   : > { %10460 = vst [vmem:[#allocation63_spill] sm:$0xff] %v8701_v44  ;;  %5854 = vmatmul.msk.f32.gmra.mxu0 %vm3244_vm3, %v3224_v22  ;;  %4724 = vmatpush.msrb.mxu3 %v4480_v45  ;;  %v1771_v44 = vadd.f32 %v10464_v60, %v8028_v40  ;;  %v10465_v45 = vld [vmem:[#allocation103_spill] sm:$0xff] }
 0x42b   : > { %v3075_v56 = vpop.f32.mrf.mxu2  ;;  %v2189_v60 = vadd.f32 %v10465_v45, %v8152_v38 }
 0x42c   : > { %v8720_v26 = vmul.f32 %v3075_v56, %v2186_v58  ;;  %v3557_v23 = vpop.f32.mrf.mxu3  ;;  %v1983_v56 = vadd.f32 %v7533_v31, %v8138_v43  ;;  %v10470_v31 = vld [vmem:[#allocation106_spill] sm:$0xff] }
 0x42d   : > { %v8722_v42 = vmul.f32 %v4167_v5, %v3557_v23  ;;  %v2869_v59 = vpop.f32.mrf.mxu1  ;;  %v3775_v5 = vpop.f32.mrf.mxu0 }
 0x42e   : > { %10463 = vst [vmem:[#allocation74_spill] sm:$0xff] %v8720_v26  ;;  %v4171_v34 = vmul.f32 %v2869_v59, %v1980_v12 }
 0x430   : > { %v8726_v48 = vmul.f32 %v4171_v34, %v3769_v41  ;;  %5658 = vmatmul.msk.f32.gmra.mxu1 %vm2354_vm1, %v6253_v16  ;;  %5722 = vmatmul.msk.f32.gmra.mxu2 %vm2354_vm1, %v6253_v16  ;;  %v10466_v41 = vld [vmem:[#allocation93_spill] sm:$0xff]  ;;  %v10468_v16 = vld [vmem:[#allocation104_spill] sm:$0xff] }
 0x431   : > { %5787 = vmatmul.msk.f32.gmra.mxu3 %vm3244_vm3, %v3222_v15  ;;  %v4170_v58 = vmul.f32 %v10466_v41, %v1771_v44  ;;  %v1774_v26 = vadd.f32 %v10468_v16, %v8028_v40  ;;  %v3226_v44 = vld [vmem:[%s7746_s26 + $0x1a0] sm:$0xff]  ;;  %v10471_v41 = vld [vmem:[#allocation95_spill] sm:$0xff] }
 0x432   : > { %5855 = vmatmul.msk.f32.gmra.mxu0 %vm3244_vm3, %v3225_v10 }
 0x433   : > { %v3078_v62 = vpop.f32.mrf.mxu2 }
 0x434   : > { %v8742_v15 = vmul.f32 %v3078_v62, %v2189_v60  ;;  %v3560_v12 = vpop.f32.mrf.mxu3  ;;  %v2192_v60 = vadd.f32 %v10470_v31, %v8152_v38  ;;  %v6255_v31 = vld [vmem:[%s6564_s15 + $0x190] sm:$0xff] }
 0x435   : > { %v8744_v23 = vmul.f32 %v4170_v58, %v3560_v12  ;;  %v2872_v59 = vpop.f32.mrf.mxu1  ;;  %v4173_v58 = vmul.f32 %v10471_v41, %v1774_v26  ;;  %v3778_v16 = vpop.f32.mrf.mxu0  ;;  %v10475_v26 = vld [vmem:[#allocation109_spill] sm:$0xff]  ;;  %v10476_v41 = vld [vmem:[#allocation99_spill] sm:$0xff] }
 0x436   : > { %10467 = vst [vmem:[#allocation76_spill] sm:$0xff] %v8742_v15  ;;  %v4174_v34 = vmul.f32 %v2872_v59, %v1983_v56 }
 0x438   : > { %v8748_v45 = vmul.f32 %v4174_v34, %v3772_v4  ;;  %5659 = vmatmul.msk.f32.gmra.mxu1 %vm2354_vm1, %v6254_v7  ;;  %5723 = vmatmul.msk.f32.gmra.mxu2 %vm2354_vm1, %v6254_v7  ;;  %v1986_v4 = vadd.f32 %v7552_v49, %v8138_v43  ;;  %v10473_v7 = vld [vmem:[#allocation107_spill] sm:$0xff] }
 0x439   : > { %5788 = vmatmul.msk.f32.gmra.mxu3 %vm3244_vm3, %v3223_v11  ;;  %v1777_v15 = vadd.f32 %v10473_v7, %v8028_v40  ;;  %v3227_v49 = vld [vmem:[%s7746_s26 + $0x1a8] sm:$0xff] }
 0x43a   : > { %10469 = vst [vmem:[#allocation66_spill] sm:$0xff] %v8748_v45  ;;  %5856 = vmatmul.msk.f32.gmra.mxu0 %vm3244_vm3, %v3226_v44 }
 0x43b   : > { %v3081_v62 = vpop.f32.mrf.mxu2 }
 0x43c   : > { %v8761_v56 = vmul.f32 %v3081_v62, %v2192_v60  ;;  %v3563_v12 = vpop.f32.mrf.mxu3  ;;  %v2195_v60 = vadd.f32 %v10475_v26, %v8152_v38  ;;  %v6256_v26 = vld [vmem:[%s6564_s15 + $0x198] sm:$0xff] }
 0x43d   : > { %v8763_v59 = vmul.f32 %v4173_v58, %v3563_v12  ;;  %v2875_v34 = vpop.f32.mrf.mxu1  ;;  %v4176_v58 = vmul.f32 %v10476_v41, %v1777_v15  ;;  %v3228_v15 = vld [vmem:[%s7746_s26 + $0x1b0] sm:$0xff] }
 0x43e   : > { %10472 = vst [vmem:[#allocation77_spill] sm:$0xff] %v8761_v56  ;;  %v4177_v11 = vmul.f32 %v2875_v34, %v1986_v4  ;;  %v3781_v56 = vpop.f32.mrf.mxu0 }
 0x440   : > { %v8767_v45 = vmul.f32 %v4177_v11, %v3775_v5  ;;  %5660 = vmatmul.msk.f32.gmra.mxu1 %vm2354_vm1, %v6255_v31  ;;  %5724 = vmatmul.msk.f32.gmra.mxu2 %vm2354_vm1, %v6255_v31  ;;  %v1989_v5 = vadd.f32 %v7571_v3, %v8138_v43  ;;  %v4463_v3 = vld [vmem:[%s10093_s9 + $0x28] sm:$0xff] }
 0x441   : > { %5789 = vmatmul.msk.f32.gmra.mxu3 %vm3244_vm3, %v3224_v22  ;;  %v10478_v22 = vld [vmem:[#allocation110_spill] sm:$0xff]  ;;  %4516 = vmatpush.msrb.mxu2 %v4463_v3 }
 0x442   : > { %10474 = vst [vmem:[#allocation79_spill] sm:$0xff] %v8767_v45  ;;  %5857 = vmatmul.msk.f32.gmra.mxu0 %vm3244_vm3, %v3227_v49  ;;  %v1780_v31 = vadd.f32 %v10478_v22, %v8028_v40  ;;  %v6257_v3 = vld [vmem:[%s6564_s15 + $0x1a0] sm:$0xff] }
 0x443   : > { %v3084_v62 = vpop.f32.mrf.mxu2 }
 0x444   : > { %v8780_v4 = vmul.f32 %v3084_v62, %v2195_v60  ;;  %v3566_v12 = vpop.f32.mrf.mxu3  ;;  %v10480_v60 = vld [vmem:[#allocation112_spill] sm:$0xff] }
 0x445   : > { %v8782_v34 = vmul.f32 %v4176_v58, %v3566_v12  ;;  %v2878_v11 = vpop.f32.mrf.mxu1  ;;  %v2198_v41 = vadd.f32 %v10480_v60, %v8152_v38  ;;  %v10481_v58 = vld [vmem:[#allocation102_spill] sm:$0xff] }
 0x446   : > { %10477 = vst [vmem:[#allocation69_spill] sm:$0xff] %v8780_v4  ;;  %v4180_v7 = vmul.f32 %v2878_v11, %v1989_v5  ;;  %v4179_v62 = vmul.f32 %v10481_v58, %v1780_v31  ;;  %v1992_v5 = vadd.f32 %v7590_v35, %v8138_v43  ;;  %v10483_v4 = vld [vmem:[#allocation113_spill] sm:$0xff]  ;;  %v3784_v35 = vpop.f32.mrf.mxu0 }
 0x447   : > { %v3229_v31 = vld [vmem:[%s7746_s26 + $0x1b8] sm:$0xff] }
 0x448   : > { %v8786_v45 = vmul.f32 %v4180_v7, %v3778_v16  ;;  %5661 = vmatmul.msk.f32.gmra.mxu1 %vm2354_vm1, %v6256_v26  ;;  %5725 = vmatmul.msk.f32.gmra.mxu2 %vm2354_vm1, %v6256_v26  ;;  %v4479_v16 = vld [vmem:[%s10093_s9 + $0xa8] sm:$0xff] }
 0x449   : > { %5790 = vmatmul.msk.f32.gmra.mxu3 %vm3244_vm3, %v3225_v10 }
 0x44a   : > { %10479 = vst [vmem:[#allocation80_spill] sm:$0xff] %v8786_v45  ;;  %5858 = vmatmul.msk.f32.gmra.mxu0 %vm3244_vm3, %v3228_v15  ;;  %4725 = vmatpush.msrb.mxu3 %v4479_v16  ;;  %v1783_v45 = vadd.f32 %v10483_v4, %v8028_v40  ;;  %v4495_v16 = vld [vmem:[%s10093_s9 + $0x128] sm:$0xff] }
 0x44b   : > { %v3087_v10 = vpop.f32.mrf.mxu2  ;;  %v10485_v4 = vld [vmem:[#allocation115_spill] sm:$0xff]  ;;  %4934 = vmatpush.msrb.mxu0 %v4495_v16 }
 0x44c   : > { %v8805_v12 = vmul.f32 %v3087_v10, %v2198_v41  ;;  %v3569_v11 = vpop.f32.mrf.mxu3  ;;  %v10486_v41 = vld [vmem:[#allocation105_spill] sm:$0xff]  ;;  %v1995_v10 = vadd.f32 %v7609_v63, %v8138_v43  ;;  %v10489_v63 = vld [vmem:[#allocation118_spill] sm:$0xff] }
 0x44d   : > { %v8807_v7 = vmul.f32 %v4179_v62, %v3569_v11  ;;  %v2881_v22 = vpop.f32.mrf.mxu1  ;;  %v4182_v58 = vmul.f32 %v10486_v41, %v1783_v45  ;;  %v3230_v45 = vld [vmem:[%s7746_s26 + $0x1c0] sm:$0xff]  ;;  %v2204_v16 = vadd.f32 %v10489_v63, %v8152_v38  ;;  %v6259_v63 = vld [vmem:[%s6564_s15 + $0x1b0] sm:$0xff] }
 0x44e   : > { %10482 = vst [vmem:[#allocation82_spill] sm:$0xff] %v8805_v12  ;;  %v4183_v26 = vmul.f32 %v2881_v22, %v1992_v5 }
 0x450   : > { %v8811_v60 = vmul.f32 %v4183_v26, %v3781_v56  ;;  %5662 = vmatmul.msk.f32.gmra.mxu1 %vm2354_vm1, %v6257_v3  ;;  %5726 = vmatmul.msk.f32.gmra.mxu2 %vm2354_vm1, %v6257_v3  ;;  %v2201_v56 = vadd.f32 %v10485_v4, %v8152_v38  ;;  %v10488_v3 = vld [vmem:[#allocation116_spill] sm:$0xff]  ;;  %v6258_v4 = vld [vmem:[%s6564_s15 + $0x1a8] sm:$0xff] }
 0x451   : > { %5791 = vmatmul.msk.f32.gmra.mxu3 %vm3244_vm3, %v3226_v44  ;;  %v1786_v12 = vadd.f32 %v10488_v3, %v8028_v40  ;;  %v10492_v3 = vld [vmem:[#allocation119_spill] sm:$0xff] }
 0x452   : > { %10484 = vst [vmem:[#allocation72_spill] sm:$0xff] %v8811_v60  ;;  %5859 = vmatmul.msk.f32.gmra.mxu0 %vm3244_vm3, %v3229_v31 }
 0x453   : > { %v3090_v62 = vpop.f32.mrf.mxu2 }
 0x454   : > { %v8827_v44 = vmul.f32 %v3090_v62, %v2201_v56  ;;  %v3572_v5 = vpop.f32.mrf.mxu3  ;;  %v10490_v56 = vld [vmem:[#allocation108_spill] sm:$0xff]  ;;  %v1998_v62 = vadd.f32 %v7628_v32, %v8138_v43  ;;  %v10494_v32 = vld [vmem:[#allocation121_spill] sm:$0xff] }
 0x455   : > { %v8829_v11 = vmul.f32 %v4182_v58, %v3572_v5  ;;  %v2884_v22 = vpop.f32.mrf.mxu1  ;;  %v4185_v41 = vmul.f32 %v10490_v56, %v1786_v12  ;;  %v3231_v12 = vld [vmem:[%s7746_s26 + $0x1c8] sm:$0xff] }
 0x456   : > { %10487 = vst [vmem:[#allocation83_spill] sm:$0xff] %v8827_v44  ;;  %v4186_v26 = vmul.f32 %v2884_v22, %v1995_v10  ;;  %v10495_v56 = vld [vmem:[#allocation111_spill] sm:$0xff] }
 0x458   : > { %v8833_v60 = vmul.f32 %v4186_v26, %v3784_v35  ;;  %5663 = vmatmul.msk.f32.gmra.mxu1 %vm2354_vm1, %v6258_v4  ;;  %5727 = vmatmul.msk.f32.gmra.mxu2 %vm2354_vm1, %v6258_v4  ;;  %v3787_v35 = vpop.f32.mrf.mxu0  ;;  %v1789_v4 = vadd.f32 %v10492_v3, %v8028_v40 }
 0x459   : > { %5792 = vmatmul.msk.f32.gmra.mxu3 %vm3244_vm3, %v3227_v49 }
 0x45a   : > { %5860 = vmatmul.msk.f32.gmra.mxu0 %vm3244_vm3, %v3230_v45 }
 0x45b   : > { %v3093_v58 = vpop.f32.mrf.mxu2 }
 0x45c   : > { %v8846_v10 = vmul.f32 %v3093_v58, %v2204_v16  ;;  %v3575_v5 = vpop.f32.mrf.mxu3  ;;  %v2207_v16 = vadd.f32 %v10494_v32, %v8152_v38  ;;  %v6260_v32 = vld [vmem:[%s6564_s15 + $0x1b8] sm:$0xff] }
 0x45d   : > { %v8848_v22 = vmul.f32 %v4185_v41, %v3575_v5  ;;  %v2887_v26 = vpop.f32.mrf.mxu1  ;;  %v4188_v41 = vmul.f32 %v10495_v56, %v1789_v4  ;;  %v4462_v4 = vld [vmem:[%s10093_s9 + $0x20] sm:$0xff]  ;;  %v10498_v56 = vld [vmem:[#allocation124_spill] sm:$0xff] }
 0x45e   : > { %10491 = vst [vmem:[#allocation85_spill] sm:$0xff] %v8846_v10  ;;  %v4189_v49 = vmul.f32 %v2887_v26, %v1998_v62  ;;  %4517 = vmatpush.msrb.mxu2 %v4462_v4  ;;  %v3233_v4 = vld [vmem:[%s7746_s26 + $0x1d8] sm:$0xff] }
 0x460   : > { %v8852_v44 = vmul.f32 %v4189_v49, %v3787_v35  ;;  %5664 = vmatmul.msk.f32.gmra.mxu1 %vm2354_vm1, %v6259_v63  ;;  %5728 = vmatmul.msk.f32.gmra.mxu2 %vm2354_vm1, %v6259_v63  ;;  %v2001_v35 = vadd.f32 %v7647_v1, %v8138_v43  ;;  %v3790_v3 = vpop.f32.mrf.mxu0  ;;  %v10497_v63 = vld [vmem:[#allocation122_spill] sm:$0xff]  ;;  %v3232_v1 = vld [vmem:[%s7746_s26 + $0x1d0] sm:$0xff] }
 0x461   : > { %5793 = vmatmul.msk.f32.gmra.mxu3 %vm3244_vm3, %v3228_v15  ;;  %v1792_v10 = vadd.f32 %v10497_v63, %v8028_v40  ;;  %v10502_v63 = vld [vmem:[#allocation125_spill] sm:$0xff] }
 0x462   : > { %10493 = vst [vmem:[#allocation75_spill] sm:$0xff] %v8852_v44  ;;  %5861 = vmatmul.msk.f32.gmra.mxu0 %vm3244_vm3, %v3231_v12 }
 0x463   : > { %v3096_v58 = vpop.f32.mrf.mxu2 }
 0x464   : > { %v8865_v62 = vmul.f32 %v3096_v58, %v2207_v16  ;;  %v3578_v5 = vpop.f32.mrf.mxu3  ;;  %v4478_v16 = vld [vmem:[%s10093_s9 + $0xa0] sm:$0xff] }
 0x465   : > { %v8867_v26 = vmul.f32 %v4188_v41, %v3578_v5  ;;  %v2890_v49 = vpop.f32.mrf.mxu1  ;;  %v2210_v41 = vadd.f32 %v10498_v56, %v8152_v38  ;;  %4726 = vmatpush.msrb.mxu3 %v4478_v16  ;;  %v10499_v58 = vld [vmem:[#allocation114_spill] sm:$0xff]  ;;  %v10503_v16 = vld [vmem:[#allocation128_spill] sm:$0xff] }
 0x466   : > { %10496 = vst [vmem:[#allocation86_spill] sm:$0xff] %v8865_v62  ;;  %v4192_v15 = vmul.f32 %v2890_v49, %v2001_v35  ;;  %v4191_v35 = vmul.f32 %v10499_v58, %v1792_v10  ;;  %v6261_v62 = vld [vmem:[%s6564_s15 + $0x1c0] sm:$0xff]  ;;  %v2213_v56 = vadd.f32 %v10503_v16, %v8152_v38  ;;  %v10507_v16 = vld [vmem:[#allocation120_spill] sm:$0xff] }
 0x467   : > { %v4494_v10 = vld [vmem:[%s10093_s9 + $0x120] sm:$0xff] }
 0x468   : > { %v8871_v44 = vmul.f32 %v4192_v15, %v3790_v3  ;;  %5665 = vmatmul.msk.f32.gmra.mxu1 %vm2354_vm1, %v6260_v32  ;;  %5729 = vmatmul.msk.f32.gmra.mxu2 %vm2354_vm1, %v6260_v32  ;;  %v1795_v32 = vadd.f32 %v10502_v63, %v8028_v40 }
 0x469   : > { %5794 = vmatmul.msk.f32.gmra.mxu3 %vm3244_vm3, %v3229_v31  ;;  %4935 = vmatpush.msrb.mxu0 %v4494_v10  ;;  %v3234_v10 = vld [vmem:[%s7746_s26 + $0x1e0] sm:$0xff] }
 0x46a   : > { %5862 = vmatmul.msk.f32.gmra.mxu0 %vm3244_vm3, %v3232_v1 }
 0x46b   : > { %v3099_v5 = vpop.f32.mrf.mxu2 }
 0x46c   : > { %v8888_v31 = vmul.f32 %v3099_v5, %v2210_v41  ;;  %v3581_v49 = vpop.f32.mrf.mxu3  ;;  %v10504_v41 = vld [vmem:[#allocation117_spill] sm:$0xff] }
 0x46d   : > { %v8890_v3 = vmul.f32 %v4191_v35, %v3581_v49  ;;  %v8892_v15 = vpop.f32.mrf.mxu1  ;;  %v4194_v58 = vmul.f32 %v10504_v41, %v1795_v32  ;;  %v2216_v32 = vadd.f32 %v7691_v46, %v8152_v38  ;;  %v3235_v46 = vld [vmem:[%s7746_s26 + $0x1e8] sm:$0xff] }
 0x46e   : > { %10500 = vst [vmem:[#allocation88_spill] sm:$0xff] %v8888_v31 }
 0x46f   : > { %10501 = vst [vmem:[#allocation78_spill] sm:$0xff] %v8892_v15  ;;  %v6262_v15 = vld [vmem:[%s6564_s15 + $0x1c8] sm:$0xff] }
 0x470   : > { %5666 = vmatmul.msk.f32.gmra.mxu1 %vm2354_vm1, %v6261_v62  ;;  %5730 = vmatmul.msk.f32.gmra.mxu2 %vm2354_vm1, %v6261_v62 }
 0x471   : > { %5795 = vmatmul.msk.f32.gmra.mxu3 %vm3244_vm3, %v3230_v45  ;;  %v10506_v45 = vld [vmem:[#allocation129_spill] sm:$0xff] }
 0x472   : > { %5863 = vmatmul.msk.f32.gmra.mxu0 %vm3244_vm3, %v3233_v4  ;;  %v1798_v31 = vadd.f32 %v10506_v45, %v8028_v40 }
 0x473   : > { %v3102_v35 = vpop.f32.mrf.mxu2 }
 0x474   : > { %v8908_v5 = vmul.f32 %v3102_v35, %v2213_v56  ;;  %v3584_v62 = vpop.f32.mrf.mxu3  ;;  %v4197_v56 = vmul.f32 %v10507_v16, %v1798_v31  ;;  %v2219_v31 = vadd.f32 %v7706_v18, %v8152_v38  ;;  %v4461_v18 = vld [vmem:[%s10093_s9 + $0x18] sm:$0xff] }
 0x475   : > { %v8910_v49 = vmul.f32 %v4194_v58, %v3584_v62  ;;  %v8912_v63 = vpop.f32.mrf.mxu1  ;;  %4518 = vmatpush.msrb.mxu2 %v4461_v18  ;;  %v4459_v18 = vld [vmem:[%s10093_s9 + $0x8] sm:$0xff] }
 0x476   : > { %10505 = vst [vmem:[#allocation89_spill] sm:$0xff] %v8908_v5 }
 0x478   : > { %5667 = vmatmul.msk.f32.gmra.mxu1 %vm2354_vm1, %v6262_v15  ;;  %5731 = vmatmul.msk.f32.gmra.mxu2 %vm2354_vm1, %v6262_v15  ;;  %v10510_v15 = vld [vmem:[#allocation3_spill] sm:$0xff] }
 0x479   : > { %5796 = vmatmul.msk.f32.gmra.mxu3 %vm3244_vm3, %v3231_v12  ;;  %v1801_v5 = vadd.f32 %v10510_v15, %v8028_v40  ;;  %v6263_v12 = vld [vmem:[%s6564_s15 + $0x1d0] sm:$0xff] }
 0x47a   : > { %5864 = vmatmul.msk.f32.gmra.mxu0 %vm3244_vm3, %v3234_v10 }
 0x47b   : > { %v3105_v41 = vpop.f32.mrf.mxu2 }
 0x47c   : > { %v8925_v58 = vmul.f32 %v3105_v41, %v2216_v32  ;;  %v3587_v35 = vpop.f32.mrf.mxu3  ;;  %v10511_v32 = vld [vmem:[#allocation123_spill] sm:$0xff] }
 0x47d   : > { %v8927_v62 = vmul.f32 %v4197_v56, %v3587_v35  ;;  %v8929_v45 = vpop.f32.mrf.mxu1  ;;  %v4200_v16 = vmul.f32 %v10511_v32, %v1801_v5  ;;  %v4477_v5 = vld [vmem:[%s10093_s9 + $0x98] sm:$0xff] }
 0x47e   : > { %10508 = vst [vmem:[#allocation91_spill] sm:$0xff] %v8925_v58  ;;  %4727 = vmatpush.msrb.mxu3 %v4477_v5  ;;  %v4475_v5 = vld [vmem:[%s10093_s9 + $0x88] sm:$0xff] }
 0x47f   : > { %10509 = vst [vmem:[#allocation81_spill] sm:$0xff] %v8929_v45  ;;  %v6264_v45 = vld [vmem:[%s6564_s15 + $0x1d8] sm:$0xff] }
 0x480   : > { %5668 = vmatmul.msk.f32.gmra.mxu1 %vm2354_vm1, %v6263_v12  ;;  %5732 = vmatmul.msk.f32.gmra.mxu2 %vm2354_vm1, %v6263_v12  ;;  %v1804_v12 = vadd.f32 %v7708_v0, %v8028_v40  ;;  %v2222_v0 = vadd.f32 %v7720_v17, %v8152_v38  ;;  %v4476_v17 = vld [vmem:[%s10093_s9 + $0x90] sm:$0xff] }
 0x481   : > { %5797 = vmatmul.msk.f32.gmra.mxu3 %vm3244_vm3, %v3232_v1  ;;  %v3236_v1 = vld [vmem:[%s7746_s26 + $0x1f0] sm:$0xff] }
 0x482   : > { %5865 = vmatmul.msk.f32.gmra.mxu0 %vm3244_vm3, %v3235_v46  ;;  %4728 = vmatpush.msrb.mxu3 %v4476_v17 }
 0x483   : > { %v3108_v56 = vpop.f32.mrf.mxu2 }
 0x484   : > { %v8942_v41 = vmul.f32 %v3108_v56, %v2219_v31  ;;  %v3590_v35 = vpop.f32.mrf.mxu3  ;;  %4729 = vmatpush.msrb.mxu3 %v4475_v5  ;;  %v10525_v5 = vld [vmem:[#allocation132_spill] sm:$0xff] }
 0x485   : > { %v8944_v15 = vmul.f32 %v4200_v16, %v3590_v35  ;;  %v8946_v58 = vpop.f32.mrf.mxu1 }
 0x486   : > { %10512 = vst [vmem:[#allocation92_spill] sm:$0xff] %v8942_v41  ;;  %v4460_v41 = vld [vmem:[%s10093_s9 + $0x10] sm:$0xff] }
 0x487   : > { %10513 = vst [vmem:[#allocation84_spill] sm:$0xff] %v8944_v15  ;;  %4519 = vmatpush.msrb.mxu2 %v4460_v41  ;;  %v4474_v41 = vld [vmem:[%s10093_s9 + $0x80] sm:$0xff] }
 0x488   : > { %10514 = vst [vmem:[#allocation96_spill] sm:$0xff] %v8946_v58  ;;  %5669 = vmatmul.msk.f32.gmra.mxu1 %vm2354_vm1, %v6264_v45  ;;  %5733 = vmatmul.msk.f32.gmra.mxu2 %vm2354_vm1, %v6264_v45  ;;  %v10515_v45 = vld [vmem:[#allocation126_spill] sm:$0xff] }
 0x489   : > { %5798 = vmatmul.msk.f32.gmra.mxu3 %vm3244_vm3, %v3233_v4  ;;  %v4203_v31 = vmul.f32 %v10515_v45, %v1804_v12  ;;  %v1807_v12 = vadd.f32 %v7722_v29, %v8028_v40  ;;  %v3237_v45 = vld [vmem:[%s7746_s26 + $0x1f8] sm:$0xff]  ;;  %v4458_v29 = vld [vmem:[%s10093_s9] sm:$0xff]  ;;  %4520 = vmatpush.msrb.mxu2 %v4459_v18 }
 0x48a   : > { %5866 = vmatmul.msk.f32.gmra.mxu0 %vm3244_vm3, %v3236_v1  ;;  %4730 = vmatpush.msrb.mxu3 %v4474_v41  ;;  %v10523_v58 = vld [vmem:[#allocation138_spill] sm:$0xff] }
 0x48b   : > { %v3111_v4 = vpop.f32.mrf.mxu2  ;;  %4521 = vmatpush.msrb.mxu2 %v4458_v29  ;;  %v1810_v15 = vadd.f32 %v10523_v58, %v8028_v40 }
 0x48c   : > { %v8965_v32 = vmul.f32 %v3111_v4, %v2222_v0  ;;  %v3593_v16 = vpop.f32.mrf.mxu3  ;;  %v6265_v0 = vld [vmem:[%s6564_s15 + $0x1e0] sm:$0xff]  ;;  %v2225_v4 = vadd.f32 %v7738_v36, %v8152_v38  ;;  %v6266_v36 = vld [vmem:[%s6564_s15 + $0x1e8] sm:$0xff] }
 0x48d   : > { %v8967_v56 = vmul.f32 %v4203_v31, %v3593_v16  ;;  %v8969_v35 = vpop.f32.mrf.mxu1  ;;  %v4493_v31 = vld [vmem:[%s10093_s9 + $0x118] sm:$0xff]  ;;  %v4209_v29 = vmul.f32 %v10525_v5, %v1810_v15 }
 0x48e   : > { %10516 = vst [vmem:[#allocation94_spill] sm:$0xff] %v8965_v32  ;;  %4936 = vmatpush.msrb.mxu0 %v4493_v31 }
 0x48f   : > { %10517 = vst [vmem:[#allocation97_spill] sm:$0xff] %v8967_v56 }
 0x490   : > { %10518 = vst [vmem:[#allocation87_spill] sm:$0xff] %v8969_v35  ;;  %5670 = vmatmul.msk.f32.gmra.mxu1 %vm2354_vm1, %v6265_v0  ;;  %5734 = vmatmul.msk.f32.gmra.mxu2 %vm2354_vm1, %v6265_v0 }
 0x491   : > { %5799 = vmatmul.msk.f32.gmra.mxu3 %vm3244_vm3, %v3234_v10  ;;  %v10519_v10 = vld [vmem:[#allocation130_spill] sm:$0xff] }
 0x492   : > { %5867 = vmatmul.msk.f32.gmra.mxu0 %vm3244_vm3, %v3237_v45  ;;  %v4206_v16 = vmul.f32 %v10519_v10, %v1807_v12  ;;  %v10524_v12 = vld [vmem:[#allocation141_spill] sm:$0xff]  ;;  %v10529_v10 = vld [vmem:[#allocation142_spill] sm:$0xff] }
 0x493   : > { %v3114_v17 = vpop.f32.mrf.mxu2  ;;  %v2228_v18 = vadd.f32 %v10524_v12, %v8152_v38 }
 0x494   : > { %v9003_v0 = vmul.f32 %v3114_v17, %v2225_v4  ;;  %v3596_v32 = vpop.f32.mrf.mxu3  ;;  %v6267_v17 = vld [vmem:[%s6564_s15 + $0x1f0] sm:$0xff] }
 0x495   : > { %v9005_v35 = vmul.f32 %v4206_v16, %v3596_v32  ;;  %v9007_v56 = vpop.f32.mrf.mxu1  ;;  %v1813_v16 = vadd.f32 %v10529_v10, %v8028_v40  ;;  %v10535_v10 = vld [vmem:[#allocation146_spill] sm:$0xff] }
 0x496   : > { %10520 = vst [vmem:[#allocation98_spill] sm:$0xff] %v9003_v0 }
 0x497   : > { %10521 = vst [vmem:[#allocation100_spill] sm:$0xff] %v9005_v35  ;;  %v10585_v35 = vld [vmem:[#allocation225_spill] sm:$0xff] }
 0x498   : > { %10522 = vst [vmem:[#allocation90_spill] sm:$0xff] %v9007_v56  ;;  %5671 = vmatmul.msk.f32.gmra.mxu1 %vm2354_vm1, %v6266_v36  ;;  %5735 = vmatmul.msk.f32.gmra.mxu2 %vm2354_vm1, %v6266_v36  ;;  %v10531_v36 = vld [vmem:[#allocation134_spill] sm:$0xff]  ;;  %v6270_v56 = vld [vmem:[%s7746_s26 + $0x8] sm:$0xff] }
 0x499   : > { %5800 = vmatmul.msk.f32.gmra.mxu3 %vm3244_vm3, %v3235_v46  ;;  %v10530_v46 = vld [vmem:[#allocation145_spill] sm:$0xff]  ;;  %v4212_v12 = vmul.f32 %v10531_v36, %v1813_v16  ;;  %v10538_v36 = vld [vmem:[#allocation136_spill] sm:$0xff] }
 0x49a   : > { %v2231_v15 = vadd.f32 %v10530_v46, %v8152_v38  ;;  %v10537_v46 = vld [vmem:[#allocation149_spill] sm:$0xff] }
 0x49b   : > { %v3117_v41 = vpop.f32.mrf.mxu2 }
 0x49c   : > { %v9018_v32 = vmul.f32 %v3117_v41, %v2228_v18  ;;  %v3599_v31 = vpop.f32.mrf.mxu3 }
 0x49d   : > { %v9020_v4 = vmul.f32 %v4209_v29, %v3599_v31  ;;  %v9022_v58 = vpop.f32.mrf.mxu1 }
 0x49e   : > { %10526 = vst [vmem:[#allocation101_spill] sm:$0xff] %v9018_v32  ;;  %v1816_v32 = vadd.f32 %v10535_v10, %v8028_v40 }
 0x49f   : > { %10527 = vst [vmem:[#allocation103_spill] sm:$0xff] %v9020_v4  ;;  %v6269_v4 = vld [vmem:[%s7746_s26] sm:$0xff] }
 0x4a0   : > { %10528 = vst [vmem:[#allocation93_spill] sm:$0xff] %v9022_v58  ;;  %5672 = vmatmul.msk.f32.gmra.mxu1 %vm2354_vm1, %v6267_v17  ;;  %5736 = vmatmul.msk.f32.gmra.mxu2 %vm2354_vm1, %v6267_v17  ;;  %v6268_v17 = vld [vmem:[%s6564_s15 + $0x1f8] sm:$0xff]  ;;  %v10544_v58 = vld [vmem:[#allocation203_spill] sm:$0xff] }
 0x4a1   : > { %5801 = vmatmul.msk.f32.gmra.mxu3 %vm3244_vm3, %v3236_v1  ;;  %v10536_v1 = vld [vmem:[#allocation6_spill] sm:$0xff] }
 0x4a2   : > { %v1884_v16 = vadd.f32 %v10536_v1, %v8138_v43 }
 0x4a3   : > { %v3120_v18 = vpop.f32.mrf.mxu2 }
 0x4a4   : > { %v9033_v5 = vmul.f32 %v3120_v18, %v2231_v15  ;;  %v3602_v29 = vpop.f32.mrf.mxu3  ;;  %v2234_v15 = vadd.f32 %v10537_v46, %v8152_v38  ;;  %v10539_v18 = vld [vmem:[#allocation214_spill] sm:$0xff] }
 0x4a5   : > { %v9035_v41 = vmul.f32 %v4212_v12, %v3602_v29  ;;  %v9037_v31 = vpop.f32.mrf.mxu1  ;;  %v4215_v12 = vmul.f32 %v10538_v36, %v1816_v32  ;;  %v4075_v29 = vmul.f32 %v10539_v18, %v1884_v16  ;;  %v10545_v46 = vld [vmem:[#allocation2_spill] sm:$0xff]  ;;  %v10547_v16 = vld [vmem:[#allocation153_spill] sm:$0xff]  ;;  %v10548_v36 = vld [vmem:[#allocation139_spill] sm:$0xff] }
 0x4a6   : > { %10532 = vst [vmem:[#allocation104_spill] sm:$0xff] %v9033_v5  ;;  %v10546_v32 = vld [vmem:[#allocation10_spill] sm:$0xff] }
 0x4a7   : > { %10533 = vst [vmem:[#allocation106_spill] sm:$0xff] %v9035_v41 }
 0x4a8   : > { %10534 = vst [vmem:[#allocation95_spill] sm:$0xff] %v9037_v31  ;;  %5673 = vmatmul.msk.f32.gmra.mxu1 %vm2354_vm1, %v6268_v17  ;;  %5737 = vmatmul.msk.f32.gmra.mxu2 %vm2354_vm1, %v6268_v17  ;;  %v10543_v17 = vld [vmem:[#allocation150_spill] sm:$0xff] }
 0x4a9   : > { %5802 = vmatmul.msk.f32.gmra.mxu3 %vm3244_vm3, %v3237_v45  ;;  %v1819_v1 = vadd.f32 %v10543_v17, %v8028_v40  ;;  %v4267_v45 = vmul.f32 %v4075_v29, %v10544_v58 }
 0x4ab   : > { %v3123_v5 = vpop.f32.mrf.mxu2  ;;  %v4218_v58 = vmul.f32 %v10548_v36, %v1819_v1  ;;  %v10555_v1 = vld [vmem:[#allocation4_spill] sm:$0xff]  ;;  %v10558_v36 = vld [vmem:[#allocation143_spill] sm:$0xff] }
 0x4ac   : > { %v9051_v10 = vmul.f32 %v3123_v5, %v2234_v15  ;;  %v3605_v0 = vpop.f32.mrf.mxu3  ;;  %v1887_v5 = vadd.f32 %v10546_v32, %v8138_v43  ;;  %v2237_v15 = vadd.f32 %v10547_v16, %v8152_v38  ;;  %v10557_v16 = vld [vmem:[#allocation157_spill] sm:$0xff] }
 0x4ad   : > { %v9053_v31 = vmul.f32 %v4215_v12, %v3605_v0  ;;  %v9055_v41 = vpop.f32.mrf.mxu1  ;;  %v4492_v0 = vld [vmem:[%s10093_s9 + $0x110] sm:$0xff] }
 0x4ae   : > { %10540 = vst [vmem:[#allocation107_spill] sm:$0xff] %v9051_v10  ;;  %4937 = vmatpush.msrb.mxu0 %v4492_v0  ;;  %v10549_v12 = vld [vmem:[#allocation216_spill] sm:$0xff] }
 0x4af   : > { %10541 = vst [vmem:[#allocation109_spill] sm:$0xff] %v9053_v31  ;;  %v4078_v18 = vmul.f32 %v10549_v12, %v1887_v5  ;;  %v10556_v5 = vld [vmem:[#allocation13_spill] sm:$0xff]  ;;  %v10559_v12 = vld [vmem:[#allocation218_spill] sm:$0xff] }
 0x4b0   : > { %10542 = vst [vmem:[#allocation99_spill] sm:$0xff] %v9055_v41  ;;  %5869 = vmatmul.msk.f32.vlgmr.msrb.gmra.mxu1 %vm3244_vm3, %v6269_v4  ;;  %4522 = vmatmul.f32.vlgmr.msrb.gmra.mxu2 %v10545_v46  ;;  %v10554_v41 = vld [vmem:[#allocation207_spill] sm:$0xff]  ;;  %v1890_v0 = vadd.f32 %v10556_v5, %v8138_v43 }
 0x4b1   : > { %4731 = vmatmul.f32.vlgmr.msrb.gmra.mxu3 %v4267_v45  ;;  %v10553_v45 = vld [vmem:[#allocation154_spill] sm:$0xff]  ;;  %v4270_v31 = vmul.f32 %v4078_v18, %v10554_v41  ;;  %v10564_v5 = vld [vmem:[#allocation211_spill] sm:$0xff] }
 0x4b2   : > { %v1822_v10 = vadd.f32 %v10553_v45, %v8028_v40 }
 0x4b3   : > { %v3126_v4 = vpop.f32.mrf.mxu2 }
 0x4b4   : > { %v9072_v29 = vmul.f32 %v3126_v4, %v2237_v15  ;;  %v3608_v17 = vpop.f32.mrf.mxu3  ;;  %v2240_v15 = vadd.f32 %v10557_v16, %v8152_v38  ;;  %v4081_v4 = vmul.f32 %v10559_v12, %v1890_v0  ;;  %v6271_v16 = vld [vmem:[%s7746_s26 + $0x10] sm:$0xff]  ;;  %v10568_v12 = vld [vmem:[#allocation147_spill] sm:$0xff] }
 0x4b5   : > { %v9074_v46 = vmul.f32 %v4218_v58, %v3608_v17  ;;  %v9076_v32 = vpop.f32.mrf.mxu1  ;;  %v4221_v58 = vmul.f32 %v10558_v36, %v1822_v10  ;;  %v10565_v10 = vld [vmem:[#allocation220_spill] sm:$0xff]  ;;  %v10567_v36 = vld [vmem:[#allocation161_spill] sm:$0xff] }
 0x4b6   : > { %10550 = vst [vmem:[#allocation110_spill] sm:$0xff] %v9072_v29  ;;  %v10566_v0 = vld [vmem:[#allocation16_spill] sm:$0xff] }
 0x4b7   : > { %10551 = vst [vmem:[#allocation112_spill] sm:$0xff] %v9074_v46  ;;  %v6272_v46 = vld [vmem:[%s7746_s26 + $0x18] sm:$0xff] }
 0x4b8   : > { %10552 = vst [vmem:[#allocation102_spill] sm:$0xff] %v9076_v32  ;;  %5870 = vmatmul.msk.f32.gmra.mxu1 %vm3244_vm3, %v6270_v56  ;;  %4525 = vmatmul.f32.gmra.mxu2 %v10555_v1  ;;  %v10563_v1 = vld [vmem:[#allocation158_spill] sm:$0xff]  ;;  %v9099_v32 = vpop.f32.mrf.mxu0 }
 0x4b9   : > { %4734 = vmatmul.f32.gmra.mxu3 %v4270_v31  ;;  %v1825_v29 = vadd.f32 %v10563_v1, %v8028_v40  ;;  %v4273_v31 = vmul.f32 %v4081_v4, %v10564_v5 }
 0x4bb   : > { %v3129_v17 = vpop.f32.mrf.mxu2 }
 0x4bc   : > { %v9090_v45 = vmul.f32 %v3129_v17, %v2240_v15  ;;  %v3611_v41 = vpop.f32.mrf.mxu3  ;;  %v1893_v15 = vadd.f32 %v10566_v0, %v8138_v43  ;;  %v4224_v17 = vmul.f32 %v10568_v12, %v1825_v29  ;;  %v10574_v0 = vld [vmem:[#allocation215_spill] sm:$0xff] }
 0x4bd   : > { %v9092_v18 = vmul.f32 %v4221_v58, %v3611_v41  ;;  %v9094_v56 = vpop.f32.mrf.mxu1  ;;  %v2243_v58 = vadd.f32 %v10567_v36, %v8152_v38  ;;  %v10569_v41 = vld [vmem:[#allocation221_spill] sm:$0xff]  ;;  %v10575_v29 = vld [vmem:[#allocation223_spill] sm:$0xff] }
 0x4be   : > { %10560 = vst [vmem:[#allocation113_spill] sm:$0xff] %v9090_v45  ;;  %v4084_v1 = vmul.f32 %v10569_v41, %v1893_v15  ;;  %v10576_v15 = vld [vmem:[#allocation19_spill] sm:$0xff] }
 0x4bf   : > { %10561 = vst [vmem:[#allocation115_spill] sm:$0xff] %v9092_v18  ;;  %v1896_v36 = vadd.f32 %v10576_v15, %v8138_v43  ;;  %v10583_v15 = vld [vmem:[#allocation166_spill] sm:$0xff] }
 0x4c0   : > { %10562 = vst [vmem:[#allocation105_spill] sm:$0xff] %v9094_v56  ;;  %5871 = vmatmul.msk.f32.gmra.mxu1 %vm3244_vm3, %v6271_v16  ;;  %4528 = vmatmul.f32.gmra.mxu2 %v10565_v10  ;;  %v10573_v10 = vld [vmem:[#allocation162_spill] sm:$0xff]  ;;  %v9126_v12 = vpop.f32.mrf.mxu0 }
 0x4c1   : > { %4737 = vmatmul.f32.gmra.mxu3 %v4273_v31  ;;  %v1828_v18 = vadd.f32 %v10573_v10, %v8028_v40  ;;  %v4276_v31 = vmul.f32 %v4084_v1, %v10574_v0 }
 0x4c3   : > { %v3132_v4 = vpop.f32.mrf.mxu2 }
 0x4c4   : > { %v9110_v5 = vmul.f32 %v3132_v4, %v2243_v58  ;;  %v3614_v45 = vpop.f32.mrf.mxu3  ;;  %v10579_v4 = vld [vmem:[#allocation224_spill] sm:$0xff] }
 0x4c5   : > { %v9112_v56 = vmul.f32 %v4224_v17, %v3614_v45  ;;  %v9114_v16 = vpop.f32.mrf.mxu1  ;;  %v10577_v45 = vld [vmem:[#allocation165_spill] sm:$0xff]  ;;  %v10578_v17 = vld [vmem:[#allocation151_spill] sm:$0xff]  ;;  %v4087_v10 = vmul.f32 %v10579_v4, %v1896_v36  ;;  %v10589_v4 = vld [vmem:[#allocation226_spill] sm:$0xff] }
 0x4c6   : > { %10570 = vst [vmem:[#allocation116_spill] sm:$0xff] %v9110_v5  ;;  %v2246_v58 = vadd.f32 %v10577_v45, %v8152_v38  ;;  %v4227_v41 = vmul.f32 %v10578_v17, %v1828_v18  ;;  %v6273_v45 = vld [vmem:[%s7746_s26 + $0x20] sm:$0xff]  ;;  %v10586_v18 = vld [vmem:[#allocation23_spill] sm:$0xff] }
 0x4c7   : > { %10571 = vst [vmem:[#allocation118_spill] sm:$0xff] %v9112_v56  ;;  %v1899_v36 = vadd.f32 %v10586_v18, %v8138_v43 }
 0x4c8   : > { %10572 = vst [vmem:[#allocation108_spill] sm:$0xff] %v9114_v16  ;;  %5872 = vmatmul.msk.f32.gmra.mxu1 %vm3244_vm3, %v6272_v46  ;;  %4531 = vmatmul.f32.gmra.mxu2 %v10575_v29  ;;  %v10584_v16 = vld [vmem:[#allocation217_spill] sm:$0xff] }
 0x4c9   : > { %4740 = vmatmul.f32.gmra.mxu3 %v4276_v31  ;;  %v1831_v31 = vadd.f32 %v10583_v15, %v8028_v40  ;;  %v4279_v56 = vmul.f32 %v4087_v10, %v10584_v16  ;;  %v4090_v10 = vmul.f32 %v10589_v4, %v1899_v36  ;;  %v9151_v15 = vpop.f32.mrf.mxu0  ;;  %v10596_v36 = vld [vmem:[#allocation173_spill] sm:$0xff] }
 0x4cb   : > { %v3135_v1 = vpop.f32.mrf.mxu2 }
 0x4cc   : > { %v9130_v0 = vmul.f32 %v3135_v1, %v2246_v58  ;;  %v3617_v5 = vpop.f32.mrf.mxu3  ;;  %v10587_v58 = vld [vmem:[#allocation169_spill] sm:$0xff] }
 0x4cd   : > { %v9132_v46 = vmul.f32 %v4227_v41, %v3617_v5  ;;  %v9134_v29 = vpop.f32.mrf.mxu1  ;;  %v4491_v5 = vld [vmem:[%s10093_s9 + $0x108] sm:$0xff]  ;;  %v2249_v17 = vadd.f32 %v10587_v58, %v8152_v38 }
 0x4ce   : > { %10580 = vst [vmem:[#allocation119_spill] sm:$0xff] %v9130_v0  ;;  %4938 = vmatpush.msrb.mxu0 %v4491_v5  ;;  %v10588_v41 = vld [vmem:[#allocation155_spill] sm:$0xff]  ;;  %v10593_v0 = vld [vmem:[#allocation170_spill] sm:$0xff] }
 0x4cf   : > { %10581 = vst [vmem:[#allocation121_spill] sm:$0xff] %v9132_v46  ;;  %v4230_v16 = vmul.f32 %v10588_v41, %v1831_v31  ;;  %v10594_v58 = vld [vmem:[#allocation219_spill] sm:$0xff] }
 0x4d0   : > { %10582 = vst [vmem:[#allocation111_spill] sm:$0xff] %v9134_v29  ;;  %5873 = vmatmul.msk.f32.gmra.mxu1 %vm3244_vm3, %v6273_v45  ;;  %4534 = vmatmul.f32.gmra.mxu2 %v10585_v35  ;;  %v1834_v29 = vadd.f32 %v10593_v0, %v8028_v40  ;;  %v4282_v5 = vmul.f32 %v4090_v10, %v10594_v58  ;;  %v6274_v46 = vld [vmem:[%s7746_s26 + $0x28] sm:$0xff] }
 0x4d1   : > { %4743 = vmatmul.f32.gmra.mxu3 %v4279_v56  ;;  %v10595_v31 = vld [vmem:[#allocation227_spill] sm:$0xff]  ;;  %v9174_v10 = vpop.f32.mrf.mxu0 }
 0x4d2   : > { %v10597_v41 = vld [vmem:[#allocation159_spill] sm:$0xff] }
 0x4d3   : > { %v3138_v1 = vpop.f32.mrf.mxu2 }
 0x4d4   : > { %v9153_v35 = vmul.f32 %v3138_v1, %v2249_v17  ;;  %v3620_v45 = vpop.f32.mrf.mxu3  ;;  %v2252_v17 = vadd.f32 %v10596_v36, %v8152_v38 }
 0x4d5   : > { %v9155_v18 = vmul.f32 %v4230_v16, %v3620_v45  ;;  %v9157_v56 = vpop.f32.mrf.mxu1  ;;  %v4233_v16 = vmul.f32 %v10597_v41, %v1834_v29  ;;  %v10602_v29 = vld [vmem:[#allocation228_spill] sm:$0xff] }
 0x4d6   : > { %10590 = vst [vmem:[#allocation122_spill] sm:$0xff] %v9153_v35 }
 0x4d7   : > { %10591 = vst [vmem:[#allocation124_spill] sm:$0xff] %v9155_v18  ;;  %v6293_v18 = vld [vmem:[%s7746_s26 + $0xc0] sm:$0xff] }
 0x4d8   : > { %10592 = vst [vmem:[#allocation114_spill] sm:$0xff] %v9157_v56  ;;  %5874 = vmatmul.msk.f32.gmra.mxu1 %vm3244_vm3, %v6274_v46  ;;  %4537 = vmatmul.f32.gmra.mxu2 %v10595_v31  ;;  %v10601_v46 = vld [vmem:[#allocation174_spill] sm:$0xff]  ;;  %v10603_v31 = vld [vmem:[#allocation177_spill] sm:$0xff] }
 0x4d9   : > { %4746 = vmatmul.f32.gmra.mxu3 %v4282_v5  ;;  %v1837_v58 = vadd.f32 %v10601_v46, %v8028_v40  ;;  %v6275_v5 = vld [vmem:[%s7746_s26 + $0x30] sm:$0xff]  ;;  %v2255_v36 = vadd.f32 %v10603_v31, %v8152_v38  ;;  %v10610_v31 = vld [vmem:[#allocation181_spill] sm:$0xff] }
 0x4da   : > { %v6292_v56 = vld [vmem:[%s7746_s26 + $0xb8] sm:$0xff] }
 0x4db   : > { %v3141_v4 = vpop.f32.mrf.mxu2 }
 0x4dc   : > { %v9168_v1 = vmul.f32 %v3141_v4, %v2252_v17  ;;  %v3623_v45 = vpop.f32.mrf.mxu3  ;;  %v10604_v17 = vld [vmem:[#allocation163_spill] sm:$0xff] }
 0x4dd   : > { %v9170_v35 = vmul.f32 %v4233_v16, %v3623_v45  ;;  %v9172_v0 = vpop.f32.mrf.mxu1  ;;  %v4236_v41 = vmul.f32 %v10604_v17, %v1837_v58  ;;  %v10609_v58 = vld [vmem:[#allocation18_spill] sm:$0xff]  ;;  %v10611_v17 = vld [vmem:[#allocation167_spill] sm:$0xff] }
 0x4de   : > { %10598 = vst [vmem:[#allocation125_spill] sm:$0xff] %v9168_v1 }
 0x4df   : > { %10599 = vst [vmem:[#allocation128_spill] sm:$0xff] %v9170_v35 }
 0x4e0   : > { %10600 = vst [vmem:[#allocation117_spill] sm:$0xff] %v9172_v0  ;;  %5875 = vmatmul.msk.f32.gmra.mxu1 %vm3244_vm3, %v6275_v5  ;;  %4540 = vmatmul.f32.gmra.mxu2 %v8169_v24  ;;  %v10608_v5 = vld [vmem:[#allocation178_spill] sm:$0xff]  ;;  %v9193_v24 = vpop.f32.mrf.mxu0 }
 0x4e1   : > { %4749 = vmatmul.f32.gmra.mxu3 %v10602_v29  ;;  %v1840_v0 = vadd.f32 %v10608_v5, %v8028_v40  ;;  %v6276_v29 = vld [vmem:[%s7746_s26 + $0x38] sm:$0xff] }
 0x4e3   : > { %v3144_v16 = vpop.f32.mrf.mxu2 }
 0x4e4   : > { %v9185_v4 = vmul.f32 %v3144_v16, %v2255_v36  ;;  %v3626_v45 = vpop.f32.mrf.mxu3  ;;  %v2258_v36 = vadd.f32 %v10610_v31, %v8152_v38 }
 0x4e5   : > { %v9187_v1 = vmul.f32 %v4236_v41, %v3626_v45  ;;  %v9189_v46 = vpop.f32.mrf.mxu1  ;;  %v4239_v41 = vmul.f32 %v10611_v17, %v1840_v0  ;;  %v4490_v0 = vld [vmem:[%s10093_s9 + $0x100] sm:$0xff]  ;;  %v10618_v17 = vld [vmem:[#allocation171_spill] sm:$0xff] }
 0x4e6   : > { %10605 = vst [vmem:[#allocation129_spill] sm:$0xff] %v9185_v4  ;;  %4939 = vmatpush.msrb.mxu0 %v4490_v0  ;;  %v10623_v0 = vld [vmem:[#allocation31_spill] sm:$0xff] }
 0x4e7   : > { %10606 = vst [vmem:[#allocation120_spill] sm:$0xff] %v9187_v1  ;;  %v10615_v1 = vld [vmem:[#allocation182_spill] sm:$0xff] }
 0x4e8   : > { %10607 = vst [vmem:[#allocation3_spill] sm:$0xff] %v9189_v46  ;;  %5876 = vmatmul.msk.f32.gmra.mxu1 %vm3244_vm3, %v6276_v29  ;;  %4543 = vmatmul.f32.gmra.mxu2 %v8194_v50  ;;  %v1843_v29 = vadd.f32 %v10615_v1, %v8028_v40  ;;  %v6277_v50 = vld [vmem:[%s7746_s26 + $0x40] sm:$0xff] }
 0x4e9   : > { %4752 = vmatmul.f32.gmra.mxu3 %v10609_v58  ;;  %v10616_v58 = vld [vmem:[#allocation21_spill] sm:$0xff] }
 0x4ea   : > { %v4242_v1 = vmul.f32 %v10618_v17, %v1843_v29  ;;  %v10624_v29 = vld [vmem:[#allocation189_spill] sm:$0xff] }
 0x4eb   : > { %v3147_v16 = vpop.f32.mrf.mxu2 }
 0x4ec   : > { %v9202_v45 = vmul.f32 %v3147_v16, %v2258_v36  ;;  %v3629_v4 = vpop.f32.mrf.mxu3  ;;  %v9219_v36 = vpop.f32.mrf.mxu0 }
 0x4ed   : > { %v9204_v46 = vmul.f32 %v4239_v41, %v3629_v4  ;;  %v9206_v5 = vpop.f32.mrf.mxu1  ;;  %v10617_v4 = vld [vmem:[#allocation185_spill] sm:$0xff] }
 0x4ee   : > { %10612 = vst [vmem:[#allocation123_spill] sm:$0xff] %v9202_v45  ;;  %v2261_v31 = vadd.f32 %v10617_v4, %v8152_v38  ;;  %v2264_v4 = vadd.f32 %v10624_v29, %v8152_v38  ;;  %v10630_v29 = vld [vmem:[#allocation25_spill] sm:$0xff] }
 0x4ef   : > { %10613 = vst [vmem:[#allocation126_spill] sm:$0xff] %v9204_v46  ;;  %v6278_v46 = vld [vmem:[%s7746_s26 + $0x48] sm:$0xff] }
 0x4f0   : > { %10614 = vst [vmem:[#allocation130_spill] sm:$0xff] %v9206_v5  ;;  %5877 = vmatmul.msk.f32.gmra.mxu1 %vm3244_vm3, %v6277_v50  ;;  %4546 = vmatmul.f32.gmra.mxu2 %v8216_v47 }
 0x4f1   : > { %4755 = vmatmul.f32.gmra.mxu3 %v10616_v58  ;;  %v10622_v58 = vld [vmem:[#allocation186_spill] sm:$0xff] }
 0x4f2   : > { %v1846_v5 = vadd.f32 %v10622_v58, %v8028_v40 }
 0x4f3   : > { %v3150_v41 = vpop.f32.mrf.mxu2 }
 0x4f4   : > { %v9222_v16 = vmul.f32 %v3150_v41, %v2261_v31  ;;  %v3632_v50 = vpop.f32.mrf.mxu3  ;;  %v10625_v31 = vld [vmem:[#allocation175_spill] sm:$0xff]  ;;  %v9237_v41 = vpop.f32.mrf.mxu0 }
 0x4f5   : > { %v9224_v45 = vmul.f32 %v4242_v1, %v3632_v50  ;;  %v9226_v47 = vpop.f32.mrf.mxu1  ;;  %v4245_v17 = vmul.f32 %v10625_v31, %v1846_v5  ;;  %v10631_v5 = vld [vmem:[#allocation32_spill] sm:$0xff]  ;;  %v10632_v31 = vld [vmem:[#allocation193_spill] sm:$0xff] }
 0x4f6   : > { %10619 = vst [vmem:[#allocation138_spill] sm:$0xff] %v9222_v16 }
 0x4f7   : > { %10620 = vst [vmem:[#allocation141_spill] sm:$0xff] %v9224_v45 }
 0x4f8   : > { %10621 = vst [vmem:[#allocation132_spill] sm:$0xff] %v9226_v47  ;;  %5878 = vmatmul.msk.f32.gmra.mxu1 %vm3244_vm3, %v6278_v46  ;;  %4549 = vmatmul.f32.gmra.mxu2 %v8236_v51  ;;  %v10629_v51 = vld [vmem:[#allocation190_spill] sm:$0xff] }
 0x4f9   : > { %4758 = vmatmul.f32.gmra.mxu3 %v10623_v0  ;;  %v1849_v46 = vadd.f32 %v10629_v51, %v8028_v40  ;;  %v6279_v0 = vld [vmem:[%s7746_s26 + $0x50] sm:$0xff] }
 0x4fb   : > { %v3153_v1 = vpop.f32.mrf.mxu2 }
 0x4fc   : > { %v9239_v50 = vmul.f32 %v3153_v1, %v2264_v4  ;;  %v3635_v16 = vpop.f32.mrf.mxu3  ;;  %v2267_v4 = vadd.f32 %v10632_v31, %v8152_v38  ;;  %v10633_v1 = vld [vmem:[#allocation179_spill] sm:$0xff]  ;;  %v9260_v51 = vpop.f32.mrf.mxu0  ;;  %v10639_v31 = vld [vmem:[#allocation197_spill] sm:$0xff] }
 0x4fd   : > { %v9241_v47 = vmul.f32 %v4245_v17, %v3635_v16  ;;  %v9243_v58 = vpop.f32.mrf.mxu1 }
 0x4fe   : > { %10626 = vst [vmem:[#allocation142_spill] sm:$0xff] %v9239_v50  ;;  %v4248_v50 = vmul.f32 %v10633_v1, %v1849_v46  ;;  %v10638_v46 = vld [vmem:[#allocation35_spill] sm:$0xff] }
 0x4ff   : > { %10627 = vst [vmem:[#allocation145_spill] sm:$0xff] %v9241_v47 }
 0x500   : > { %10628 = vst [vmem:[#allocation134_spill] sm:$0xff] %v9243_v58  ;;  %5879 = vmatmul.msk.f32.gmra.mxu1 %vm3244_vm3, %v6279_v0  ;;  %4552 = vmatmul.f32.gmra.mxu2 %v10630_v29  ;;  %v10637_v0 = vld [vmem:[#allocation194_spill] sm:$0xff] }
 0x501   : > { %4761 = vmatmul.f32.gmra.mxu3 %v10631_v5  ;;  %v1852_v29 = vadd.f32 %v10637_v0, %v8028_v40  ;;  %v6280_v5 = vld [vmem:[%s7746_s26 + $0x58] sm:$0xff] }
 0x503   : > { %v3156_v16 = vpop.f32.mrf.mxu2 }
 0x504   : > { %v9254_v17 = vmul.f32 %v3156_v16, %v2267_v4  ;;  %v3638_v47 = vpop.f32.mrf.mxu3  ;;  %v2270_v4 = vadd.f32 %v10639_v31, %v8152_v38 }
 0x505   : > { %v9256_v58 = vmul.f32 %v4248_v50, %v3638_v47  ;;  %v9258_v45 = vpop.f32.mrf.mxu1  ;;  %v10640_v47 = vld [vmem:[#allocation183_spill] sm:$0xff] }
 0x506   : > { %10634 = vst [vmem:[#allocation146_spill] sm:$0xff] %v9254_v17  ;;  %v4251_v50 = vmul.f32 %v10640_v47, %v1852_v29  ;;  %v10645_v29 = vld [vmem:[#allocation201_spill] sm:$0xff] }
 0x507   : > { %10635 = vst [vmem:[#allocation6_spill] sm:$0xff] %v9256_v58  ;;  %v2273_v31 = vadd.f32 %v10645_v29, %v8152_v38 }
 0x508   : > { %10636 = vst [vmem:[#allocation149_spill] sm:$0xff] %v9258_v45  ;;  %5880 = vmatmul.msk.f32.gmra.mxu1 %vm3244_vm3, %v6280_v5  ;;  %4555 = vmatmul.f32.gmra.mxu2 %v8290_v54  ;;  %v10644_v5 = vld [vmem:[#allocation198_spill] sm:$0xff]  ;;  %v9279_v54 = vpop.f32.mrf.mxu0 }
 0x509   : > { %4764 = vmatmul.f32.gmra.mxu3 %v10638_v46  ;;  %v1855_v58 = vadd.f32 %v10644_v5, %v8028_v40  ;;  %v6281_v46 = vld [vmem:[%s7746_s26 + $0x60] sm:$0xff] }
 0x50b   : > { %v3159_v1 = vpop.f32.mrf.mxu2 }
 0x50c   : > { %v9271_v16 = vmul.f32 %v3159_v1, %v2270_v4  ;;  %v3641_v17 = vpop.f32.mrf.mxu3 }
 0x50d   : > { %v9273_v45 = vmul.f32 %v4251_v50, %v3641_v17  ;;  %v9275_v0 = vpop.f32.mrf.mxu1  ;;  %v10646_v17 = vld [vmem:[#allocation187_spill] sm:$0xff] }
 0x50e   : > { %10641 = vst [vmem:[#allocation136_spill] sm:$0xff] %v9271_v16  ;;  %v4254_v4 = vmul.f32 %v10646_v17, %v1855_v58  ;;  %v10652_v58 = vld [vmem:[#allocation205_spill] sm:$0xff]  ;;  %v10654_v17 = vld [vmem:[#allocation191_spill] sm:$0xff] }
 0x50f   : > { %10642 = vst [vmem:[#allocation214_spill] sm:$0xff] %v9273_v45  ;;  %v2276_v29 = vadd.f32 %v10652_v58, %v8152_v38  ;;  %v10659_v58 = vld [vmem:[#allocation30_spill] sm:$0xff] }
 0x510   : > { %10643 = vst [vmem:[#allocation150_spill] sm:$0xff] %v9275_v0  ;;  %5881 = vmatmul.msk.f32.gmra.mxu1 %vm3244_vm3, %v6281_v46  ;;  %4558 = vmatmul.f32.gmra.mxu2 %v8315_v61  ;;  %v10650_v46 = vld [vmem:[#allocation202_spill] sm:$0xff]  ;;  %v6282_v61 = vld [vmem:[%s7746_s26 + $0x68] sm:$0xff] }
 0x511   : > { %4767 = vmatmul.f32.gmra.mxu3 %v8294_v21  ;;  %v1858_v0 = vadd.f32 %v10650_v46, %v8028_v40  ;;  %v10651_v21 = vld [vmem:[#allocation38_spill] sm:$0xff] }
 0x512   : > { %v6285_v45 = vld [vmem:[%s7746_s26 + $0x80] sm:$0xff] }
 0x513   : > { %v3162_v47 = vpop.f32.mrf.mxu2 }
 0x514   : > { %v9288_v50 = vmul.f32 %v3162_v47, %v2273_v31  ;;  %v3644_v1 = vpop.f32.mrf.mxu3  ;;  %v9302_v31 = vpop.f32.mrf.mxu0 }
 0x515   : > { %v9290_v16 = vmul.f32 %v4254_v4, %v3644_v1  ;;  %v9292_v5 = vpop.f32.mrf.mxu1  ;;  %10653 = vst [vmem:[#allocation153_spill] sm:$0xff] %v9302_v31  ;;  %v4257_v4 = vmul.f32 %v10654_v17, %v1858_v0  ;;  %v10660_v0 = vld [vmem:[#allocation209_spill] sm:$0xff]  ;;  %v10661_v17 = vld [vmem:[#allocation195_spill] sm:$0xff] }
 0x516   : > { %10647 = vst [vmem:[#allocation203_spill] sm:$0xff] %v9288_v50 }
 0x517   : > { %10648 = vst [vmem:[#allocation2_spill] sm:$0xff] %v9290_v16 }
 0x518   : > { %10649 = vst [vmem:[#allocation10_spill] sm:$0xff] %v9292_v5  ;;  %5882 = vmatmul.msk.f32.gmra.mxu1 %vm3244_vm3, %v6282_v61  ;;  %4561 = vmatmul.f32.gmra.mxu2 %v8336_v39  ;;  %v10658_v39 = vld [vmem:[#allocation206_spill] sm:$0xff] }
 0x519   : > { %4770 = vmatmul.f32.gmra.mxu3 %v10651_v21  ;;  %v1861_v61 = vadd.f32 %v10658_v39, %v8028_v40  ;;  %v6283_v21 = vld [vmem:[%s7746_s26 + $0x70] sm:$0xff] }
 0x51b   : > { %v3165_v47 = vpop.f32.mrf.mxu2 }
 0x51c   : > { %v9305_v1 = vmul.f32 %v3165_v47, %v2276_v29  ;;  %v3647_v50 = vpop.f32.mrf.mxu3  ;;  %v2279_v29 = vadd.f32 %v10660_v0, %v8152_v38  ;;  %v4260_v47 = vmul.f32 %v10661_v17, %v1861_v61  ;;  %v10667_v61 = vld [vmem:[#allocation41_spill] sm:$0xff]  ;;  %v10668_v0 = vld [vmem:[#allocation8_spill] sm:$0xff] }
 0x51d   : > { %v9307_v5 = vmul.f32 %v4257_v4, %v3647_v50  ;;  %v9309_v46 = vpop.f32.mrf.mxu1  ;;  %v9320_v4 = vpop.f32.mrf.mxu0  ;;  %v10669_v17 = vld [vmem:[#allocation213_spill] sm:$0xff] }
 0x51e   : > { %10655 = vst [vmem:[#allocation139_spill] sm:$0xff] %v9305_v1 }
 0x51f   : > { %10656 = vst [vmem:[#allocation216_spill] sm:$0xff] %v9307_v5 }
 0x520   : > { %10657 = vst [vmem:[#allocation154_spill] sm:$0xff] %v9309_v46  ;;  %5883 = vmatmul.msk.f32.gmra.mxu1 %vm3244_vm3, %v6283_v21  ;;  %4564 = vmatmul.f32.gmra.mxu2 %v8357_v27  ;;  %v10666_v21 = vld [vmem:[#allocation210_spill] sm:$0xff] }
 0x521   : > { %4773 = vmatmul.f32.gmra.mxu3 %v10659_v58  ;;  %10662 = vst [vmem:[#allocation207_spill] sm:$0xff] %v9320_v4  ;;  %v1864_v27 = vadd.f32 %v10666_v21, %v8028_v40  ;;  %v6284_v58 = vld [vmem:[%s7746_s26 + $0x78] sm:$0xff] }
 0x523   : > { %v3168_v50 = vpop.f32.mrf.mxu2 }
 0x524   : > { %v9322_v1 = vmul.f32 %v3168_v50, %v2279_v29  ;;  %v3650_v46 = vpop.f32.mrf.mxu3  ;;  %v2093_v29 = vadd.f32 %v10668_v0, %v8152_v38  ;;  %v10675_v0 = vld [vmem:[#allocation44_spill] sm:$0xff] }
 0x525   : > { %v9324_v5 = vmul.f32 %v4260_v47, %v3650_v46  ;;  %v9326_v39 = vpop.f32.mrf.mxu1  ;;  %v2282_v46 = vadd.f32 %v10669_v17, %v8152_v38  ;;  %v10670_v47 = vld [vmem:[#allocation199_spill] sm:$0xff] }
 0x526   : > { %10663 = vst [vmem:[#allocation4_spill] sm:$0xff] %v9322_v1  ;;  %v4263_v50 = vmul.f32 %v10670_v47, %v1864_v27 }
 0x527   : > { %10664 = vst [vmem:[#allocation13_spill] sm:$0xff] %v9324_v5 }
 0x528   : > { %10665 = vst [vmem:[#allocation157_spill] sm:$0xff] %v9326_v39  ;;  %5884 = vmatmul.msk.f32.gmra.mxu1 %vm3244_vm3, %v6284_v58  ;;  %4567 = vmatmul.f32.gmra.mxu2 %v8382_v52  ;;  %v10671_v39 = vld [vmem:[#allocation5_spill] sm:$0xff]  ;;  %v9344_v58 = vpop.f32.mrf.mxu0 }
 0x529   : > { %4776 = vmatmul.f32.gmra.mxu3 %v10667_v61  ;;  %v4076_v5 = vmul.f32 %v10671_v39, %v2093_v29  ;;  %10674 = vst [vmem:[#allocation158_spill] sm:$0xff] %v9344_v58  ;;  %v10676_v39 = vld [vmem:[#allocation11_spill] sm:$0xff]  ;;  %v10677_v29 = vld [vmem:[#allocation9_spill] sm:$0xff]  ;;  %v6295_v58 = vld [vmem:[%s7746_s26 + $0xd0] sm:$0xff] }
 0x52b   : > { %v3171_v1 = vpop.f32.mrf.mxu2 }
 0x52c   : > { %v9340_v40 = vmul.f32 %v3171_v1, %v2282_v46  ;;  %v3653_v21 = vpop.f32.mrf.mxu3  ;;  %v2096_v1 = vadd.f32 %v10676_v39, %v8152_v38 }
 0x52d   : > { %v9342_v16 = vmul.f32 %v4263_v50, %v3653_v21  ;;  %v3882_v52 = vpop.f32.mrf.mxu1  ;;  %v10680_v21 = vld [vmem:[#allocation14_spill] sm:$0xff] }
 0x52e   : > { %10672 = vst [vmem:[#allocation143_spill] sm:$0xff] %v9340_v40  ;;  %v4268_v61 = vmul.f32 %v4076_v5, %v3882_v52  ;;  %v4079_v17 = vmul.f32 %v10677_v29, %v2096_v1  ;;  %v2099_v52 = vadd.f32 %v10680_v21, %v8152_v38 }
 0x52f   : > { %10673 = vst [vmem:[#allocation218_spill] sm:$0xff] %v9342_v16  ;;  %v10688_v16 = vld [vmem:[#allocation12_spill] sm:$0xff] }
 0x530   : > { %5885 = vmatmul.msk.f32.gmra.mxu1 %vm3244_vm3, %v6285_v45  ;;  %4570 = vmatmul.f32.gmra.mxu2 %v8404_v30  ;;  %v9357_v50 = vpop.f32.mrf.mxu0  ;;  %v6286_v45 = vld [vmem:[%s7746_s26 + $0x88] sm:$0xff]  ;;  %v10679_v30 = vld [vmem:[#allocation36_spill] sm:$0xff] }
 0x531   : > { %4779 = vmatmul.f32.gmra.mxu3 %v10675_v0  ;;  %4940 = vmatmul.f32.vlgmr.msrb.gmra.mxu0 %v4268_v61  ;;  %10678 = vst [vmem:[#allocation211_spill] sm:$0xff] %v9357_v50  ;;  %v10681_v0 = vld [vmem:[#allocation7_spill] sm:$0xff] }
 0x532   : > { %v4082_v39 = vmul.f32 %v10681_v0, %v2099_v52  ;;  %v10685_v52 = vld [vmem:[#allocation222_spill] sm:$0xff]  ;;  %v6294_v50 = vld [vmem:[%s7746_s26 + $0xc8] sm:$0xff] }
 0x533   : > { %v9352_v27 = vpop.f32.mrf.mxu2 }
 0x534   : > { %v9355_v46 = vpop.f32.mrf.mxu3 }
 0x535   : > { %v3885_v47 = vpop.f32.mrf.mxu1 }
 0x536   : > { %v4271_v5 = vmul.f32 %v4079_v17, %v3885_v47  ;;  %v6287_v47 = vld [vmem:[%s7746_s26 + $0x90] sm:$0xff] }
 0x538   : > { %5886 = vmatmul.msk.f32.gmra.mxu1 %vm3244_vm3, %v6286_v45  ;;  %4573 = vmatmul.f32.gmra.mxu2 %v8423_v28  ;;  %v10682_v28 = vld [vmem:[#allocation49_spill] sm:$0xff] }
 0x539   : > { %4782 = vmatmul.f32.gmra.mxu3 %v10679_v30  ;;  %4943 = vmatmul.f32.gmra.mxu0 %v4271_v5  ;;  %v10683_v5 = vld [vmem:[#allocation17_spill] sm:$0xff]  ;;  %v9376_v30 = vpop.f32.mrf.mxu0 }
 0x53a   : > { %v2102_v45 = vadd.f32 %v10683_v5, %v8152_v38  ;;  %10684 = vst [vmem:[#allocation220_spill] sm:$0xff] %v9376_v30 }
 0x53b   : > { %v9365_v61 = vpop.f32.mrf.mxu2 }
 0x53c   : > { %v9368_v1 = vpop.f32.mrf.mxu3  ;;  %v4085_v0 = vmul.f32 %v10685_v52, %v2102_v45 }
 0x53d   : > { %v3888_v29 = vpop.f32.mrf.mxu1 }
 0x53e   : > { %v4274_v17 = vmul.f32 %v4082_v39, %v3888_v29 }
 0x540   : > { %5887 = vmatmul.msk.f32.gmra.mxu1 %vm3244_vm3, %v6287_v47  ;;  %4576 = vmatmul.f32.gmra.mxu2 %v8442_v8  ;;  %v6288_v47 = vld [vmem:[%s7746_s26 + $0x98] sm:$0xff]  ;;  %v10686_v8 = vld [vmem:[#allocation50_spill] sm:$0xff] }
 0x541   : > { %4785 = vmatmul.f32.gmra.mxu3 %v10682_v28  ;;  %4946 = vmatmul.f32.gmra.mxu0 %v4274_v17  ;;  %v10687_v17 = vld [vmem:[#allocation20_spill] sm:$0xff]  ;;  %v9392_v52 = vpop.f32.mrf.mxu0 }
 0x542   : > { %v2105_v28 = vadd.f32 %v10687_v17, %v8152_v38  ;;  %10689 = vst [vmem:[#allocation16_spill] sm:$0xff] %v9392_v52 }
 0x543   : > { %v9378_v21 = vpop.f32.mrf.mxu2 }
 0x544   : > { %v9381_v40 = vpop.f32.mrf.mxu3  ;;  %v4088_v45 = vmul.f32 %v10688_v16, %v2105_v28  ;;  %v10692_v16 = vld [vmem:[#allocation15_spill] sm:$0xff] }
 0x545   : > { %v3891_v39 = vpop.f32.mrf.mxu1 }
 0x546   : > { %v4277_v29 = vmul.f32 %v4085_v0, %v3891_v39 }
 0x548   : > { %5888 = vmatmul.msk.f32.gmra.mxu1 %vm3244_vm3, %v6288_v47  ;;  %4579 = vmatmul.f32.gmra.mxu2 %v8467_v6  ;;  %v6289_v47 = vld [vmem:[%s7746_s26 + $0xa0] sm:$0xff] }
 0x549   : > { %4788 = vmatmul.f32.gmra.mxu3 %v10686_v8  ;;  %4949 = vmatmul.f32.gmra.mxu0 %v4277_v29  ;;  %v10690_v6 = vld [vmem:[#allocation42_spill] sm:$0xff]  ;;  %v10691_v29 = vld [vmem:[#allocation24_spill] sm:$0xff] }
 0x54a   : > { %v2108_v8 = vadd.f32 %v10691_v29, %v8152_v38  ;;  %v10695_v29 = vld [vmem:[#allocation26_spill] sm:$0xff] }
 0x54b   : > { %v9389_v5 = vpop.f32.mrf.mxu2 }
 0x54c   : > { %v9394_v35 = vpop.f32.mrf.mxu3  ;;  %v4091_v28 = vmul.f32 %v10692_v16, %v2108_v8 }
 0x54d   : > { %v3894_v0 = vpop.f32.mrf.mxu1 }
 0x54e   : > { %v4280_v39 = vmul.f32 %v4088_v45, %v3894_v0  ;;  %v9407_v45 = vpop.f32.mrf.mxu0 }
 0x54f   : > { %10693 = vst [vmem:[#allocation161_spill] sm:$0xff] %v9407_v45  ;;  %v6291_v45 = vld [vmem:[%s7746_s26 + $0xb0] sm:$0xff] }
 0x550   : > { %5889 = vmatmul.msk.f32.gmra.mxu1 %vm3244_vm3, %v6289_v47  ;;  %4582 = vmatmul.f32.gmra.mxu2 %v8489_v9  ;;  %v6290_v47 = vld [vmem:[%s7746_s26 + $0xa8] sm:$0xff] }
 0x551   : > { %4791 = vmatmul.f32.gmra.mxu3 %v10690_v6  ;;  %4952 = vmatmul.f32.gmra.mxu0 %v4280_v39  ;;  %v10694_v9 = vld [vmem:[#allocation55_spill] sm:$0xff] }
 0x553   : > { %v9402_v17 = vpop.f32.mrf.mxu2 }
 0x554   : > { %v9405_v52 = vpop.f32.mrf.mxu3 }
 0x555   : > { %v3897_v30 = vpop.f32.mrf.mxu1 }
 0x556   : > { %v4283_v0 = vmul.f32 %v4091_v28, %v3897_v30  ;;  %v9418_v16 = vpop.f32.mrf.mxu0  ;;  %v10697_v30 = vld [vmem:[#allocation56_spill] sm:$0xff] }
 0x557   : > { %10696 = vst [vmem:[#allocation147_spill] sm:$0xff] %v9418_v16 }
 0x558   : > { %5890 = vmatmul.msk.f32.gmra.mxu1 %vm3244_vm3, %v6290_v47  ;;  %4585 = vmatmul.f32.gmra.mxu2 %v8508_v25  ;;  %v10698_v47 = vld [vmem:[#allocation28_spill] sm:$0xff] }
 0x559   : > { %4794 = vmatmul.f32.gmra.mxu3 %v10694_v9  ;;  %4955 = vmatmul.f32.gmra.mxu0 %v4283_v0 }
 0x55b   : > { %v9413_v38 = vpop.f32.mrf.mxu2 }
 0x55c   : > { %v9415_v39 = vpop.f32.mrf.mxu3 }
 0x55d   : > { %v3900_v6 = vpop.f32.mrf.mxu1 }
 0x55e   : > { %v4286_v8 = vmul.f32 %v10695_v29, %v3900_v6  ;;  %v10699_v6 = vld [vmem:[#allocation48_spill] sm:$0xff] }
 0x560   : > { %5891 = vmatmul.msk.f32.gmra.mxu1 %vm3244_vm3, %v6291_v45  ;;  %4588 = vmatmul.f32.gmra.mxu2 %v8527_v37  ;;  %v9433_v37 = vpop.f32.mrf.mxu0 }
 0x561   : > { %4797 = vmatmul.f32.gmra.mxu3 %v10697_v30  ;;  %4958 = vmatmul.f32.gmra.mxu0 %v4286_v8  ;;  %10700 = vst [vmem:[#allocation221_spill] sm:$0xff] %v9433_v37  ;;  %v10701_v30 = vld [vmem:[#allocation29_spill] sm:$0xff] }
 0x563   : > { %v9424_v25 = vpop.f32.mrf.mxu2 }
 0x564   : > { %v9426_v28 = vpop.f32.mrf.mxu3 }
 0x565   : > { %v3903_v0 = vpop.f32.mrf.mxu1 }
 0x566   : > { %v4289_v9 = vmul.f32 %v10698_v47, %v3903_v0 }
 0x568   : > { %5892 = vmatmul.msk.f32.gmra.mxu1 %vm3244_vm3, %v6292_v56  ;;  %4591 = vmatmul.f32.gmra.mxu2 %v8552_v33  ;;  %v10702_v56 = vld [vmem:[#allocation61_spill] sm:$0xff]  ;;  %v9446_v0 = vpop.f32.mrf.mxu0 }
 0x569   : > { %4800 = vmatmul.f32.gmra.mxu3 %v10699_v6  ;;  %4961 = vmatmul.f32.gmra.mxu0 %v4289_v9  ;;  %10703 = vst [vmem:[#allocation162_spill] sm:$0xff] %v9446_v0  ;;  %v10704_v6 = vld [vmem:[#allocation22_spill] sm:$0xff] }
 0x56b   : > { %v9435_v45 = vpop.f32.mrf.mxu2 }
 0x56c   : > { %v9437_v29 = vpop.f32.mrf.mxu3 }
 0x56d   : > { %v3906_v8 = vpop.f32.mrf.mxu1 }
 0x56e   : > { %v4292_v16 = vmul.f32 %v10701_v30, %v3906_v8 }
 0x570   : > { %5893 = vmatmul.msk.f32.gmra.mxu1 %vm3244_vm3, %v6293_v18  ;;  %4594 = vmatmul.f32.gmra.mxu2 %v8574_v55  ;;  %v10705_v18 = vld [vmem:[#allocation62_spill] sm:$0xff]  ;;  %v9459_v30 = vpop.f32.mrf.mxu0 }
 0x571   : > { %4803 = vmatmul.f32.gmra.mxu3 %v10702_v56  ;;  %4964 = vmatmul.f32.gmra.mxu0 %v4292_v16  ;;  %10706 = vst [vmem:[#allocation215_spill] sm:$0xff] %v9459_v30  ;;  %v10707_v56 = vld [vmem:[#allocation34_spill] sm:$0xff]  ;;  %v6296_v30 = vld [vmem:[%s7746_s26 + $0xd8] sm:$0xff] }
 0x573   : > { %v9444_v33 = vpop.f32.mrf.mxu2 }
 0x574   : > { %v9448_v47 = vpop.f32.mrf.mxu3 }
 0x575   : > { %v3909_v9 = vpop.f32.mrf.mxu1 }
 0x576   : > { %v4295_v37 = vmul.f32 %v10704_v6, %v3909_v9  ;;  %v10709_v9 = vld [vmem:[#allocation37_spill] sm:$0xff] }
 0x578   : > { %5894 = vmatmul.msk.f32.gmra.mxu1 %vm3244_vm3, %v6294_v50  ;;  %4597 = vmatmul.f32.gmra.mxu2 %v8593_v14  ;;  %v10708_v50 = vld [vmem:[#allocation54_spill] sm:$0xff]  ;;  %v9471_v4 = vpop.f32.mrf.mxu0 }
 0x579   : > { %4806 = vmatmul.f32.gmra.mxu3 %v10705_v18  ;;  %4967 = vmatmul.f32.gmra.mxu0 %v4295_v37  ;;  %10710 = vst [vmem:[#allocation223_spill] sm:$0xff] %v9471_v4  ;;  %v6299_v4 = vld [vmem:[%s7746_s26 + $0xf0] sm:$0xff] }
 0x57b   : > { %v9455_v55 = vpop.f32.mrf.mxu2 }
 0x57c   : > { %v9457_v16 = vpop.f32.mrf.mxu3 }
 0x57d   : > { %v3912_v8 = vpop.f32.mrf.mxu1 }
 0x57e   : > { %v4298_v0 = vmul.f32 %v10707_v56, %v3912_v8  ;;  %v6297_v56 = vld [vmem:[%s7746_s26 + $0xe0] sm:$0xff] }
 0x580   : > { %5895 = vmatmul.msk.f32.gmra.mxu1 %vm3244_vm3, %v6295_v58  ;;  %4600 = vmatmul.f32.gmra.mxu2 %v8612_v57  ;;  %v10711_v58 = vld [vmem:[#allocation27_spill] sm:$0xff] }
 0x581   : > { %4809 = vmatmul.f32.gmra.mxu3 %v10708_v50  ;;  %4970 = vmatmul.f32.gmra.mxu0 %v4298_v0 }
 0x583   : > { %v9466_v37 = vpop.f32.mrf.mxu2 }
 0x584   : > { %v9469_v18 = vpop.f32.mrf.mxu3 }
 0x585   : > { %v3915_v14 = vpop.f32.mrf.mxu1 }
 0x586   : > { %v4301_v6 = vmul.f32 %v10709_v9, %v3915_v14  ;;  %v10712_v14 = vld [vmem:[#allocation57_spill] sm:$0xff] }
 0x588   : > { %5896 = vmatmul.msk.f32.gmra.mxu1 %vm3244_vm3, %v6296_v30  ;;  %4603 = vmatmul.f32.gmra.mxu2 %v8637_v2  ;;  %v9486_v2 = vpop.f32.mrf.mxu0  ;;  %v10714_v30 = vld [vmem:[#allocation40_spill] sm:$0xff] }
 0x589   : > { %4812 = vmatmul.f32.gmra.mxu3 %v8616_v20  ;;  %4973 = vmatmul.f32.gmra.mxu0 %v4301_v6  ;;  %10713 = vst [vmem:[#allocation19_spill] sm:$0xff] %v9486_v2  ;;  %v6298_v6 = vld [vmem:[%s7746_s26 + $0xe8] sm:$0xff] }
 0x58b   : > { %v9478_v8 = vpop.f32.mrf.mxu2 }
 0x58c   : > { %v9483_v50 = vpop.f32.mrf.mxu3 }
 0x58d   : > { %v3918_v57 = vpop.f32.mrf.mxu1 }
 0x58e   : > { %v4304_v0 = vmul.f32 %v10711_v58, %v3918_v57  ;;  %v10715_v57 = vld [vmem:[#allocation70_spill] sm:$0xff] }
 0x590   : > { %5897 = vmatmul.msk.f32.gmra.mxu1 %vm3244_vm3, %v6297_v56  ;;  %4606 = vmatmul.f32.gmra.mxu2 %v8659_v19  ;;  %v9497_v56 = vpop.f32.mrf.mxu0 }
 0x591   : > { %4815 = vmatmul.f32.gmra.mxu3 %v10712_v14  ;;  %4976 = vmatmul.f32.gmra.mxu0 %v4304_v0  ;;  %10716 = vst [vmem:[#allocation165_spill] sm:$0xff] %v9497_v56  ;;  %v10717_v14 = vld [vmem:[#allocation43_spill] sm:$0xff] }
 0x593   : > { %v9493_v19 = vpop.f32.mrf.mxu2 }
 0x594   : > { %v9495_v58 = vpop.f32.mrf.mxu3 }
 0x595   : > { %v3921_v20 = vpop.f32.mrf.mxu1 }
 0x596   : > { %v4307_v9 = vmul.f32 %v10714_v30, %v3921_v20  ;;  %v10718_v20 = vld [vmem:[#allocation71_spill] sm:$0xff] }
 0x598   : > { %5898 = vmatmul.msk.f32.gmra.mxu1 %vm3244_vm3, %v6298_v6  ;;  %4609 = vmatmul.f32.gmra.mxu2 %v8678_v13  ;;  %v9508_v6 = vpop.f32.mrf.mxu0 }
 0x599   : > { %4818 = vmatmul.f32.gmra.mxu3 %v10715_v57  ;;  %4979 = vmatmul.f32.gmra.mxu0 %v4307_v9  ;;  %v10719_v57 = vld [vmem:[#allocation33_spill] sm:$0xff] }
 0x59b   : > { %v9504_v13 = vpop.f32.mrf.mxu2 }
 0x59c   : > { %v9506_v30 = vpop.f32.mrf.mxu3 }
 0x59d   : > { %v3924_v0 = vpop.f32.mrf.mxu1 }
 0x59e   : > { %v4310_v2 = vmul.f32 %v10717_v14, %v3924_v0  ;;  %v6300_v0 = vld [vmem:[%s7746_s26 + $0xf8] sm:$0xff] }
 0x5a0   : > { %5899 = vmatmul.msk.f32.gmra.mxu1 %vm3244_vm3, %v6299_v4  ;;  %4612 = vmatmul.f32.gmra.mxu2 %v8697_v53  ;;  %v10720_v53 = vld [vmem:[#allocation63_spill] sm:$0xff]  ;;  %v4733_v4 = vadd.f32 %v9355_v46, %v9352_v27  ;;  %v4736_v27 = vadd.f32 %v9368_v1, %v9365_v61 }
 0x5a1   : > { %4821 = vmatmul.f32.gmra.mxu3 %v10718_v20  ;;  %4982 = vmatmul.f32.gmra.mxu0 %v4310_v2  ;;  %v10721_v20 = vld [vmem:[#allocation46_spill] sm:$0xff]  ;;  %v10724_v1 = vld [vmem:[#allocation39_spill] sm:$0xff] }
 0x5a3   : > { %v9517_v14 = vpop.f32.mrf.mxu2 }
 0x5a5   : > { %v3927_v9 = vpop.f32.mrf.mxu1 }
 0x5a6   : > { %v4313_v56 = vmul.f32 %v10719_v57, %v3927_v9 }
 0x5a8   : > { %5900 = vmatmul.msk.f32.gmra.mxu1 %vm3244_vm3, %v6300_v0  ;;  %4615 = vmatmul.f32.gmra.mxu2 %v8722_v42  ;;  %v9526_v42 = vpop.f32.mrf.mxu3  ;;  %v10722_v0 = vld [vmem:[#allocation47_spill] sm:$0xff] }
 0x5a9   : > { %4824 = vmatmul.f32.gmra.mxu3 %v10720_v53  ;;  %4985 = vmatmul.f32.gmra.mxu0 %v4313_v56  ;;  %v6301_v56 = vld [vmem:[%s7746_s26 + $0x100] sm:$0xff] }
 0x5ad   : > { %v3930_v2 = vpop.f32.mrf.mxu1 }
 0x5ae   : > { %v4316_v31 = vmul.f32 %v10721_v20, %v3930_v2  ;;  %v4941_v9 = vpop.f32.mrf.mxu0  ;;  %v9537_v20 = vpop.f32.mrf.mxu2 }
 0x5af   : > { %v4942_v57 = vadd.f32 %v4941_v9, %v4733_v4  ;;  %v6302_v9 = vld [vmem:[%s7746_s26 + $0x108] sm:$0xff] }
 0x5b0   : > { %5901 = vmatmul.msk.f32.gmra.mxu1 %vm3244_vm3, %v6301_v56  ;;  %4618 = vmatmul.f32.gmra.mxu2 %v8744_v23  ;;  %v9542_v23 = vpop.f32.mrf.mxu3 }
 0x5b1   : > { %5133 = vst.msk [vmem:[%s9524_s12] sm:$0xff] %vm2354_vm1, %v4942_v57  ;;  %4827 = vmatmul.f32.gmra.mxu3 %v8726_v48  ;;  %4988 = vmatmul.f32.gmra.mxu0 %v4316_v31  ;;  %v10723_v48 = vld [vmem:[#allocation66_spill] sm:$0xff]  ;;  %v4739_v31 = vadd.f32 %v9381_v40, %v9378_v21  ;;  %v4742_v21 = vadd.f32 %v9394_v35, %v9389_v5 }
 0x5b2   : > { %v4745_v35 = vadd.f32 %v9405_v52, %v9402_v17  ;;  %v4748_v52 = vadd.f32 %v9415_v39, %v9413_v38  ;;  %v10731_v39 = vld [vmem:[#allocation58_spill] sm:$0xff] }
 0x5b5   : > { %v3933_v46 = vpop.f32.mrf.mxu1 }
 0x5b6   : > { %v4319_v53 = vmul.f32 %v10722_v0, %v3933_v46  ;;  %v4944_v2 = vpop.f32.mrf.mxu0  ;;  %v6303_v46 = vld [vmem:[%s7746_s26 + $0x110] sm:$0xff]  ;;  %v9556_v0 = vpop.f32.mrf.mxu2 }
 0x5b7   : > { %v4945_v4 = vadd.f32 %v4944_v2, %v4736_v27  ;;  %v10726_v2 = vld [vmem:[#allocation52_spill] sm:$0xff] }
 0x5b8   : > { %5902 = vmatmul.msk.f32.gmra.mxu1 %vm3244_vm3, %v6302_v9  ;;  %4621 = vmatmul.f32.gmra.mxu2 %v8763_v59  ;;  %v10725_v59 = vld [vmem:[#allocation79_spill] sm:$0xff]  ;;  %v9558_v40 = vpop.f32.mrf.mxu3 }
 0x5b9   : > { %5134 = vst.msk [vmem:[%s9524_s12 + $0x8] sm:$0xff] %vm2354_vm1, %v4945_v4  ;;  %4830 = vmatmul.f32.gmra.mxu3 %v10723_v48  ;;  %4991 = vmatmul.f32.gmra.mxu0 %v4319_v53 }
 0x5bd   : > { %v3936_v61 = vpop.f32.mrf.mxu1 }
 0x5be   : > { %v4322_v57 = vmul.f32 %v10724_v1, %v3936_v61  ;;  %v4947_v56 = vpop.f32.mrf.mxu0  ;;  %v9569_v61 = vpop.f32.mrf.mxu2 }
 0x5bf   : > { %v4948_v27 = vadd.f32 %v4947_v56, %v4739_v31  ;;  %v6304_v31 = vld [vmem:[%s7746_s26 + $0x118] sm:$0xff] }
 0x5c0   : > { %5903 = vmatmul.msk.f32.gmra.mxu1 %vm3244_vm3, %v6303_v46  ;;  %4624 = vmatmul.f32.gmra.mxu2 %v8782_v34  ;;  %v10727_v34 = vld [vmem:[#allocation80_spill] sm:$0xff]  ;;  %v9573_v5 = vpop.f32.mrf.mxu3 }
 0x5c1   : > { %5135 = vst.msk [vmem:[%s9524_s12 + $0x10] sm:$0xff] %vm2354_vm1, %v4948_v27  ;;  %4833 = vmatmul.f32.gmra.mxu3 %v10725_v59  ;;  %4994 = vmatmul.f32.gmra.mxu0 %v4322_v57  ;;  %v10728_v57 = vld [vmem:[#allocation53_spill] sm:$0xff]  ;;  %v6305_v59 = vld [vmem:[%s7746_s26 + $0x120] sm:$0xff] }
 0x5c5   : > { %v3939_v53 = vpop.f32.mrf.mxu1 }
 0x5c6   : > { %v4325_v4 = vmul.f32 %v10726_v2, %v3939_v53  ;;  %v4950_v9 = vpop.f32.mrf.mxu0  ;;  %v10730_v53 = vld [vmem:[#allocation45_spill] sm:$0xff] }
 0x5c7   : > { %v4951_v48 = vadd.f32 %v4950_v9, %v4742_v21  ;;  %v9584_v21 = vpop.f32.mrf.mxu2 }
 0x5c8   : > { %5904 = vmatmul.msk.f32.gmra.mxu1 %vm3244_vm3, %v6304_v31  ;;  %4627 = vmatmul.f32.gmra.mxu2 %v8807_v7  ;;  %v10729_v7 = vld [vmem:[#allocation72_spill] sm:$0xff]  ;;  %v9587_v9 = vpop.f32.mrf.mxu3  ;;  %v6306_v31 = vld [vmem:[%s7746_s26 + $0x128] sm:$0xff] }
 0x5c9   : > { %5136 = vst.msk [vmem:[%s9524_s12 + $0x18] sm:$0xff] %vm2354_vm1, %v4951_v48  ;;  %4836 = vmatmul.f32.gmra.mxu3 %v10727_v34  ;;  %4997 = vmatmul.f32.gmra.mxu0 %v4325_v4 }
 0x5cd   : > { %v3942_v1 = vpop.f32.mrf.mxu1 }
 0x5ce   : > { %v4328_v56 = vmul.f32 %v10728_v57, %v3942_v1  ;;  %v4953_v27 = vpop.f32.mrf.mxu0 }
 0x5cf   : > { %v4954_v46 = vadd.f32 %v4953_v27, %v4745_v35  ;;  %v9598_v57 = vpop.f32.mrf.mxu2  ;;  %v10733_v27 = vld [vmem:[#allocation59_spill] sm:$0xff] }
 0x5d0   : > { %5905 = vmatmul.msk.f32.gmra.mxu1 %vm3244_vm3, %v6305_v59  ;;  %4630 = vmatmul.f32.gmra.mxu2 %v8829_v11  ;;  %v4751_v11 = vadd.f32 %v9426_v28, %v9424_v25  ;;  %v4754_v25 = vadd.f32 %v9437_v29, %v9435_v45  ;;  %v10735_v29 = vld [vmem:[#allocation78_spill] sm:$0xff] }
 0x5d1   : > { %5137 = vst.msk [vmem:[%s9524_s12 + $0x20] sm:$0xff] %vm2354_vm1, %v4954_v46  ;;  %4839 = vmatmul.f32.gmra.mxu3 %v10729_v7  ;;  %5000 = vmatmul.f32.gmra.mxu0 %v4328_v56  ;;  %v6307_v56 = vld [vmem:[%s7746_s26 + $0x130] sm:$0xff] }
 0x5d5   : > { %v3945_v17 = vpop.f32.mrf.mxu1 }
 0x5d6   : > { %v4331_v2 = vmul.f32 %v10730_v53, %v3945_v17  ;;  %v4956_v4 = vpop.f32.mrf.mxu0 }
 0x5d7   : > { %v4957_v48 = vadd.f32 %v4956_v4, %v4748_v52  ;;  %v6308_v52 = vld [vmem:[%s7746_s26 + $0x138] sm:$0xff]  ;;  %v9619_v45 = vpop.f32.mrf.mxu2  ;;  %v4757_v4 = vadd.f32 %v9448_v47, %v9444_v33 }
 0x5d8   : > { %5906 = vmatmul.msk.f32.gmra.mxu1 %vm3244_vm3, %v6306_v31  ;;  %4633 = vmatmul.f32.gmra.mxu2 %v8848_v22  ;;  %v9603_v22 = vpop.f32.mrf.mxu3 }
 0x5d9   : > { %5138 = vst.msk [vmem:[%s9524_s12 + $0x28] sm:$0xff] %vm2354_vm1, %v4957_v48  ;;  %4842 = vmatmul.f32.gmra.mxu3 %v8833_v60  ;;  %5003 = vmatmul.f32.gmra.mxu0 %v4331_v2  ;;  %v10732_v60 = vld [vmem:[#allocation75_spill] sm:$0xff] }
 0x5dd   : > { %v3948_v38 = vpop.f32.mrf.mxu1 }
 0x5de   : > { %v4334_v34 = vmul.f32 %v10731_v39, %v3948_v38  ;;  %v4959_v35 = vpop.f32.mrf.mxu0 }
 0x5df   : > { %v4960_v1 = vadd.f32 %v4959_v35, %v4751_v11  ;;  %v9636_v47 = vpop.f32.mrf.mxu2 }
 0x5e0   : > { %5907 = vmatmul.msk.f32.gmra.mxu1 %vm3244_vm3, %v6307_v56  ;;  %4636 = vmatmul.f32.gmra.mxu2 %v8867_v26  ;;  %v10734_v26 = vld [vmem:[#allocation127_spill] sm:$0xff]  ;;  %v9622_v2 = vpop.f32.mrf.mxu3 }
 0x5e1   : > { %5139 = vst.msk [vmem:[%s9524_s12 + $0x30] sm:$0xff] %vm2354_vm1, %v4960_v1  ;;  %4845 = vmatmul.f32.gmra.mxu3 %v10732_v60  ;;  %5006 = vmatmul.f32.gmra.mxu0 %v4334_v34  ;;  %v2004_v17 = vadd.f32 %v10734_v26, %v8138_v43  ;;  %v6309_v34 = vld [vmem:[%s7746_s26 + $0x140] sm:$0xff]  ;;  %v10738_v60 = vld [vmem:[#allocation64_spill] sm:$0xff]  ;;  %v10741_v26 = vld [vmem:[#allocation65_spill] sm:$0xff] }
 0x5e3   : > { %v4195_v53 = vmul.f32 %v10735_v29, %v2004_v17 }
 0x5e5   : > { %v3951_v28 = vpop.f32.mrf.mxu1  ;;  %v4387_v38 = vmul.f32 %v4195_v53, %v9099_v32  ;;  %v4760_v32 = vadd.f32 %v9457_v16, %v9455_v55  ;;  %v10740_v55 = vld [vmem:[#allocation81_spill] sm:$0xff] }
 0x5e6   : > { %v4337_v46 = vmul.f32 %v10733_v27, %v3951_v28  ;;  %v4962_v59 = vpop.f32.mrf.mxu0 }
 0x5e7   : > { %v4963_v7 = vadd.f32 %v4962_v59, %v4754_v25 }
 0x5e8   : > { %5908 = vmatmul.msk.f32.gmra.mxu1 %vm3244_vm3, %v6308_v52  ;;  %4639 = vmatmul.f32.gmra.mxu2 %v8890_v3  ;;  %v10736_v3 = vld [vmem:[#allocation51_spill] sm:$0xff]  ;;  %v9640_v1 = vpop.f32.mrf.mxu3  ;;  %v9654_v52 = vpop.f32.mrf.mxu2 }
 0x5e9   : > { %5140 = vst.msk [vmem:[%s9524_s12 + $0x38] sm:$0xff] %vm2354_vm1, %v4963_v7  ;;  %4848 = vmatmul.f32.gmra.mxu3 %v8871_v44  ;;  %5009 = vmatmul.f32.gmra.mxu0 %v4337_v46  ;;  %v10737_v44 = vld [vmem:[#allocation131_spill] sm:$0xff] }
 0x5ea   : > { %v2007_v35 = vadd.f32 %v10737_v44, %v8138_v43  ;;  %v6310_v46 = vld [vmem:[%s7746_s26 + $0x148] sm:$0xff] }
 0x5ec   : > { %v4198_v33 = vmul.f32 %v8912_v63, %v2007_v35  ;;  %v10739_v63 = vld [vmem:[#allocation133_spill] sm:$0xff] }
 0x5ed   : > { %v3954_v48 = vpop.f32.mrf.mxu1  ;;  %v2010_v59 = vadd.f32 %v10739_v63, %v8138_v43 }
 0x5ee   : > { %v4340_v31 = vmul.f32 %v10736_v3, %v3954_v48  ;;  %v4965_v11 = vpop.f32.mrf.mxu0  ;;  %v4390_v28 = vmul.f32 %v4198_v33, %v9126_v12  ;;  %v4763_v12 = vadd.f32 %v9469_v18, %v9466_v37  ;;  %v6311_v48 = vld [vmem:[%s7746_s26 + $0x150] sm:$0xff] }
 0x5ef   : > { %v4966_v39 = vadd.f32 %v4965_v11, %v4757_v4  ;;  %v4201_v16 = vmul.f32 %v10740_v55, %v2010_v59  ;;  %v10742_v3 = vld [vmem:[#allocation84_spill] sm:$0xff] }
 0x5f0   : > { %5909 = vmatmul.msk.f32.gmra.mxu1 %vm3244_vm3, %v6309_v34  ;;  %4642 = vmatmul.f32.gmra.mxu2 %v8910_v49  ;;  %v9658_v53 = vpop.f32.mrf.mxu3  ;;  %v10744_v18 = vld [vmem:[#allocation96_spill] sm:$0xff] }
 0x5f1   : > { %5141 = vst.msk [vmem:[%s9524_s12 + $0x40] sm:$0xff] %vm2354_vm1, %v4966_v39  ;;  %4851 = vmatmul.f32.gmra.mxu3 %v4387_v38  ;;  %5012 = vmatmul.f32.gmra.mxu0 %v4340_v31  ;;  %v10743_v31 = vld [vmem:[#allocation135_spill] sm:$0xff] }
 0x5f2   : > { %v2013_v37 = vadd.f32 %v10743_v31, %v8138_v43  ;;  %v10745_v39 = vld [vmem:[#allocation67_spill] sm:$0xff] }
 0x5f4   : > { %v4204_v11 = vmul.f32 %v10744_v18, %v2013_v37 }
 0x5f5   : > { %v3957_v56 = vpop.f32.mrf.mxu1 }
 0x5f6   : > { %v4343_v49 = vmul.f32 %v10738_v60, %v3957_v56  ;;  %v4968_v25 = vpop.f32.mrf.mxu0  ;;  %v4396_v35 = vmul.f32 %v4204_v11, %v9174_v10  ;;  %v6312_v56 = vld [vmem:[%s7746_s26 + $0x158] sm:$0xff]  ;;  %v10748_v10 = vld [vmem:[#allocation87_spill] sm:$0xff] }
 0x5f7   : > { %v4969_v27 = vadd.f32 %v4968_v25, %v4760_v32  ;;  %v9672_v32 = vpop.f32.mrf.mxu2  ;;  %v10746_v60 = vld [vmem:[#allocation97_spill] sm:$0xff]  ;;  %v6314_v11 = vld [vmem:[%s7746_s26 + $0x168] sm:$0xff] }
 0x5f8   : > { %5910 = vmatmul.msk.f32.gmra.mxu1 %vm3244_vm3, %v6310_v46  ;;  %4645 = vmatmul.f32.gmra.mxu2 %v8927_v62  ;;  %v4393_v62 = vmul.f32 %v4201_v16, %v9151_v15  ;;  %v4766_v15 = vadd.f32 %v9483_v50, %v9478_v8  ;;  %v9679_v8 = vpop.f32.mrf.mxu3  ;;  %v10749_v46 = vld [vmem:[#allocation68_spill] sm:$0xff] }
 0x5f9   : > { %5142 = vst.msk [vmem:[%s9524_s12 + $0x48] sm:$0xff] %vm2354_vm1, %v4969_v27  ;;  %4854 = vmatmul.f32.gmra.mxu3 %v4390_v28  ;;  %5015 = vmatmul.f32.gmra.mxu0 %v4343_v49  ;;  %v10747_v49 = vld [vmem:[#allocation137_spill] sm:$0xff]  ;;  %v4769_v28 = vadd.f32 %v9495_v58, %v9493_v19  ;;  %v10752_v58 = vld [vmem:[#allocation90_spill] sm:$0xff] }
 0x5fa   : > { %v2016_v25 = vadd.f32 %v10747_v49, %v8138_v43 }
 0x5fc   : > { %v4207_v50 = vmul.f32 %v10748_v10, %v2016_v25  ;;  %v6315_v10 = vld [vmem:[%s7746_s26 + $0x170] sm:$0xff] }
 0x5fd   : > { %v3960_v7 = vpop.f32.mrf.mxu1 }
 0x5fe   : > { %v4346_v17 = vmul.f32 %v10741_v26, %v3960_v7  ;;  %v4971_v29 = vpop.f32.mrf.mxu0  ;;  %v4399_v55 = vmul.f32 %v4207_v50, %v9193_v24  ;;  %v10750_v7 = vld [vmem:[#allocation100_spill] sm:$0xff]  ;;  %v10758_v50 = vld [vmem:[#allocation106_spill] sm:$0xff] }
 0x5ff   : > { %v4972_v4 = vadd.f32 %v4971_v29, %v4763_v12  ;;  %v6313_v12 = vld [vmem:[%s7746_s26 + $0x160] sm:$0xff]  ;;  %v10751_v26 = vld [vmem:[#allocation140_spill] sm:$0xff]  ;;  %v9695_v19 = vpop.f32.mrf.mxu2 }
 0x600   : > { %5911 = vmatmul.msk.f32.gmra.mxu1 %vm3244_vm3, %v6311_v48  ;;  %4648 = vmatmul.f32.gmra.mxu2 %v10742_v3  ;;  %v9698_v24 = vpop.f32.mrf.mxu3  ;;  %v10753_v48 = vld [vmem:[#allocation60_spill] sm:$0xff] }
 0x601   : > { %5143 = vst.msk [vmem:[%s9524_s12 + $0x50] sm:$0xff] %vm2354_vm1, %v4972_v4  ;;  %4857 = vmatmul.f32.gmra.mxu3 %v4393_v62  ;;  %5018 = vmatmul.f32.gmra.mxu0 %v4346_v17  ;;  %v2019_v17 = vadd.f32 %v10751_v26, %v8138_v43  ;;  %v4772_v62 = vadd.f32 %v9506_v30, %v9504_v13  ;;  %v10756_v13 = vld [vmem:[#allocation93_spill] sm:$0xff] }
 0x603   : > { %v4210_v29 = vmul.f32 %v10752_v58, %v2019_v17  ;;  %v6316_v17 = vld [vmem:[%s7746_s26 + $0x178] sm:$0xff] }
 0x604   : > { %v10762_v58 = vld [vmem:[#allocation109_spill] sm:$0xff] }
 0x605   : > { %v3963_v38 = vpop.f32.mrf.mxu1  ;;  %v4402_v37 = vmul.f32 %v4210_v29, %v9219_v36  ;;  %v4775_v36 = vadd.f32 %v9526_v42, %v9517_v14  ;;  %v10760_v14 = vld [vmem:[#allocation95_spill] sm:$0xff]  ;;  %v10763_v29 = vld [vmem:[#allocation152_spill] sm:$0xff] }
 0x606   : > { %v4349_v34 = vmul.f32 %v10745_v39, %v3963_v38  ;;  %v4974_v44 = vpop.f32.mrf.mxu0  ;;  %v10755_v38 = vld [vmem:[#allocation144_spill] sm:$0xff] }
 0x607   : > { %v4975_v33 = vadd.f32 %v4974_v44, %v4766_v15  ;;  %v10754_v15 = vld [vmem:[#allocation103_spill] sm:$0xff]  ;;  %v2022_v39 = vadd.f32 %v10755_v38, %v8138_v43  ;;  %v10766_v38 = vld [vmem:[#allocation112_spill] sm:$0xff] }
 0x608   : > { %5912 = vmatmul.msk.f32.gmra.mxu1 %vm3244_vm3, %v6312_v56  ;;  %4651 = vmatmul.f32.gmra.mxu2 %v10746_v60  ;;  %v9716_v44 = vpop.f32.mrf.mxu3 }
 0x609   : > { %5144 = vst.msk [vmem:[%s9524_s12 + $0x58] sm:$0xff] %vm2354_vm1, %v4975_v33  ;;  %4860 = vmatmul.f32.gmra.mxu3 %v4396_v35  ;;  %5021 = vmatmul.f32.gmra.mxu0 %v4349_v34  ;;  %v4213_v30 = vmul.f32 %v10756_v13, %v2022_v39  ;;  %v9712_v34 = vpop.f32.mrf.mxu2  ;;  %v10757_v33 = vld [vmem:[#allocation73_spill] sm:$0xff]  ;;  %v10767_v39 = vld [vmem:[#allocation156_spill] sm:$0xff] }
 0x60a   : > { %v2031_v13 = vadd.f32 %v10767_v39, %v8138_v43  ;;  %v6320_v39 = vld [vmem:[%s7746_s26 + $0x198] sm:$0xff] }
 0x60b   : > { %v4405_v49 = vmul.f32 %v4213_v30, %v9237_v41  ;;  %v4778_v41 = vadd.f32 %v9542_v23, %v9537_v20  ;;  %v2028_v20 = vadd.f32 %v10763_v29, %v8138_v43  ;;  %v10764_v23 = vld [vmem:[#allocation99_spill] sm:$0xff]  ;;  %v4784_v30 = vadd.f32 %v9573_v5, %v9569_v61  ;;  %v10773_v5 = vld [vmem:[#allocation105_spill] sm:$0xff]  ;;  %v10776_v29 = vld [vmem:[#allocation118_spill] sm:$0xff] }
 0x60d   : > { %v3966_v27 = vpop.f32.mrf.mxu1 }
 0x60e   : > { %v4352_v63 = vmul.f32 %v10749_v46, %v3966_v27  ;;  %v4977_v59 = vpop.f32.mrf.mxu0 }
 0x60f   : > { %v4978_v16 = vadd.f32 %v4977_v59, %v4769_v28  ;;  %v10759_v28 = vld [vmem:[#allocation148_spill] sm:$0xff]  ;;  %v10761_v59 = vld [vmem:[#allocation74_spill] sm:$0xff] }
 0x610   : > { %5913 = vmatmul.msk.f32.gmra.mxu1 %vm3244_vm3, %v6313_v12  ;;  %4654 = vmatmul.f32.gmra.mxu2 %v10750_v7  ;;  %v2025_v27 = vadd.f32 %v10759_v28, %v8138_v43  ;;  %v9734_v7 = vpop.f32.mrf.mxu3  ;;  %v10772_v28 = vld [vmem:[#allocation160_spill] sm:$0xff] }
 0x611   : > { %5145 = vst.msk [vmem:[%s9524_s12 + $0x60] sm:$0xff] %vm2354_vm1, %v4978_v16  ;;  %4863 = vmatmul.f32.gmra.mxu3 %v4399_v55  ;;  %5024 = vmatmul.f32.gmra.mxu0 %v4352_v63  ;;  %v9730_v63 = vpop.f32.mrf.mxu2 }
 0x612   : > { %v4216_v42 = vmul.f32 %v10760_v14, %v2025_v27  ;;  %v2034_v27 = vadd.f32 %v10772_v28, %v8138_v43  ;;  %v6321_v28 = vld [vmem:[%s7746_s26 + $0x1a0] sm:$0xff] }
 0x614   : > { %v4408_v12 = vmul.f32 %v4216_v42, %v9260_v51  ;;  %v4781_v51 = vadd.f32 %v9558_v40, %v9556_v0  ;;  %v4225_v14 = vmul.f32 %v10773_v5, %v2034_v27  ;;  %v10786_v27 = vld [vmem:[#allocation124_spill] sm:$0xff] }
 0x615   : > { %v3969_v4 = vpop.f32.mrf.mxu1  ;;  %v10787_v5 = vld [vmem:[#allocation172_spill] sm:$0xff] }
 0x616   : > { %v4355_v3 = vmul.f32 %v10753_v48, %v3969_v4  ;;  %v4980_v31 = vpop.f32.mrf.mxu0  ;;  %v10765_v48 = vld [vmem:[#allocation76_spill] sm:$0xff] }
 0x617   : > { %v4981_v18 = vadd.f32 %v4980_v31, %v4772_v62  ;;  %v4219_v62 = vmul.f32 %v10764_v23, %v2028_v20  ;;  %v10777_v20 = vld [vmem:[#allocation164_spill] sm:$0xff] }
 0x618   : > { %5914 = vmatmul.msk.f32.gmra.mxu1 %vm3244_vm3, %v6314_v11  ;;  %4657 = vmatmul.f32.gmra.mxu2 %v10754_v15  ;;  %v6317_v15 = vld [vmem:[%s7746_s26 + $0x180] sm:$0xff]  ;;  %v9755_v0 = vpop.f32.mrf.mxu3  ;;  %v2037_v23 = vadd.f32 %v10777_v20, %v8138_v43  ;;  %v10791_v20 = vld [vmem:[#allocation128_spill] sm:$0xff] }
 0x619   : > { %5146 = vst.msk [vmem:[%s9524_s12 + $0x68] sm:$0xff] %vm2354_vm1, %v4981_v18  ;;  %4866 = vmatmul.f32.gmra.mxu3 %v4402_v37  ;;  %5027 = vmatmul.f32.gmra.mxu0 %v4355_v3  ;;  %v4411_v37 = vmul.f32 %v4219_v62, %v9279_v54  ;;  %v9748_v11 = vpop.f32.mrf.mxu2  ;;  %v10768_v54 = vld [vmem:[#allocation102_spill] sm:$0xff] }
 0x61a   : > { %v4222_v40 = vmul.f32 %v10768_v54, %v2031_v13  ;;  %v10781_v13 = vld [vmem:[#allocation121_spill] sm:$0xff]  ;;  %v10782_v54 = vld [vmem:[#allocation168_spill] sm:$0xff] }
 0x61d   : > { %v3972_v35 = vpop.f32.mrf.mxu1 }
 0x61e   : > { %v4358_v56 = vmul.f32 %v10757_v33, %v3972_v35  ;;  %v4983_v60 = vpop.f32.mrf.mxu0  ;;  %v10769_v35 = vld [vmem:[#allocation77_spill] sm:$0xff] }
 0x61f   : > { %v4984_v25 = vadd.f32 %v4983_v60, %v4775_v36  ;;  %v10770_v60 = vld [vmem:[#allocation153_spill] sm:$0xff] }
 0x620   : > { %5915 = vmatmul.msk.f32.gmra.mxu1 %vm3244_vm3, %v6315_v10  ;;  %4660 = vmatmul.f32.gmra.mxu2 %v10758_v50  ;;  %v6318_v10 = vld [vmem:[%s7746_s26 + $0x188] sm:$0xff]  ;;  %v9774_v42 = vpop.f32.mrf.mxu3 }
 0x621   : > { %5147 = vst.msk [vmem:[%s9524_s12 + $0x70] sm:$0xff] %vm2354_vm1, %v4984_v25  ;;  %4869 = vmatmul.f32.gmra.mxu3 %v4405_v49  ;;  %5030 = vmatmul.f32.gmra.mxu0 %v4358_v56  ;;  %v4414_v49 = vmul.f32 %v4222_v40, %v10770_v60  ;;  %v10771_v50 = vld [vmem:[#allocation115_spill] sm:$0xff]  ;;  %v9771_v61 = vpop.f32.mrf.mxu2  ;;  %v2040_v40 = vadd.f32 %v10782_v54, %v8138_v43  ;;  %v10797_v54 = vld [vmem:[#allocation180_spill] sm:$0xff] }
 0x625   : > { %v3975_v46 = vpop.f32.mrf.mxu1 }
 0x626   : > { %v4361_v55 = vmul.f32 %v10761_v59, %v3975_v46  ;;  %v4986_v16 = vpop.f32.mrf.mxu0  ;;  %v10774_v59 = vld [vmem:[#allocation69_spill] sm:$0xff] }
 0x627   : > { %v4987_v26 = vadd.f32 %v4986_v16, %v4778_v41  ;;  %v4787_v41 = vadd.f32 %v9587_v9, %v9584_v21  ;;  %v10778_v21 = vld [vmem:[#allocation108_spill] sm:$0xff] }
 0x628   : > { %5916 = vmatmul.msk.f32.gmra.mxu1 %vm3244_vm3, %v6316_v17  ;;  %4663 = vmatmul.f32.gmra.mxu2 %v10762_v58  ;;  %v6319_v58 = vld [vmem:[%s7746_s26 + $0x190] sm:$0xff]  ;;  %v4228_v9 = vmul.f32 %v10778_v21, %v2037_v23 }
 0x629   : > { %5148 = vst.msk [vmem:[%s9524_s12 + $0x78] sm:$0xff] %vm2354_vm1, %v4987_v26  ;;  %4872 = vmatmul.f32.gmra.mxu3 %v4408_v12  ;;  %5033 = vmatmul.f32.gmra.mxu0 %v4361_v55  ;;  %v10775_v12 = vld [vmem:[#allocation207_spill] sm:$0xff]  ;;  %v9788_v62 = vpop.f32.mrf.mxu2  ;;  %v10792_v23 = vld [vmem:[#allocation176_spill] sm:$0xff] }
 0x62a   : > { %v4417_v26 = vmul.f32 %v4225_v14, %v10775_v12  ;;  %v10790_v12 = vld [vmem:[#allocation220_spill] sm:$0xff]  ;;  %v2046_v21 = vadd.f32 %v10792_v23, %v8138_v43 }
 0x62b   : > { %v10807_v23 = vld [vmem:[#allocation188_spill] sm:$0xff] }
 0x62d   : > { %v3978_v4 = vpop.f32.mrf.mxu1 }
 0x62e   : > { %v4364_v3 = vmul.f32 %v10765_v48, %v3978_v4  ;;  %v4989_v31 = vpop.f32.mrf.mxu0  ;;  %v9792_v4 = vpop.f32.mrf.mxu3 }
 0x62f   : > { %v4990_v18 = vadd.f32 %v4989_v31, %v4781_v51  ;;  %v4790_v51 = vadd.f32 %v9603_v22, %v9598_v57  ;;  %v10783_v57 = vld [vmem:[#allocation111_spill] sm:$0xff] }
 0x630   : > { %5917 = vmatmul.msk.f32.gmra.mxu1 %vm3244_vm3, %v6317_v15  ;;  %4666 = vmatmul.f32.gmra.mxu2 %v10766_v38  ;;  %v4231_v22 = vmul.f32 %v10783_v57, %v2040_v40  ;;  %v2049_v40 = vadd.f32 %v10797_v54, %v8138_v43  ;;  %v10812_v54 = vld [vmem:[#allocation192_spill] sm:$0xff] }
 0x631   : > { %5149 = vst.msk [vmem:[%s9524_s12 + $0x80] sm:$0xff] %vm2354_vm1, %v4990_v18  ;;  %4875 = vmatmul.f32.gmra.mxu3 %v4411_v37  ;;  %5036 = vmatmul.f32.gmra.mxu0 %v4364_v3  ;;  %v10779_v3 = vld [vmem:[#allocation82_spill] sm:$0xff] }
 0x632   : > { %v10780_v18 = vld [vmem:[#allocation158_spill] sm:$0xff] }
 0x633   : > { %v4420_v15 = vmul.f32 %v4228_v9, %v10780_v18  ;;  %v10795_v18 = vld [vmem:[#allocation16_spill] sm:$0xff] }
 0x635   : > { %v3981_v36 = vpop.f32.mrf.mxu1 }
 0x636   : > { %v4367_v33 = vmul.f32 %v10769_v35, %v3981_v36  ;;  %v4992_v56 = vpop.f32.mrf.mxu0  ;;  %v9806_v35 = vpop.f32.mrf.mxu2 }
 0x637   : > { %v4993_v25 = vadd.f32 %v4992_v56, %v4784_v30  ;;  %v4793_v30 = vadd.f32 %v9622_v2, %v9619_v45  ;;  %v2043_v45 = vadd.f32 %v10787_v5, %v8138_v43  ;;  %v10788_v2 = vld [vmem:[#allocation114_spill] sm:$0xff]  ;;  %v10802_v5 = vld [vmem:[#allocation184_spill] sm:$0xff] }
 0x638   : > { %5918 = vmatmul.msk.f32.gmra.mxu1 %vm3244_vm3, %v6318_v10  ;;  %4669 = vmatmul.f32.gmra.mxu2 %v10771_v50  ;;  %v9810_v10 = vpop.f32.mrf.mxu3 }
 0x639   : > { %5150 = vst.msk [vmem:[%s9524_s12 + $0x88] sm:$0xff] %vm2354_vm1, %v4993_v25  ;;  %4878 = vmatmul.f32.gmra.mxu3 %v4414_v49  ;;  %5039 = vmatmul.f32.gmra.mxu0 %v4367_v33  ;;  %v10784_v33 = vld [vmem:[#allocation83_spill] sm:$0xff]  ;;  %v4234_v14 = vmul.f32 %v10788_v2, %v2043_v45  ;;  %v2052_v45 = vadd.f32 %v10802_v5, %v8138_v43 }
 0x63a   : > { %v10785_v49 = vld [vmem:[#allocation211_spill] sm:$0xff] }
 0x63b   : > { %v4423_v25 = vmul.f32 %v4231_v22, %v10785_v49  ;;  %v10800_v49 = vld [vmem:[#allocation161_spill] sm:$0xff] }
 0x63d   : > { %v3984_v46 = vpop.f32.mrf.mxu1 }
 0x63e   : > { %v4370_v55 = vmul.f32 %v10774_v59, %v3984_v46  ;;  %v4995_v16 = vpop.f32.mrf.mxu0  ;;  %v10789_v59 = vld [vmem:[#allocation85_spill] sm:$0xff] }
 0x63f   : > { %v4996_v17 = vadd.f32 %v4995_v16, %v4787_v41  ;;  %v4796_v41 = vadd.f32 %v9640_v1, %v9636_v47  ;;  %v10793_v1 = vld [vmem:[#allocation117_spill] sm:$0xff] }
 0x640   : > { %5919 = vmatmul.msk.f32.gmra.mxu1 %vm3244_vm3, %v6319_v58  ;;  %4672 = vmatmul.f32.gmra.mxu2 %v10776_v29  ;;  %v9824_v58 = vpop.f32.mrf.mxu2  ;;  %v6322_v29 = vld [vmem:[%s7746_s26 + $0x1a8] sm:$0xff]  ;;  %v9831_v47 = vpop.f32.mrf.mxu3  ;;  %v4237_v9 = vmul.f32 %v10793_v1, %v2046_v21  ;;  %v2055_v21 = vadd.f32 %v10807_v23, %v8138_v43  ;;  %v4808_v1 = vadd.f32 %v9716_v44, %v9712_v34  ;;  %v10813_v44 = vld [vmem:[#allocation134_spill] sm:$0xff] }
 0x641   : > { %5151 = vst.msk [vmem:[%s9524_s12 + $0x90] sm:$0xff] %vm2354_vm1, %v4996_v17  ;;  %4881 = vmatmul.f32.gmra.mxu3 %v4417_v26  ;;  %5042 = vmatmul.f32.gmra.mxu0 %v4370_v55  ;;  %v4426_v26 = vmul.f32 %v4234_v14, %v10790_v12  ;;  %v4805_v14 = vadd.f32 %v9698_v24, %v9695_v19  ;;  %v10805_v12 = vld [vmem:[#allocation147_spill] sm:$0xff]  ;;  %v10808_v19 = vld [vmem:[#allocation132_spill] sm:$0xff] }
 0x642   : > { %v4246_v24 = vmul.f32 %v10808_v19, %v2055_v21  ;;  %v2058_v34 = vadd.f32 %v10812_v54, %v8138_v43  ;;  %v4817_v19 = vadd.f32 %v9774_v42, %v9771_v61  ;;  %v10828_v61 = vld [vmem:[#allocation10_spill] sm:$0xff] }
 0x645   : > { %v3987_v48 = vpop.f32.mrf.mxu1 }
 0x646   : > { %v4373_v31 = vmul.f32 %v10779_v3, %v3987_v48  ;;  %v4998_v37 = vpop.f32.mrf.mxu0  ;;  %v10794_v3 = vld [vmem:[#allocation86_spill] sm:$0xff] }
 0x647   : > { %v4999_v38 = vadd.f32 %v4998_v37, %v4790_v51  ;;  %v4799_v51 = vadd.f32 %v9658_v53, %v9654_v52  ;;  %v10798_v53 = vld [vmem:[#allocation3_spill] sm:$0xff] }
 0x648   : > { %5920 = vmatmul.msk.f32.gmra.mxu1 %vm3244_vm3, %v6320_v39  ;;  %4675 = vmatmul.f32.gmra.mxu2 %v10781_v13  ;;  %v6323_v39 = vld [vmem:[%s7746_s26 + $0x1b0] sm:$0xff]  ;;  %v9847_v52 = vpop.f32.mrf.mxu2  ;;  %v4240_v57 = vmul.f32 %v10798_v53, %v2049_v40  ;;  %v9850_v22 = vpop.f32.mrf.mxu3  ;;  %v4249_v40 = vmul.f32 %v10813_v44, %v2058_v34  ;;  %v4811_v53 = vadd.f32 %v9734_v7, %v9730_v63  ;;  %v10818_v7 = vld [vmem:[#allocation149_spill] sm:$0xff] }
 0x649   : > { %5152 = vst.msk [vmem:[%s9524_s12 + $0x98] sm:$0xff] %vm2354_vm1, %v4999_v38  ;;  %4884 = vmatmul.f32.gmra.mxu3 %v4420_v15  ;;  %5045 = vmatmul.f32.gmra.mxu0 %v4373_v31  ;;  %v4429_v15 = vmul.f32 %v4237_v9, %v10795_v18  ;;  %v10796_v13 = vld [vmem:[#allocation120_spill] sm:$0xff]  ;;  %v4820_v34 = vadd.f32 %v9792_v4, %v9788_v62  ;;  %v10833_v62 = vld [vmem:[#allocation154_spill] sm:$0xff] }
 0x64d   : > { %v3990_v36 = vpop.f32.mrf.mxu1 }
 0x64e   : > { %v4376_v56 = vmul.f32 %v10784_v33, %v3990_v36  ;;  %v5001_v60 = vpop.f32.mrf.mxu0  ;;  %v10799_v33 = vld [vmem:[#allocation88_spill] sm:$0xff] }
 0x64f   : > { %v5002_v50 = vadd.f32 %v5001_v60, %v4793_v30  ;;  %v4802_v30 = vadd.f32 %v9679_v8, %v9672_v32  ;;  %v10803_v32 = vld [vmem:[#allocation130_spill] sm:$0xff] }
 0x650   : > { %5921 = vmatmul.msk.f32.gmra.mxu1 %vm3244_vm3, %v6321_v28  ;;  %4678 = vmatmul.f32.gmra.mxu2 %v10786_v27  ;;  %v6324_v28 = vld [vmem:[%s7746_s26 + $0x1b8] sm:$0xff]  ;;  %v10801_v27 = vld [vmem:[#allocation126_spill] sm:$0xff]  ;;  %v4243_v8 = vmul.f32 %v10803_v32, %v2052_v45  ;;  %v9864_v2 = vpop.f32.mrf.mxu2  ;;  %v4814_v32 = vadd.f32 %v9755_v0, %v9748_v11 }
 0x651   : > { %5153 = vst.msk [vmem:[%s9524_s12 + $0xa0] sm:$0xff] %vm2354_vm1, %v5002_v50  ;;  %4887 = vmatmul.f32.gmra.mxu3 %v4423_v25  ;;  %5048 = vmatmul.f32.gmra.mxu0 %v4376_v56  ;;  %v4432_v25 = vmul.f32 %v4240_v57, %v10800_v49  ;;  %v10823_v0 = vld [vmem:[#allocation150_spill] sm:$0xff] }
 0x655   : > { %v3993_v46 = vpop.f32.mrf.mxu1 }
 0x656   : > { %v4379_v55 = vmul.f32 %v10789_v59, %v3993_v46  ;;  %v5004_v16 = vpop.f32.mrf.mxu0  ;;  %v10804_v59 = vld [vmem:[#allocation89_spill] sm:$0xff] }
 0x657   : > { %v5005_v17 = vadd.f32 %v5004_v16, %v4796_v41  ;;  %v9868_v41 = vpop.f32.mrf.mxu3 }
 0x658   : > { %5922 = vmatmul.msk.f32.gmra.mxu1 %vm3244_vm3, %v6322_v29  ;;  %4681 = vmatmul.f32.gmra.mxu2 %v10791_v20  ;;  %v6325_v29 = vld [vmem:[%s7746_s26 + $0x1c0] sm:$0xff]  ;;  %v10806_v20 = vld [vmem:[#allocation141_spill] sm:$0xff] }
 0x659   : > { %5154 = vst.msk [vmem:[%s9524_s12 + $0xa8] sm:$0xff] %vm2354_vm1, %v5005_v17  ;;  %4890 = vmatmul.f32.gmra.mxu3 %v4426_v26  ;;  %5051 = vmatmul.f32.gmra.mxu0 %v4379_v55  ;;  %v4435_v26 = vmul.f32 %v4243_v8, %v10805_v12 }
 0x65d   : > { %v3996_v48 = vpop.f32.mrf.mxu1 }
 0x65e   : > { %v4382_v31 = vmul.f32 %v10794_v3, %v3996_v48  ;;  %v5007_v37 = vpop.f32.mrf.mxu0  ;;  %v10809_v48 = vld [vmem:[#allocation91_spill] sm:$0xff] }
 0x65f   : > { %v5008_v38 = vadd.f32 %v5007_v37, %v4799_v51  ;;  %v9882_v51 = vpop.f32.mrf.mxu2  ;;  %v10810_v37 = vld [vmem:[#allocation221_spill] sm:$0xff] }
 0x660   : > { %5923 = vmatmul.msk.f32.gmra.mxu1 %vm3244_vm3, %v6323_v39  ;;  %4684 = vmatmul.f32.gmra.mxu2 %v10796_v13  ;;  %v4438_v18 = vmul.f32 %v4246_v24, %v10810_v37  ;;  %v6326_v39 = vld [vmem:[%s7746_s26 + $0x1c8] sm:$0xff]  ;;  %v10811_v13 = vld [vmem:[#allocation145_spill] sm:$0xff] }
 0x661   : > { %5155 = vst.msk [vmem:[%s9524_s12 + $0xb0] sm:$0xff] %vm2354_vm1, %v5008_v38  ;;  %4893 = vmatmul.f32.gmra.mxu3 %v4429_v15  ;;  %5054 = vmatmul.f32.gmra.mxu0 %v4382_v31  ;;  %v9886_v15 = vpop.f32.mrf.mxu3 }
 0x665   : > { %v3999_v36 = vpop.f32.mrf.mxu1 }
 0x666   : > { %v4385_v56 = vmul.f32 %v10799_v33, %v3999_v36  ;;  %v5010_v60 = vpop.f32.mrf.mxu0 }
 0x667   : > { %v5011_v50 = vadd.f32 %v5010_v60, %v4802_v30  ;;  %v10814_v30 = vld [vmem:[#allocation92_spill] sm:$0xff] }
 0x668   : > { %5924 = vmatmul.msk.f32.gmra.mxu1 %vm3244_vm3, %v6324_v28  ;;  %4687 = vmatmul.f32.gmra.mxu2 %v10801_v27  ;;  %v10816_v28 = vld [vmem:[#allocation6_spill] sm:$0xff]  ;;  %v10817_v27 = vld [vmem:[#allocation196_spill] sm:$0xff] }
 0x669   : > { %5156 = vst.msk [vmem:[%s9524_s12 + $0xb8] sm:$0xff] %vm2354_vm1, %v5011_v50  ;;  %4896 = vmatmul.f32.gmra.mxu3 %v4432_v25  ;;  %5057 = vmatmul.f32.gmra.mxu0 %v4385_v56  ;;  %v10815_v56 = vld [vmem:[#allocation162_spill] sm:$0xff]  ;;  %v9900_v25 = vpop.f32.mrf.mxu2  ;;  %v6327_v50 = vld [vmem:[%s7746_s26 + $0x1d0] sm:$0xff]  ;;  %v2061_v5 = vadd.f32 %v10817_v27, %v8138_v43  ;;  %v9907_v63 = vpop.f32.mrf.mxu3  ;;  %v4823_v27 = vadd.f32 %v9810_v10, %v9806_v35  ;;  %v10838_v10 = vld [vmem:[#allocation157_spill] sm:$0xff] }
 0x66a   : > { %v4441_v60 = vmul.f32 %v4249_v40, %v10815_v56 }
 0x66b   : > { %v4252_v45 = vmul.f32 %v10818_v7, %v2061_v5 }
 0x66d   : > { %v4002_v46 = vpop.f32.mrf.mxu1 }
 0x66e   : > { %v4388_v55 = vmul.f32 %v10804_v59, %v4002_v46  ;;  %v5013_v16 = vpop.f32.mrf.mxu0 }
 0x66f   : > { %v5014_v17 = vadd.f32 %v5013_v16, %v4805_v14  ;;  %v10819_v14 = vld [vmem:[#allocation94_spill] sm:$0xff] }
 0x670   : > { %5925 = vmatmul.msk.f32.gmra.mxu1 %vm3244_vm3, %v6325_v29  ;;  %4690 = vmatmul.f32.gmra.mxu2 %v10806_v20  ;;  %v10822_v29 = vld [vmem:[#allocation200_spill] sm:$0xff] }
 0x671   : > { %5157 = vst.msk [vmem:[%s9524_s12 + $0xc0] sm:$0xff] %vm2354_vm1, %v5014_v17  ;;  %4899 = vmatmul.f32.gmra.mxu3 %v4435_v26  ;;  %5060 = vmatmul.f32.gmra.mxu0 %v4388_v55  ;;  %v10820_v55 = vld [vmem:[#allocation215_spill] sm:$0xff]  ;;  %v6328_v26 = vld [vmem:[%s7746_s26 + $0x1d8] sm:$0xff]  ;;  %v10821_v17 = vld [vmem:[#allocation214_spill] sm:$0xff]  ;;  %v2064_v20 = vadd.f32 %v10822_v29, %v8138_v43  ;;  %v9923_v11 = vpop.f32.mrf.mxu2  ;;  %v9926_v21 = vpop.f32.mrf.mxu3  ;;  %v4826_v29 = vadd.f32 %v9831_v47, %v9824_v58 }
 0x672   : > { %v4444_v16 = vmul.f32 %v4252_v45, %v10820_v55  ;;  %v10834_v45 = vld [vmem:[#allocation104_spill] sm:$0xff]  ;;  %v4829_v58 = vadd.f32 %v9850_v22, %v9847_v52 }
 0x673   : > { %v4255_v23 = vmul.f32 %v10823_v0, %v2064_v20  ;;  %v10839_v0 = vld [vmem:[#allocation107_spill] sm:$0xff] }
 0x675   : > { %v4005_v9 = vpop.f32.mrf.mxu1 }
 0x676   : > { %v4391_v3 = vmul.f32 %v10809_v48, %v4005_v9  ;;  %v5016_v31 = vpop.f32.mrf.mxu0 }
 0x677   : > { %v5017_v38 = vadd.f32 %v5016_v31, %v4808_v1  ;;  %v10824_v1 = vld [vmem:[#allocation98_spill] sm:$0xff] }
 0x678   : > { %5926 = vmatmul.msk.f32.gmra.mxu1 %vm3244_vm3, %v6326_v39  ;;  %4693 = vmatmul.f32.gmra.mxu2 %v10811_v13  ;;  %v10827_v39 = vld [vmem:[#allocation204_spill] sm:$0xff] }
 0x679   : > { %5158 = vst.msk [vmem:[%s9524_s12 + $0xc8] sm:$0xff] %vm2354_vm1, %v5017_v38  ;;  %4902 = vmatmul.f32.gmra.mxu3 %v4438_v18  ;;  %5063 = vmatmul.f32.gmra.mxu0 %v4391_v3  ;;  %v10825_v3 = vld [vmem:[#allocation223_spill] sm:$0xff]  ;;  %v6329_v18 = vld [vmem:[%s7746_s26 + $0x1e0] sm:$0xff]  ;;  %v2067_v13 = vadd.f32 %v10827_v39, %v8138_v43  ;;  %v9940_v54 = vpop.f32.mrf.mxu2  ;;  %v9944_v44 = vpop.f32.mrf.mxu3 }
 0x67a   : > { %v4447_v31 = vmul.f32 %v4255_v23, %v10825_v3  ;;  %v10826_v38 = vld [vmem:[#allocation2_spill] sm:$0xff] }
 0x67b   : > { %v4258_v42 = vmul.f32 %v10828_v61, %v2067_v13  ;;  %v10842_v13 = vld [vmem:[#allocation113_spill] sm:$0xff] }
 0x67d   : > { %v4008_v57 = vpop.f32.mrf.mxu1 }
 0x67e   : > { %v4394_v36 = vmul.f32 %v10814_v30, %v4008_v57  ;;  %v5019_v33 = vpop.f32.mrf.mxu0 }
 0x67f   : > { %v5020_v49 = vadd.f32 %v5019_v33, %v4811_v53  ;;  %v10829_v53 = vld [vmem:[#allocation101_spill] sm:$0xff] }
 0x680   : > { %5927 = vmatmul.msk.f32.gmra.mxu1 %vm3244_vm3, %v6327_v50  ;;  %4696 = vmatmul.f32.gmra.mxu2 %v10816_v28  ;;  %v10832_v50 = vld [vmem:[#allocation208_spill] sm:$0xff] }
 0x681   : > { %5159 = vst.msk [vmem:[%s9524_s12 + $0xd0] sm:$0xff] %vm2354_vm1, %v5020_v49  ;;  %4905 = vmatmul.f32.gmra.mxu3 %v4441_v60  ;;  %5066 = vmatmul.f32.gmra.mxu0 %v4394_v36  ;;  %v10830_v36 = vld [vmem:[#allocation19_spill] sm:$0xff]  ;;  %v10831_v49 = vld [vmem:[#allocation216_spill] sm:$0xff]  ;;  %v2070_v28 = vadd.f32 %v10832_v50, %v8138_v43  ;;  %v9958_v7 = vpop.f32.mrf.mxu2 }
 0x682   : > { %v4450_v33 = vmul.f32 %v4258_v42, %v10830_v36  ;;  %v6330_v60 = vld [vmem:[%s7746_s26 + $0x1e8] sm:$0xff] }
 0x683   : > { %v4261_v4 = vmul.f32 %v10833_v62, %v2070_v28 }
 0x685   : > { %v4011_v8 = vpop.f32.mrf.mxu1 }
 0x686   : > { %v4397_v46 = vmul.f32 %v10819_v14, %v4011_v8  ;;  %v5022_v59 = vpop.f32.mrf.mxu0  ;;  %v10835_v14 = vld [vmem:[#allocation165_spill] sm:$0xff] }
 0x687   : > { %v5023_v12 = vadd.f32 %v5022_v59, %v4814_v32  ;;  %v9962_v59 = vpop.f32.mrf.mxu3 }
 0x688   : > { %5928 = vmatmul.msk.f32.gmra.mxu1 %vm3244_vm3, %v6328_v26  ;;  %4699 = vmatmul.f32.gmra.mxu2 %v10821_v17  ;;  %v10837_v26 = vld [vmem:[#allocation212_spill] sm:$0xff] }
 0x689   : > { %5160 = vst.msk [vmem:[%s9524_s12 + $0xd8] sm:$0xff] %vm2354_vm1, %v5023_v12  ;;  %4908 = vmatmul.f32.gmra.mxu3 %v4444_v16  ;;  %5069 = vmatmul.f32.gmra.mxu0 %v4397_v46  ;;  %v4453_v46 = vmul.f32 %v4261_v4, %v10835_v14  ;;  %v6331_v16 = vld [vmem:[%s7746_s26 + $0x1f0] sm:$0xff]  ;;  %v10836_v12 = vld [vmem:[#allocation13_spill] sm:$0xff]  ;;  %v2073_v35 = vadd.f32 %v10837_v26, %v8138_v43  ;;  %v10845_v4 = vld [vmem:[#allocation122_spill] sm:$0xff] }
 0x68a   : > { %v6332_v43 = vld [vmem:[%s7746_s26 + $0x1f8] sm:$0xff] }
 0x68b   : > { %v4264_v17 = vmul.f32 %v10838_v10, %v2073_v35  ;;  %v10846_v14 = vld [vmem:[#allocation125_spill] sm:$0xff] }
 0x68c   : > { %v10847_v35 = vld [vmem:[#allocation129_spill] sm:$0xff] }
 0x68d   : > { %v4014_v24 = vpop.f32.mrf.mxu1 }
 0x68e   : > { %v4400_v9 = vmul.f32 %v10824_v1, %v4014_v24  ;;  %v5025_v48 = vpop.f32.mrf.mxu0  ;;  %v4456_v24 = vmul.f32 %v4264_v17, %v9508_v6  ;;  %v10841_v6 = vld [vmem:[#allocation110_spill] sm:$0xff] }
 0x68f   : > { %v5026_v37 = vadd.f32 %v5025_v48, %v4817_v19  ;;  %v10840_v48 = vld [vmem:[#allocation218_spill] sm:$0xff]  ;;  %v9981_v3 = vpop.f32.mrf.mxu3 }
 0x690   : > { %5929 = vmatmul.msk.f32.gmra.mxu1 %vm3244_vm3, %v6329_v18  ;;  %4702 = vmatmul.f32.gmra.mxu2 %v10826_v38  ;;  %v4832_v38 = vadd.f32 %v9868_v41, %v9864_v2  ;;  %v4838_v2 = vadd.f32 %v9907_v63, %v9900_v25 }
 0x691   : > { %5161 = vst.msk [vmem:[%s9524_s12 + $0xe0] sm:$0xff] %vm2354_vm1, %v5026_v37  ;;  %4911 = vmatmul.f32.gmra.mxu3 %v4447_v31  ;;  %5072 = vmatmul.f32.gmra.mxu0 %v4400_v9  ;;  %v9976_v9 = vpop.f32.mrf.mxu2 }
 0x695   : > { %v4017_v40 = vpop.f32.mrf.mxu1 }
 0x696   : > { %v4403_v57 = vmul.f32 %v10829_v53, %v4017_v40  ;;  %v5028_v30 = vpop.f32.mrf.mxu0  ;;  %v4835_v40 = vadd.f32 %v9886_v15, %v9882_v51  ;;  %v4841_v51 = vadd.f32 %v9926_v21, %v9923_v11 }
 0x697   : > { %v5029_v56 = vadd.f32 %v5028_v30, %v4820_v34  ;;  %v4852_v22 = vpop.f32.mrf.mxu3 }
 0x698   : > { %5930 = vmatmul.msk.f32.gmra.mxu1 %vm3244_vm3, %v6330_v60  ;;  %4705 = vmatmul.f32.gmra.mxu2 %v10831_v49  ;;  %v10844_v49 = vld [vmem:[#allocation119_spill] sm:$0xff] }
 0x699   : > { %5162 = vst.msk [vmem:[%s9524_s12 + $0xe8] sm:$0xff] %vm2354_vm1, %v5029_v56  ;;  %4914 = vmatmul.f32.gmra.mxu3 %v4450_v33  ;;  %5075 = vmatmul.f32.gmra.mxu0 %v4403_v57  ;;  %v4643_v52 = vpop.f32.mrf.mxu2  ;;  %v10843_v57 = vld [vmem:[#allocation116_spill] sm:$0xff] }
 0x69d   : > { %v4020_v5 = vpop.f32.mrf.mxu1 }
 0x69e   : > { %v4406_v32 = vmul.f32 %v10834_v45, %v4020_v5  ;;  %v5031_v8 = vpop.f32.mrf.mxu0 }
 0x69f   : > { %v5032_v55 = vadd.f32 %v5031_v8, %v4823_v27  ;;  %v4855_v60 = vpop.f32.mrf.mxu3 }
 0x6a0   : > { %5931 = vmatmul.msk.f32.gmra.mxu1 %vm3244_vm3, %v6331_v16  ;;  %4708 = vmatmul.f32.gmra.mxu2 %v10836_v12  ;;  %v4847_v12 = vadd.f32 %v9962_v59, %v9958_v7  ;;  %v4853_v7 = vadd.f32 %v4852_v22, %v4643_v52  ;;  %v10851_v52 = vld [vmem:[#allocation146_spill] sm:$0xff] }
 0x6a1   : > { %5163 = vst.msk [vmem:[%s9524_s12 + $0xf0] sm:$0xff] %vm2354_vm1, %v5032_v55  ;;  %4917 = vmatmul.f32.gmra.mxu3 %v4453_v46  ;;  %5078 = vmatmul.f32.gmra.mxu0 %v4406_v32  ;;  %v4646_v41 = vpop.f32.mrf.mxu2  ;;  %v4844_v32 = vadd.f32 %v9944_v44, %v9940_v54 }
 0x6a5   : > { %v4023_v20 = vpop.f32.mrf.mxu1 }
 0x6a6   : > { %v4409_v23 = vmul.f32 %v10839_v0, %v4023_v20  ;;  %v5034_v19 = vpop.f32.mrf.mxu0  ;;  %v4850_v20 = vadd.f32 %v9981_v3, %v9976_v9  ;;  %v4856_v9 = vadd.f32 %v4855_v60, %v4646_v41 }
 0x6a7   : > { %v5035_v1 = vadd.f32 %v5034_v19, %v4826_v29  ;;  %v4858_v45 = vpop.f32.mrf.mxu3 }
 0x6a8   : > { %5932 = vmatmul.msk.f32.gmra.mxu1 %vm3244_vm3, %v6332_v43  ;;  %4711 = vmatmul.f32.gmra.mxu2 %v10840_v48 }
 0x6a9   : > { %5164 = vst.msk [vmem:[%s9524_s12 + $0xf8] sm:$0xff] %vm2354_vm1, %v5035_v1  ;;  %4920 = vmatmul.f32.gmra.mxu3 %v4456_v24  ;;  %5081 = vmatmul.f32.gmra.mxu0 %v4409_v23  ;;  %v4649_v25 = vpop.f32.mrf.mxu2  ;;  %v10848_v23 = vld [vmem:[#allocation123_spill] sm:$0xff] }
 0x6ad   : > { %v4026_v47 = vpop.f32.mrf.mxu1 }
 0x6ae   : > { %v4412_v31 = vmul.f32 %v10841_v6, %v4026_v47  ;;  %v5037_v37 = vpop.f32.mrf.mxu0 }
 0x6af   : > { %v5038_v18 = vadd.f32 %v5037_v37, %v4829_v58  ;;  %v4861_v21 = vpop.f32.mrf.mxu3  ;;  %v10849_v58 = vld [vmem:[#allocation138_spill] sm:$0xff] }
 0x6b0   : > { %v10850_v37 = vld [vmem:[#allocation142_spill] sm:$0xff] }
 0x6b1   : > { %5165 = vst.msk [vmem:[%s9524_s12 + $0x100] sm:$0xff] %vm2354_vm1, %v5038_v18  ;;  %5084 = vmatmul.f32.gmra.mxu0 %v4412_v31  ;;  %v4652_v11 = vpop.f32.mrf.mxu2 }
 0x6b5   : > { %v4029_v39 = vpop.f32.mrf.mxu1 }
 0x6b6   : > { %v4415_v61 = vmul.f32 %v10842_v13, %v4029_v39  ;;  %v5040_v42 = vpop.f32.mrf.mxu0 }
 0x6b7   : > { %v5041_v34 = vadd.f32 %v5040_v42, %v4832_v38  ;;  %v4864_v44 = vpop.f32.mrf.mxu3  ;;  %v4859_v42 = vadd.f32 %v4858_v45, %v4649_v25 }
 0x6b9   : > { %5166 = vst.msk [vmem:[%s9524_s12 + $0x108] sm:$0xff] %vm2354_vm1, %v5041_v34  ;;  %5087 = vmatmul.f32.gmra.mxu0 %v4415_v61  ;;  %v4655_v54 = vpop.f32.mrf.mxu2 }
 0x6bd   : > { %v4032_v53 = vpop.f32.mrf.mxu1 }
 0x6be   : > { %v4418_v30 = vmul.f32 %v10843_v57, %v4032_v53  ;;  %v5043_v36 = vpop.f32.mrf.mxu0 }
 0x6bf   : > { %v5044_v33 = vadd.f32 %v5043_v36, %v4835_v40  ;;  %v4867_v48 = vpop.f32.mrf.mxu3  ;;  %v4862_v36 = vadd.f32 %v4861_v21, %v4652_v11  ;;  %v10855_v11 = vld [vmem:[#allocation4_spill] sm:$0xff] }
 0x6c1   : > { %5167 = vst.msk [vmem:[%s9524_s12 + $0x110] sm:$0xff] %vm2354_vm1, %v5044_v33  ;;  %5090 = vmatmul.f32.gmra.mxu0 %v4418_v30  ;;  %v4658_v59 = vpop.f32.mrf.mxu2 }
 0x6c5   : > { %v4035_v56 = vpop.f32.mrf.mxu1 }
 0x6c6   : > { %v4421_v50 = vmul.f32 %v10844_v49, %v4035_v56  ;;  %v5046_v28 = vpop.f32.mrf.mxu0 }
 0x6c7   : > { %v5047_v62 = vadd.f32 %v5046_v28, %v4838_v2  ;;  %v4870_v61 = vpop.f32.mrf.mxu3  ;;  %v10852_v2 = vld [vmem:[#allocation136_spill] sm:$0xff]  ;;  %v4865_v28 = vadd.f32 %v4864_v44, %v4655_v54  ;;  %v10856_v54 = vld [vmem:[#allocation143_spill] sm:$0xff] }
 0x6c9   : > { %5168 = vst.msk [vmem:[%s9524_s12 + $0x118] sm:$0xff] %vm2354_vm1, %v5047_v62  ;;  %5093 = vmatmul.f32.gmra.mxu0 %v4421_v50  ;;  %v4661_v39 = vpop.f32.mrf.mxu2 }
 0x6cd   : > { %v4038_v15 = vpop.f32.mrf.mxu1 }
 0x6ce   : > { %v4424_v27 = vmul.f32 %v10845_v4, %v4038_v15  ;;  %v5049_v5 = vpop.f32.mrf.mxu0 }
 0x6cf   : > { %v5050_v63 = vadd.f32 %v5049_v5, %v4841_v51  ;;  %v4873_v30 = vpop.f32.mrf.mxu3  ;;  %v10853_v51 = vld [vmem:[#allocation203_spill] sm:$0xff]  ;;  %v4868_v5 = vadd.f32 %v4867_v48, %v4658_v59 }
 0x6d1   : > { %5169 = vst.msk [vmem:[%s9524_s12 + $0x120] sm:$0xff] %vm2354_vm1, %v5050_v63  ;;  %5096 = vmatmul.f32.gmra.mxu0 %v4424_v27  ;;  %v4664_v57 = vpop.f32.mrf.mxu2 }
 0x6d5   : > { %v4041_v8 = vpop.f32.mrf.mxu1 }
 0x6d6   : > { %v4427_v46 = vmul.f32 %v10846_v14, %v4041_v8  ;;  %v5052_v55 = vpop.f32.mrf.mxu0 }
 0x6d7   : > { %v5053_v16 = vadd.f32 %v5052_v55, %v4844_v32  ;;  %v4876_v50 = vpop.f32.mrf.mxu3  ;;  %v10854_v32 = vld [vmem:[#allocation139_spill] sm:$0xff]  ;;  %v4871_v55 = vadd.f32 %v4870_v61, %v4661_v39 }
 0x6d9   : > { %5170 = vst.msk [vmem:[%s9524_s12 + $0x128] sm:$0xff] %vm2354_vm1, %v5053_v16  ;;  %5099 = vmatmul.f32.gmra.mxu0 %v4427_v46  ;;  %v4667_v49 = vpop.f32.mrf.mxu2 }
 0x6dd   : > { %v4044_v26 = vpop.f32.mrf.mxu1 }
 0x6de   : > { %v4430_v10 = vmul.f32 %v10847_v35, %v4044_v26  ;;  %v5055_v17 = vpop.f32.mrf.mxu0 }
 0x6df   : > { %v5056_v29 = vadd.f32 %v5055_v17, %v4847_v12  ;;  %v4879_v45 = vpop.f32.mrf.mxu3  ;;  %v4874_v17 = vadd.f32 %v4873_v30, %v4664_v57 }
 0x6e1   : > { %5171 = vst.msk [vmem:[%s9524_s12 + $0x130] sm:$0xff] %vm2354_vm1, %v5056_v29  ;;  %5102 = vmatmul.f32.gmra.mxu0 %v4430_v10  ;;  %v4670_v25 = vpop.f32.mrf.mxu2 }
 0x6e2   : > { %v4880_v48 = vadd.f32 %v4879_v45, %v4670_v25 }
 0x6e5   : > { %v4047_v0 = vpop.f32.mrf.mxu1 }
 0x6e6   : > { %v4433_v19 = vmul.f32 %v10848_v23, %v4047_v0  ;;  %v5058_v24 = vpop.f32.mrf.mxu0 }
 0x6e7   : > { %v5059_v1 = vadd.f32 %v5058_v24, %v4850_v20  ;;  %v4882_v10 = vpop.f32.mrf.mxu3  ;;  %v4877_v24 = vadd.f32 %v4876_v50, %v4667_v49 }
 0x6e9   : > { %5172 = vst.msk [vmem:[%s9524_s12 + $0x138] sm:$0xff] %vm2354_vm1, %v5059_v1  ;;  %5105 = vmatmul.f32.gmra.mxu0 %v4433_v19  ;;  %v4673_v26 = vpop.f32.mrf.mxu2 }
 0x6ed   : > { %v4050_v43 = vpop.f32.mrf.mxu1 }
 0x6ee   : > { %v4436_v47 = vmul.f32 %v10849_v58, %v4050_v43  ;;  %v5061_v6 = vpop.f32.mrf.mxu0 }
 0x6ef   : > { %v5062_v31 = vadd.f32 %v5061_v6, %v4853_v7  ;;  %v4885_v19 = vpop.f32.mrf.mxu3  ;;  %v4883_v6 = vadd.f32 %v4882_v10, %v4673_v26 }
 0x6f1   : > { %5173 = vst.msk [vmem:[%s9524_s12 + $0x140] sm:$0xff] %vm2354_vm1, %v5062_v31  ;;  %5108 = vmatmul.f32.gmra.mxu0 %v4436_v47  ;;  %v4676_v23 = vpop.f32.mrf.mxu2 }
 0x6f5   : > { %v4053_v3 = vpop.f32.mrf.mxu1 }
 0x6f6   : > { %v4439_v18 = vmul.f32 %v10850_v37, %v4053_v3  ;;  %v5064_v38 = vpop.f32.mrf.mxu0 }
 0x6f7   : > { %v5065_v13 = vadd.f32 %v5064_v38, %v4856_v9  ;;  %v4888_v43 = vpop.f32.mrf.mxu3 }
 0x6f9   : > { %5174 = vst.msk [vmem:[%s9524_s12 + $0x148] sm:$0xff] %vm2354_vm1, %v5065_v13  ;;  %5111 = vmatmul.f32.gmra.mxu0 %v4439_v18  ;;  %v4679_v59 = vpop.f32.mrf.mxu2  ;;  %v4886_v18 = vadd.f32 %v4885_v19, %v4676_v23 }
 0x6fd   : > { %v4056_v34 = vpop.f32.mrf.mxu1 }
 0x6fe   : > { %v4442_v22 = vmul.f32 %v10851_v52, %v4056_v34  ;;  %v5067_v40 = vpop.f32.mrf.mxu0 }
 0x6ff   : > { %v5068_v53 = vadd.f32 %v5067_v40, %v4859_v42  ;;  %v4891_v9 = vpop.f32.mrf.mxu3  ;;  %v4889_v42 = vadd.f32 %v4888_v43, %v4679_v59 }
 0x701   : > { %5175 = vst.msk [vmem:[%s9524_s12 + $0x150] sm:$0xff] %vm2354_vm1, %v5068_v53  ;;  %5114 = vmatmul.f32.gmra.mxu0 %v4442_v22  ;;  %v4682_v31 = vpop.f32.mrf.mxu2 }
 0x702   : > { %v4892_v53 = vadd.f32 %v4891_v9, %v4682_v31 }
 0x705   : > { %v4059_v33 = vpop.f32.mrf.mxu1 }
 0x706   : > { %v4445_v41 = vmul.f32 %v10852_v2, %v4059_v33  ;;  %v5070_v56 = vpop.f32.mrf.mxu0 }
 0x707   : > { %v5071_v60 = vadd.f32 %v5070_v56, %v4862_v36  ;;  %v4894_v61 = vpop.f32.mrf.mxu3 }
 0x709   : > { %5176 = vst.msk [vmem:[%s9524_s12 + $0x158] sm:$0xff] %vm2354_vm1, %v5071_v60  ;;  %5117 = vmatmul.f32.gmra.mxu0 %v4445_v41  ;;  %v4685_v39 = vpop.f32.mrf.mxu2 }
 0x70a   : > { %v4895_v2 = vadd.f32 %v4894_v61, %v4685_v39 }
 0x70d   : > { %v4062_v62 = vpop.f32.mrf.mxu1 }
 0x70e   : > { %v4448_v15 = vmul.f32 %v10853_v51, %v4062_v62  ;;  %v5073_v4 = vpop.f32.mrf.mxu0 }
 0x70f   : > { %v5074_v27 = vadd.f32 %v5073_v4, %v4865_v28  ;;  %v4897_v40 = vpop.f32.mrf.mxu3 }
 0x711   : > { %5177 = vst.msk [vmem:[%s9524_s12 + $0x160] sm:$0xff] %vm2354_vm1, %v5074_v27  ;;  %5120 = vmatmul.f32.gmra.mxu0 %v4448_v15  ;;  %v4688_v22 = vpop.f32.mrf.mxu2 }
 0x712   : > { %v4898_v60 = vadd.f32 %v4897_v40, %v4688_v22 }
 0x715   : > { %v4065_v63 = vpop.f32.mrf.mxu1 }
 0x716   : > { %v4451_v8 = vmul.f32 %v10854_v32, %v4065_v63  ;;  %v5076_v14 = vpop.f32.mrf.mxu0 }
 0x717   : > { %v5077_v46 = vadd.f32 %v5076_v14, %v4868_v5  ;;  %v4900_v33 = vpop.f32.mrf.mxu3 }
 0x719   : > { %5178 = vst.msk [vmem:[%s9524_s12 + $0x168] sm:$0xff] %vm2354_vm1, %v5077_v46  ;;  %5123 = vmatmul.f32.gmra.mxu0 %v4451_v8  ;;  %v4691_v36 = vpop.f32.mrf.mxu2 }
 0x71a   : > { %v4901_v51 = vadd.f32 %v4900_v33, %v4691_v36 }
 0x71d   : > { %v4068_v16 = vpop.f32.mrf.mxu1 }
 0x71e   : > { %v4454_v21 = vmul.f32 %v10855_v11, %v4068_v16  ;;  %v5079_v12 = vpop.f32.mrf.mxu0 }
 0x71f   : > { %v5080_v35 = vadd.f32 %v5079_v12, %v4871_v55  ;;  %v4903_v50 = vpop.f32.mrf.mxu3 }
 0x721   : > { %5179 = vst.msk [vmem:[%s9524_s12 + $0x170] sm:$0xff] %vm2354_vm1, %v5080_v35  ;;  %5126 = vmatmul.f32.gmra.mxu0 %v4454_v21  ;;  %v4694_v49 = vpop.f32.mrf.mxu2 }
 0x722   : > { %v4904_v25 = vadd.f32 %v4903_v50, %v4694_v49 }
 0x725   : > { %v4071_v29 = vpop.f32.mrf.mxu1 }
 0x726   : > { %v4457_v44 = vmul.f32 %v10856_v54, %v4071_v29  ;;  %v5082_v20 = vpop.f32.mrf.mxu0 }
 0x727   : > { %v5083_v0 = vadd.f32 %v5082_v20, %v4874_v17  ;;  %v4906_v5 = vpop.f32.mrf.mxu3 }
 0x729   : > { %5180 = vst.msk [vmem:[%s9524_s12 + $0x178] sm:$0xff] %vm2354_vm1, %v5083_v0  ;;  %5129 = vmatmul.f32.gmra.mxu0 %v4457_v44  ;;  %v4697_v4 = vpop.f32.mrf.mxu2 }
 0x72a   : > { %v4907_v14 = vadd.f32 %v4906_v5, %v4697_v4 }
 0x72e   : > { %v5085_v1 = vpop.f32.mrf.mxu0 }
 0x72f   : > { %v5086_v7 = vadd.f32 %v5085_v1, %v4877_v24  ;;  %v4909_v8 = vpop.f32.mrf.mxu3 }
 0x731   : > { %5181 = vst.msk [vmem:[%s9524_s12 + $0x180] sm:$0xff] %vm2354_vm1, %v5086_v7  ;;  %v4700_v32 = vpop.f32.mrf.mxu2 }
 0x732   : > { %v4910_v21 = vadd.f32 %v4909_v8, %v4700_v32 }
 0x736   : > { %v5088_v58 = vpop.f32.mrf.mxu0 }
 0x737   : > { %v5089_v47 = vadd.f32 %v5088_v58, %v4880_v48  ;;  %v4912_v11 = vpop.f32.mrf.mxu3 }
 0x739   : > { %5182 = vst.msk [vmem:[%s9524_s12 + $0x188] sm:$0xff] %vm2354_vm1, %v5089_v47  ;;  %v4703_v16 = vpop.f32.mrf.mxu2 }
 0x73a   : > { %v4913_v35 = vadd.f32 %v4912_v11, %v4703_v16 }
 0x73e   : > { %v5091_v3 = vpop.f32.mrf.mxu0 }
 0x73f   : > { %v5092_v37 = vadd.f32 %v5091_v3, %v4883_v6  ;;  %v4915_v17 = vpop.f32.mrf.mxu3 }
 0x741   : > { %5183 = vst.msk [vmem:[%s9524_s12 + $0x190] sm:$0xff] %vm2354_vm1, %v5092_v37  ;;  %v4706_v10 = vpop.f32.mrf.mxu2 }
 0x742   : > { %v4916_v44 = vadd.f32 %v4915_v17, %v4706_v10 }
 0x746   : > { %v5094_v38 = vpop.f32.mrf.mxu0 }
 0x747   : > { %v5095_v13 = vadd.f32 %v5094_v38, %v4886_v18  ;;  %v4918_v19 = vpop.f32.mrf.mxu3 }
 0x749   : > { %5184 = vst.msk [vmem:[%s9524_s12 + $0x198] sm:$0xff] %vm2354_vm1, %v5095_v13  ;;  %v4709_v23 = vpop.f32.mrf.mxu2 }
 0x74a   : > { %v4919_v24 = vadd.f32 %v4918_v19, %v4709_v23 }
 0x74e   : > { %v5097_v34 = vpop.f32.mrf.mxu0 }
 0x74f   : > { %v5098_v52 = vadd.f32 %v5097_v34, %v4889_v42  ;;  %v4921_v43 = vpop.f32.mrf.mxu3 }
 0x751   : > { %5185 = vst.msk [vmem:[%s9524_s12 + $0x1a0] sm:$0xff] %vm2354_vm1, %v5098_v52  ;;  %v4712_v59 = vpop.f32.mrf.mxu2 }
 0x752   : > { %v4922_v48 = vadd.f32 %v4921_v43, %v4712_v59 }
 0x756   : > { %v5100_v57 = vpop.f32.mrf.mxu0 }
 0x757   : > { %v5101_v30 = vadd.f32 %v5100_v57, %v4892_v53 }
 0x759   : > { %5186 = vst.msk [vmem:[%s9524_s12 + $0x1a8] sm:$0xff] %vm2354_vm1, %v5101_v30 }
 0x75e   : > { %v5103_v41 = vpop.f32.mrf.mxu0 }
 0x75f   : > { %v5104_v56 = vadd.f32 %v5103_v41, %v4895_v2 }
 0x761   : > { %5187 = vst.msk [vmem:[%s9524_s12 + $0x1b0] sm:$0xff] %vm2354_vm1, %v5104_v56 }
 0x766   : > { %v5106_v28 = vpop.f32.mrf.mxu0 }
 0x767   : > { %v5107_v62 = vadd.f32 %v5106_v28, %v4898_v60 }
 0x769   : > { %5188 = vst.msk [vmem:[%s9524_s12 + $0x1b8] sm:$0xff] %vm2354_vm1, %v5107_v62 }
 0x76e   : > { %v5109_v15 = vpop.f32.mrf.mxu0 }
 0x76f   : > { %v5110_v27 = vadd.f32 %v5109_v15, %v4901_v51 }
 0x771   : > { %5189 = vst.msk [vmem:[%s9524_s12 + $0x1c0] sm:$0xff] %vm2354_vm1, %v5110_v27 }
 0x776   : > { %v5112_v63 = vpop.f32.mrf.mxu0 }
 0x777   : > { %v5113_v45 = vadd.f32 %v5112_v63, %v4904_v25 }
 0x779   : > { %5190 = vst.msk [vmem:[%s9524_s12 + $0x1c8] sm:$0xff] %vm2354_vm1, %v5113_v45 }
 0x77e   : > { %v5115_v46 = vpop.f32.mrf.mxu0 }
 0x77f   : > { %v5116_v55 = vadd.f32 %v5115_v46, %v4907_v14 }
 0x781   : > { %5191 = vst.msk [vmem:[%s9524_s12 + $0x1d0] sm:$0xff] %vm2354_vm1, %v5116_v55 }
 0x786   : > { %v5118_v12 = vpop.f32.mrf.mxu0 }
 0x787   : > { %v5119_v26 = vadd.f32 %v5118_v12, %v4910_v21 }
 0x789   : > { %5192 = vst.msk [vmem:[%s9524_s12 + $0x1d8] sm:$0xff] %vm2354_vm1, %v5119_v26 }
 0x78e   : > { %v5121_v29 = vpop.f32.mrf.mxu0 }
 0x78f   : > { %v5122_v54 = vadd.f32 %v5121_v29, %v4913_v35 }
 0x791   : > { %5193 = vst.msk [vmem:[%s9524_s12 + $0x1e0] sm:$0xff] %vm2354_vm1, %v5122_v54 }
 0x796   : > { %v5124_v20 = vpop.f32.mrf.mxu0 }
 0x797   : > { %v5125_v0 = vadd.f32 %v5124_v20, %v4916_v44 }
 0x799   : > { %5194 = vst.msk [vmem:[%s9524_s12 + $0x1e8] sm:$0xff] %vm2354_vm1, %v5125_v0 }
 0x79e   : > { %v5127_v1 = vpop.f32.mrf.mxu0 }
 0x79f   : > { %v5128_v7 = vadd.f32 %v5127_v1, %v4919_v24 }
 0x7a1   : > { %5195 = vst.msk [vmem:[%s9524_s12 + $0x1f0] sm:$0xff] %vm2354_vm1, %v5128_v7 }
 0x7a6   : > { %v5130_v58 = vpop.f32.mrf.mxu0 }
 0x7a7   : > { %v5131_v47 = vadd.f32 %v5130_v58, %v4922_v48 }
 0x7a9   : > { %5196 = vst.msk [vmem:[%s9524_s12 + $0x1f8] sm:$0xff] %vm2354_vm1, %v5131_v47 }
 0x7aa PF: > { %s20_s13 = sadd.s32 1, %s6339_s13  }
 0x7ab   : > { %p17_p4 = scmp.ge.s32.totalorder %s20_s13, 4  }
 0x7ad   :  { %19 = sbr.rel (!%p17_p4) target bundleno = 1 (0x1), region = 96 }

</bundles_post_ra>
